<compile_context>
chip_gen: v7x
topology: tpu7x:2x2x1
jax: 0.10.0
libtpu: 0.0.40
codegen_flags: <defaults>
</compile_context>

<pallas_src>
import functools

import jax
import jax.numpy as jnp
from jax import lax
from jax.experimental import pallas as pl
from jax.experimental.pallas import tpu as pltpu

NEG_INF = -1e30  # finite mask value: keeps the online softmax free of inf-inf NaNs


# --------------------------------------------------------------------------
# Kernel 1: QKV projection (contraction-tiled) + bias + neox RoPE + q scaling.
# grid = (token tiles [parallel], hidden contraction tiles [arbitrary])
# --------------------------------------------------------------------------
def _qkv_rope_kernel(x_ref, wqkv_ref, bias_ref, cos_ref, sin_ref,
                     q_ref, k_ref, v_ref, acc_ref,
                     *, num_heads, num_kv_heads, head_dim, scale):
    kk = pl.program_id(1)

    @pl.when(kk == 0)
    def _():
        acc_ref[...] = jnp.zeros_like(acc_ref)

    # MXU matmul in the input dtype, f32 accumulate into resident scratch.
    acc_ref[...] += jnp.dot(x_ref[...], wqkv_ref[...],
                            preferred_element_type=jnp.float32)

    @pl.when(kk == pl.num_programs(1) - 1)
    def _():
        dq = num_heads * head_dim
        dkv = num_kv_heads * head_dim
        hd2 = head_dim // 2

        qkv = acc_ref[...] + bias_ref[...].astype(jnp.float32)   # (TM, dq + 2*dkv)
        q = qkv[:, :dq]
        k = qkv[:, dq:dq + dkv]
        v = qkv[:, dq + dkv:]

        # Full-width (head_dim) tables, sign already folded into sin:
        #   cos_full = [cos, cos],  sin_fold = [-sin, +sin]
        cos = cos_ref[...][:, None, :]                            # (TM, 1, hd)
        sin = sin_ref[...][:, None, :]

        def rope(t, n):
            tm = t.shape[0]
            th = t.reshape(tm, n, head_dim)
            rot = pltpu.roll(th, shift=hd2, axis=2)               # rotate-half (XLU)
            return (th * cos + rot * sin).reshape(tm, n * head_dim)

        # Fold the softmax scale into Q so the flash kv loop has no per-step scaling.
        q_ref[...] = (rope(q, num_heads) * scale).astype(q_ref.dtype)
        k_ref[...] = rope(k, num_kv_heads).astype(k_ref.dtype)
        v_ref[...] = v.astype(v_ref.dtype)


# --------------------------------------------------------------------------
# Kernel 2: causal GQA flash attention, grouped over kv heads.
# grid = (num_kv_heads [parallel], q tiles [parallel], kv tiles [arbitrary])
# q/out blocks are (TQ, group*head_dim) column slabs of the (T, dq) layout.
# --------------------------------------------------------------------------
def _flash_attn_kernel(q_ref, k_ref, v_ref, o_ref, m_sc, l_sc, acc_sc,
                       *, group, head_dim, tq, tk):
    qi = pl.program_id(1)
    ki = pl.program_id(2)

    @pl.when(ki == 0)
    def _():
        m_sc[...] = jnp.full_like(m_sc, NEG_INF)
        l_sc[...] = jnp.zeros_like(l_sc)
        acc_sc[...] = jnp.zeros_like(acc_sc)

    def process(apply_mask):
        k_t = k_ref[...]                                          # (TK, hd)
        v_t = v_ref[...]
        if apply_mask:
            q_idx = qi * tq + lax.broadcasted_iota(jnp.int32, (tq, tk), 0)
            k_idx = ki * tk + lax.broadcasted_iota(jnp.int32, (tq, tk), 1)
            causal = q_idx >= k_idx
        for g in range(group):                                    # unrolled GQA group
            q_g = q_ref[:, g * head_dim:(g + 1) * head_dim]       # (TQ, hd) static slice
            s = lax.dot_general(q_g, k_t, (((1,), (1,)), ((), ())),
                                preferred_element_type=jnp.float32)   # (TQ, TK)
            if apply_mask:
                s = jnp.where(causal, s, NEG_INF)
            m_prev = m_sc[g]
            m_new = jnp.maximum(m_prev, s.max(axis=-1, keepdims=True))
            alpha = jnp.exp(m_prev - m_new)
            p = jnp.exp(s - m_new)
            l_sc[g] = alpha * l_sc[g] + p.sum(axis=-1, keepdims=True)
            acc_sc[g] = alpha * acc_sc[g] + jnp.dot(
                p.astype(v_t.dtype), v_t, preferred_element_type=jnp.float32)
            m_sc[g] = m_new

    # Tile classification (TK is a multiple of TQ, tiles aligned at 0).
    needs_mask = (ki * tk + (tk - 1)) > (qi * tq)            # straddles the diagonal
    fully_masked = (ki * tk) > (qi * tq + (tq - 1))          # entirely above diagonal

    @pl.when(jnp.logical_not(needs_mask))                    # interior tile: no mask
    def _():
        process(False)

    @pl.when(jnp.logical_and(needs_mask, jnp.logical_not(fully_masked)))
    def _():
        process(True)

    @pl.when(ki == pl.num_programs(2) - 1)
    def _():
        for g in range(group):
            inv_l = pl.reciprocal(l_sc[g], approx=True)       # EUP slot
            o_ref[:, g * head_dim:(g + 1) * head_dim] = (
                acc_sc[g] * inv_l).astype(o_ref.dtype)


# --------------------------------------------------------------------------
# Kernel 3: output projection (RowParallelLinear, bias=False), contraction-tiled.
# grid = (token tiles [parallel], dq contraction tiles [arbitrary])
# --------------------------------------------------------------------------
def _o_proj_kernel(a_ref, w_ref, o_ref, acc_ref):
    kk = pl.program_id(1)

    @pl.when(kk == 0)
    def _():
        acc_ref[...] = jnp.zeros_like(acc_ref)

    acc_ref[...] += jnp.dot(a_ref[...], w_ref[...],
                            preferred_element_type=jnp.float32)

    @pl.when(kk == pl.num_programs(1) - 1)
    def _():
        o_ref[...] = acc_ref[...].astype(o_ref.dtype)


# --------------------------------------------------------------------------
# Wrapper
# --------------------------------------------------------------------------
def qwen2_moe_attention(positions, hidden_states, params, *,
                        num_heads, num_kv_heads, head_dim, rope_theta=10000.0):
    orig_shape = hidden_states.shape
    H = orig_shape[-1]
    x = hidden_states.reshape(-1, H)            # (T, H) token-major, as in vLLM
    pos = positions.reshape(-1)
    T = x.shape[0]

    assert num_heads % num_kv_heads == 0
    dq = num_heads * head_dim
    dkv = num_kv_heads * head_dim
    hd2 = head_dim // 2
    group = num_heads // num_kv_heads
    scale = head_dim ** -0.5
    n_qkv = dq + 2 * dkv

    # --- token padding to a multiple of 128 (no huge single-block fallback) ---
    TM = 128
    T_pad = ((T + TM - 1) // TM) * TM
    if T_pad != T:
        x = jnp.pad(x, ((0, T_pad - T), (0, 0)))
        pos = jnp.pad(pos, (0, T_pad - T))
    TQ = TM
    TK = 256 if T_pad % 256 == 0 else 128        # wide kv tile when it divides

    # --- contraction tiles for the projection weights (VMEM-safe at real sizes) ---
    def pick_ktile(dim):
        if dim % 512 == 0 and dim > 512:
            return 512
        if dim % 256 == 0 and dim > 256:
            return 256
        return dim
    TKH = pick_ktile(H)       # hidden contraction tile, kernel 1
    TKO = pick_ktile(dq)      # dq contraction tile, kernel 3

    # --- RoPE tables: built ONCE, full head_dim width, sign-folded sin ---
    inv_freq = 1.0 / (rope_theta ** (
        jnp.arange(hd2, dtype=jnp.float32) * (2.0 / head_dim)))
    ang = pos.astype(jnp.float32)[:, None] * inv_freq[None, :]       # (T_pad, hd2)
    cos_full = jnp.concatenate([jnp.cos(ang), jnp.cos(ang)], axis=-1)   # (T_pad, hd)
    sin_fold = jnp.concatenate([-jnp.sin(ang), jnp.sin(ang)], axis=-1)  # (T_pad, hd)

    vmem_lim = 32 * 1024 * 1024

    # ---- kernel 1: QKV + bias + RoPE (+ q scaling) --------------------------
    q, k, v = pl.pallas_call(
        functools.partial(_qkv_rope_kernel, num_heads=num_heads,
                          num_kv_heads=num_kv_heads, head_dim=head_dim,
                          scale=scale),
        out_shape=(jax.ShapeDtypeStruct((T_pad, dq), x.dtype),
                   jax.ShapeDtypeStruct((T_pad, dkv), x.dtype),
                   jax.ShapeDtypeStruct((T_pad, dkv), x.dtype)),
        grid_spec=pltpu.PrefetchScalarGridSpec(
            num_scalar_prefetch=0,
            grid=(T_pad // TM, H // TKH),
            in_specs=[
                pl.BlockSpec((TM, TKH), lambda i, kk: (i, kk)),        # x tile
                pl.BlockSpec((TKH, n_qkv), lambda i, kk: (kk, 0)),     # Wqkv k-slab
                pl.BlockSpec((1, n_qkv), lambda i, kk: (0, 0)),        # bias
                pl.BlockSpec((TM, head_dim), lambda i, kk: (i, 0)),    # cos
                pl.BlockSpec((TM, head_dim), lambda i, kk: (i, 0)),    # sin (signed)
            ],
            out_specs=[
                pl.BlockSpec((TM, dq), lambda i, kk: (i, 0)),
                pl.BlockSpec((TM, dkv), lambda i, kk: (i, 0)),
                pl.BlockSpec((TM, dkv), lambda i, kk: (i, 0)),
            ],
            scratch_shapes=[pltpu.VMEM((TM, n_qkv), jnp.float32)]),
        compiler_params=pltpu.CompilerParams(
            dimension_semantics=("parallel", "arbitrary"),
            vmem_limit_bytes=vmem_lim),
    )(x, params["wqkv"], params["b_qkv"], cos_full, sin_fold)

    # ---- kernel 2: causal GQA flash attention (no layout plumbing) -----------
    nq = T_pad // TQ
    nk = T_pad // TK

    def q_map(h, qi, ki):
        return (qi, h)                                   # (TQ, group*hd) column slab

    def kv_map(h, qi, ki):
        last_needed = (qi * TQ + TQ - 1) // TK           # causal clamp: skip DMA on
        return (jnp.minimum(ki, last_needed), h)         # fully-masked kv tiles

    attn = pl.pallas_call(
        functools.partial(_flash_attn_kernel, group=group, head_dim=head_dim,
                          tq=TQ, tk=TK),
        out_shape=jax.ShapeDtypeStruct((T_pad, dq), x.dtype),
        grid_spec=pltpu.PrefetchScalarGridSpec(
            num_scalar_prefetch=0,
            grid=(num_kv_heads, nq, nk),
            in_specs=[
                pl.BlockSpec((TQ, group * head_dim), q_map),
                pl.BlockSpec((TK, head_dim), kv_map),
                pl.BlockSpec((TK, head_dim), kv_map),
            ],
            out_specs=pl.BlockSpec((TQ, group * head_dim), q_map),
            scratch_shapes=[pltpu.VMEM((group, TQ, 1), jnp.float32),          # m
                            pltpu.VMEM((group, TQ, 1), jnp.float32),          # l
                            pltpu.VMEM((group, TQ, head_dim), jnp.float32)]), # acc
        compiler_params=pltpu.CompilerParams(
            dimension_semantics=("parallel", "parallel", "arbitrary"),
            vmem_limit_bytes=vmem_lim),
    )(q, k, v)

    # ---- kernel 3: output projection -----------------------------------------
    out = pl.pallas_call(
        _o_proj_kernel,
        out_shape=jax.ShapeDtypeStruct((T_pad, H), x.dtype),
        grid_spec=pltpu.PrefetchScalarGridSpec(
            num_scalar_prefetch=0,
            grid=(T_pad // TM, dq // TKO),
            in_specs=[pl.BlockSpec((TM, TKO), lambda i, kk: (i, kk)),
                      pl.BlockSpec((TKO, H), lambda i, kk: (kk, 0))],
            out_specs=pl.BlockSpec((TM, H), lambda i, kk: (i, 0)),
            scratch_shapes=[pltpu.VMEM((TM, H), jnp.float32)]),
        compiler_params=pltpu.CompilerParams(
            dimension_semantics=("parallel", "arbitrary"),
            vmem_limit_bytes=vmem_lim),
    )(attn, params["wo"])

    out = out[:T]
    return out.reshape(orig_shape)


# --------------------------------------------------------------------------
# Pure-JAX reference of the same forward pass (correctness check).
# --------------------------------------------------------------------------
def _reference(positions, hidden_states, params, *, num_heads, num_kv_heads,
               head_dim, rope_theta):
    x = hidden_states.reshape(-1, hidden_states.shape[-1])
    T = x.shape[0]
    dq = num_heads * head_dim
    dkv = num_kv_heads * head_dim
    hd2 = head_dim // 2

    qkv = x @ params["wqkv"] + params["b_qkv"][0]
    q, k, v = qkv[:, :dq], qkv[:, dq:dq + dkv], qkv[:, dq + dkv:]

    inv_freq = 1.0 / (rope_theta ** (
        jnp.arange(hd2, dtype=jnp.float32) * (2.0 / head_dim)))
    ang = positions.astype(jnp.float32)[:, None] * inv_freq[None, :]
    cos = jnp.cos(ang)[:, None, :]
    sin = jnp.sin(ang)[:, None, :]

    def rope(t, n):
        th = t.reshape(T, n, head_dim)
        t1, t2 = th[..., :hd2], th[..., hd2:]
        return jnp.concatenate([t1 * cos - t2 * sin, t2 * cos + t1 * sin], -1)

    qh = rope(q, num_heads)                              # (T, nh, hd)
    kh = rope(k, num_kv_heads)                           # (T, nkv, hd)
    vh = v.reshape(T, num_kv_heads, head_dim)

    group = num_heads // num_kv_heads
    kh = jnp.repeat(kh, group, axis=1)                   # (T, nh, hd)
    vh = jnp.repeat(vh, group, axis=1)

    logits = jnp.einsum("qhd,khd->hqk", qh, kh) * (head_dim ** -0.5)
    mask = jnp.tril(jnp.ones((T, T), dtype=bool))
    logits = jnp.where(mask[None, :, :], logits, -jnp.inf)
    probs = jax.nn.softmax(logits, axis=-1)
    attn = jnp.einsum("hqk,khd->qhd", probs, vh).reshape(T, dq)
    return (attn @ params["wo"]).reshape(hidden_states.shape)


if __name__ == "__main__":
    # Small synthetic config (mirrors Qwen2MoeAttention constructor fields).
    # head_dim = 128 (as in real Qwen2-MoE) keeps all blocks lane-aligned;
    # T = 500 exercises padding (to 512), the wide TK=256 path, and all
    # interior / diagonal / fully-masked causal-tile branches.
    HIDDEN = 512                 # hidden_size
    NUM_HEADS = 4                # num_heads
    NUM_KV_HEADS = 2             # num_kv_heads (GQA, group=2)
    HEAD_DIM = HIDDEN // NUM_HEADS   # 128
    ROPE_THETA = 10000.0
    T = 500                      # tokens (single causal prefill sequence)

    DQ = NUM_HEADS * HEAD_DIM
    DKV = NUM_KV_HEADS * HEAD_DIM

    key = jax.random.PRNGKey(0)
    ks = jax.random.split(key, 4)
    w_scale = 0.05
    params = {
        # (in_features, out_features) layout == transpose of torch nn.Linear
        "wqkv": w_scale * jax.random.normal(ks[0], (HIDDEN, DQ + 2 * DKV), jnp.float32),
        "b_qkv": w_scale * jax.random.normal(ks[1], (1, DQ + 2 * DKV), jnp.float32),
        "wo": w_scale * jax.random.normal(ks[2], (DQ, HIDDEN), jnp.float32),
    }
    hidden_states = jax.random.normal(ks[3], (T, HIDDEN), jnp.float32)
    positions = jnp.arange(T, dtype=jnp.int32)

    out = qwen2_moe_attention(positions, hidden_states, params,
                              num_heads=NUM_HEADS, num_kv_heads=NUM_KV_HEADS,
                              head_dim=HEAD_DIM, rope_theta=ROPE_THETA)
    out = jax.block_until_ready(out)

    ref = _reference(positions, hidden_states, params,
                     num_heads=NUM_HEADS, num_kv_heads=NUM_KV_HEADS,
                     head_dim=HEAD_DIM, rope_theta=ROPE_THETA)
    assert out.shape == hidden_states.shape and out.dtype == hidden_states.dtype
    max_err = float(jnp.max(jnp.abs(out - ref)))
    assert jnp.allclose(out, ref, atol=5e-3, rtol=5e-3), \
        f"mismatch vs reference, max_err={max_err}"

    print("KERNEL_OK")
</pallas_src>

<mosaic_0001>
module attributes {stable_mosaic.version = 11 : i64} {
  func.func @_qkv_rope_kernel(%arg0: i32, %arg1: i32, %arg2: memref<128x256xf32, #tpu.memory_space<vmem>>, %arg3: memref<256x1024xf32, #tpu.memory_space<vmem>>, %arg4: memref<1x1024xf32, #tpu.memory_space<vmem>>, %arg5: memref<128x128xf32, #tpu.memory_space<vmem>>, %arg6: memref<128x128xf32, #tpu.memory_space<vmem>>, %arg7: memref<128x512xf32, #tpu.memory_space<vmem>>, %arg8: memref<128x256xf32, #tpu.memory_space<vmem>>, %arg9: memref<128x256xf32, #tpu.memory_space<vmem>>, %arg10: memref<128x1024xf32, #tpu.memory_space<vmem>>) attributes {dimension_semantics = [#tpu.dimension_semantics<parallel>, #tpu.dimension_semantics<arbitrary>], iteration_bounds = array<i64: 4, 2>, scalar_prefetch = 0 : i64, scratch_operands = 1 : i64, tpu.core_type = #tpu.core_type<tc>, window_params = [{transform_indices = @transform_0, window_bounds = array<i64: 128, 256>}, {transform_indices = @transform_1, window_bounds = array<i64: 256, 1024>}, {pipeline_mode = #tpu.pipeline_mode<synchronous>, transform_indices = @transform_2, window_bounds = array<i64: 1, 1024>}, {transform_indices = @transform_3, window_bounds = array<i64: 128, 128>}, {transform_indices = @transform_4, window_bounds = array<i64: 128, 128>}, {transform_indices = @transform_5, window_bounds = array<i64: 128, 512>}, {transform_indices = @transform_6, window_bounds = array<i64: 128, 256>}, {transform_indices = @transform_7, window_bounds = array<i64: 128, 256>}]} {
    %c0_i32 = arith.constant 0 : i32
    %0 = arith.cmpi eq, %arg1, %c0_i32 : i32
    %1 = arith.extui %0 : i1 to i32
    %c0_i32_0 = arith.constant 0 : i32
    %2 = arith.cmpi ne, %1, %c0_i32_0 : i32
    scf.if %2 {
      %cst_9 = arith.constant 0.000000e+00 : f32
      %12 = vector.broadcast %cst_9 : f32 to vector<128x1024xf32>
      %c0_10 = arith.constant 0 : index
      %c0_11 = arith.constant 0 : index
      %13 = vector.load %arg10[%c0_10, %c0_11] : memref<128x1024xf32, #tpu.memory_space<vmem>>, vector<128x1024xf32>
      tpu.vector_store %arg10[%c0_10, %c0_11], %12 {strides = array<i32>} : memref<128x1024xf32, #tpu.memory_space<vmem>>, vector<128x1024xf32>,
    } else {
    }
    %c0 = arith.constant 0 : index
    %c0_1 = arith.constant 0 : index
    %3 = vector.load %arg10[%c0, %c0_1] : memref<128x1024xf32, #tpu.memory_space<vmem>>, vector<128x1024xf32>
    %c0_2 = arith.constant 0 : index
    %c0_3 = arith.constant 0 : index
    %4 = vector.load %arg2[%c0_2, %c0_3] : memref<128x256xf32, #tpu.memory_space<vmem>>, vector<128x256xf32>
    %c0_4 = arith.constant 0 : index
    %c0_5 = arith.constant 0 : index
    %5 = vector.load %arg3[%c0_4, %c0_5] : memref<256x1024xf32, #tpu.memory_space<vmem>>, vector<256x1024xf32>
    %cst = arith.constant dense<0.000000e+00> : vector<128x1024xf32>
    %6 = tpu.matmul %4, %5, %cst {dimension_numbers = #tpu.dot_dimension_numbers<[1], [0], [0], [1], [0, 0, 1, 1], [], []>} : vector<128x256xf32>, vector<256x1024xf32>, vector<128x1024xf32> -> vector<128x1024xf32>
    %7 = arith.addf %3, %6 : vector<128x1024xf32>
    %c0_6 = arith.constant 0 : index
    %c0_7 = arith.constant 0 : index
    %8 = vector.load %arg10[%c0_6, %c0_7] : memref<128x1024xf32, #tpu.memory_space<vmem>>, vector<128x1024xf32>
    tpu.vector_store %arg10[%c0_6, %c0_7], %7 {strides = array<i32>} : memref<128x1024xf32, #tpu.memory_space<vmem>>, vector<128x1024xf32>,
    %c1_i32 = arith.constant 1 : i32
    %9 = arith.cmpi eq, %arg1, %c1_i32 : i32
    %10 = arith.extui %9 : i1 to i32
    %c0_i32_8 = arith.constant 0 : i32
    %11 = arith.cmpi ne, %10, %c0_i32_8 : i32
    scf.if %11 {
      %c0_9 = arith.constant 0 : index
      %c0_10 = arith.constant 0 : index
      %12 = vector.load %arg10[%c0_9, %c0_10] : memref<128x1024xf32, #tpu.memory_space<vmem>>, vector<128x1024xf32>
      %c0_11 = arith.constant 0 : index
      %c0_12 = arith.constant 0 : index
      %13 = vector.load %arg4[%c0_11, %c0_12] : memref<1x1024xf32, #tpu.memory_space<vmem>>, vector<1x1024xf32>
      %14 = vector.broadcast %13 : vector<1x1024xf32> to vector<128x1024xf32>
      %15 = arith.addf %12, %14 : vector<128x1024xf32>
      %16 = vector.extract_strided_slice %15 {offsets = [0, 0], sizes = [128, 512], strides = [1, 1]} : vector<128x1024xf32> to vector<128x512xf32>
      %17 = vector.extract_strided_slice %15 {offsets = [0, 512], sizes = [128, 256], strides = [1, 1]} : vector<128x1024xf32> to vector<128x256xf32>
      %18 = vector.extract_strided_slice %15 {offsets = [0, 768], sizes = [128, 256], strides = [1, 1]} : vector<128x1024xf32> to vector<128x256xf32>
      %c0_13 = arith.constant 0 : index
      %c0_14 = arith.constant 0 : index
      %19 = vector.load %arg5[%c0_13, %c0_14] : memref<128x128xf32, #tpu.memory_space<vmem>>, vector<128x128xf32>
      %20 = vector.shape_cast %19 : vector<128x128xf32> to vector<128x1x128xf32>
      %c0_15 = arith.constant 0 : index
      %c0_16 = arith.constant 0 : index
      %21 = vector.load %arg6[%c0_15, %c0_16] : memref<128x128xf32, #tpu.memory_space<vmem>>, vector<128x128xf32>
      %22 = vector.shape_cast %21 : vector<128x128xf32> to vector<128x1x128xf32>
      %23 = vector.shape_cast %16 : vector<128x512xf32> to vector<128x4x128xf32>
      %c64_i32 = arith.constant 64 : i32
      %24 = tpu.dynamic_rotate %23 by %c64_i32 dim 2 : vector<128x4x128xf32>, i32 -> vector<128x4x128xf32>
      %25 = vector.broadcast %20 : vector<128x1x128xf32> to vector<128x4x128xf32>
      %26 = arith.mulf %23, %25 : vector<128x4x128xf32>
      %27 = vector.broadcast %22 : vector<128x1x128xf32> to vector<128x4x128xf32>
      %28 = arith.mulf %24, %27 : vector<128x4x128xf32>
      %29 = arith.addf %26, %28 : vector<128x4x128xf32>
      %30 = vector.shape_cast %29 : vector<128x4x128xf32> to vector<128x512xf32>
      %cst_17 = arith.constant 0.0883883461 : f32
      %31 = vector.broadcast %cst_17 : f32 to vector<128x512xf32>
      %32 = arith.mulf %30, %31 : vector<128x512xf32>
      %c0_18 = arith.constant 0 : index
      %c0_19 = arith.constant 0 : index
      %33 = vector.load %arg7[%c0_18, %c0_19] : memref<128x512xf32, #tpu.memory_space<vmem>>, vector<128x512xf32>
      tpu.vector_store %arg7[%c0_18, %c0_19], %32 {strides = array<i32>} : memref<128x512xf32, #tpu.memory_space<vmem>>, vector<128x512xf32>,
      %34 = vector.shape_cast %17 : vector<128x256xf32> to vector<128x2x128xf32>
      %c64_i32_20 = arith.constant 64 : i32
      %35 = tpu.dynamic_rotate %34 by %c64_i32_20 dim 2 : vector<128x2x128xf32>, i32 -> vector<128x2x128xf32>
      %36 = vector.broadcast %20 : vector<128x1x128xf32> to vector<128x2x128xf32>
      %37 = arith.mulf %34, %36 : vector<128x2x128xf32>
      %38 = vector.broadcast %22 : vector<128x1x128xf32> to vector<128x2x128xf32>
      %39 = arith.mulf %35, %38 : vector<128x2x128xf32>
      %40 = arith.addf %37, %39 : vector<128x2x128xf32>
      %41 = vector.shape_cast %40 : vector<128x2x128xf32> to vector<128x256xf32>
      %c0_21 = arith.constant 0 : index
      %c0_22 = arith.constant 0 : index
      %42 = vector.load %arg8[%c0_21, %c0_22] : memref<128x256xf32, #tpu.memory_space<vmem>>, vector<128x256xf32>
      tpu.vector_store %arg8[%c0_21, %c0_22], %41 {strides = array<i32>} : memref<128x256xf32, #tpu.memory_space<vmem>>, vector<128x256xf32>,
      %c0_23 = arith.constant 0 : index
      %c0_24 = arith.constant 0 : index
      %43 = vector.load %arg9[%c0_23, %c0_24] : memref<128x256xf32, #tpu.memory_space<vmem>>, vector<128x256xf32>
      tpu.vector_store %arg9[%c0_23, %c0_24], %18 {strides = array<i32>} : memref<128x256xf32, #tpu.memory_space<vmem>>, vector<128x256xf32>,
    } else {
    }
    return
  }
  func.func @transform_0(%arg0: i32, %arg1: i32) -> (i32, i32) {
    %c0_i32 = arith.constant 0 : i32
    return %arg0, %arg1 : i32, i32
  }
  func.func @transform_1(%arg0: i32, %arg1: i32) -> (i32, i32) {
    %c0_i32 = arith.constant 0 : i32
    %c0_i32_0 = arith.constant 0 : i32
    return %arg1, %c0_i32 : i32, i32
  }
  func.func @transform_2(%arg0: i32, %arg1: i32) -> (i32, i32) {
    %c0_i32 = arith.constant 0 : i32
    %c0_i32_0 = arith.constant 0 : i32
    %c0_i32_1 = arith.constant 0 : i32
    return %c0_i32, %c0_i32_0 : i32, i32
  }
  func.func @transform_3(%arg0: i32, %arg1: i32) -> (i32, i32) {
    %c0_i32 = arith.constant 0 : i32
    %c0_i32_0 = arith.constant 0 : i32
    return %arg0, %c0_i32 : i32, i32
  }
  func.func @transform_4(%arg0: i32, %arg1: i32) -> (i32, i32) {
    %c0_i32 = arith.constant 0 : i32
    %c0_i32_0 = arith.constant 0 : i32
    return %arg0, %c0_i32 : i32, i32
  }
  func.func @transform_5(%arg0: i32, %arg1: i32) -> (i32, i32) {
    %c0_i32 = arith.constant 0 : i32
    %c0_i32_0 = arith.constant 0 : i32
    return %arg0, %c0_i32 : i32, i32
  }
  func.func @transform_6(%arg0: i32, %arg1: i32) -> (i32, i32) {
    %c0_i32 = arith.constant 0 : i32
    %c0_i32_0 = arith.constant 0 : i32
    return %arg0, %c0_i32 : i32, i32
  }
  func.func @transform_7(%arg0: i32, %arg1: i32) -> (i32, i32) {
    %c0_i32 = arith.constant 0 : i32
    %c0_i32_0 = arith.constant 0 : i32
    return %arg0, %c0_i32 : i32, i32
  }
}

</mosaic_0001>

<bundles_post_ra>
// kernel: tpu_custom_call.1
= control target key start
LH: loop header
LB: loop body
LE: loop exit
PB: predicated region body
PF: predicated region fallthrough
CT: control target
= control target key end

     0   :  { %s17926_s0 = inlined_call_operand.hbm [shape: f32[512,512], index: 0, kind: input, shape index: {}]   ;;  %s17927_s1 = inlined_call_operand.hbm [shape: f32[512,1024], index: 1, kind: input, shape index: {}]   ;;  %s17928_s2 = inlined_call_operand.hbm [shape: f32[1,1024], index: 2, kind: input, shape index: {}]   ;;  %s17929_s3 = inlined_call_operand.hbm [shape: f32[512,128], index: 3, kind: input, shape index: {}]   ;;  %s17930_s4 = inlined_call_operand.hbm [shape: f32[512,128], index: 4, kind: input, shape index: {}]   ;;  %s17931_s5 = inlined_call_operand.hbm [shape: f32[512,512], index: 5, kind: output, shape index: {0}]   ;;  %s17932_s6 = inlined_call_operand.hbm [shape: f32[512,256], index: 6, kind: output, shape index: {1}]   ;;  %s17933_s7 = inlined_call_operand.hbm [shape: f32[512,256], index: 7, kind: output, shape index: {2}]  }
   0x1   :  { %18419 = sst [smem:[#allocation343_spill]] %s17926_s0 }
   0x2   :  { %18420 = sst [smem:[#allocation344_spill]] %s17927_s1 }
   0x3   :  { %18421 = sst [smem:[#allocation345_spill]] %s17928_s2 }
   0x4   :  { %18422 = sst [smem:[#allocation346_spill]] %s17929_s3 }
   0x5   :  { %18423 = sst [smem:[#allocation347_spill]] %s17930_s4 }
   0x6   :  { %18424 = sst [smem:[#allocation348_spill]] %s17931_s5 }
   0x7   :  { %18425 = sst [smem:[#allocation349_spill]] %s17932_s6 }
   0x8   :  { %18426 = sst [smem:[#allocation350_spill]] %s17933_s7 }
   0x9   :  { %13 = vsyncpa [#allocation4], 0 }
   0xa   :  { %15 = vsyncpa [#allocation4 + $0x1], 0 }
   0xb   :  { %16 = vsyncpa [#allocation7], 0 }
   0xc   :  { %18 = vsyncpa [#allocation7 + $0x1], 0 }
   0xd   :  { %19 = vsyncpa [#allocation10], 0 }
   0xe   :  { %21 = vsyncpa [#allocation10 + $0x1], 0 }
   0xf   :  { %22 = vsyncpa [#allocation5], 0 }
  0x10   :  { %24 = vsyncpa [#allocation5 + $0x1], 0 }
  0x11   :  { %25 = vsyncpa [#allocation14], 0 }
  0x12   :  { %27 = vsyncpa [#allocation14 + $0x1], 0  ;;  %s11875_s24 = smov 0   ;;  %s11877_s25 = smov 0  }
  0x13   :  { %s11879_s26 = smov 0   ;;  %s11881_s27 = smov 0  }
  0x14   :  { %s11883_s28 = smov 0   ;;  %s11885_s29 = smov 0  }
  0x15   :  { %s11887_s30 = smov 0   ;;  %s11889_s8 = smov 0  }
  0x16   :  { %s11891_s9 = smov 0   ;;  %s11893_s10 = smov 0  }
  0x17   :  { %s11895_s11 = smov 0   ;;  %s11897_s12 = smov 0  }
  0x18   :  { %s11899_s13 = smov 0   ;;  %s11901_s14 = smov 0  }
  0x19 LB: > { %18427 = sst [smem:[#allocation22_spill]] %s11756_s24  ;;  %s11942_s15 = sadd.s32 4294967295, %s11808_s14   ;;  %s11808_s14 = sphi %s11901_s14, %s33_s14   ;;  %s11804_s13 = sphi %s11899_s13, %s19472_s13   ;;  %s11800_s12 = sphi %s11897_s12, %s19471_s12   ;;  %s11796_s11 = sphi %s11895_s11, %s19470_s11   ;;  %s11792_s10 = sphi %s11893_s10, %s19469_s10   ;;  %s11788_s9 = sphi %s11891_s9, %s19479_s9   ;;  %s11784_s8 = sphi %s11889_s8, %s19478_s8   ;;  %s11780_s30 = sphi %s11887_s30, %s19468_s30   ;;  %s11776_s29 = sphi %s11885_s29, %s19477_s29   ;;  %s11772_s28 = sphi %s11883_s28, %s19476_s28   ;;  %s11768_s27 = sphi %s11881_s27, %s19475_s27   ;;  %s11764_s26 = sphi %s11879_s26, %s19474_s26   ;;  %s11760_s25 = sphi %s11877_s25, %s19473_s25   ;;  %s11756_s24 = sphi %s11875_s24, %s19466_s24  }
  0x1a   : > { %18428 = sst [smem:[#allocation23_spill]] %s11760_s25  ;;  %s17934_s16 = sadd.s32 4294967294, %s11808_s14  }
  0x1b   : > { %18429 = sst [smem:[#allocation24_spill]] %s11784_s8  ;;  %p67_p0 = scmp.ne.s32.totalorder %s11784_s8, %s11780_s30 }
  0x1c   : > { %18430 = sst [smem:[#allocation25_spill]] %s11792_s10  ;;  %p17941_p1 = scmp.eq.s32.totalorder %s11942_s15, 0 }
  0x1d   : > { %18431 = sst [smem:[#allocation26_spill]] %s11796_s11  ;;  %p93_p2 = scmp.ne.s32.totalorder %s11772_s28, %s11768_s27 }
  0x1e   : > { %18432 = sst [smem:[#allocation27_spill]] %s11800_s12  ;;  %p140_p3 = scmp.ne.s32.totalorder %s11760_s25, %s11756_s24 }
  0x1f   : > { %18433 = sst [smem:[#allocation28_spill]] %s11804_s13  ;;  %p11952_p4 = por %p17941_p1, %p67_p0 }
  0x20   : > { %18434 = sst [smem:[#allocation29_spill]] %s11942_s15  ;;  %p11959_p6 = por %p93_p2, %p17941_p1 }
  0x21   : > { %s18435_s17 = scalar_select %p11952_p4, 1, 0 }
  0x22   : > { %s18437_s18 = scalar_select %p11959_p6, 1, 0 }
  0x23   : > { %18436 = sst [smem:[#allocation30_spill]] %s18435_s17  ;;  %p11965_p7 = por %p140_p3, %p17941_p1 }
  0x24   : > { %18438 = sst [smem:[#allocation31_spill]] %s18437_s18  ;;  %p196_p8 = scmp.eq.s32.totalorder %s17934_s16, 7 }
  0x25   : > { %s18439_s19 = scalar_select %p11965_p7, 1, 0 }
  0x26   : > { %p10920_p9 = scmp.ge.s32.totalorder %s11808_s14, 1  ;;  %p255_p10 = scmp.lt.s32.totalorder %s11808_s14, 9 }
  0x27   : > { %18440 = sst [smem:[#allocation32_spill]] %s18439_s19  ;;  %p11973_p11 = por %p196_p8, %p140_p3 }
  0x28   : > { %p11977_p12 = pnand %p10920_p9, %p255_p10  ;;  %s11810_s22 = smov [#allocation8]  }
  0x29   : > { %s18441_s20 = scalar_select %p11973_p11, 1, 0 }
  0x2a   : > { %s18443_s21 = scalar_select %p11977_p12, 1, 0 }
  0x2b   : > { %18442 = sst [smem:[#allocation33_spill]] %s18441_s20  ;;  %s268_s23 = sshll.u32 %s11810_s22, 4  ;;  %s269_s23 = int_to_ptr.vmem [resolvable:$true] %s268_s23 }
  0x2c   : > { %18444 = sst [smem:[#allocation34_spill]] %s18443_s21  ;;  %p11248_p13 = pneg %p11977_p12 }
  0x2d   : > { %s18446_s2 = sld [smem:[#allocation345_spill]] }
  0x2e   : > { %p11985_p0 = pnand %p11248_p13, %p17941_p1 }
  0x30   : > { %p11444_p8 = pneg %p11985_p0 }
  0x33   : > { %s11442_s5 = scalar_lea.hbm %s18446_s2, 128 }
  0x34   : > { %p11443_p3 = scmp.ne.s32.totalorder %s18446_s2, %s11442_s5  ;;  %p11449_p13 = scmp.lt.u32.totalorder %s11442_s5, %s18446_s2 }
  0x36   : > { %p11445_p9 = pnand %p11444_p8, %p11443_p3 }
  0x38   : > { %p11446_p10 = pneg %p11445_p9 }
  0x3a   : > { %p11451_p1 = pnand %p11449_p13, %p11446_p10 }
  0x3c   : > { %11454 = shalt.err (!%p11451_p1)
}
  0x3d   : > { %s11455_s30 = scalar_lea.vmem %s269_s23, 128  ;;  %p11463_p7 = scmp.lt.s32.totalorder %s269_s23, %s269_s23 }
  0x3e   : > { %p11456_p5 = scmp.ne.s32.totalorder %s269_s23, %s11455_s30  ;;  %p11464_p6 = scmp.lt.s32.totalorder %s11455_s30, %s11455_s30 }
  0x40   : > { %p11458_p2 = pnand %p11456_p5, %p11444_p8  ;;  %p11465_p4 = por %p11464_p6, %p11463_p7 }
  0x42   : > { %p11459_p11 = pneg %p11458_p2 }
  0x44   : > { %p11466_p12 = pnand %p11465_p4, %p11459_p11 }
  0x46   : > { %11469 = shalt.err (!%p11466_p12)
}
  0x47   : > { %11251 = dma.hbm_to_vmem [thread:$0]  (!%p11985_p0), %s18446_s2, 128, %s269_s23, [#allocation7]  }
  0x48   : > { %p134_p1 = scmp.ne.s32.totalorder %s11764_s26, %s11760_s25  ;;  %p17950_p4 = scmp.lt.s32.totalorder %s11808_s14, 8 }
  0x49   : > { %s17949_s5 = sand.u32 1, %s11808_s14   ;;  %s327_s24 = sand.u32 1, %s11764_s26  }
  0x4a   : > { %p18447_p5 = scmp.eq.s32.totalorder %s11808_s14, 0  ;;  %p18448_p7 = scmp.eq.s32.totalorder %s11942_s15, 7 }
  0x4b   : > { %s12021_s20 = sshll.u32 %s327_s24, 7  ;;  %s17946_s27 = sshll.u32 %s11804_s13, 11 }
  0x4c   : > { %p136_p6 = por %p134_p1, %p18447_p5  ;;  %p12017_p11 = por %p18448_p7, %p134_p1 }
  0x4d   : > { %s18451_s3 = sld [smem:[#allocation346_spill]]  ;;  %s329_s6 = scalar_lea.vmem [#allocation9], %s12021_s20 }
  0x4e   : > { %s18449_s11 = scalar_select %p12017_p11, 1, 0 }
  0x4f   : > { %s336_s7 = sshll.u32 %s329_s6, 4  ;;  %p12034_p12 = pnand %p17950_p4, %p136_p6  ;;  %s12038_s7 = int_to_ptr.vmem [resolvable:$true] %s336_s7 }
  0x50   : > { %18450 = sst [smem:[#allocation35_spill]] %s18449_s11  ;;  %s12042_s24 = scalar_lea.sflag [#allocation10], %s17949_s5 }
  0x51   : > { %18453 = sst [smem:[#allocation36_spill]] %s12042_s24  ;;  %p17967_p2 = pneg %p12034_p12 }
  0x53   : > { %s12029_s23 = scalar_lea.hbm %s18451_s3, %s17946_s27  ;;  %s11475_s27 = scalar_lea.hbm %s18451_s3, 8192 }
  0x54   : > { %s11470_s30 = scalar_lea.hbm %s12029_s23, 2048  ;;  %p11476_p9 = scmp.lt.u32.totalorder %s12029_s23, %s18451_s3 }
  0x55   : > { %p11471_p0 = scmp.ne.s32.totalorder %s12029_s23, %s11470_s30  ;;  %p11477_p10 = scmp.lt.u32.totalorder %s11475_s27, %s11470_s30 }
  0x56   : > { %p11479_p1 = scmp.lt.u32.totalorder %s11470_s30, %s12029_s23 }
  0x57   : > { %p11473_p3 = pnand %p17967_p2, %p11471_p0  ;;  %p11478_p13 = por %p11477_p10, %p11476_p9 }
  0x59   : > { %p11474_p8 = pneg %p11473_p3  ;;  %p11480_p5 = por %p11479_p1, %p11478_p13 }
  0x5b   : > { %p11481_p6 = pnand %p11480_p5, %p11474_p8 }
  0x5d   : > { %11484 = shalt.err (!%p11481_p6)
}
  0x5e   : > { %s11485_s5 = scalar_lea.vmem %s12038_s7, 2048  ;;  %s11811_s22 = smov [#allocation9]  }
  0x5f   : > { %p11486_p7 = scmp.ne.s32.totalorder %s12038_s7, %s11485_s5  ;;  %s11490_s6 = sshll.u32 %s11811_s22, 4  ;;  %s11491_s6 = int_to_ptr.vmem [resolvable:$false] %s11490_s6 }
  0x60   : > { %s11492_s2 = scalar_lea.vmem %s11491_s6, 4096  ;;  %p11493_p4 = scmp.lt.s32.totalorder %s12038_s7, %s11491_s6 }
  0x61   : > { %p11488_p0 = pnand %p11486_p7, %p17967_p2  ;;  %p11494_p9 = scmp.lt.s32.totalorder %s11492_s2, %s11485_s5 }
  0x63   : > { %p11489_p3 = pneg %p11488_p0  ;;  %p11495_p10 = por %p11494_p9, %p11493_p4 }
  0x65   : > { %p11496_p13 = pnand %p11495_p10, %p11489_p3 }
  0x67   : > { %11499 = shalt.err (!%p11496_p13)
}
  0x68   : > { %s17956_s11 = smov 128   ;;  %s17957_s5 = smov 8  }
  0x69   : > { %11261 = dma.hbm_to_vmem [thread:$0]  (!%p12034_p12), %s12029_s23, 2048, %s12038_s7, %s12042_s24, %s17956_s11, %s17956_s11, %s17957_s5  }
  0x6a   : > { %s18454_s27 = sshll.u32 %s11804_s13, 11  ;;  %s18455_s4 = sld [smem:[#allocation347_spill]] }
  0x6b   : > { %s350_s2 = scalar_lea.vmem [#allocation11], %s12021_s20  ;;  %s42_s10 = sadd.s32 1, %s11800_s12 }
  0x6c   : > { %s357_s3 = sshll.u32 %s350_s2, 4  ;;  %s54_s19 = sadd.s32 1, %s11788_s9  ;;  %s12081_s3 = int_to_ptr.vmem [resolvable:$true] %s357_s3 }
  0x6d   : > { %p43_p4 = scmp.ge.s32.totalorder %s42_s10, 2  ;;  %p61_p8 = scmp.ne.s32.totalorder %s11788_s9, %s11784_s8 }
  0x6e   : > { %s279_s25 = sand.u32 1, %s11788_s9   ;;  %s10925_s18 = sshll.u32 %s11800_s12, 1 }
  0x6f   : > { %s19481_s10 = smov (%p43_p4, %s42_s10), 0  ;;  %s18457_s23 = sadd.s32 1, %s11804_s13 }
  0x70   : > { %s12078_s6 = scalar_lea.hbm %s18455_s4, %s18454_s27  ;;  %18456 = sst [smem:[#allocation37_spill]] %s19481_s10 }
  0x71   : > { %s19483_s23 = smov (!%p43_p4, %s18457_s23), %s11804_s13  ;;  %s12096_s20 = ssub.s32 %s11800_s12, %s19481_s10 }
  0x72   : > { %p18458_p1 = scmp.eq.s32.totalorder %s11808_s14, 0  ;;  %p47_p6 = scmp.ge.s32.totalorder %s19483_s23, 4 }
  0x73   : > { %s10923_s27 = sshll.u32 %s279_s25, 8  ;;  %s10963_s30 = sshll.u32 %s11804_s13, 6 }
  0x74   : > { %p12100_p5 = por %p18458_p1, %p61_p8  ;;  %s19485_s23 = smov (%p47_p6, %s19483_s23), 0 }
  0x75   : > { %18460 = sst [smem:[#allocation38_spill]] %s19485_s23  ;;  %s49_s22 = ssub.s32 %s11804_s13, %s19485_s23 }
  0x76   : > { %s290_s2 = sadd.s32 %s10963_s30, %s10925_s18  ;;  %s51_s11 = sor.u32 %s12096_s20, %s49_s22 }
  0x77   : > { %p125_p0 = scmp.eq.s32.totalorder %s49_s22, 0  ;;  %p52_p3 = scmp.eq.s32.totalorder %s51_s11, 0 }
  0x78   : > { %s10927_s5 = sshll.u32 %s290_s2, 7  ;;  %s18461_s10 = sadd.s32 1, %s11764_s26 }
  0x79   : > { %s12114_s15 = scalar_select %p125_p0, %s11764_s26, %s18461_s10  }
  0x7a   : > { %s12117_s17 = scalar_select %p52_p3, %s11788_s9, %s54_s19  }
  0x7b   : > { %s18462_s0 = sld [smem:[#allocation343_spill]]  ;;  %s283_s23 = scalar_lea.vmem [#allocation3], %s10923_s27 }
  0x7c   : > { %s293_s18 = sshll.u32 %s283_s23, 4  ;;  %p18463_p9 = scmp.lt.s32.totalorder %s11808_s14, 8  ;;  %s12124_s18 = int_to_ptr.vmem [resolvable:$true] %s293_s18 }
  0x7d   : > { %s12134_s19 = scalar_lea.sflag [#allocation4], %s279_s25 }
  0x7e   : > { %p12130_p10 = pnand %p18463_p9, %p12100_p5 }
  0x80   : > { %p11502_p4 = pneg %p12130_p10 }
  0x81   : > { %s12122_s24 = scalar_lea.hbm %s18462_s0, %s10927_s5  ;;  %s11505_s5 = scalar_lea.hbm %s18462_s0, 32768 }
  0x82   : > { %s11500_s8 = scalar_lea.hbm %s12122_s24, 4096  ;;  %p11506_p5 = scmp.lt.u32.totalorder %s12122_s24, %s18462_s0 }
  0x83   : > { %p11501_p13 = scmp.ne.s32.totalorder %s12122_s24, %s11500_s8  ;;  %p11507_p6 = scmp.lt.u32.totalorder %s11505_s5, %s11500_s8 }
  0x84   : > { %p11509_p3 = scmp.lt.u32.totalorder %s11500_s8, %s12122_s24 }
  0x85   : > { %p11503_p8 = pnand %p11502_p4, %p11501_p13  ;;  %p11508_p0 = por %p11507_p6, %p11506_p5 }
  0x87   : > { %p11504_p1 = pneg %p11503_p8  ;;  %p11510_p9 = por %p11509_p3, %p11508_p0 }
  0x89   : > { %p11511_p2 = pnand %p11510_p9, %p11504_p1 }
  0x8b   : > { %11514 = shalt.err (!%p11511_p2)
}
  0x8c   : > { %s11515_s25 = scalar_lea.vmem %s12124_s18, 4096  ;;  %s11814_s27 = smov [#allocation3]  }
  0x8d   : > { %p11516_p13 = scmp.ne.s32.totalorder %s12124_s18, %s11515_s25  ;;  %s11520_s30 = sshll.u32 %s11814_s27, 4  ;;  %s11521_s30 = int_to_ptr.vmem [resolvable:$false] %s11520_s30 }
  0x8e   : > { %s11522_s22 = scalar_lea.vmem %s11521_s30, 8192  ;;  %p11523_p11 = scmp.lt.s32.totalorder %s12124_s18, %s11521_s30 }
  0x8f   : > { %p11518_p8 = pnand %p11516_p13, %p11502_p4  ;;  %p11524_p5 = scmp.lt.s32.totalorder %s11522_s22, %s11515_s25 }
  0x91   : > { %p11519_p7 = pneg %p11518_p8  ;;  %p11525_p6 = por %p11524_p5, %p11523_p11 }
  0x93   : > { %p11526_p0 = pnand %p11525_p6, %p11519_p7 }
  0x95   : > { %11529 = shalt.err (!%p11526_p0)
}
  0x96   : > { %s11815_s2 = smov 512   ;;  %s11816_s8 = smov 256  }
  0x97   : > { %s11817_s21 = smov 16   ;;  %s10965_s11 = sshll.u32 %s11800_s12, 15 }
  0x98   : > { %11255 = dma.hbm_to_vmem [thread:$0]  (!%p12130_p10), %s12122_s24, 4096, %s12124_s18, %s12134_s19, %s11815_s2, %s11816_s8, %s11817_s21  }
  0x99   : > { %s18465_s1 = sld [smem:[#allocation344_spill]]  ;;  %s80_s25 = sadd.s32 1, %s11776_s29 }
  0x9a   : > { %p87_p11 = scmp.ne.s32.totalorder %s11776_s29, %s11772_s28  ;;  %p18466_p2 = scmp.eq.s32.totalorder %s12096_s20, 0 }
  0x9b   : > { %p18467_p7 = scmp.eq.s32.totalorder %s11808_s14, 0  ;;  %s305_s30 = sand.u32 1, %s11776_s29  }
  0x9c   : > { %s12174_s27 = scalar_select %p18466_p2, %s11776_s29, %s80_s25  }
  0x9d   : > { %p89_p4 = por %p87_p11, %p18467_p7  ;;  %s10928_s10 = sshll.u32 %s305_s30, 11 }
  0x9e   : > { %p18468_p10 = scmp.lt.s32.totalorder %s11808_s14, 8  ;;  %s307_s18 = scalar_lea.vmem [#allocation6], %s10928_s10 }
  0x9f   : > { %s12166_s7 = scalar_lea.hbm %s18465_s1, %s10965_s11  ;;  %s315_s19 = sshll.u32 %s307_s18, 4  ;;  %s12185_s19 = int_to_ptr.vmem [resolvable:$true] %s315_s19 }
  0xa0   : > { %p12181_p1 = pnand %p18468_p10, %p89_p4  ;;  %s18470_s20 = sand.u32 1, %s11808_s14  }
  0xa1   : > { %s12189_s22 = scalar_lea.sflag [#allocation7], %s18470_s20  ;;  %s11530_s2 = scalar_lea.hbm %s12166_s7, 32768 }
  0xa2   : > { %p11531_p3 = scmp.ne.s32.totalorder %s12166_s7, %s11530_s2  ;;  %p11532_p9 = pneg %p12181_p1 }
  0xa3   : > { %s11535_s11 = scalar_lea.hbm %s18465_s1, 65536  ;;  %p11536_p5 = scmp.lt.u32.totalorder %s12166_s7, %s18465_s1 }
  0xa4   : > { %p11533_p13 = pnand %p11532_p9, %p11531_p3  ;;  %p11537_p6 = scmp.lt.u32.totalorder %s11535_s11, %s11530_s2 }
  0xa5   : > { %p11539_p11 = scmp.lt.u32.totalorder %s11530_s2, %s12166_s7 }
  0xa6   : > { %p11534_p8 = pneg %p11533_p13  ;;  %p11538_p0 = por %p11537_p6, %p11536_p5 }
  0xa8   : > { %p11540_p2 = por %p11539_p11, %p11538_p0 }
  0xaa   : > { %p11541_p7 = pnand %p11540_p2, %p11534_p8 }
  0xac   : > { %11544 = shalt.err (!%p11541_p7)
}
  0xad   : > { %s11545_s25 = scalar_lea.vmem %s12185_s19, 32768  ;;  %s11818_s30 = smov [#allocation6]  }
  0xae   : > { %p11546_p4 = scmp.ne.s32.totalorder %s12185_s19, %s11545_s25  ;;  %s11550_s10 = sshll.u32 %s11818_s30, 4  ;;  %s11551_s10 = int_to_ptr.vmem [resolvable:$false] %s11550_s10 }
  0xaf   : > { %s11552_s18 = scalar_lea.vmem %s11551_s10, 65536  ;;  %p11553_p13 = scmp.lt.s32.totalorder %s12185_s19, %s11551_s10 }
  0xb0   : > { %p11548_p10 = pnand %p11546_p4, %p11532_p9  ;;  %p11554_p5 = scmp.lt.s32.totalorder %s11552_s18, %s11545_s25 }
  0xb2   : > { %p11549_p3 = pneg %p11548_p10  ;;  %p11555_p6 = por %p11554_p5, %p11553_p13 }
  0xb4   : > { %p11556_p0 = pnand %p11555_p6, %p11549_p3 }
  0xb6   : > { %11559 = shalt.err (!%p11556_p0)
}
  0xb7   : > { %s11819_s20 = smov 1024   ;;  %s11820_s2 = smov 64  }
  0xb8   : > { %11258 = dma.hbm_to_vmem [thread:$0]  (!%p12181_p1), %s12166_s7, 32768, %s12185_s19, %s12189_s22, %s11819_s20, %s11819_s20, %s11820_s2  }
  0xb9   : > { %s11560_s8 = scalar_lea.hbm %s12078_s6, 2048  ;;  %p18471_p8 = pneg %p12034_p12 }
  0xba   : > { %p11561_p9 = scmp.ne.s32.totalorder %s12078_s6, %s11560_s8  ;;  %s11565_s5 = scalar_lea.hbm %s18455_s4, 8192 }
  0xbb   : > { %p11566_p7 = scmp.lt.u32.totalorder %s12078_s6, %s18455_s4  ;;  %p11567_p4 = scmp.lt.u32.totalorder %s11565_s5, %s11560_s8 }
  0xbc   : > { %p11563_p11 = pnand %p11561_p9, %p18471_p8  ;;  %p11569_p3 = scmp.lt.u32.totalorder %s11560_s8, %s12078_s6 }
  0xbd   : > { %p11568_p10 = por %p11567_p4, %p11566_p7 }
  0xbe   : > { %p11564_p2 = pneg %p11563_p11 }
  0xbf   : > { %p11570_p13 = por %p11569_p3, %p11568_p10 }
  0xc1   : > { %p11571_p5 = pnand %p11570_p13, %p11564_p2 }
  0xc3   : > { %11574 = shalt.err (!%p11571_p5)
}
  0xc4   : > { %s11575_s7 = scalar_lea.vmem %s12081_s3, 2048  ;;  %p18472_p6 = pmov %p18471_p8 }
  0xc5   : > { %p11576_p1 = scmp.ne.s32.totalorder %s12081_s3, %s11575_s7  ;;  %s11821_s24 = smov [#allocation11]  }
  0xc6   : > { %s11580_s19 = sshll.u32 %s11821_s24, 4  ;;  %s11581_s19 = int_to_ptr.vmem [resolvable:$false] %s11580_s19 }
  0xc7   : > { %p11578_p0 = pnand %p11576_p1, %p18472_p6  ;;  %s11582_s22 = scalar_lea.vmem %s11581_s19, 4096 }
  0xc8   : > { %p11583_p8 = scmp.lt.s32.totalorder %s12081_s3, %s11581_s19  ;;  %p11584_p11 = scmp.lt.s32.totalorder %s11582_s22, %s11575_s7 }
  0xc9   : > { %p11579_p9 = pneg %p11578_p0 }
  0xca   : > { %p11585_p7 = por %p11584_p11, %p11583_p8 }
  0xcc   : > { %p11586_p4 = pnand %p11585_p7, %p11579_p9 }
  0xce   : > { %11589 = shalt.err (!%p11586_p4)
}
  0xcf   : > { %s18473_s30 = smov 8   ;;  %s18474_s10 = smov 128  }
  0xd0   : > { %s18475_s18 = sld [smem:[#allocation36_spill]]  ;;  %s18476_s20 = sld [smem:[#allocation34_spill]] }
  0xd6   : > { %11264 = dma.hbm_to_vmem [thread:$0]  (!%p12034_p12), %s12078_s6, 2048, %s12081_s3, %s18475_s18, %s18474_s10, %s18474_s10, %s18473_s30  }
  0xd7   : > { %p18477_p2 = scmp.ne.s32.totalorder %s18476_s20, 0 }
  0xd8   : > { %s18478_s2 = sld [smem:[#allocation24_spill]] (!%p18477_p2)  ;;  %s18479_s8 = sld [smem:[#allocation30_spill]] (!%p18477_p2) }
  0xd9   : > { %369 = sbr.rel (%p18477_p2) target bundleno = 1655 (0x677), region = 40 }
  0xde   : > { %s371_s21 = sand.u32 (!%p18477_p2), 1, %s18478_s2   ;;  %p18480_p10 = scmp.ne.s32.totalorder (!%p18477_p2), %s18479_s8, 0 }
  0xdf   : > { %s10939_s11 = sshll.u32 (!%p18477_p2), %s371_s21, 8  ;;  %s372_s5 = scalar_lea.sflag (!%p18477_p2), [#allocation4], %s371_s21 }
  0xe0   : > { %s12247_s23 = scalar_lea.vmem [#allocation3], %s10939_s11 }
  0xe1   : > { %11731 = dma.done.wait (%p18480_p10), %s372_s5, 4096  }
  0xe2   : > { %11733 = vsyncadd (%p18480_p10), %s372_s5, 4294963200  ;;  %s18481_s16 = sld [smem:[#allocation29_spill]]  ;;  %s18482_s25 = sld [smem:[#allocation31_spill]] }
  0xe3   : > { %s382_s3 = sand.u32 1, %s11772_s28  }
  0xe4   : > { %s10940_s6 = sshll.u32 %s382_s3, 11 }
  0xe5   : > { %s12258_s19 = scalar_lea.vmem [#allocation6], %s10940_s6 }
  0xe8   : > { %s12254_s7 = sand.u32 1, %s18481_s16   ;;  %p18483_p12 = scmp.ne.s32.totalorder %s18482_s25, 0 }
  0xe9   : > { %s381_s24 = scalar_lea.sflag [#allocation7], %s12254_s7 }
  0xea   : > { %11735 = dma.done.wait (%p18483_p12), %s381_s24, 32768  }
  0xeb   : > { %11737 = vsyncadd (%p18483_p12), %s381_s24, 4294934528  ;;  %p18484_p3 = scmp.eq.s32.totalorder %s18481_s16, 0 }
  0xed   : > { %11739 = dma.done.wait (%p18484_p3), [#allocation7], 128   ;;  %p18485_p13 = pmov %p18484_p3 }
  0xee   : > { %s18486_s22 = sld [smem:[#allocation23_spill]]  ;;  %s18487_s30 = sld [smem:[#allocation32_spill]] }
  0xef   : > { %11741 = vsyncadd (%p18485_p13), [#allocation7], 4294967168  ;;  %s394_s20 = scalar_lea.sflag [#allocation10], %s12254_s7 }
  0xf4   : > { %s12269_s10 = sand.u32 1, %s18486_s22   ;;  %p18488_p5 = scmp.ne.s32.totalorder %s18487_s30, 0 }
  0xf5   : > { %s10942_s18 = sshll.u32 %s12269_s10, 7 }
  0xf6   : > { %s12273_s2 = scalar_lea.vmem [#allocation9], %s10942_s18 }
  0xf7   : > { %11743 = dma.done.wait (%p18488_p5), %s394_s20, 4096  }
  0xf8   : > { %11745 = vsyncadd (%p18488_p5), %s394_s20, 4294963200  ;;  %s10944_s8 = sshll.u32 %s12269_s10, 9  ;;  %s10945_s21 = sshll.u32 %s12269_s10, 8 }
  0xf9   : > { %s12281_s11 = scalar_lea.vmem [#allocation11], %s10942_s18  ;;  %s12283_s5 = scalar_lea.vmem [#allocation12], %s10944_s8 }
  0xfa   : > { %s12285_s16 = scalar_lea.vmem [#allocation13], %s10945_s21  ;;  %s12287_s25 = scalar_lea.vmem [#allocation15], %s10945_s21 }
  0xfb   : > { %s18489_s3 = sld [smem:[#allocation25_spill]] }
 0x101   : > { %p10947_p1 = scmp.ne.s32.totalorder %s18489_s3, 0 }
 0x102   : > { %v11822_v0 = vmov (!%p10947_p1), 0.0  }
 0x103   : > { %473 = sbr.rel (%p10947_p1) target bundleno = 323 (0x143), region = 64  ;;  %474 = vst [vmem:[#allocation2] sm:$0xff] (!%p10947_p1), %v11822_v0  ;;  %475 = vst [vmem:[#allocation2 + $0x8] sm:$0xff] (!%p10947_p1), %v11822_v0 }
 0x104   : > { %476 = vst [vmem:[#allocation2 + $0x10] sm:$0xff] (!%p10947_p1), %v11822_v0  ;;  %477 = vst [vmem:[#allocation2 + $0x18] sm:$0xff] (!%p10947_p1), %v11822_v0 }
 0x105   : > { %478 = vst [vmem:[#allocation2 + $0x20] sm:$0xff] (!%p10947_p1), %v11822_v0  ;;  %479 = vst [vmem:[#allocation2 + $0x28] sm:$0xff] (!%p10947_p1), %v11822_v0 }
 0x106   : > { %480 = vst [vmem:[#allocation2 + $0x30] sm:$0xff] (!%p10947_p1), %v11822_v0  ;;  %481 = vst [vmem:[#allocation2 + $0x38] sm:$0xff] (!%p10947_p1), %v11822_v0 }
 0x107   : > { %482 = vst [vmem:[#allocation2 + $0x40] sm:$0xff] (!%p10947_p1), %v11822_v0  ;;  %483 = vst [vmem:[#allocation2 + $0x48] sm:$0xff] (!%p10947_p1), %v11822_v0 }
 0x108   : > { %484 = vst [vmem:[#allocation2 + $0x50] sm:$0xff] (!%p10947_p1), %v11822_v0  ;;  %485 = vst [vmem:[#allocation2 + $0x58] sm:$0xff] (!%p10947_p1), %v11822_v0 }
 0x109   : > { %486 = vst [vmem:[#allocation2 + $0x60] sm:$0xff] (!%p10947_p1), %v11822_v0  ;;  %487 = vst [vmem:[#allocation2 + $0x68] sm:$0xff] (!%p10947_p1), %v11822_v0 }
 0x10a   : > { %488 = vst [vmem:[#allocation2 + $0x70] sm:$0xff] %v11822_v0  ;;  %489 = vst [vmem:[#allocation2 + $0x78] sm:$0xff] %v11822_v0 }
 0x10b   : > { %490 = vst [vmem:[#allocation2 + $0x80] sm:$0xff] %v11822_v0  ;;  %491 = vst [vmem:[#allocation2 + $0x88] sm:$0xff] %v11822_v0 }
 0x10c   : > { %492 = vst [vmem:[#allocation2 + $0x90] sm:$0xff] %v11822_v0  ;;  %493 = vst [vmem:[#allocation2 + $0x98] sm:$0xff] %v11822_v0 }
 0x10d   : > { %494 = vst [vmem:[#allocation2 + $0xa0] sm:$0xff] %v11822_v0  ;;  %495 = vst [vmem:[#allocation2 + $0xa8] sm:$0xff] %v11822_v0 }
 0x10e   : > { %496 = vst [vmem:[#allocation2 + $0xb0] sm:$0xff] %v11822_v0  ;;  %497 = vst [vmem:[#allocation2 + $0xb8] sm:$0xff] %v11822_v0 }
 0x10f   : > { %498 = vst [vmem:[#allocation2 + $0xc0] sm:$0xff] %v11822_v0  ;;  %499 = vst [vmem:[#allocation2 + $0xc8] sm:$0xff] %v11822_v0 }
 0x110   : > { %500 = vst [vmem:[#allocation2 + $0xd0] sm:$0xff] %v11822_v0  ;;  %501 = vst [vmem:[#allocation2 + $0xd8] sm:$0xff] %v11822_v0 }
 0x111   : > { %502 = vst [vmem:[#allocation2 + $0xe0] sm:$0xff] %v11822_v0  ;;  %503 = vst [vmem:[#allocation2 + $0xe8] sm:$0xff] %v11822_v0 }
 0x112   : > { %504 = vst [vmem:[#allocation2 + $0xf0] sm:$0xff] %v11822_v0  ;;  %505 = vst [vmem:[#allocation2 + $0xf8] sm:$0xff] %v11822_v0 }
 0x113   : > { %506 = vst [vmem:[#allocation2 + $0x100] sm:$0xff] %v11822_v0  ;;  %507 = vst [vmem:[#allocation2 + $0x108] sm:$0xff] %v11822_v0 }
 0x114   : > { %508 = vst [vmem:[#allocation2 + $0x110] sm:$0xff] %v11822_v0  ;;  %509 = vst [vmem:[#allocation2 + $0x118] sm:$0xff] %v11822_v0 }
 0x115   : > { %510 = vst [vmem:[#allocation2 + $0x120] sm:$0xff] %v11822_v0  ;;  %511 = vst [vmem:[#allocation2 + $0x128] sm:$0xff] %v11822_v0 }
 0x116   : > { %512 = vst [vmem:[#allocation2 + $0x130] sm:$0xff] %v11822_v0  ;;  %513 = vst [vmem:[#allocation2 + $0x138] sm:$0xff] %v11822_v0 }
 0x117   : > { %514 = vst [vmem:[#allocation2 + $0x140] sm:$0xff] %v11822_v0  ;;  %515 = vst [vmem:[#allocation2 + $0x148] sm:$0xff] %v11822_v0 }
 0x118   : > { %516 = vst [vmem:[#allocation2 + $0x150] sm:$0xff] %v11822_v0  ;;  %517 = vst [vmem:[#allocation2 + $0x158] sm:$0xff] %v11822_v0 }
 0x119   : > { %518 = vst [vmem:[#allocation2 + $0x160] sm:$0xff] %v11822_v0  ;;  %519 = vst [vmem:[#allocation2 + $0x168] sm:$0xff] %v11822_v0 }
 0x11a   : > { %520 = vst [vmem:[#allocation2 + $0x170] sm:$0xff] %v11822_v0  ;;  %521 = vst [vmem:[#allocation2 + $0x178] sm:$0xff] %v11822_v0 }
 0x11b   : > { %522 = vst [vmem:[#allocation2 + $0x180] sm:$0xff] %v11822_v0  ;;  %523 = vst [vmem:[#allocation2 + $0x188] sm:$0xff] %v11822_v0 }
 0x11c   : > { %524 = vst [vmem:[#allocation2 + $0x190] sm:$0xff] %v11822_v0  ;;  %525 = vst [vmem:[#allocation2 + $0x198] sm:$0xff] %v11822_v0 }
 0x11d   : > { %526 = vst [vmem:[#allocation2 + $0x1a0] sm:$0xff] %v11822_v0  ;;  %527 = vst [vmem:[#allocation2 + $0x1a8] sm:$0xff] %v11822_v0 }
 0x11e   : > { %528 = vst [vmem:[#allocation2 + $0x1b0] sm:$0xff] %v11822_v0  ;;  %529 = vst [vmem:[#allocation2 + $0x1b8] sm:$0xff] %v11822_v0 }
 0x11f   : > { %530 = vst [vmem:[#allocation2 + $0x1c0] sm:$0xff] %v11822_v0  ;;  %531 = vst [vmem:[#allocation2 + $0x1c8] sm:$0xff] %v11822_v0 }
 0x120   : > { %532 = vst [vmem:[#allocation2 + $0x1d0] sm:$0xff] %v11822_v0  ;;  %533 = vst [vmem:[#allocation2 + $0x1d8] sm:$0xff] %v11822_v0 }
 0x121   : > { %534 = vst [vmem:[#allocation2 + $0x1e0] sm:$0xff] %v11822_v0  ;;  %535 = vst [vmem:[#allocation2 + $0x1e8] sm:$0xff] %v11822_v0 }
 0x122   : > { %536 = vst [vmem:[#allocation2 + $0x1f0] sm:$0xff] %v11822_v0  ;;  %537 = vst [vmem:[#allocation2 + $0x1f8] sm:$0xff] %v11822_v0 }
 0x123   : > { %538 = vst [vmem:[#allocation2 + $0x200] sm:$0xff] %v11822_v0  ;;  %539 = vst [vmem:[#allocation2 + $0x208] sm:$0xff] %v11822_v0 }
 0x124   : > { %540 = vst [vmem:[#allocation2 + $0x210] sm:$0xff] %v11822_v0  ;;  %541 = vst [vmem:[#allocation2 + $0x218] sm:$0xff] %v11822_v0 }
 0x125   : > { %542 = vst [vmem:[#allocation2 + $0x220] sm:$0xff] %v11822_v0  ;;  %543 = vst [vmem:[#allocation2 + $0x228] sm:$0xff] %v11822_v0 }
 0x126   : > { %544 = vst [vmem:[#allocation2 + $0x230] sm:$0xff] %v11822_v0  ;;  %545 = vst [vmem:[#allocation2 + $0x238] sm:$0xff] %v11822_v0 }
 0x127   : > { %546 = vst [vmem:[#allocation2 + $0x240] sm:$0xff] %v11822_v0  ;;  %547 = vst [vmem:[#allocation2 + $0x248] sm:$0xff] %v11822_v0 }
 0x128   : > { %548 = vst [vmem:[#allocation2 + $0x250] sm:$0xff] %v11822_v0  ;;  %549 = vst [vmem:[#allocation2 + $0x258] sm:$0xff] %v11822_v0 }
 0x129   : > { %550 = vst [vmem:[#allocation2 + $0x260] sm:$0xff] %v11822_v0  ;;  %551 = vst [vmem:[#allocation2 + $0x268] sm:$0xff] %v11822_v0 }
 0x12a   : > { %552 = vst [vmem:[#allocation2 + $0x270] sm:$0xff] %v11822_v0  ;;  %553 = vst [vmem:[#allocation2 + $0x278] sm:$0xff] %v11822_v0 }
 0x12b   : > { %554 = vst [vmem:[#allocation2 + $0x280] sm:$0xff] %v11822_v0  ;;  %555 = vst [vmem:[#allocation2 + $0x288] sm:$0xff] %v11822_v0 }
 0x12c   : > { %556 = vst [vmem:[#allocation2 + $0x290] sm:$0xff] %v11822_v0  ;;  %557 = vst [vmem:[#allocation2 + $0x298] sm:$0xff] %v11822_v0 }
 0x12d   : > { %558 = vst [vmem:[#allocation2 + $0x2a0] sm:$0xff] %v11822_v0  ;;  %559 = vst [vmem:[#allocation2 + $0x2a8] sm:$0xff] %v11822_v0 }
 0x12e   : > { %560 = vst [vmem:[#allocation2 + $0x2b0] sm:$0xff] %v11822_v0  ;;  %561 = vst [vmem:[#allocation2 + $0x2b8] sm:$0xff] %v11822_v0 }
 0x12f   : > { %562 = vst [vmem:[#allocation2 + $0x2c0] sm:$0xff] %v11822_v0  ;;  %563 = vst [vmem:[#allocation2 + $0x2c8] sm:$0xff] %v11822_v0 }
 0x130   : > { %564 = vst [vmem:[#allocation2 + $0x2d0] sm:$0xff] %v11822_v0  ;;  %565 = vst [vmem:[#allocation2 + $0x2d8] sm:$0xff] %v11822_v0 }
 0x131   : > { %566 = vst [vmem:[#allocation2 + $0x2e0] sm:$0xff] %v11822_v0  ;;  %567 = vst [vmem:[#allocation2 + $0x2e8] sm:$0xff] %v11822_v0 }
 0x132   : > { %568 = vst [vmem:[#allocation2 + $0x2f0] sm:$0xff] %v11822_v0  ;;  %569 = vst [vmem:[#allocation2 + $0x2f8] sm:$0xff] %v11822_v0 }
 0x133   : > { %570 = vst [vmem:[#allocation2 + $0x300] sm:$0xff] %v11822_v0  ;;  %571 = vst [vmem:[#allocation2 + $0x308] sm:$0xff] %v11822_v0 }
 0x134   : > { %572 = vst [vmem:[#allocation2 + $0x310] sm:$0xff] %v11822_v0  ;;  %573 = vst [vmem:[#allocation2 + $0x318] sm:$0xff] %v11822_v0 }
 0x135   : > { %574 = vst [vmem:[#allocation2 + $0x320] sm:$0xff] %v11822_v0  ;;  %575 = vst [vmem:[#allocation2 + $0x328] sm:$0xff] %v11822_v0 }
 0x136   : > { %576 = vst [vmem:[#allocation2 + $0x330] sm:$0xff] %v11822_v0  ;;  %577 = vst [vmem:[#allocation2 + $0x338] sm:$0xff] %v11822_v0 }
 0x137   : > { %578 = vst [vmem:[#allocation2 + $0x340] sm:$0xff] %v11822_v0  ;;  %579 = vst [vmem:[#allocation2 + $0x348] sm:$0xff] %v11822_v0 }
 0x138   : > { %580 = vst [vmem:[#allocation2 + $0x350] sm:$0xff] %v11822_v0  ;;  %581 = vst [vmem:[#allocation2 + $0x358] sm:$0xff] %v11822_v0 }
 0x139   : > { %582 = vst [vmem:[#allocation2 + $0x360] sm:$0xff] %v11822_v0  ;;  %583 = vst [vmem:[#allocation2 + $0x368] sm:$0xff] %v11822_v0 }
 0x13a   : > { %584 = vst [vmem:[#allocation2 + $0x370] sm:$0xff] %v11822_v0  ;;  %585 = vst [vmem:[#allocation2 + $0x378] sm:$0xff] %v11822_v0 }
 0x13b   : > { %586 = vst [vmem:[#allocation2 + $0x380] sm:$0xff] %v11822_v0  ;;  %587 = vst [vmem:[#allocation2 + $0x388] sm:$0xff] %v11822_v0 }
 0x13c   : > { %588 = vst [vmem:[#allocation2 + $0x390] sm:$0xff] %v11822_v0  ;;  %589 = vst [vmem:[#allocation2 + $0x398] sm:$0xff] %v11822_v0 }
 0x13d   : > { %590 = vst [vmem:[#allocation2 + $0x3a0] sm:$0xff] %v11822_v0  ;;  %591 = vst [vmem:[#allocation2 + $0x3a8] sm:$0xff] %v11822_v0 }
 0x13e   : > { %592 = vst [vmem:[#allocation2 + $0x3b0] sm:$0xff] %v11822_v0  ;;  %593 = vst [vmem:[#allocation2 + $0x3b8] sm:$0xff] %v11822_v0 }
 0x13f   : > { %594 = vst [vmem:[#allocation2 + $0x3c0] sm:$0xff] %v11822_v0  ;;  %595 = vst [vmem:[#allocation2 + $0x3c8] sm:$0xff] %v11822_v0 }
 0x140   : > { %596 = vst [vmem:[#allocation2 + $0x3d0] sm:$0xff] %v11822_v0  ;;  %597 = vst [vmem:[#allocation2 + $0x3d8] sm:$0xff] %v11822_v0 }
 0x141   : > { %598 = vst [vmem:[#allocation2 + $0x3e0] sm:$0xff] %v11822_v0  ;;  %599 = vst [vmem:[#allocation2 + $0x3e8] sm:$0xff] %v11822_v0 }
 0x142   : > { %600 = vst [vmem:[#allocation2 + $0x3f0] sm:$0xff] %v11822_v0  ;;  %601 = vst [vmem:[#allocation2 + $0x3f8] sm:$0xff] %v11822_v0 }
 0x143 PF: > { %v763_v1 = vld [vmem:[%s12258_s19 + $0x8] sm:$0xff]  ;;  %v765_v3 = vld [vmem:[%s12258_s19 + $0x18] sm:$0xff]  ;;  %v762_v6 = vld [vmem:[%s12258_s19] sm:$0xff] }
 0x144   : > { %v771_v2 = vld [vmem:[%s12258_s19 + $0x48] sm:$0xff]  ;;  %v773_v5 = vld [vmem:[%s12258_s19 + $0x58] sm:$0xff]  ;;  %v770_v7 = vld [vmem:[%s12258_s19 + $0x40] sm:$0xff] }
 0x145   : > { %v10974_v4 = vpack.c.bf16 %v771_v2, %v763_v1  ;;  %v11038_v8 = vpack.c.bf16 %v773_v5, %v765_v3  ;;  %v10976_v9 = vpack.c.bf16 %v770_v7, %v762_v6  ;;  %v764_v10 = vld [vmem:[%s12258_s19 + $0x10] sm:$0xff]  ;;  %v779_v12 = vld [vmem:[%s12258_s19 + $0x88] sm:$0xff]  ;;  %v781_v15 = vld [vmem:[%s12258_s19 + $0x98] sm:$0xff] }
 0x146   : > { %v772_v11 = vld [vmem:[%s12258_s19 + $0x50] sm:$0xff]  ;;  %v787_v14 = vld [vmem:[%s12258_s19 + $0xc8] sm:$0xff]  ;;  %v789_v16 = vld [vmem:[%s12258_s19 + $0xd8] sm:$0xff] }
 0x147   : > { %10975 = vmatprep.subr.bf16.mxu0 %v10974_v4  ;;  %v11040_v13 = vpack.c.bf16 %v772_v11, %v764_v10  ;;  %11039 = vmatprep.subr.bf16.mxu1 %v11038_v8  ;;  %v10978_v17 = vpack.c.bf16 %v787_v14, %v779_v12  ;;  %v11042_v18 = vpack.c.bf16 %v789_v16, %v781_v15  ;;  %v778_v19 = vld [vmem:[%s12258_s19 + $0x80] sm:$0xff]  ;;  %v780_v21 = vld [vmem:[%s12258_s19 + $0x90] sm:$0xff]  ;;  %v795_v24 = vld [vmem:[%s12258_s19 + $0x108] sm:$0xff] }
 0x148   : > { %10977 = vmatpush1.bf16.msra.mxu0 %v10976_v9  ;;  %v786_v20 = vld [vmem:[%s12258_s19 + $0xc0] sm:$0xff]  ;;  %v788_v23 = vld [vmem:[%s12258_s19 + $0xd0] sm:$0xff]  ;;  %v803_v25 = vld [vmem:[%s12258_s19 + $0x148] sm:$0xff] }
 0x149   : > { %11041 = vmatpush1.bf16.msra.mxu1 %v11040_v13  ;;  %v10980_v22 = vpack.c.bf16 %v786_v20, %v778_v19  ;;  %10979 = vmatprep.subr.bf16.mxu0 %v10978_v17  ;;  %v11044_v26 = vpack.c.bf16 %v788_v23, %v780_v21  ;;  %v10982_v27 = vpack.c.bf16 %v803_v25, %v795_v24  ;;  %v797_v28 = vld [vmem:[%s12258_s19 + $0x118] sm:$0xff]  ;;  %v794_v30 = vld [vmem:[%s12258_s19 + $0x100] sm:$0xff]  ;;  %v796_v33 = vld [vmem:[%s12258_s19 + $0x110] sm:$0xff] }
 0x14a   : > { %11043 = vmatprep.subr.bf16.mxu1 %v11042_v18  ;;  %v805_v29 = vld [vmem:[%s12258_s19 + $0x158] sm:$0xff]  ;;  %v802_v32 = vld [vmem:[%s12258_s19 + $0x140] sm:$0xff]  ;;  %v804_v34 = vld [vmem:[%s12258_s19 + $0x150] sm:$0xff] }
 0x14b   : > { %v11046_v31 = vpack.c.bf16 %v805_v29, %v797_v28  ;;  %v10984_v35 = vpack.c.bf16 %v802_v32, %v794_v30  ;;  %v811_v36 = vld [vmem:[%s12258_s19 + $0x188] sm:$0xff]  ;;  %v813_v38 = vld [vmem:[%s12258_s19 + $0x198] sm:$0xff]  ;;  %v11048_v39 = vpack.c.bf16 %v804_v34, %v796_v33  ;;  %v810_v42 = vld [vmem:[%s12258_s19 + $0x180] sm:$0xff] }
 0x14c   : > { %10981 = vmatpush1.bf16.msra.mxu0 %v10980_v22  ;;  %v819_v37 = vld [vmem:[%s12258_s19 + $0x1c8] sm:$0xff]  ;;  %v821_v41 = vld [vmem:[%s12258_s19 + $0x1d8] sm:$0xff]  ;;  %v818_v43 = vld [vmem:[%s12258_s19 + $0x1c0] sm:$0xff] }
 0x14d   : > { %11045 = vmatpush1.bf16.msra.mxu1 %v11044_v26  ;;  %10983 = vmatprep.subr.bf16.mxu0 %v10982_v27  ;;  %v10986_v40 = vpack.c.bf16 %v819_v37, %v811_v36  ;;  %v11050_v44 = vpack.c.bf16 %v821_v41, %v813_v38  ;;  %v812_v45 = vld [vmem:[%s12258_s19 + $0x190] sm:$0xff]  ;;  %v827_v47 = vld [vmem:[%s12258_s19 + $0x208] sm:$0xff]  ;;  %v829_v49 = vld [vmem:[%s12258_s19 + $0x218] sm:$0xff]  ;;  %v10988_v51 = vpack.c.bf16 %v818_v43, %v810_v42 }
 0x14e   : > { %11047 = vmatprep.subr.bf16.mxu1 %v11046_v31  ;;  %v820_v46 = vld [vmem:[%s12258_s19 + $0x1d0] sm:$0xff]  ;;  %v835_v48 = vld [vmem:[%s12258_s19 + $0x248] sm:$0xff]  ;;  %v837_v50 = vld [vmem:[%s12258_s19 + $0x258] sm:$0xff] }
 0x14f   : > { %v11052_v52 = vpack.c.bf16 %v820_v46, %v812_v45  ;;  %v10990_v53 = vpack.c.bf16 %v835_v48, %v827_v47  ;;  %v826_v54 = vld [vmem:[%s12258_s19 + $0x200] sm:$0xff]  ;;  %v828_v56 = vld [vmem:[%s12258_s19 + $0x210] sm:$0xff]  ;;  %v11054_v57 = vpack.c.bf16 %v837_v50, %v829_v49  ;;  %v843_v59 = vld [vmem:[%s12258_s19 + $0x288] sm:$0xff] }
 0x150   : > { %10985 = vmatpush1.bf16.msra.mxu0 %v10984_v35  ;;  %v834_v55 = vld [vmem:[%s12258_s19 + $0x240] sm:$0xff]  ;;  %v836_v58 = vld [vmem:[%s12258_s19 + $0x250] sm:$0xff]  ;;  %v851_v60 = vld [vmem:[%s12258_s19 + $0x2c8] sm:$0xff] }
 0x151   : > { %11049 = vmatpush1.bf16.msra.mxu1 %v11048_v39  ;;  %10987 = vmatprep.subr.bf16.mxu0 %v10986_v40  ;;  %v845_v61 = vld [vmem:[%s12258_s19 + $0x298] sm:$0xff]  ;;  %v10992_v63 = vpack.c.bf16 %v834_v55, %v826_v54  ;;  %v11056_v0 = vpack.c.bf16 %v836_v58, %v828_v56  ;;  %v10994_v1 = vpack.c.bf16 %v851_v60, %v843_v59  ;;  %v842_v2 = vld [vmem:[%s12258_s19 + $0x280] sm:$0xff]  ;;  %v844_v4 = vld [vmem:[%s12258_s19 + $0x290] sm:$0xff] }
 0x152   : > { %11051 = vmatprep.subr.bf16.mxu1 %v11050_v44  ;;  %v853_v62 = vld [vmem:[%s12258_s19 + $0x2d8] sm:$0xff]  ;;  %v850_v3 = vld [vmem:[%s12258_s19 + $0x2c0] sm:$0xff]  ;;  %v852_v6 = vld [vmem:[%s12258_s19 + $0x2d0] sm:$0xff] }
 0x153   : > { %v11058_v5 = vpack.c.bf16 %v853_v62, %v845_v61  ;;  %v859_v7 = vld [vmem:[%s12258_s19 + $0x308] sm:$0xff]  ;;  %v861_v9 = vld [vmem:[%s12258_s19 + $0x318] sm:$0xff]  ;;  %v10996_v11 = vpack.c.bf16 %v850_v3, %v842_v2  ;;  %v11060_v12 = vpack.c.bf16 %v852_v6, %v844_v4  ;;  %v858_v14 = vld [vmem:[%s12258_s19 + $0x300] sm:$0xff] }
 0x154   : > { %10989 = vmatpush1.bf16.msra.mxu0 %v10988_v51  ;;  %v867_v8 = vld [vmem:[%s12258_s19 + $0x348] sm:$0xff]  ;;  %v869_v10 = vld [vmem:[%s12258_s19 + $0x358] sm:$0xff]  ;;  %v866_v15 = vld [vmem:[%s12258_s19 + $0x340] sm:$0xff] }
 0x155   : > { %11053 = vmatpush1.bf16.msra.mxu1 %v11052_v52  ;;  %10991 = vmatprep.subr.bf16.mxu0 %v10990_v53  ;;  %v10998_v13 = vpack.c.bf16 %v867_v8, %v859_v7  ;;  %v860_v16 = vld [vmem:[%s12258_s19 + $0x310] sm:$0xff]  ;;  %v11062_v17 = vpack.c.bf16 %v869_v10, %v861_v9  ;;  %v875_v19 = vld [vmem:[%s12258_s19 + $0x388] sm:$0xff]  ;;  %v877_v21 = vld [vmem:[%s12258_s19 + $0x398] sm:$0xff]  ;;  %v11000_v23 = vpack.c.bf16 %v866_v15, %v858_v14 }
 0x156   : > { %11055 = vmatprep.subr.bf16.mxu1 %v11054_v57  ;;  %v868_v18 = vld [vmem:[%s12258_s19 + $0x350] sm:$0xff]  ;;  %v883_v20 = vld [vmem:[%s12258_s19 + $0x3c8] sm:$0xff]  ;;  %v885_v22 = vld [vmem:[%s12258_s19 + $0x3d8] sm:$0xff] }
 0x157   : > { %v11064_v24 = vpack.c.bf16 %v868_v18, %v860_v16  ;;  %v11002_v25 = vpack.c.bf16 %v883_v20, %v875_v19  ;;  %v874_v26 = vld [vmem:[%s12258_s19 + $0x380] sm:$0xff]  ;;  %v876_v28 = vld [vmem:[%s12258_s19 + $0x390] sm:$0xff]  ;;  %v11066_v29 = vpack.c.bf16 %v885_v22, %v877_v21  ;;  %v891_v31 = vld [vmem:[%s12258_s19 + $0x408] sm:$0xff] }
 0x158   : > { %10993 = vmatpush1.bf16.msra.mxu0 %v10992_v63  ;;  %v882_v27 = vld [vmem:[%s12258_s19 + $0x3c0] sm:$0xff]  ;;  %v884_v30 = vld [vmem:[%s12258_s19 + $0x3d0] sm:$0xff]  ;;  %v899_v32 = vld [vmem:[%s12258_s19 + $0x448] sm:$0xff] }
 0x159   : > { %11057 = vmatpush1.bf16.msra.mxu1 %v11056_v0  ;;  %10995 = vmatprep.subr.bf16.mxu0 %v10994_v1  ;;  %v893_v33 = vld [vmem:[%s12258_s19 + $0x418] sm:$0xff]  ;;  %v11004_v35 = vpack.c.bf16 %v882_v27, %v874_v26  ;;  %v11068_v36 = vpack.c.bf16 %v884_v30, %v876_v28  ;;  %v11006_v37 = vpack.c.bf16 %v899_v32, %v891_v31  ;;  %v890_v38 = vld [vmem:[%s12258_s19 + $0x400] sm:$0xff]  ;;  %v892_v40 = vld [vmem:[%s12258_s19 + $0x410] sm:$0xff] }
 0x15a   : > { %11059 = vmatprep.subr.bf16.mxu1 %v11058_v5  ;;  %v901_v34 = vld [vmem:[%s12258_s19 + $0x458] sm:$0xff]  ;;  %v898_v39 = vld [vmem:[%s12258_s19 + $0x440] sm:$0xff]  ;;  %v900_v42 = vld [vmem:[%s12258_s19 + $0x450] sm:$0xff] }
 0x15b   : > { %v11070_v41 = vpack.c.bf16 %v901_v34, %v893_v33  ;;  %v907_v43 = vld [vmem:[%s12258_s19 + $0x488] sm:$0xff]  ;;  %v909_v45 = vld [vmem:[%s12258_s19 + $0x498] sm:$0xff]  ;;  %v11008_v47 = vpack.c.bf16 %v898_v39, %v890_v38  ;;  %v11072_v48 = vpack.c.bf16 %v900_v42, %v892_v40  ;;  %v906_v50 = vld [vmem:[%s12258_s19 + $0x480] sm:$0xff] }
 0x15c   : > { %10997 = vmatpush1.bf16.msra.mxu0 %v10996_v11  ;;  %v915_v44 = vld [vmem:[%s12258_s19 + $0x4c8] sm:$0xff]  ;;  %v917_v46 = vld [vmem:[%s12258_s19 + $0x4d8] sm:$0xff]  ;;  %v914_v51 = vld [vmem:[%s12258_s19 + $0x4c0] sm:$0xff] }
 0x15d   : > { %11061 = vmatpush1.bf16.msra.mxu1 %v11060_v12  ;;  %10999 = vmatprep.subr.bf16.mxu0 %v10998_v13  ;;  %v11010_v49 = vpack.c.bf16 %v915_v44, %v907_v43  ;;  %v908_v52 = vld [vmem:[%s12258_s19 + $0x490] sm:$0xff]  ;;  %v11074_v53 = vpack.c.bf16 %v917_v46, %v909_v45  ;;  %v923_v55 = vld [vmem:[%s12258_s19 + $0x508] sm:$0xff]  ;;  %v925_v57 = vld [vmem:[%s12258_s19 + $0x518] sm:$0xff]  ;;  %v11012_v59 = vpack.c.bf16 %v914_v51, %v906_v50 }
 0x15e   : > { %11063 = vmatprep.subr.bf16.mxu1 %v11062_v17  ;;  %v916_v54 = vld [vmem:[%s12258_s19 + $0x4d0] sm:$0xff]  ;;  %v931_v56 = vld [vmem:[%s12258_s19 + $0x548] sm:$0xff]  ;;  %v933_v58 = vld [vmem:[%s12258_s19 + $0x558] sm:$0xff] }
 0x15f   : > { %v11076_v60 = vpack.c.bf16 %v916_v54, %v908_v52  ;;  %v11014_v61 = vpack.c.bf16 %v931_v56, %v923_v55  ;;  %v922_v62 = vld [vmem:[%s12258_s19 + $0x500] sm:$0xff]  ;;  %v924_v0 = vld [vmem:[%s12258_s19 + $0x510] sm:$0xff]  ;;  %v11078_v1 = vpack.c.bf16 %v933_v58, %v925_v57  ;;  %v939_v3 = vld [vmem:[%s12258_s19 + $0x588] sm:$0xff] }
 0x160   : > { %11001 = vmatpush1.bf16.msra.mxu0 %v11000_v23  ;;  %v930_v63 = vld [vmem:[%s12258_s19 + $0x540] sm:$0xff]  ;;  %v932_v2 = vld [vmem:[%s12258_s19 + $0x550] sm:$0xff]  ;;  %v947_v4 = vld [vmem:[%s12258_s19 + $0x5c8] sm:$0xff] }
 0x161   : > { %11065 = vmatpush1.bf16.msra.mxu1 %v11064_v24  ;;  %11003 = vmatprep.subr.bf16.mxu0 %v11002_v25  ;;  %v941_v5 = vld [vmem:[%s12258_s19 + $0x598] sm:$0xff]  ;;  %v11016_v7 = vpack.c.bf16 %v930_v63, %v922_v62  ;;  %v938_v8 = vld [vmem:[%s12258_s19 + $0x580] sm:$0xff]  ;;  %v11080_v9 = vpack.c.bf16 %v932_v2, %v924_v0  ;;  %v11018_v10 = vpack.c.bf16 %v947_v4, %v939_v3  ;;  %v940_v12 = vld [vmem:[%s12258_s19 + $0x590] sm:$0xff] }
 0x162   : > { %11067 = vmatprep.subr.bf16.mxu1 %v11066_v29  ;;  %v949_v6 = vld [vmem:[%s12258_s19 + $0x5d8] sm:$0xff]  ;;  %v946_v11 = vld [vmem:[%s12258_s19 + $0x5c0] sm:$0xff]  ;;  %v948_v13 = vld [vmem:[%s12258_s19 + $0x5d0] sm:$0xff] }
 0x163   : > { %v11082_v14 = vpack.c.bf16 %v949_v6, %v941_v5  ;;  %v955_v15 = vld [vmem:[%s12258_s19 + $0x608] sm:$0xff]  ;;  %v957_v18 = vld [vmem:[%s12258_s19 + $0x618] sm:$0xff]  ;;  %v11020_v20 = vpack.c.bf16 %v946_v11, %v938_v8  ;;  %v11084_v21 = vpack.c.bf16 %v948_v13, %v940_v12  ;;  %v954_v23 = vld [vmem:[%s12258_s19 + $0x600] sm:$0xff] }
 0x164   : > { %11005 = vmatpush1.bf16.msra.mxu0 %v11004_v35  ;;  %v963_v16 = vld [vmem:[%s12258_s19 + $0x648] sm:$0xff]  ;;  %v965_v19 = vld [vmem:[%s12258_s19 + $0x658] sm:$0xff]  ;;  %v962_v24 = vld [vmem:[%s12258_s19 + $0x640] sm:$0xff] }
 0x165   : > { %11069 = vmatpush1.bf16.msra.mxu1 %v11068_v36  ;;  %11007 = vmatprep.subr.bf16.mxu0 %v11006_v37  ;;  %v12517_v17 = vld [vmem:[%s12247_s23 + $0x8] sm:$0xff]  ;;  %v11022_v22 = vpack.c.bf16 %v963_v16, %v955_v15  ;;  %v956_v25 = vld [vmem:[%s12258_s19 + $0x610] sm:$0xff]  ;;  %v11086_v26 = vpack.c.bf16 %v965_v19, %v957_v18  ;;  %v973_v30 = vld [vmem:[%s12258_s19 + $0x698] sm:$0xff]  ;;  %v11024_v32 = vpack.c.bf16 %v962_v24, %v954_v23 }
 0x166   : > { %11071 = vmatprep.subr.bf16.mxu1 %v11070_v41  ;;  %1082 = vmatprep.mubr.f32.mxu0 %v12517_v17  ;;  %v964_v27 = vld [vmem:[%s12258_s19 + $0x650] sm:$0xff]  ;;  %v971_v28 = vld [vmem:[%s12258_s19 + $0x688] sm:$0xff]  ;;  %v981_v31 = vld [vmem:[%s12258_s19 + $0x6d8] sm:$0xff] }
 0x167   : > { %1243 = vmatprep.mubr.f32.mxu1 %v12517_v17  ;;  %v979_v29 = vld [vmem:[%s12258_s19 + $0x6c8] sm:$0xff]  ;;  %v11088_v33 = vpack.c.bf16 %v964_v27, %v956_v25  ;;  %v970_v35 = vld [vmem:[%s12258_s19 + $0x680] sm:$0xff]  ;;  %v972_v37 = vld [vmem:[%s12258_s19 + $0x690] sm:$0xff]  ;;  %v11090_v38 = vpack.c.bf16 %v981_v31, %v973_v30 }
 0x168   : > { %11009 = vmatpush1.bf16.msra.mxu0 %v11008_v47  ;;  %v11026_v34 = vpack.c.bf16 %v979_v29, %v971_v28  ;;  %v978_v36 = vld [vmem:[%s12258_s19 + $0x6c0] sm:$0xff]  ;;  %v980_v39 = vld [vmem:[%s12258_s19 + $0x6d0] sm:$0xff]  ;;  %v987_v40 = vld [vmem:[%s12258_s19 + $0x708] sm:$0xff] }
 0x169   : > { %11073 = vmatpush1.bf16.msra.mxu1 %v11072_v48  ;;  %11011 = vmatprep.subr.bf16.mxu0 %v11010_v49  ;;  %v995_v41 = vld [vmem:[%s12258_s19 + $0x748] sm:$0xff]  ;;  %v989_v42 = vld [vmem:[%s12258_s19 + $0x718] sm:$0xff]  ;;  %v11028_v44 = vpack.c.bf16 %v978_v36, %v970_v35  ;;  %v11092_v45 = vpack.c.bf16 %v980_v39, %v972_v37  ;;  %v986_v47 = vld [vmem:[%s12258_s19 + $0x700] sm:$0xff] }
 0x16a   : > { %11075 = vmatprep.subr.bf16.mxu1 %v11074_v53  ;;  %v997_v43 = vld [vmem:[%s12258_s19 + $0x758] sm:$0xff]  ;;  %v11030_v46 = vpack.c.bf16 %v995_v41, %v987_v40  ;;  %v994_v48 = vld [vmem:[%s12258_s19 + $0x740] sm:$0xff]  ;;  %v988_v49 = vld [vmem:[%s12258_s19 + $0x710] sm:$0xff] }
 0x16b   : > { %v11094_v50 = vpack.c.bf16 %v997_v43, %v989_v42  ;;  %v996_v51 = vld [vmem:[%s12258_s19 + $0x750] sm:$0xff]  ;;  %v1003_v52 = vld [vmem:[%s12258_s19 + $0x788] sm:$0xff]  ;;  %v1005_v54 = vld [vmem:[%s12258_s19 + $0x798] sm:$0xff]  ;;  %v11032_v56 = vpack.c.bf16 %v994_v48, %v986_v47 }
 0x16c   : > { %11013 = vmatpush1.bf16.msra.mxu0 %v11012_v59  ;;  %v1011_v53 = vld [vmem:[%s12258_s19 + $0x7c8] sm:$0xff]  ;;  %v1013_v55 = vld [vmem:[%s12258_s19 + $0x7d8] sm:$0xff]  ;;  %v11096_v57 = vpack.c.bf16 %v996_v51, %v988_v49  ;;  %v1002_v59 = vld [vmem:[%s12258_s19 + $0x780] sm:$0xff] }
 0x16d   : > { %11077 = vmatpush1.bf16.msra.mxu1 %v11076_v60  ;;  %11015 = vmatprep.subr.bf16.mxu0 %v11014_v61  ;;  %v11034_v58 = vpack.c.bf16 %v1011_v53, %v1003_v52  ;;  %v1010_v60 = vld [vmem:[%s12258_s19 + $0x7c0] sm:$0xff]  ;;  %v1004_v61 = vld [vmem:[%s12258_s19 + $0x790] sm:$0xff]  ;;  %v11098_v62 = vpack.c.bf16 %v1013_v55, %v1005_v54  ;;  %v767_v0 = vld [vmem:[%s12258_s19 + $0x28] sm:$0xff] }
 0x16e   : > { %11079 = vmatprep.subr.bf16.mxu1 %v11078_v1  ;;  %v1012_v63 = vld [vmem:[%s12258_s19 + $0x7d0] sm:$0xff]  ;;  %v775_v1 = vld [vmem:[%s12258_s19 + $0x68] sm:$0xff]  ;;  %v769_v2 = vld [vmem:[%s12258_s19 + $0x38] sm:$0xff]  ;;  %v11036_v4 = vpack.c.bf16 %v1010_v60, %v1002_v59 }
 0x16f   : > { %v777_v3 = vld [vmem:[%s12258_s19 + $0x78] sm:$0xff]  ;;  %v11100_v5 = vpack.c.bf16 %v1012_v63, %v1004_v61  ;;  %v11102_v6 = vpack.c.bf16 %v775_v1, %v767_v0  ;;  %v774_v8 = vld [vmem:[%s12258_s19 + $0x60] sm:$0xff]  ;;  %v776_v11 = vld [vmem:[%s12258_s19 + $0x70] sm:$0xff] }
 0x170   : > { %11017 = vmatpush1.bf16.msra.mxu0 %v11016_v7  ;;  %v766_v7 = vld [vmem:[%s12258_s19 + $0x20] sm:$0xff]  ;;  %v783_v12 = vld [vmem:[%s12258_s19 + $0xa8] sm:$0xff]  ;;  %v785_v16 = vld [vmem:[%s12258_s19 + $0xb8] sm:$0xff] }
 0x171   : > { %11081 = vmatpush1.bf16.msra.mxu1 %v11080_v9  ;;  %11019 = vmatprep.subr.bf16.mxu0 %v11018_v10  ;;  %v11166_v9 = vpack.c.bf16 %v777_v3, %v769_v2  ;;  %v768_v10 = vld [vmem:[%s12258_s19 + $0x30] sm:$0xff]  ;;  %v791_v13 = vld [vmem:[%s12258_s19 + $0xe8] sm:$0xff]  ;;  %v11104_v15 = vpack.c.bf16 %v774_v8, %v766_v7  ;;  %v793_v18 = vld [vmem:[%s12258_s19 + $0xf8] sm:$0xff] }
 0x172   : > { %11083 = vmatprep.subr.bf16.mxu1 %v11082_v14  ;;  %v12562_v14 = vld [vmem:[%s12247_s23] sm:$0xff]  ;;  %v11168_v19 = vpack.c.bf16 %v776_v11, %v768_v10  ;;  %v11106_v23 = vpack.c.bf16 %v791_v13, %v783_v12  ;;  %v784_v24 = vld [vmem:[%s12258_s19 + $0xb0] sm:$0xff]  ;;  %v799_v27 = vld [vmem:[%s12258_s19 + $0x128] sm:$0xff] }
 0x173   : > { %v792_v25 = vld [vmem:[%s12258_s19 + $0xf0] sm:$0xff]  ;;  %v807_v28 = vld [vmem:[%s12258_s19 + $0x168] sm:$0xff]  ;;  %v801_v31 = vld [vmem:[%s12258_s19 + $0x138] sm:$0xff] }
 0x174   : > { %11021 = vmatpush1.bf16.msra.mxu0 %v11020_v20  ;;  %v782_v20 = vld [vmem:[%s12258_s19 + $0xa0] sm:$0xff]  ;;  %v12578_v29 = vld [vmem:[%s12247_s23 + $0x10] sm:$0xff]  ;;  %v12587_v36 = vld [vmem:[%s12247_s23 + $0x28] sm:$0xff]  ;;  %v11110_v37 = vpack.c.bf16 %v807_v28, %v799_v27 }
 0x175   : > { %11085 = vmatpush1.bf16.msra.mxu1 %v11084_v21  ;;  %11023 = vmatprep.subr.bf16.mxu0 %v11022_v22  ;;  %v790_v21 = vld [vmem:[%s12258_s19 + $0xe0] sm:$0xff]  ;;  %v12569_v22 = vld [vmem:[%s12247_s23 + $0x18] sm:$0xff]  ;;  %v808_v39 = vld [vmem:[%s12258_s19 + $0x170] sm:$0xff] }
 0x176   : > { %11087 = vmatprep.subr.bf16.mxu1 %v11086_v26  ;;  %v11170_v26 = vpack.c.bf16 %v793_v18, %v785_v16  ;;  %v11108_v30 = vpack.c.bf16 %v790_v21, %v782_v20  ;;  %v806_v35 = vld [vmem:[%s12258_s19 + $0x160] sm:$0xff]  ;;  %v815_v41 = vld [vmem:[%s12258_s19 + $0x1a8] sm:$0xff]  ;;  %v816_v52 = vld [vmem:[%s12258_s19 + $0x1b0] sm:$0xff] }
 0x177   : > { %v823_v42 = vld [vmem:[%s12258_s19 + $0x1e8] sm:$0xff]  ;;  %v12596_v43 = vld [vmem:[%s12247_s23 + $0x20] sm:$0xff]  ;;  %v824_v53 = vld [vmem:[%s12258_s19 + $0x1f0] sm:$0xff] }
 0x178   : > { %11025 = vmatpush1.bf16.msra.mxu0 %v11024_v32  ;;  %v809_v32 = vld [vmem:[%s12258_s19 + $0x178] sm:$0xff]  ;;  %v814_v48 = vld [vmem:[%s12258_s19 + $0x1a0] sm:$0xff]  ;;  %v11114_v51 = vpack.c.bf16 %v823_v42, %v815_v41  ;;  %v831_v55 = vld [vmem:[%s12258_s19 + $0x228] sm:$0xff]  ;;  %v11180_v61 = vpack.c.bf16 %v824_v53, %v816_v52 }
 0x179   : > { %11089 = vmatpush1.bf16.msra.mxu1 %v11088_v33  ;;  %11027 = vmatprep.subr.bf16.mxu0 %v11026_v34  ;;  %v11172_v33 = vpack.c.bf16 %v792_v25, %v784_v24  ;;  %v798_v34 = vld [vmem:[%s12258_s19 + $0x120] sm:$0xff]  ;;  %v11174_v40 = vpack.c.bf16 %v809_v32, %v801_v31  ;;  %v833_v59 = vld [vmem:[%s12258_s19 + $0x238] sm:$0xff]  ;;  %v12623_v0 = vld [vmem:[%s12247_s23 + $0x48] sm:$0xff] }
 0x17a   : > { %11091 = vmatprep.subr.bf16.mxu1 %v11090_v38  ;;  %v800_v38 = vld [vmem:[%s12258_s19 + $0x130] sm:$0xff]  ;;  %v822_v49 = vld [vmem:[%s12258_s19 + $0x1e0] sm:$0xff]  ;;  %v841_v60 = vld [vmem:[%s12258_s19 + $0x278] sm:$0xff] }
 0x17b   : > { %v11176_v47 = vpack.c.bf16 %v808_v39, %v800_v38  ;;  %v838_v63 = vld [vmem:[%s12258_s19 + $0x260] sm:$0xff]  ;;  %v832_v2 = vld [vmem:[%s12258_s19 + $0x230] sm:$0xff]  ;;  %v857_v10 = vld [vmem:[%s12258_s19 + $0x2f8] sm:$0xff] }
 0x17c   : > { %11029 = vmatpush1.bf16.msra.mxu0 %v11028_v44  ;;  %v11112_v44 = vpack.c.bf16 %v806_v35, %v798_v34  ;;  %v840_v3 = vld [vmem:[%s12258_s19 + $0x270] sm:$0xff]  ;;  %v12632_v7 = vld [vmem:[%s12247_s23 + $0x40] sm:$0xff]  ;;  %v863_v21 = vld [vmem:[%s12258_s19 + $0x328] sm:$0xff] }
 0x17d   : > { %11093 = vmatpush1.bf16.msra.mxu1 %v11092_v45  ;;  %11031 = vmatprep.subr.bf16.mxu0 %v11030_v46  ;;  %v817_v45 = vld [vmem:[%s12258_s19 + $0x1b8] sm:$0xff]  ;;  %v11184_v11 = vpack.c.bf16 %v840_v3, %v832_v2  ;;  %v846_v12 = vld [vmem:[%s12258_s19 + $0x2a0] sm:$0xff]  ;;  %v848_v18 = vld [vmem:[%s12258_s19 + $0x2b0] sm:$0xff] }
 0x17e   : > { %11095 = vmatprep.subr.bf16.mxu1 %v11094_v50  ;;  %v825_v46 = vld [vmem:[%s12258_s19 + $0x1f8] sm:$0xff]  ;;  %v854_v13 = vld [vmem:[%s12258_s19 + $0x2e0] sm:$0xff]  ;;  %v12650_v24 = vld [vmem:[%s12247_s23 + $0x50] sm:$0xff] }
 0x17f   : > { %v12605_v50 = vld [vmem:[%s12247_s23 + $0x38] sm:$0xff]  ;;  %v11178_v54 = vpack.c.bf16 %v825_v46, %v817_v45  ;;  %v11124_v25 = vpack.c.bf16 %v854_v13, %v846_v12  ;;  %v870_v31 = vld [vmem:[%s12258_s19 + $0x360] sm:$0xff]  ;;  %v12659_v32 = vld [vmem:[%s12247_s23 + $0x68] sm:$0xff] }
 0x180   : > { %11033 = vmatpush1.bf16.msra.mxu0 %v11032_v56  ;;  %v839_v56 = vld [vmem:[%s12258_s19 + $0x268] sm:$0xff]  ;;  %v873_v27 = vld [vmem:[%s12258_s19 + $0x378] sm:$0xff]  ;;  %v864_v34 = vld [vmem:[%s12258_s19 + $0x330] sm:$0xff] }
 0x181   : > { %11097 = vmatpush1.bf16.msra.mxu1 %v11096_v57  ;;  %11035 = vmatprep.subr.bf16.mxu0 %v11034_v58  ;;  %v12614_v57 = vld [vmem:[%s12247_s23 + $0x30] sm:$0xff]  ;;  %v11116_v58 = vpack.c.bf16 %v822_v49, %v814_v48  ;;  %v11118_v1 = vpack.c.bf16 %v839_v56, %v831_v55  ;;  %v879_v38 = vld [vmem:[%s12258_s19 + $0x3a8] sm:$0xff]  ;;  %v881_v42 = vld [vmem:[%s12258_s19 + $0x3b8] sm:$0xff] }
 0x182   : > { %11099 = vmatprep.subr.bf16.mxu1 %v11098_v62  ;;  %v830_v62 = vld [vmem:[%s12258_s19 + $0x220] sm:$0xff]  ;;  %v872_v35 = vld [vmem:[%s12258_s19 + $0x370] sm:$0xff]  ;;  %v887_v39 = vld [vmem:[%s12258_s19 + $0x3e8] sm:$0xff] }
 0x183   : > { %v11120_v8 = vpack.c.bf16 %v838_v63, %v830_v62  ;;  %v11192_v45 = vpack.c.bf16 %v872_v35, %v864_v34  ;;  %v878_v46 = vld [vmem:[%s12258_s19 + $0x3a0] sm:$0xff]  ;;  %v12677_v48 = vld [vmem:[%s12247_s23 + $0x78] sm:$0xff]  ;;  %v11130_v49 = vpack.c.bf16 %v887_v39, %v879_v38  ;;  %v888_v52 = vld [vmem:[%s12258_s19 + $0x3f0] sm:$0xff] }
 0x184   : > { %11037 = vmatpush1.bf16.msra.mxu0 %v11036_v4  ;;  %v11182_v4 = vpack.c.bf16 %v841_v60, %v833_v59  ;;  %v903_v55 = vld [vmem:[%s12258_s19 + $0x468] sm:$0xff]  ;;  %v12686_v56 = vld [vmem:[%s12247_s23 + $0x70] sm:$0xff]  ;;  %v897_v59 = vld [vmem:[%s12258_s19 + $0x438] sm:$0xff] }
 0x185   : > { %11101 = vmatpush1.bf16.msra.mxu1 %v11100_v5  ;;  %11103 = vmatprep.subr.bf16.mxu0 %v11102_v6  ;;  %v847_v5 = vld [vmem:[%s12258_s19 + $0x2a8] sm:$0xff]  ;;  %v905_v60 = vld [vmem:[%s12258_s19 + $0x478] sm:$0xff]  ;;  %v894_v62 = vld [vmem:[%s12258_s19 + $0x420] sm:$0xff] }
 0x186   : > { %11167 = vmatprep.subr.bf16.mxu1 %v11166_v9  ;;  %v855_v6 = vld [vmem:[%s12258_s19 + $0x2e8] sm:$0xff]  ;;  %v849_v9 = vld [vmem:[%s12258_s19 + $0x2b8] sm:$0xff]  ;;  %v902_v63 = vld [vmem:[%s12258_s19 + $0x460] sm:$0xff] }
 0x187   : > { %1083 = vmatmul.mubr.f32.vlgmr.msra.gmra.mrb[0].mxu0 %v12562_v14  ;;  %v11122_v16 = vpack.c.bf16 %v855_v6, %v847_v5  ;;  %v11186_v20 = vpack.c.bf16 %v857_v10, %v849_v9  ;;  %v896_v3 = vld [vmem:[%s12258_s19 + $0x430] sm:$0xff]  ;;  %v11198_v5 = vpack.c.bf16 %v905_v60, %v897_v59  ;;  %v911_v6 = vld [vmem:[%s12258_s19 + $0x4a8] sm:$0xff]  ;;  %v12704_v9 = vld [vmem:[%s12247_s23 + $0x80] sm:$0xff]  ;;  %v11136_v10 = vpack.c.bf16 %v902_v63, %v894_v62 }
 0x188   : > { %1244 = vmatmul.mubr.f32.vlgmr.msra.gmra.mrb[0].mxu1 %v12562_v14  ;;  %11105 = vmatpush1.bf16.msra.mxu0 %v11104_v15  ;;  %v12641_v15 = vld [vmem:[%s12247_s23 + $0x58] sm:$0xff]  ;;  %v926_v35 = vld [vmem:[%s12258_s19 + $0x520] sm:$0xff]  ;;  %v12731_v38 = vld [vmem:[%s12247_s23 + $0xa8] sm:$0xff] }
 0x189   : > { %11169 = vmatpush1.bf16.msra.mxu1 %v11168_v19  ;;  %1088 = vmatprep.mubr.f32.mxu0 %v12569_v22  ;;  %v856_v19 = vld [vmem:[%s12258_s19 + $0x2f0] sm:$0xff]  ;;  %v921_v12 = vld [vmem:[%s12258_s19 + $0x4f8] sm:$0xff]  ;;  %v959_v63 = vld [vmem:[%s12258_s19 + $0x628] sm:$0xff] }
 0x18a   : > { %1249 = vmatprep.mubr.f32.mxu1 %v12569_v22  ;;  %11107 = vmatprep.subr.bf16.mxu0 %v11106_v23  ;;  %v871_v23 = vld [vmem:[%s12258_s19 + $0x368] sm:$0xff]  ;;  %v11188_v28 = vpack.c.bf16 %v856_v19, %v848_v18  ;;  %v918_v18 = vld [vmem:[%s12258_s19 + $0x4e0] sm:$0xff]  ;;  %v12713_v19 = vld [vmem:[%s12247_s23 + $0x98] sm:$0xff] }
 0x18b   : > { %1089 = vmatmul.mubr.f32.gmra.mrb[2].mxu0 %v12578_v29  ;;  %11171 = vmatprep.subr.bf16.mxu1 %v11170_v26  ;;  %v865_v26 = vld [vmem:[%s12258_s19 + $0x338] sm:$0xff]  ;;  %v944_v60 = vld [vmem:[%s12258_s19 + $0x5b0] sm:$0xff] }
 0x18c   : > { %1250 = vmatmul.mubr.f32.gmra.mrb[2].mxu1 %v12578_v29  ;;  %11109 = vmatpush1.bf16.msra.mxu0 %v11108_v30  ;;  %v862_v30 = vld [vmem:[%s12258_s19 + $0x320] sm:$0xff] }
 0x18d   : > { %11173 = vmatpush1.bf16.msra.mxu1 %v11172_v33  ;;  %1094 = vmatprep.mubr.f32.mxu0 %v12587_v36  ;;  %v11126_v33 = vpack.c.bf16 %v871_v23, %v863_v21  ;;  %v11128_v41 = vpack.c.bf16 %v870_v31, %v862_v30  ;;  %v912_v21 = vld [vmem:[%s12258_s19 + $0x4b0] sm:$0xff]  ;;  %v929_v31 = vld [vmem:[%s12258_s19 + $0x538] sm:$0xff] }
 0x18e   : > { %1255 = vmatprep.mubr.f32.mxu1 %v12587_v36  ;;  %11111 = vmatprep.subr.bf16.mxu0 %v11110_v37  ;;  %v11190_v37 = vpack.c.bf16 %v873_v27, %v865_v26  ;;  %v920_v23 = vld [vmem:[%s12258_s19 + $0x4f0] sm:$0xff]  ;;  %v927_v26 = vld [vmem:[%s12258_s19 + $0x528] sm:$0xff] }
 0x18f   : > { %1095 = vmatmul.mubr.f32.gmra.mrb[4].mxu0 %v12596_v43  ;;  %11175 = vmatprep.subr.bf16.mxu1 %v11174_v40  ;;  %v12668_v40 = vld [vmem:[%s12247_s23 + $0x60] sm:$0xff]  ;;  %v935_v27 = vld [vmem:[%s12258_s19 + $0x568] sm:$0xff]  ;;  %v11204_v34 = vpack.c.bf16 %v920_v23, %v912_v21 }
 0x190   : > { %1256 = vmatmul.mubr.f32.gmra.mrb[4].mxu1 %v12596_v43  ;;  %11113 = vmatpush1.bf16.msra.mxu0 %v11112_v44  ;;  %v889_v44 = vld [vmem:[%s12258_s19 + $0x3f8] sm:$0xff]  ;;  %v11142_v39 = vpack.c.bf16 %v935_v27, %v927_v26  ;;  %v975_v21 = vld [vmem:[%s12258_s19 + $0x6a8] sm:$0xff] }
 0x191   : > { %11177 = vmatpush1.bf16.msra.mxu1 %v11176_v47  ;;  %1100 = vmatprep.mubr.f32.mxu0 %v12605_v50  ;;  %v886_v47 = vld [vmem:[%s12258_s19 + $0x3e0] sm:$0xff]  ;;  %v11194_v53 = vpack.c.bf16 %v889_v44, %v881_v42  ;;  %v936_v42 = vld [vmem:[%s12258_s19 + $0x570] sm:$0xff]  ;;  %v983_v23 = vld [vmem:[%s12258_s19 + $0x6e8] sm:$0xff] }
 0x192   : > { %1261 = vmatprep.mubr.f32.mxu1 %v12605_v50  ;;  %11115 = vmatprep.subr.bf16.mxu0 %v11114_v51  ;;  %v880_v51 = vld [vmem:[%s12258_s19 + $0x3b0] sm:$0xff]  ;;  %v977_v27 = vld [vmem:[%s12258_s19 + $0x6b8] sm:$0xff] }
 0x193   : > { %1101 = vmatmul.mubr.f32.gmra.mrb[6].mxu0 %v12614_v57  ;;  %11179 = vmatprep.subr.bf16.mxu1 %v11178_v54  ;;  %v895_v54 = vld [vmem:[%s12258_s19 + $0x428] sm:$0xff] }
 0x194   : > { %1262 = vmatmul.mubr.f32.gmra.mrb[6].mxu1 %v12614_v57  ;;  %11117 = vmatpush1.bf16.msra.mxu0 %v11116_v58  ;;  %v11132_v58 = vpack.c.bf16 %v886_v47, %v878_v46  ;;  %v11134_v2 = vpack.c.bf16 %v903_v55, %v895_v54  ;;  %v951_v46 = vld [vmem:[%s12258_s19 + $0x5e8] sm:$0xff]  ;;  %v12740_v47 = vld [vmem:[%s12247_s23 + $0xa0] sm:$0xff] }
 0x195   : > { %11181 = vmatpush1.bf16.msra.mxu1 %v11180_v61  ;;  %1106 = vmatprep.mubr.f32.mxu0 %v12623_v0  ;;  %v11196_v61 = vpack.c.bf16 %v888_v52, %v880_v51  ;;  %v945_v51 = vld [vmem:[%s12258_s19 + $0x5b8] sm:$0xff]  ;;  %v942_v54 = vld [vmem:[%s12258_s19 + $0x5a0] sm:$0xff] }
 0x196   : > { %1267 = vmatprep.mubr.f32.mxu1 %v12623_v0  ;;  %11119 = vmatprep.subr.bf16.mxu0 %v11118_v1  ;;  %v12695_v1 = vld [vmem:[%s12247_s23 + $0x88] sm:$0xff]  ;;  %v953_v52 = vld [vmem:[%s12258_s19 + $0x5f8] sm:$0xff]  ;;  %v950_v55 = vld [vmem:[%s12258_s19 + $0x5e0] sm:$0xff] }
 0x197   : > { %1107 = vmatmul.mubr.f32.gmra.mrb[8].mxu0 %v12632_v7  ;;  %11183 = vmatprep.subr.bf16.mxu1 %v11182_v4  ;;  %v904_v4 = vld [vmem:[%s12258_s19 + $0x470] sm:$0xff]  ;;  %v11210_v62 = vpack.c.bf16 %v953_v52, %v945_v51  ;;  %v993_v51 = vld [vmem:[%s12258_s19 + $0x738] sm:$0xff] }
 0x198   : > { %1268 = vmatmul.mubr.f32.gmra.mrb[8].mxu1 %v12632_v7  ;;  %11121 = vmatpush1.bf16.msra.mxu0 %v11120_v8  ;;  %v919_v8 = vld [vmem:[%s12258_s19 + $0x4e8] sm:$0xff]  ;;  %v11200_v13 = vpack.c.bf16 %v904_v4, %v896_v3  ;;  %v12758_v3 = vld [vmem:[%s12247_s23 + $0xb0] sm:$0xff]  ;;  %v11148_v4 = vpack.c.bf16 %v950_v55, %v942_v54  ;;  %v1001_v52 = vld [vmem:[%s12258_s19 + $0x778] sm:$0xff] }
 0x199   : > { %11185 = vmatpush1.bf16.msra.mxu1 %v11184_v11  ;;  %1112 = vmatprep.mubr.f32.mxu0 %v12641_v15  ;;  %v913_v11 = vld [vmem:[%s12258_s19 + $0x4b8] sm:$0xff]  ;;  %v990_v54 = vld [vmem:[%s12258_s19 + $0x720] sm:$0xff] }
 0x19a   : > { %1273 = vmatprep.mubr.f32.mxu1 %v12641_v15  ;;  %11123 = vmatprep.subr.bf16.mxu0 %v11122_v16  ;;  %v910_v16 = vld [vmem:[%s12258_s19 + $0x4a0] sm:$0xff] }
 0x19b   : > { %1113 = vmatmul.mubr.f32.gmra.mrb[10].mxu0 %v12650_v24  ;;  %11187 = vmatprep.subr.bf16.mxu1 %v11186_v20  ;;  %v11138_v20 = vpack.c.bf16 %v919_v8, %v911_v6  ;;  %v11140_v30 = vpack.c.bf16 %v918_v18, %v910_v16  ;;  %v969_v6 = vld [vmem:[%s12258_s19 + $0x678] sm:$0xff]  ;;  %v960_v16 = vld [vmem:[%s12258_s19 + $0x630] sm:$0xff]  ;;  %v998_v55 = vld [vmem:[%s12258_s19 + $0x760] sm:$0xff] }
 0x19c   : > { %1274 = vmatmul.mubr.f32.gmra.mrb[10].mxu1 %v12650_v24  ;;  %11125 = vmatpush1.bf16.msra.mxu0 %v11124_v25  ;;  %v11202_v25 = vpack.c.bf16 %v921_v12, %v913_v11  ;;  %v966_v11 = vld [vmem:[%s12258_s19 + $0x660] sm:$0xff]  ;;  %v12767_v12 = vld [vmem:[%s12247_s23 + $0xc8] sm:$0xff]  ;;  %v968_v18 = vld [vmem:[%s12258_s19 + $0x670] sm:$0xff] }
 0x19d   : > { %11189 = vmatpush1.bf16.msra.mxu1 %v11188_v28  ;;  %1118 = vmatprep.mubr.f32.mxu0 %v12659_v32  ;;  %v12722_v28 = vld [vmem:[%s12247_s23 + $0x90] sm:$0xff] }
 0x19e   : > { %1279 = vmatprep.mubr.f32.mxu1 %v12659_v32  ;;  %11127 = vmatprep.subr.bf16.mxu0 %v11126_v33  ;;  %v937_v33 = vld [vmem:[%s12258_s19 + $0x578] sm:$0xff] }
 0x19f   : > { %1119 = vmatmul.mubr.f32.gmra.mrb[12].mxu0 %v12668_v40  ;;  %11191 = vmatprep.subr.bf16.mxu1 %v11190_v37  ;;  %v934_v37 = vld [vmem:[%s12258_s19 + $0x560] sm:$0xff]  ;;  %v11206_v44 = vpack.c.bf16 %v937_v33, %v929_v31  ;;  %v11216_v31 = vpack.c.bf16 %v968_v18, %v960_v16  ;;  %v12821_v18 = vld [vmem:[%s12247_s23 + $0xf8] sm:$0xff] }
 0x1a0   : > { %1280 = vmatmul.mubr.f32.gmra.mrb[12].mxu1 %v12668_v40  ;;  %11129 = vmatpush1.bf16.msra.mxu0 %v11128_v41  ;;  %v928_v41 = vld [vmem:[%s12258_s19 + $0x530] sm:$0xff]  ;;  %v974_v33 = vld [vmem:[%s12258_s19 + $0x6a0] sm:$0xff] }
 0x1a1   : > { %11193 = vmatpush1.bf16.msra.mxu1 %v11192_v45  ;;  %1124 = vmatprep.mubr.f32.mxu0 %v12677_v48  ;;  %v943_v45 = vld [vmem:[%s12258_s19 + $0x5a8] sm:$0xff]  ;;  %v1014_v16 = vld [vmem:[%s12258_s19 + $0x7e0] sm:$0xff] }
 0x1a2   : > { %1285 = vmatprep.mubr.f32.mxu1 %v12677_v48  ;;  %11131 = vmatprep.subr.bf16.mxu0 %v11130_v49  ;;  %v11144_v49 = vpack.c.bf16 %v934_v37, %v926_v35  ;;  %v11146_v59 = vpack.c.bf16 %v951_v46, %v943_v45  ;;  %v12785_v35 = vld [vmem:[%s12247_s23 + $0xd8] sm:$0xff]  ;;  %v11154_v37 = vpack.c.bf16 %v983_v23, %v975_v21  ;;  %v999_v45 = vld [vmem:[%s12258_s19 + $0x768] sm:$0xff]  ;;  %v12794_v46 = vld [vmem:[%s12247_s23 + $0xd0] sm:$0xff] }
 0x1a3   : > { %1125 = vmatmul.mubr.f32.gmra.mrb[14].mxu0 %v12686_v56  ;;  %11195 = vmatprep.subr.bf16.mxu1 %v11194_v53  ;;  %v11208_v53 = vpack.c.bf16 %v936_v42, %v928_v41  ;;  %v984_v41 = vld [vmem:[%s12258_s19 + $0x6f0] sm:$0xff] }
 0x1a4   : > { %1286 = vmatmul.mubr.f32.gmra.mrb[14].mxu1 %v12686_v56  ;;  %11133 = vmatpush1.bf16.msra.mxu0 %v11132_v58  ;;  %v12749_v58 = vld [vmem:[%s12247_s23 + $0xb8] sm:$0xff]  ;;  %v1008_v21 = vld [vmem:[%s12258_s19 + $0x7b0] sm:$0xff] }
 0x1a5   : > { %11197 = vmatpush1.bf16.msra.mxu1 %v11196_v61  ;;  %1130 = vmatprep.mubr.f32.mxu0 %v12695_v1  ;;  %v952_v61 = vld [vmem:[%s12258_s19 + $0x5f0] sm:$0xff] }
 0x1a6   : > { %1291 = vmatprep.mubr.f32.mxu1 %v12695_v1  ;;  %11135 = vmatprep.subr.bf16.mxu0 %v11134_v2  ;;  %v967_v2 = vld [vmem:[%s12258_s19 + $0x668] sm:$0xff]  ;;  %v11212_v8 = vpack.c.bf16 %v952_v61, %v944_v60  ;;  %v992_v61 = vld [vmem:[%s12258_s19 + $0x730] sm:$0xff] }
 0x1a7   : > { %1131 = vmatmul.mubr.f32.gmra.mrb[16].mxu0 %v12704_v9  ;;  %11199 = vmatprep.subr.bf16.mxu1 %v11198_v5  ;;  %v961_v5 = vld [vmem:[%s12258_s19 + $0x638] sm:$0xff]  ;;  %v1016_v23 = vld [vmem:[%s12258_s19 + $0x7f0] sm:$0xff] }
 0x1a8   : > { %1292 = vmatmul.mubr.f32.gmra.mrb[16].mxu1 %v12704_v9  ;;  %11137 = vmatpush1.bf16.msra.mxu0 %v11136_v10  ;;  %v958_v10 = vld [vmem:[%s12258_s19 + $0x620] sm:$0xff] }
 0x1a9   : > { %11201 = vmatpush1.bf16.msra.mxu1 %v11200_v13  ;;  %1136 = vmatprep.mubr.f32.mxu0 %v12713_v19  ;;  %v11150_v13 = vpack.c.bf16 %v967_v2, %v959_v63  ;;  %v11152_v26 = vpack.c.bf16 %v966_v11, %v958_v10  ;;  %v11222_v63 = vpack.c.bf16 %v1001_v52, %v993_v51  ;;  %v1007_v2 = vld [vmem:[%s12258_s19 + $0x7a8] sm:$0xff]  ;;  %v1017_v10 = vld [vmem:[%s12258_s19 + $0x7f8] sm:$0xff]  ;;  %v628_v51 = vld [vmem:[#allocation2 + $0xd0] sm:$0xff] }
 0x1aa   : > { %1297 = vmatprep.mubr.f32.mxu1 %v12713_v19  ;;  %11139 = vmatprep.subr.bf16.mxu0 %v11138_v20  ;;  %v11214_v20 = vpack.c.bf16 %v969_v6, %v961_v5  ;;  %v12812_v5 = vld [vmem:[%s12247_s23 + $0xe0] sm:$0xff]  ;;  %v11160_v6 = vpack.c.bf16 %v998_v55, %v990_v54  ;;  %v627_v52 = vld [vmem:[#allocation2 + $0xc8] sm:$0xff]  ;;  %v629_v54 = vld [vmem:[#allocation2 + $0xd8] sm:$0xff] }
 0x1ab   : > { %1137 = vmatmul.mubr.f32.gmra.mrb[18].mxu0 %v12722_v28  ;;  %11203 = vmatprep.subr.bf16.mxu1 %v11202_v25  ;;  %v12776_v25 = vld [vmem:[%s12247_s23 + $0xc0] sm:$0xff] }
 0x1ac   : > { %1298 = vmatmul.mubr.f32.gmra.mrb[18].mxu1 %v12722_v28  ;;  %11141 = vmatpush1.bf16.msra.mxu0 %v11140_v30  ;;  %v985_v30 = vld [vmem:[%s12258_s19 + $0x6f8] sm:$0xff] }
 0x1ad   : > { %11205 = vmatpush1.bf16.msra.mxu1 %v11204_v34  ;;  %1142 = vmatprep.mubr.f32.mxu0 %v12731_v38  ;;  %v982_v34 = vld [vmem:[%s12258_s19 + $0x6e0] sm:$0xff]  ;;  %v11218_v42 = vpack.c.bf16 %v985_v30, %v977_v27  ;;  %v12828_v27 = vld [vmem:[%s12247_s23 + $0xf0] sm:$0xff] }
 0x1ae   : > { %1303 = vmatprep.mubr.f32.mxu1 %v12731_v38  ;;  %11143 = vmatprep.subr.bf16.mxu0 %v11142_v39  ;;  %v976_v39 = vld [vmem:[%s12258_s19 + $0x6b0] sm:$0xff] }
 0x1af   : > { %1143 = vmatmul.mubr.f32.gmra.mrb[20].mxu0 %v12740_v47  ;;  %11207 = vmatprep.subr.bf16.mxu1 %v11206_v44  ;;  %v991_v44 = vld [vmem:[%s12258_s19 + $0x728] sm:$0xff] }
 0x1b0   : > { %1304 = vmatmul.mubr.f32.gmra.mrb[20].mxu1 %v12740_v47  ;;  %11145 = vmatpush1.bf16.msra.mxu0 %v11144_v49  ;;  %v11156_v49 = vpack.c.bf16 %v982_v34, %v974_v33  ;;  %v11158_v60 = vpack.c.bf16 %v999_v45, %v991_v44  ;;  %v619_v33 = vld [vmem:[#allocation2 + $0x88] sm:$0xff] }
 0x1b1   : > { %11209 = vmatpush1.bf16.msra.mxu1 %v11208_v53  ;;  %1148 = vmatprep.mubr.f32.mxu0 %v12749_v58  ;;  %v11220_v53 = vpack.c.bf16 %v984_v41, %v976_v39 }
 0x1b2   : > { %1309 = vmatprep.mubr.f32.mxu1 %v12749_v58  ;;  %11147 = vmatprep.subr.bf16.mxu0 %v11146_v59  ;;  %v12803_v59 = vld [vmem:[%s12247_s23 + $0xe8] sm:$0xff]  ;;  %s18490_s23 = sld [smem:[#allocation25_spill]] }
 0x1b3   : > { %1149 = vmatmul.mubr.f32.gmra.mrb[22].mxu0 %v12758_v3  ;;  %11211 = vmatprep.subr.bf16.mxu1 %v11210_v62  ;;  %v1000_v62 = vld [vmem:[%s12258_s19 + $0x770] sm:$0xff] }
 0x1b4   : > { %1310 = vmatmul.mubr.f32.gmra.mrb[22].mxu1 %v12758_v3  ;;  %11149 = vmatpush1.bf16.msra.mxu0 %v11148_v4  ;;  %v1015_v4 = vld [vmem:[%s12258_s19 + $0x7e8] sm:$0xff]  ;;  %v11224_v11 = vpack.c.bf16 %v1000_v62, %v992_v61 }
 0x1b5   : > { %11213 = vmatpush1.bf16.msra.mxu1 %v11212_v8  ;;  %1154 = vmatprep.mubr.f32.mxu0 %v12767_v12  ;;  %v1009_v8 = vld [vmem:[%s12258_s19 + $0x7b8] sm:$0xff] }
 0x1b6   : > { %1315 = vmatprep.mubr.f32.mxu1 %v12767_v12  ;;  %11151 = vmatprep.subr.bf16.mxu0 %v11150_v13  ;;  %v1006_v13 = vld [vmem:[%s12258_s19 + $0x7a0] sm:$0xff] }
 0x1b7   : > { %1155 = vmatmul.mubr.f32.gmra.mrb[24].mxu0 %v12776_v25  ;;  %11215 = vmatprep.subr.bf16.mxu1 %v11214_v20  ;;  %v11162_v20 = vpack.c.bf16 %v1015_v4, %v1007_v2  ;;  %v11164_v30 = vpack.c.bf16 %v1014_v16, %v1006_v13  ;;  %v634_v2 = vld [vmem:[#allocation2 + $0x100] sm:$0xff] }
 0x1b8   : > { %1316 = vmatmul.mubr.f32.gmra.mrb[24].mxu1 %v12776_v25  ;;  %11153 = vmatpush1.bf16.msra.mxu0 %v11152_v26  ;;  %v11226_v26 = vpack.c.bf16 %v1017_v10, %v1009_v8  ;;  %v637_v10 = vld [vmem:[#allocation2 + $0x118] sm:$0xff]  ;;  %p10948_p6 = scmp.ne.s32.totalorder %s18490_s23, 1 }
 0x1b9   : > { %11217 = vmatpush1.bf16.msra.mxu1 %v11216_v31  ;;  %1160 = vmatprep.mubr.f32.mxu0 %v12785_v35  ;;  %v11228_v31 = vpack.c.bf16 %v1016_v23, %v1008_v21  ;;  %v642_v23 = vld [vmem:[#allocation2 + $0x140] sm:$0xff] }
 0x1ba   : > { %1321 = vmatprep.mubr.f32.mxu1 %v12785_v35  ;;  %11155 = vmatprep.subr.bf16.mxu0 %v11154_v37 }
 0x1bb   : > { %1161 = vmatmul.mubr.f32.gmra.mrb[26].mxu0 %v12794_v46  ;;  %11219 = vmatprep.subr.bf16.mxu1 %v11218_v42 }
 0x1bc   : > { %1322 = vmatmul.mubr.f32.gmra.mrb[26].mxu1 %v12794_v46  ;;  %11157 = vmatpush1.bf16.msra.mxu0 %v11156_v49 }
 0x1bd   : > { %11221 = vmatpush1.bf16.msra.mxu1 %v11220_v53  ;;  %1166 = vmatprep.mubr.f32.mxu0 %v12803_v59 }
 0x1be   : > { %1327 = vmatprep.mubr.f32.mxu1 %v12803_v59  ;;  %11159 = vmatprep.subr.bf16.mxu0 %v11158_v60 }
 0x1bf   : > { %1167 = vmatmul.mubr.f32.gmra.mrb[28].mxu0 %v12812_v5  ;;  %11223 = vmatprep.subr.bf16.mxu1 %v11222_v63 }
 0x1c0   : > { %1328 = vmatmul.mubr.f32.gmra.mrb[28].mxu1 %v12812_v5  ;;  %11161 = vmatpush1.bf16.msra.mxu0 %v11160_v6  ;;  %v635_v6 = vld [vmem:[#allocation2 + $0x108] sm:$0xff] }
 0x1c1   : > { %11225 = vmatpush1.bf16.msra.mxu1 %v11224_v11  ;;  %1172 = vmatprep.mubr.f32.mxu0 %v12821_v18 }
 0x1c2   : > { %1333 = vmatprep.mubr.f32.mxu1 %v12821_v18  ;;  %11163 = vmatprep.subr.bf16.mxu0 %v11162_v20 }
 0x1c3   : > { %1173 = vmatmul.mubr.f32.gmra.mrb[30].mxu0 %v12828_v27  ;;  %11227 = vmatprep.subr.bf16.mxu1 %v11226_v26 }
 0x1c4   : > { %1334 = vmatmul.mubr.f32.gmra.mrb[30].mxu1 %v12828_v27  ;;  %11165 = vmatpush1.bf16.msra.mxu0 %v11164_v30  ;;  %v643_v30 = vld [vmem:[#allocation2 + $0x148] sm:$0xff] }
 0x1c5   : > { %11229 = vmatpush1.bf16.msra.mxu1 %v11228_v31  ;;  %1404 = vmatprep.mubr.f32.mxu0 %v12517_v17 }
 0x1c6   : > { %1565 = vmatprep.mubr.f32.mxu1 %v12517_v17  ;;  %v602_v17 = vld [vmem:[#allocation2] sm:$0xff] }
 0x1c7   : > { %1405 = vmatmul.mubr.f32.vlgmr.msra.gmra.mrb[32].mxu0 %v12562_v14 }
 0x1c8   : > { %1566 = vmatmul.mubr.f32.vlgmr.msra.gmra.mrb[32].mxu1 %v12562_v14  ;;  %1410 = vmatprep.mubr.f32.mxu0 %v12569_v22  ;;  %v604_v14 = vld [vmem:[#allocation2 + $0x10] sm:$0xff] }
 0x1c9   : > { %1571 = vmatprep.mubr.f32.mxu1 %v12569_v22  ;;  %v603_v22 = vld [vmem:[#allocation2 + $0x8] sm:$0xff] }
 0x1cb   : > { %1411 = vmatmul.mubr.f32.gmra.mrb[34].mxu0 %v12578_v29 }
 0x1cc   : > { %1572 = vmatmul.mubr.f32.gmra.mrb[34].mxu1 %v12578_v29  ;;  %1416 = vmatprep.mubr.f32.mxu0 %v12587_v36 }
 0x1cd   : > { %1577 = vmatprep.mubr.f32.mxu1 %v12587_v36  ;;  %v605_v36 = vld [vmem:[#allocation2 + $0x18] sm:$0xff] }
 0x1cf   : > { %1417 = vmatmul.mubr.f32.gmra.mrb[36].mxu0 %v12596_v43 }
 0x1d0   : > { %1578 = vmatmul.mubr.f32.gmra.mrb[36].mxu1 %v12596_v43  ;;  %1422 = vmatprep.mubr.f32.mxu0 %v12605_v50 }
 0x1d1   : > { %1583 = vmatprep.mubr.f32.mxu1 %v12605_v50 }
 0x1d3   : > { %1423 = vmatmul.mubr.f32.gmra.mrb[38].mxu0 %v12614_v57 }
 0x1d4   : > { %1584 = vmatmul.mubr.f32.gmra.mrb[38].mxu1 %v12614_v57  ;;  %1428 = vmatprep.mubr.f32.mxu0 %v12623_v0 }
 0x1d5   : > { %1589 = vmatprep.mubr.f32.mxu1 %v12623_v0 }
 0x1d7   : > { %1429 = vmatmul.mubr.f32.gmra.mrb[40].mxu0 %v12632_v7 }
 0x1d8   : > { %1590 = vmatmul.mubr.f32.gmra.mrb[40].mxu1 %v12632_v7  ;;  %1434 = vmatprep.mubr.f32.mxu0 %v12641_v15 }
 0x1d9   : > { %1595 = vmatprep.mubr.f32.mxu1 %v12641_v15 }
 0x1db   : > { %1435 = vmatmul.mubr.f32.gmra.mrb[42].mxu0 %v12650_v24 }
 0x1dc   : > { %1596 = vmatmul.mubr.f32.gmra.mrb[42].mxu1 %v12650_v24  ;;  %1440 = vmatprep.mubr.f32.mxu0 %v12659_v32  ;;  %v610_v24 = vld [vmem:[#allocation2 + $0x40] sm:$0xff] }
 0x1dd   : > { %1601 = vmatprep.mubr.f32.mxu1 %v12659_v32 }
 0x1df   : > { %1441 = vmatmul.mubr.f32.gmra.mrb[44].mxu0 %v12668_v40 }
 0x1e0   : > { %1602 = vmatmul.mubr.f32.gmra.mrb[44].mxu1 %v12668_v40  ;;  %1446 = vmatprep.mubr.f32.mxu0 %v12677_v48  ;;  %v612_v40 = vld [vmem:[#allocation2 + $0x50] sm:$0xff] }
 0x1e1   : > { %1607 = vmatprep.mubr.f32.mxu1 %v12677_v48  ;;  %v611_v48 = vld [vmem:[#allocation2 + $0x48] sm:$0xff] }
 0x1e3   : > { %1447 = vmatmul.mubr.f32.gmra.mrb[46].mxu0 %v12686_v56 }
 0x1e4   : > { %1608 = vmatmul.mubr.f32.gmra.mrb[46].mxu1 %v12686_v56  ;;  %1452 = vmatprep.mubr.f32.mxu0 %v12695_v1 }
 0x1e5   : > { %1613 = vmatprep.mubr.f32.mxu1 %v12695_v1  ;;  %v613_v1 = vld [vmem:[#allocation2 + $0x58] sm:$0xff] }
 0x1e7   : > { %1453 = vmatmul.mubr.f32.gmra.mrb[48].mxu0 %v12704_v9 }
 0x1e8   : > { %1614 = vmatmul.mubr.f32.gmra.mrb[48].mxu1 %v12704_v9  ;;  %1458 = vmatprep.mubr.f32.mxu0 %v12713_v19 }
 0x1e9   : > { %1619 = vmatprep.mubr.f32.mxu1 %v12713_v19 }
 0x1eb   : > { %1459 = vmatmul.mubr.f32.gmra.mrb[50].mxu0 %v12722_v28 }
 0x1ec   : > { %1620 = vmatmul.mubr.f32.gmra.mrb[50].mxu1 %v12722_v28  ;;  %1464 = vmatprep.mubr.f32.mxu0 %v12731_v38 }
 0x1ed   : > { %1625 = vmatprep.mubr.f32.mxu1 %v12731_v38 }
 0x1ef   : > { %1465 = vmatmul.mubr.f32.gmra.mrb[52].mxu0 %v12740_v47 }
 0x1f0   : > { %1626 = vmatmul.mubr.f32.gmra.mrb[52].mxu1 %v12740_v47  ;;  %1470 = vmatprep.mubr.f32.mxu0 %v12749_v58 }
 0x1f1   : > { %1631 = vmatprep.mubr.f32.mxu1 %v12749_v58 }
 0x1f3   : > { %1471 = vmatmul.mubr.f32.gmra.mrb[54].mxu0 %v12758_v3 }
 0x1f4   : > { %1632 = vmatmul.mubr.f32.gmra.mrb[54].mxu1 %v12758_v3  ;;  %1476 = vmatprep.mubr.f32.mxu0 %v12767_v12  ;;  %v618_v3 = vld [vmem:[#allocation2 + $0x80] sm:$0xff] }
 0x1f5   : > { %1637 = vmatprep.mubr.f32.mxu1 %v12767_v12 }
 0x1f7   : > { %1477 = vmatmul.mubr.f32.gmra.mrb[56].mxu0 %v12776_v25 }
 0x1f8   : > { %1638 = vmatmul.mubr.f32.gmra.mrb[56].mxu1 %v12776_v25  ;;  %1482 = vmatprep.mubr.f32.mxu0 %v12785_v35  ;;  %v620_v25 = vld [vmem:[#allocation2 + $0x90] sm:$0xff] }
 0x1f9   : > { %1643 = vmatprep.mubr.f32.mxu1 %v12785_v35  ;;  %v621_v35 = vld [vmem:[#allocation2 + $0x98] sm:$0xff] }
 0x1fb   : > { %1483 = vmatmul.mubr.f32.gmra.mrb[58].mxu0 %v12794_v46 }
 0x1fc   : > { %1644 = vmatmul.mubr.f32.gmra.mrb[58].mxu1 %v12794_v46  ;;  %1488 = vmatprep.mubr.f32.mxu0 %v12803_v59  ;;  %v626_v46 = vld [vmem:[#allocation2 + $0xc0] sm:$0xff] }
 0x1fd   : > { %1649 = vmatprep.mubr.f32.mxu1 %v12803_v59 }
 0x1ff   : > { %1489 = vmatmul.mubr.f32.gmra.mrb[60].mxu0 %v12812_v5 }
 0x200   : > { %1650 = vmatmul.mubr.f32.gmra.mrb[60].mxu1 %v12812_v5  ;;  %1494 = vmatprep.mubr.f32.mxu0 %v12821_v18  ;;  %v636_v5 = vld [vmem:[#allocation2 + $0x110] sm:$0xff] }
 0x201   : > { %1655 = vmatprep.mubr.f32.mxu1 %v12821_v18 }
 0x203   : > { %1495 = vmatmul.mubr.f32.gmra.mrb[62].mxu0 %v12828_v27 }
 0x204   : > { %1656 = vmatmul.mubr.f32.gmra.mrb[62].mxu1 %v12828_v27  ;;  %v644_v27 = vld [vmem:[#allocation2 + $0x150] sm:$0xff] }
 0x25a   : > { %v1084_v29 = vpop.f32.mrb[0].mxu0 }
 0x25b   : > { %v1662_v43 = vadd.f32 %v1084_v29, %v602_v17  ;;  %v1245_v50 = vpop.f32.mrb[0].mxu1  ;;  %v1086_v57 = vpop.f32.mrb[1].mxu0  ;;  %v645_v17 = vld [vmem:[#allocation2 + $0x158] sm:$0xff] }
 0x25c   : > { %v1664_v0 = vadd.f32 %v1245_v50, %v604_v14  ;;  %v1663_v7 = vadd.f32 %v1086_v57, %v603_v22  ;;  %v1247_v15 = vpop.f32.mrb[1].mxu1  ;;  %v650_v57 = vld [vmem:[#allocation2 + $0x180] sm:$0xff] }
 0x25d   : > { %1790 = vst [vmem:[#allocation2] sm:$0xff] %v1662_v43  ;;  %v1665_v32 = vadd.f32 %v1247_v15, %v605_v36  ;;  %v651_v15 = vld [vmem:[#allocation2 + $0x188] sm:$0xff] }
 0x25e   : > { %1792 = vst [vmem:[#allocation2 + $0x10] sm:$0xff] %v1664_v0  ;;  %1791 = vst [vmem:[#allocation2 + $0x8] sm:$0xff] %v1663_v7  ;;  %v1090_v56 = vpop.f32.mrb[2].mxu0  ;;  %v652_v7 = vld [vmem:[#allocation2 + $0x190] sm:$0xff] }
 0x25f   : > { %1793 = vst [vmem:[#allocation2 + $0x18] sm:$0xff] %v1665_v32  ;;  %v1670_v9 = vadd.f32 %v1090_v56, %v610_v24  ;;  %v1251_v19 = vpop.f32.mrb[2].mxu1  ;;  %v1092_v28 = vpop.f32.mrb[3].mxu0  ;;  %v653_v32 = vld [vmem:[#allocation2 + $0x198] sm:$0xff] }
 0x260   : > { %v1672_v38 = vadd.f32 %v1251_v19, %v612_v40  ;;  %v1671_v47 = vadd.f32 %v1092_v28, %v611_v48  ;;  %v1253_v58 = vpop.f32.mrb[3].mxu1  ;;  %v658_v28 = vld [vmem:[#allocation2 + $0x1c0] sm:$0xff] }
 0x261   : > { %1798 = vst [vmem:[#allocation2 + $0x40] sm:$0xff] %v1670_v9  ;;  %v1673_v12 = vadd.f32 %v1253_v58, %v613_v1  ;;  %v659_v58 = vld [vmem:[#allocation2 + $0x1c8] sm:$0xff] }
 0x262   : > { %1800 = vst [vmem:[#allocation2 + $0x50] sm:$0xff] %v1672_v38  ;;  %1799 = vst [vmem:[#allocation2 + $0x48] sm:$0xff] %v1671_v47  ;;  %v1096_v34 = vpop.f32.mrb[4].mxu0  ;;  %v660_v47 = vld [vmem:[#allocation2 + $0x1d0] sm:$0xff] }
 0x263   : > { %1801 = vst [vmem:[#allocation2 + $0x58] sm:$0xff] %v1673_v12  ;;  %v1678_v37 = vadd.f32 %v1096_v34, %v618_v3  ;;  %v1257_v39 = vpop.f32.mrb[4].mxu1  ;;  %v1098_v41 = vpop.f32.mrb[5].mxu0  ;;  %v661_v12 = vld [vmem:[#allocation2 + $0x1d8] sm:$0xff] }
 0x264   : > { %v1680_v42 = vadd.f32 %v1257_v39, %v620_v25  ;;  %v1679_v44 = vadd.f32 %v1098_v41, %v619_v33  ;;  %v1259_v45 = vpop.f32.mrb[5].mxu1  ;;  %v666_v41 = vld [vmem:[#allocation2 + $0x200] sm:$0xff] }
 0x265   : > { %1806 = vst [vmem:[#allocation2 + $0x80] sm:$0xff] %v1678_v37  ;;  %v1681_v49 = vadd.f32 %v1259_v45, %v621_v35  ;;  %v667_v45 = vld [vmem:[#allocation2 + $0x208] sm:$0xff] }
 0x266   : > { %1808 = vst [vmem:[#allocation2 + $0x90] sm:$0xff] %v1680_v42  ;;  %1807 = vst [vmem:[#allocation2 + $0x88] sm:$0xff] %v1679_v44  ;;  %v1102_v53 = vpop.f32.mrb[6].mxu0  ;;  %v668_v44 = vld [vmem:[#allocation2 + $0x210] sm:$0xff] }
 0x267   : > { %1809 = vst [vmem:[#allocation2 + $0x98] sm:$0xff] %v1681_v49  ;;  %v1686_v55 = vadd.f32 %v1102_v53, %v626_v46  ;;  %v1263_v59 = vpop.f32.mrb[6].mxu1  ;;  %v1104_v60 = vpop.f32.mrb[7].mxu0  ;;  %v669_v49 = vld [vmem:[#allocation2 + $0x218] sm:$0xff] }
 0x268   : > { %v1688_v61 = vadd.f32 %v1263_v59, %v628_v51  ;;  %v1687_v62 = vadd.f32 %v1104_v60, %v627_v52  ;;  %v1265_v63 = vpop.f32.mrb[7].mxu1  ;;  %v674_v60 = vld [vmem:[#allocation2 + $0x240] sm:$0xff] }
 0x269   : > { %1814 = vst [vmem:[#allocation2 + $0xc0] sm:$0xff] %v1686_v55  ;;  %v1689_v4 = vadd.f32 %v1265_v63, %v629_v54  ;;  %v675_v63 = vld [vmem:[#allocation2 + $0x248] sm:$0xff] }
 0x26a   : > { %1816 = vst [vmem:[#allocation2 + $0xd0] sm:$0xff] %v1688_v61  ;;  %1815 = vst [vmem:[#allocation2 + $0xc8] sm:$0xff] %v1687_v62  ;;  %v1108_v8 = vpop.f32.mrb[8].mxu0  ;;  %v676_v62 = vld [vmem:[#allocation2 + $0x250] sm:$0xff] }
 0x26b   : > { %1817 = vst [vmem:[#allocation2 + $0xd8] sm:$0xff] %v1689_v4  ;;  %v1694_v11 = vadd.f32 %v1108_v8, %v634_v2  ;;  %v1269_v13 = vpop.f32.mrb[8].mxu1  ;;  %v1110_v16 = vpop.f32.mrb[9].mxu0  ;;  %v677_v4 = vld [vmem:[#allocation2 + $0x258] sm:$0xff] }
 0x26c   : > { %v1696_v18 = vadd.f32 %v1269_v13, %v636_v5  ;;  %v1695_v20 = vadd.f32 %v1110_v16, %v635_v6  ;;  %v1271_v21 = vpop.f32.mrb[9].mxu1  ;;  %v682_v16 = vld [vmem:[#allocation2 + $0x280] sm:$0xff] }
 0x26d   : > { %1822 = vst [vmem:[#allocation2 + $0x100] sm:$0xff] %v1694_v11  ;;  %v1697_v26 = vadd.f32 %v1271_v21, %v637_v10  ;;  %v683_v21 = vld [vmem:[#allocation2 + $0x288] sm:$0xff] }
 0x26e   : > { %1824 = vst [vmem:[#allocation2 + $0x110] sm:$0xff] %v1696_v18  ;;  %1823 = vst [vmem:[#allocation2 + $0x108] sm:$0xff] %v1695_v20  ;;  %v1114_v31 = vpop.f32.mrb[10].mxu0  ;;  %v684_v20 = vld [vmem:[#allocation2 + $0x290] sm:$0xff] }
 0x26f   : > { %1825 = vst [vmem:[#allocation2 + $0x118] sm:$0xff] %v1697_v26  ;;  %v1702_v14 = vadd.f32 %v1114_v31, %v642_v23  ;;  %v1275_v22 = vpop.f32.mrb[10].mxu1  ;;  %v1116_v29 = vpop.f32.mrb[11].mxu0  ;;  %v685_v26 = vld [vmem:[#allocation2 + $0x298] sm:$0xff] }
 0x270   : > { %v1704_v36 = vadd.f32 %v1275_v22, %v644_v27  ;;  %v1703_v43 = vadd.f32 %v1116_v29, %v643_v30  ;;  %v1277_v50 = vpop.f32.mrb[11].mxu1  ;;  %v690_v29 = vld [vmem:[#allocation2 + $0x2c0] sm:$0xff] }
 0x271   : > { %1830 = vst [vmem:[#allocation2 + $0x140] sm:$0xff] %v1702_v14  ;;  %v1705_v0 = vadd.f32 %v1277_v50, %v645_v17  ;;  %v691_v50 = vld [vmem:[#allocation2 + $0x2c8] sm:$0xff] }
 0x272   : > { %1832 = vst [vmem:[#allocation2 + $0x150] sm:$0xff] %v1704_v36  ;;  %1831 = vst [vmem:[#allocation2 + $0x148] sm:$0xff] %v1703_v43  ;;  %v1120_v24 = vpop.f32.mrb[12].mxu0  ;;  %v692_v43 = vld [vmem:[#allocation2 + $0x2d0] sm:$0xff] }
 0x273   : > { %1833 = vst [vmem:[#allocation2 + $0x158] sm:$0xff] %v1705_v0  ;;  %v1710_v40 = vadd.f32 %v1120_v24, %v650_v57  ;;  %v1281_v48 = vpop.f32.mrb[12].mxu1  ;;  %v1122_v56 = vpop.f32.mrb[13].mxu0  ;;  %v693_v0 = vld [vmem:[#allocation2 + $0x2d8] sm:$0xff] }
 0x274   : > { %v1712_v1 = vadd.f32 %v1281_v48, %v652_v7  ;;  %v1711_v9 = vadd.f32 %v1122_v56, %v651_v15  ;;  %v1283_v19 = vpop.f32.mrb[13].mxu1  ;;  %v698_v56 = vld [vmem:[#allocation2 + $0x300] sm:$0xff] }
 0x275   : > { %1838 = vst [vmem:[#allocation2 + $0x180] sm:$0xff] %v1710_v40  ;;  %v1713_v38 = vadd.f32 %v1283_v19, %v653_v32  ;;  %v699_v19 = vld [vmem:[#allocation2 + $0x308] sm:$0xff] }
 0x276   : > { %1840 = vst [vmem:[#allocation2 + $0x190] sm:$0xff] %v1712_v1  ;;  %1839 = vst [vmem:[#allocation2 + $0x188] sm:$0xff] %v1711_v9  ;;  %v1126_v3 = vpop.f32.mrb[14].mxu0  ;;  %v700_v9 = vld [vmem:[#allocation2 + $0x310] sm:$0xff] }
 0x277   : > { %1841 = vst [vmem:[#allocation2 + $0x198] sm:$0xff] %v1713_v38  ;;  %v1718_v25 = vadd.f32 %v1126_v3, %v658_v28  ;;  %v1287_v33 = vpop.f32.mrb[14].mxu1  ;;  %v1128_v34 = vpop.f32.mrb[15].mxu0  ;;  %v701_v38 = vld [vmem:[#allocation2 + $0x318] sm:$0xff] }
 0x278   : > { %v1720_v35 = vadd.f32 %v1287_v33, %v660_v47  ;;  %v1719_v37 = vadd.f32 %v1128_v34, %v659_v58  ;;  %v1289_v39 = vpop.f32.mrb[15].mxu1  ;;  %v706_v34 = vld [vmem:[#allocation2 + $0x340] sm:$0xff] }
 0x279   : > { %1846 = vst [vmem:[#allocation2 + $0x1c0] sm:$0xff] %v1718_v25  ;;  %v1721_v42 = vadd.f32 %v1289_v39, %v661_v12  ;;  %v707_v39 = vld [vmem:[#allocation2 + $0x348] sm:$0xff] }
 0x27a   : > { %1848 = vst [vmem:[#allocation2 + $0x1d0] sm:$0xff] %v1720_v35  ;;  %1847 = vst [vmem:[#allocation2 + $0x1c8] sm:$0xff] %v1719_v37  ;;  %v1132_v46 = vpop.f32.mrb[16].mxu0  ;;  %v708_v37 = vld [vmem:[#allocation2 + $0x350] sm:$0xff] }
 0x27b   : > { %1849 = vst [vmem:[#allocation2 + $0x1d8] sm:$0xff] %v1721_v42  ;;  %v1726_v51 = vadd.f32 %v1132_v46, %v666_v41  ;;  %v1293_v52 = vpop.f32.mrb[16].mxu1  ;;  %v1134_v53 = vpop.f32.mrb[17].mxu0  ;;  %v709_v42 = vld [vmem:[#allocation2 + $0x358] sm:$0xff] }
 0x27c   : > { %v1728_v54 = vadd.f32 %v1293_v52, %v668_v44  ;;  %v1727_v55 = vadd.f32 %v1134_v53, %v667_v45  ;;  %v1295_v59 = vpop.f32.mrb[17].mxu1  ;;  %v714_v53 = vld [vmem:[#allocation2 + $0x380] sm:$0xff] }
 0x27d   : > { %1854 = vst [vmem:[#allocation2 + $0x200] sm:$0xff] %v1726_v51  ;;  %v1729_v61 = vadd.f32 %v1295_v59, %v669_v49  ;;  %v715_v59 = vld [vmem:[#allocation2 + $0x388] sm:$0xff] }
 0x27e   : > { %1856 = vst [vmem:[#allocation2 + $0x210] sm:$0xff] %v1728_v54  ;;  %1855 = vst [vmem:[#allocation2 + $0x208] sm:$0xff] %v1727_v55  ;;  %v1138_v2 = vpop.f32.mrb[18].mxu0  ;;  %v716_v55 = vld [vmem:[#allocation2 + $0x390] sm:$0xff] }
 0x27f   : > { %1857 = vst [vmem:[#allocation2 + $0x218] sm:$0xff] %v1729_v61  ;;  %v1734_v5 = vadd.f32 %v1138_v2, %v674_v60  ;;  %v1299_v6 = vpop.f32.mrb[18].mxu1  ;;  %v1140_v8 = vpop.f32.mrb[19].mxu0  ;;  %v717_v61 = vld [vmem:[#allocation2 + $0x398] sm:$0xff] }
 0x280   : > { %v1736_v10 = vadd.f32 %v1299_v6, %v676_v62  ;;  %v1735_v11 = vadd.f32 %v1140_v8, %v675_v63  ;;  %v1301_v13 = vpop.f32.mrb[19].mxu1  ;;  %v722_v8 = vld [vmem:[#allocation2 + $0x3c0] sm:$0xff] }
 0x281   : > { %1862 = vst [vmem:[#allocation2 + $0x240] sm:$0xff] %v1734_v5  ;;  %v1737_v18 = vadd.f32 %v1301_v13, %v677_v4  ;;  %v723_v13 = vld [vmem:[#allocation2 + $0x3c8] sm:$0xff] }
 0x282   : > { %1864 = vst [vmem:[#allocation2 + $0x250] sm:$0xff] %v1736_v10  ;;  %1863 = vst [vmem:[#allocation2 + $0x248] sm:$0xff] %v1735_v11  ;;  %v1144_v23 = vpop.f32.mrb[20].mxu0  ;;  %v724_v11 = vld [vmem:[#allocation2 + $0x3d0] sm:$0xff] }
 0x283   : > { %1865 = vst [vmem:[#allocation2 + $0x258] sm:$0xff] %v1737_v18  ;;  %v1742_v27 = vadd.f32 %v1144_v23, %v682_v16  ;;  %v1305_v30 = vpop.f32.mrb[20].mxu1  ;;  %v1146_v31 = vpop.f32.mrb[21].mxu0  ;;  %v725_v18 = vld [vmem:[#allocation2 + $0x3d8] sm:$0xff] }
 0x284   : > { %v1744_v17 = vadd.f32 %v1305_v30, %v684_v20  ;;  %v1743_v14 = vadd.f32 %v1146_v31, %v683_v21  ;;  %v1307_v22 = vpop.f32.mrb[21].mxu1  ;;  %v606_v31 = vld [vmem:[#allocation2 + $0x20] sm:$0xff] }
 0x285   : > { %1870 = vst [vmem:[#allocation2 + $0x280] sm:$0xff] %v1742_v27  ;;  %v1745_v36 = vadd.f32 %v1307_v22, %v685_v26  ;;  %v607_v22 = vld [vmem:[#allocation2 + $0x28] sm:$0xff] }
 0x286   : > { %1872 = vst [vmem:[#allocation2 + $0x290] sm:$0xff] %v1744_v17  ;;  %1871 = vst [vmem:[#allocation2 + $0x288] sm:$0xff] %v1743_v14  ;;  %v1150_v57 = vpop.f32.mrb[22].mxu0  ;;  %v608_v14 = vld [vmem:[#allocation2 + $0x30] sm:$0xff] }
 0x287   : > { %1873 = vst [vmem:[#allocation2 + $0x298] sm:$0xff] %v1745_v36  ;;  %v1750_v7 = vadd.f32 %v1150_v57, %v690_v29  ;;  %v1311_v15 = vpop.f32.mrb[22].mxu1  ;;  %v1152_v24 = vpop.f32.mrb[23].mxu0  ;;  %v609_v36 = vld [vmem:[#allocation2 + $0x38] sm:$0xff] }
 0x288   : > { %v1752_v32 = vadd.f32 %v1311_v15, %v692_v43  ;;  %v1751_v40 = vadd.f32 %v1152_v24, %v691_v50  ;;  %v1313_v48 = vpop.f32.mrb[23].mxu1  ;;  %v614_v24 = vld [vmem:[#allocation2 + $0x60] sm:$0xff] }
 0x289   : > { %1878 = vst [vmem:[#allocation2 + $0x2c0] sm:$0xff] %v1750_v7  ;;  %v1753_v1 = vadd.f32 %v1313_v48, %v693_v0  ;;  %v615_v48 = vld [vmem:[#allocation2 + $0x68] sm:$0xff] }
 0x28a   : > { %1880 = vst [vmem:[#allocation2 + $0x2d0] sm:$0xff] %v1752_v32  ;;  %1879 = vst [vmem:[#allocation2 + $0x2c8] sm:$0xff] %v1751_v40  ;;  %v1156_v28 = vpop.f32.mrb[24].mxu0  ;;  %v616_v40 = vld [vmem:[#allocation2 + $0x70] sm:$0xff] }
 0x28b   : > { %1881 = vst [vmem:[#allocation2 + $0x2d8] sm:$0xff] %v1753_v1  ;;  %v1758_v47 = vadd.f32 %v1156_v28, %v698_v56  ;;  %v1317_v58 = vpop.f32.mrb[24].mxu1  ;;  %v1158_v3 = vpop.f32.mrb[25].mxu0  ;;  %v617_v1 = vld [vmem:[#allocation2 + $0x78] sm:$0xff] }
 0x28c   : > { %v1760_v12 = vadd.f32 %v1317_v58, %v700_v9  ;;  %v1759_v25 = vadd.f32 %v1158_v3, %v699_v19  ;;  %v1319_v33 = vpop.f32.mrb[25].mxu1  ;;  %v622_v3 = vld [vmem:[#allocation2 + $0xa0] sm:$0xff] }
 0x28d   : > { %1886 = vst [vmem:[#allocation2 + $0x300] sm:$0xff] %v1758_v47  ;;  %v1761_v35 = vadd.f32 %v1319_v33, %v701_v38  ;;  %v623_v33 = vld [vmem:[#allocation2 + $0xa8] sm:$0xff] }
 0x28e   : > { %1888 = vst [vmem:[#allocation2 + $0x310] sm:$0xff] %v1760_v12  ;;  %1887 = vst [vmem:[#allocation2 + $0x308] sm:$0xff] %v1759_v25  ;;  %v1162_v41 = vpop.f32.mrb[26].mxu0  ;;  %v624_v25 = vld [vmem:[#allocation2 + $0xb0] sm:$0xff] }
 0x28f   : > { %1889 = vst [vmem:[#allocation2 + $0x318] sm:$0xff] %v1761_v35  ;;  %v1766_v44 = vadd.f32 %v1162_v41, %v706_v34  ;;  %v1323_v45 = vpop.f32.mrb[26].mxu1  ;;  %v1164_v46 = vpop.f32.mrb[27].mxu0  ;;  %v625_v35 = vld [vmem:[#allocation2 + $0xb8] sm:$0xff] }
 0x290   : > { %v1768_v49 = vadd.f32 %v1323_v45, %v708_v37  ;;  %v1767_v51 = vadd.f32 %v1164_v46, %v707_v39  ;;  %v1325_v52 = vpop.f32.mrb[27].mxu1  ;;  %v630_v46 = vld [vmem:[#allocation2 + $0xe0] sm:$0xff] }
 0x291   : > { %1894 = vst [vmem:[#allocation2 + $0x340] sm:$0xff] %v1766_v44  ;;  %v1769_v54 = vadd.f32 %v1325_v52, %v709_v42  ;;  %v631_v52 = vld [vmem:[#allocation2 + $0xe8] sm:$0xff] }
 0x292   : > { %1896 = vst [vmem:[#allocation2 + $0x350] sm:$0xff] %v1768_v49  ;;  %1895 = vst [vmem:[#allocation2 + $0x348] sm:$0xff] %v1767_v51  ;;  %v1168_v60 = vpop.f32.mrb[28].mxu0  ;;  %v632_v51 = vld [vmem:[#allocation2 + $0xf0] sm:$0xff] }
 0x293   : > { %1897 = vst [vmem:[#allocation2 + $0x358] sm:$0xff] %v1769_v54  ;;  %v1774_v62 = vadd.f32 %v1168_v60, %v714_v53  ;;  %v1329_v63 = vpop.f32.mrb[28].mxu1  ;;  %v1170_v2 = vpop.f32.mrb[29].mxu0  ;;  %v633_v54 = vld [vmem:[#allocation2 + $0xf8] sm:$0xff] }
 0x294   : > { %v1776_v4 = vadd.f32 %v1329_v63, %v716_v55  ;;  %v1775_v5 = vadd.f32 %v1170_v2, %v715_v59  ;;  %v1331_v6 = vpop.f32.mrb[29].mxu1  ;;  %v638_v2 = vld [vmem:[#allocation2 + $0x120] sm:$0xff] }
 0x295   : > { %1902 = vst [vmem:[#allocation2 + $0x380] sm:$0xff] %v1774_v62  ;;  %v1777_v10 = vadd.f32 %v1331_v6, %v717_v61  ;;  %v639_v6 = vld [vmem:[#allocation2 + $0x128] sm:$0xff] }
 0x296   : > { %1904 = vst [vmem:[#allocation2 + $0x390] sm:$0xff] %v1776_v4  ;;  %1903 = vst [vmem:[#allocation2 + $0x388] sm:$0xff] %v1775_v5  ;;  %v1174_v16 = vpop.f32.mrb[30].mxu0  ;;  %v640_v5 = vld [vmem:[#allocation2 + $0x130] sm:$0xff] }
 0x297   : > { %1905 = vst [vmem:[#allocation2 + $0x398] sm:$0xff] %v1777_v10  ;;  %v1782_v20 = vadd.f32 %v1174_v16, %v722_v8  ;;  %v1335_v21 = vpop.f32.mrb[30].mxu1  ;;  %v1176_v23 = vpop.f32.mrb[31].mxu0  ;;  %v641_v10 = vld [vmem:[#allocation2 + $0x138] sm:$0xff] }
 0x298   : > { %v1784_v26 = vadd.f32 %v1335_v21, %v724_v11  ;;  %v1783_v27 = vadd.f32 %v1176_v23, %v723_v13  ;;  %v1337_v30 = vpop.f32.mrb[31].mxu1  ;;  %v646_v23 = vld [vmem:[#allocation2 + $0x160] sm:$0xff] }
 0x299   : > { %1910 = vst [vmem:[#allocation2 + $0x3c0] sm:$0xff] %v1782_v20  ;;  %v1785_v17 = vadd.f32 %v1337_v30, %v725_v18  ;;  %v647_v30 = vld [vmem:[#allocation2 + $0x168] sm:$0xff] }
 0x29a   : > { %1912 = vst [vmem:[#allocation2 + $0x3d0] sm:$0xff] %v1784_v26  ;;  %1911 = vst [vmem:[#allocation2 + $0x3c8] sm:$0xff] %v1783_v27  ;;  %v1406_v29 = vpop.f32.mrb[32].mxu0  ;;  %v648_v27 = vld [vmem:[#allocation2 + $0x170] sm:$0xff] }
 0x29b   : > { %1913 = vst [vmem:[#allocation2 + $0x3d8] sm:$0xff] %v1785_v17  ;;  %v1666_v43 = vadd.f32 %v1406_v29, %v606_v31  ;;  %v1567_v50 = vpop.f32.mrb[32].mxu1  ;;  %v1408_v57 = vpop.f32.mrb[33].mxu0  ;;  %v649_v17 = vld [vmem:[#allocation2 + $0x178] sm:$0xff] }
 0x29c   : > { %v1668_v0 = vadd.f32 %v1567_v50, %v608_v14  ;;  %v1667_v7 = vadd.f32 %v1408_v57, %v607_v22  ;;  %v1569_v15 = vpop.f32.mrb[33].mxu1  ;;  %v654_v57 = vld [vmem:[#allocation2 + $0x1a0] sm:$0xff] }
 0x29d   : > { %1794 = vst [vmem:[#allocation2 + $0x20] sm:$0xff] %v1666_v43  ;;  %v1669_v32 = vadd.f32 %v1569_v15, %v609_v36  ;;  %v655_v15 = vld [vmem:[#allocation2 + $0x1a8] sm:$0xff] }
 0x29e   : > { %1796 = vst [vmem:[#allocation2 + $0x30] sm:$0xff] %v1668_v0  ;;  %1795 = vst [vmem:[#allocation2 + $0x28] sm:$0xff] %v1667_v7  ;;  %v1412_v56 = vpop.f32.mrb[34].mxu0  ;;  %v656_v7 = vld [vmem:[#allocation2 + $0x1b0] sm:$0xff] }
 0x29f   : > { %1797 = vst [vmem:[#allocation2 + $0x38] sm:$0xff] %v1669_v32  ;;  %v1674_v9 = vadd.f32 %v1412_v56, %v614_v24  ;;  %v1573_v19 = vpop.f32.mrb[34].mxu1  ;;  %v1414_v28 = vpop.f32.mrb[35].mxu0  ;;  %v657_v32 = vld [vmem:[#allocation2 + $0x1b8] sm:$0xff] }
 0x2a0   : > { %v1676_v38 = vadd.f32 %v1573_v19, %v616_v40  ;;  %v1675_v47 = vadd.f32 %v1414_v28, %v615_v48  ;;  %v1575_v58 = vpop.f32.mrb[35].mxu1  ;;  %v662_v28 = vld [vmem:[#allocation2 + $0x1e0] sm:$0xff] }
 0x2a1   : > { %1802 = vst [vmem:[#allocation2 + $0x60] sm:$0xff] %v1674_v9  ;;  %v1677_v12 = vadd.f32 %v1575_v58, %v617_v1  ;;  %v663_v58 = vld [vmem:[#allocation2 + $0x1e8] sm:$0xff] }
 0x2a2   : > { %1804 = vst [vmem:[#allocation2 + $0x70] sm:$0xff] %v1676_v38  ;;  %1803 = vst [vmem:[#allocation2 + $0x68] sm:$0xff] %v1675_v47  ;;  %v1418_v34 = vpop.f32.mrb[36].mxu0  ;;  %v664_v47 = vld [vmem:[#allocation2 + $0x1f0] sm:$0xff] }
 0x2a3   : > { %1805 = vst [vmem:[#allocation2 + $0x78] sm:$0xff] %v1677_v12  ;;  %v1682_v37 = vadd.f32 %v1418_v34, %v622_v3  ;;  %v1579_v39 = vpop.f32.mrb[36].mxu1  ;;  %v1420_v41 = vpop.f32.mrb[37].mxu0  ;;  %v665_v12 = vld [vmem:[#allocation2 + $0x1f8] sm:$0xff] }
 0x2a4   : > { %v1684_v42 = vadd.f32 %v1579_v39, %v624_v25  ;;  %v1683_v44 = vadd.f32 %v1420_v41, %v623_v33  ;;  %v1581_v45 = vpop.f32.mrb[37].mxu1  ;;  %v670_v41 = vld [vmem:[#allocation2 + $0x220] sm:$0xff] }
 0x2a5   : > { %1810 = vst [vmem:[#allocation2 + $0xa0] sm:$0xff] %v1682_v37  ;;  %v1685_v49 = vadd.f32 %v1581_v45, %v625_v35  ;;  %v671_v45 = vld [vmem:[#allocation2 + $0x228] sm:$0xff] }
 0x2a6   : > { %1812 = vst [vmem:[#allocation2 + $0xb0] sm:$0xff] %v1684_v42  ;;  %1811 = vst [vmem:[#allocation2 + $0xa8] sm:$0xff] %v1683_v44  ;;  %v1424_v53 = vpop.f32.mrb[38].mxu0  ;;  %v672_v44 = vld [vmem:[#allocation2 + $0x230] sm:$0xff] }
 0x2a7   : > { %1813 = vst [vmem:[#allocation2 + $0xb8] sm:$0xff] %v1685_v49  ;;  %v1690_v55 = vadd.f32 %v1424_v53, %v630_v46  ;;  %v1585_v59 = vpop.f32.mrb[38].mxu1  ;;  %v1426_v60 = vpop.f32.mrb[39].mxu0  ;;  %v673_v49 = vld [vmem:[#allocation2 + $0x238] sm:$0xff] }
 0x2a8   : > { %v1692_v61 = vadd.f32 %v1585_v59, %v632_v51  ;;  %v1691_v62 = vadd.f32 %v1426_v60, %v631_v52  ;;  %v1587_v63 = vpop.f32.mrb[39].mxu1  ;;  %v678_v60 = vld [vmem:[#allocation2 + $0x260] sm:$0xff] }
 0x2a9   : > { %1818 = vst [vmem:[#allocation2 + $0xe0] sm:$0xff] %v1690_v55  ;;  %v1693_v4 = vadd.f32 %v1587_v63, %v633_v54  ;;  %v679_v63 = vld [vmem:[#allocation2 + $0x268] sm:$0xff] }
 0x2aa   : > { %1820 = vst [vmem:[#allocation2 + $0xf0] sm:$0xff] %v1692_v61  ;;  %1819 = vst [vmem:[#allocation2 + $0xe8] sm:$0xff] %v1691_v62  ;;  %v1430_v8 = vpop.f32.mrb[40].mxu0  ;;  %v680_v62 = vld [vmem:[#allocation2 + $0x270] sm:$0xff] }
 0x2ab   : > { %1821 = vst [vmem:[#allocation2 + $0xf8] sm:$0xff] %v1693_v4  ;;  %v1698_v11 = vadd.f32 %v1430_v8, %v638_v2  ;;  %v1591_v13 = vpop.f32.mrb[40].mxu1  ;;  %v1432_v16 = vpop.f32.mrb[41].mxu0  ;;  %v681_v4 = vld [vmem:[#allocation2 + $0x278] sm:$0xff] }
 0x2ac   : > { %v1700_v18 = vadd.f32 %v1591_v13, %v640_v5  ;;  %v1699_v20 = vadd.f32 %v1432_v16, %v639_v6  ;;  %v1593_v21 = vpop.f32.mrb[41].mxu1  ;;  %v686_v16 = vld [vmem:[#allocation2 + $0x2a0] sm:$0xff] }
 0x2ad   : > { %1826 = vst [vmem:[#allocation2 + $0x120] sm:$0xff] %v1698_v11  ;;  %v1701_v26 = vadd.f32 %v1593_v21, %v641_v10  ;;  %v687_v21 = vld [vmem:[#allocation2 + $0x2a8] sm:$0xff] }
 0x2ae   : > { %1828 = vst [vmem:[#allocation2 + $0x130] sm:$0xff] %v1700_v18  ;;  %1827 = vst [vmem:[#allocation2 + $0x128] sm:$0xff] %v1699_v20  ;;  %v1436_v31 = vpop.f32.mrb[42].mxu0  ;;  %v688_v20 = vld [vmem:[#allocation2 + $0x2b0] sm:$0xff] }
 0x2af   : > { %1829 = vst [vmem:[#allocation2 + $0x138] sm:$0xff] %v1701_v26  ;;  %v1706_v14 = vadd.f32 %v1436_v31, %v646_v23  ;;  %v1597_v22 = vpop.f32.mrb[42].mxu1  ;;  %v1438_v29 = vpop.f32.mrb[43].mxu0  ;;  %v689_v26 = vld [vmem:[#allocation2 + $0x2b8] sm:$0xff] }
 0x2b0   : > { %v1708_v36 = vadd.f32 %v1597_v22, %v648_v27  ;;  %v1707_v43 = vadd.f32 %v1438_v29, %v647_v30  ;;  %v1599_v50 = vpop.f32.mrb[43].mxu1  ;;  %v694_v29 = vld [vmem:[#allocation2 + $0x2e0] sm:$0xff] }
 0x2b1   : > { %1834 = vst [vmem:[#allocation2 + $0x160] sm:$0xff] %v1706_v14  ;;  %v1709_v0 = vadd.f32 %v1599_v50, %v649_v17  ;;  %v695_v50 = vld [vmem:[#allocation2 + $0x2e8] sm:$0xff] }
 0x2b2   : > { %1836 = vst [vmem:[#allocation2 + $0x170] sm:$0xff] %v1708_v36  ;;  %1835 = vst [vmem:[#allocation2 + $0x168] sm:$0xff] %v1707_v43  ;;  %v1442_v24 = vpop.f32.mrb[44].mxu0  ;;  %v696_v43 = vld [vmem:[#allocation2 + $0x2f0] sm:$0xff] }
 0x2b3   : > { %1837 = vst [vmem:[#allocation2 + $0x178] sm:$0xff] %v1709_v0  ;;  %v1714_v40 = vadd.f32 %v1442_v24, %v654_v57  ;;  %v1603_v48 = vpop.f32.mrb[44].mxu1  ;;  %v1444_v56 = vpop.f32.mrb[45].mxu0  ;;  %v697_v0 = vld [vmem:[#allocation2 + $0x2f8] sm:$0xff] }
 0x2b4   : > { %v1716_v1 = vadd.f32 %v1603_v48, %v656_v7  ;;  %v1715_v9 = vadd.f32 %v1444_v56, %v655_v15  ;;  %v1605_v19 = vpop.f32.mrb[45].mxu1  ;;  %v702_v56 = vld [vmem:[#allocation2 + $0x320] sm:$0xff] }
 0x2b5   : > { %1842 = vst [vmem:[#allocation2 + $0x1a0] sm:$0xff] %v1714_v40  ;;  %v1717_v38 = vadd.f32 %v1605_v19, %v657_v32  ;;  %v703_v19 = vld [vmem:[#allocation2 + $0x328] sm:$0xff] }
 0x2b6   : > { %1844 = vst [vmem:[#allocation2 + $0x1b0] sm:$0xff] %v1716_v1  ;;  %1843 = vst [vmem:[#allocation2 + $0x1a8] sm:$0xff] %v1715_v9  ;;  %v1448_v3 = vpop.f32.mrb[46].mxu0  ;;  %v704_v9 = vld [vmem:[#allocation2 + $0x330] sm:$0xff] }
 0x2b7   : > { %1845 = vst [vmem:[#allocation2 + $0x1b8] sm:$0xff] %v1717_v38  ;;  %v1722_v25 = vadd.f32 %v1448_v3, %v662_v28  ;;  %v1609_v33 = vpop.f32.mrb[46].mxu1  ;;  %v1450_v34 = vpop.f32.mrb[47].mxu0  ;;  %v705_v38 = vld [vmem:[#allocation2 + $0x338] sm:$0xff] }
 0x2b8   : > { %v1724_v35 = vadd.f32 %v1609_v33, %v664_v47  ;;  %v1723_v37 = vadd.f32 %v1450_v34, %v663_v58  ;;  %v1611_v39 = vpop.f32.mrb[47].mxu1  ;;  %v710_v34 = vld [vmem:[#allocation2 + $0x360] sm:$0xff] }
 0x2b9   : > { %1850 = vst [vmem:[#allocation2 + $0x1e0] sm:$0xff] %v1722_v25  ;;  %v1725_v42 = vadd.f32 %v1611_v39, %v665_v12  ;;  %v711_v39 = vld [vmem:[#allocation2 + $0x368] sm:$0xff] }
 0x2ba   : > { %1852 = vst [vmem:[#allocation2 + $0x1f0] sm:$0xff] %v1724_v35  ;;  %1851 = vst [vmem:[#allocation2 + $0x1e8] sm:$0xff] %v1723_v37  ;;  %v1454_v46 = vpop.f32.mrb[48].mxu0  ;;  %v712_v37 = vld [vmem:[#allocation2 + $0x370] sm:$0xff] }
 0x2bb   : > { %1853 = vst [vmem:[#allocation2 + $0x1f8] sm:$0xff] %v1725_v42  ;;  %v1730_v51 = vadd.f32 %v1454_v46, %v670_v41  ;;  %v1615_v52 = vpop.f32.mrb[48].mxu1  ;;  %v1456_v53 = vpop.f32.mrb[49].mxu0  ;;  %v713_v42 = vld [vmem:[#allocation2 + $0x378] sm:$0xff] }
 0x2bc   : > { %v1732_v54 = vadd.f32 %v1615_v52, %v672_v44  ;;  %v1731_v55 = vadd.f32 %v1456_v53, %v671_v45  ;;  %v1617_v59 = vpop.f32.mrb[49].mxu1  ;;  %v718_v53 = vld [vmem:[#allocation2 + $0x3a0] sm:$0xff] }
 0x2bd   : > { %1858 = vst [vmem:[#allocation2 + $0x220] sm:$0xff] %v1730_v51  ;;  %v1733_v61 = vadd.f32 %v1617_v59, %v673_v49  ;;  %v719_v59 = vld [vmem:[#allocation2 + $0x3a8] sm:$0xff] }
 0x2be   : > { %1860 = vst [vmem:[#allocation2 + $0x230] sm:$0xff] %v1732_v54  ;;  %1859 = vst [vmem:[#allocation2 + $0x228] sm:$0xff] %v1731_v55  ;;  %v1460_v2 = vpop.f32.mrb[50].mxu0  ;;  %v720_v55 = vld [vmem:[#allocation2 + $0x3b0] sm:$0xff] }
 0x2bf   : > { %1861 = vst [vmem:[#allocation2 + $0x238] sm:$0xff] %v1733_v61  ;;  %v1738_v5 = vadd.f32 %v1460_v2, %v678_v60  ;;  %v1621_v6 = vpop.f32.mrb[50].mxu1  ;;  %v1462_v8 = vpop.f32.mrb[51].mxu0  ;;  %v721_v61 = vld [vmem:[#allocation2 + $0x3b8] sm:$0xff] }
 0x2c0   : > { %v1740_v10 = vadd.f32 %v1621_v6, %v680_v62  ;;  %v1739_v11 = vadd.f32 %v1462_v8, %v679_v63  ;;  %v1623_v13 = vpop.f32.mrb[51].mxu1  ;;  %v726_v8 = vld [vmem:[#allocation2 + $0x3e0] sm:$0xff] }
 0x2c1   : > { %1866 = vst [vmem:[#allocation2 + $0x260] sm:$0xff] %v1738_v5  ;;  %v1741_v18 = vadd.f32 %v1623_v13, %v681_v4  ;;  %v727_v13 = vld [vmem:[#allocation2 + $0x3e8] sm:$0xff] }
 0x2c2   : > { %1868 = vst [vmem:[#allocation2 + $0x270] sm:$0xff] %v1740_v10  ;;  %1867 = vst [vmem:[#allocation2 + $0x268] sm:$0xff] %v1739_v11  ;;  %v1466_v23 = vpop.f32.mrb[52].mxu0  ;;  %v728_v11 = vld [vmem:[#allocation2 + $0x3f0] sm:$0xff] }
 0x2c3   : > { %1869 = vst [vmem:[#allocation2 + $0x278] sm:$0xff] %v1741_v18  ;;  %v1746_v27 = vadd.f32 %v1466_v23, %v686_v16  ;;  %v1627_v30 = vpop.f32.mrb[52].mxu1  ;;  %v1468_v31 = vpop.f32.mrb[53].mxu0  ;;  %v729_v18 = vld [vmem:[#allocation2 + $0x3f8] sm:$0xff] }
 0x2c4   : > { %v1748_v17 = vadd.f32 %v1627_v30, %v688_v20  ;;  %v1747_v14 = vadd.f32 %v1468_v31, %v687_v21  ;;  %v1629_v22 = vpop.f32.mrb[53].mxu1 }
 0x2c5   : > { %1874 = vst [vmem:[#allocation2 + $0x2a0] sm:$0xff] %v1746_v27  ;;  %v1749_v36 = vadd.f32 %v1629_v22, %v689_v26 }
 0x2c6   : > { %1876 = vst [vmem:[#allocation2 + $0x2b0] sm:$0xff] %v1748_v17  ;;  %1875 = vst [vmem:[#allocation2 + $0x2a8] sm:$0xff] %v1747_v14  ;;  %v1472_v57 = vpop.f32.mrb[54].mxu0 }
 0x2c7   : > { %1877 = vst [vmem:[#allocation2 + $0x2b8] sm:$0xff] %v1749_v36  ;;  %v1754_v7 = vadd.f32 %v1472_v57, %v694_v29  ;;  %v1633_v15 = vpop.f32.mrb[54].mxu1  ;;  %v1474_v24 = vpop.f32.mrb[55].mxu0 }
 0x2c8   : > { %v1756_v32 = vadd.f32 %v1633_v15, %v696_v43  ;;  %v1755_v40 = vadd.f32 %v1474_v24, %v695_v50  ;;  %v1635_v48 = vpop.f32.mrb[55].mxu1 }
 0x2c9   : > { %1882 = vst [vmem:[#allocation2 + $0x2e0] sm:$0xff] %v1754_v7  ;;  %v1757_v1 = vadd.f32 %v1635_v48, %v697_v0 }
 0x2ca   : > { %1884 = vst [vmem:[#allocation2 + $0x2f0] sm:$0xff] %v1756_v32  ;;  %1883 = vst [vmem:[#allocation2 + $0x2e8] sm:$0xff] %v1755_v40  ;;  %v1478_v28 = vpop.f32.mrb[56].mxu0 }
 0x2cb   : > { %1885 = vst [vmem:[#allocation2 + $0x2f8] sm:$0xff] %v1757_v1  ;;  %v1762_v47 = vadd.f32 %v1478_v28, %v702_v56  ;;  %v1639_v58 = vpop.f32.mrb[56].mxu1  ;;  %v1480_v3 = vpop.f32.mrb[57].mxu0 }
 0x2cc   : > { %v1764_v12 = vadd.f32 %v1639_v58, %v704_v9  ;;  %v1763_v25 = vadd.f32 %v1480_v3, %v703_v19  ;;  %v1641_v33 = vpop.f32.mrb[57].mxu1 }
 0x2cd   : > { %1890 = vst [vmem:[#allocation2 + $0x320] sm:$0xff] %v1762_v47  ;;  %v1765_v35 = vadd.f32 %v1641_v33, %v705_v38 }
 0x2ce   : > { %1892 = vst [vmem:[#allocation2 + $0x330] sm:$0xff] %v1764_v12  ;;  %1891 = vst [vmem:[#allocation2 + $0x328] sm:$0xff] %v1763_v25  ;;  %v1484_v41 = vpop.f32.mrb[58].mxu0 }
 0x2cf   : > { %1893 = vst [vmem:[#allocation2 + $0x338] sm:$0xff] %v1765_v35  ;;  %v1770_v44 = vadd.f32 %v1484_v41, %v710_v34  ;;  %v1645_v45 = vpop.f32.mrb[58].mxu1  ;;  %v1486_v46 = vpop.f32.mrb[59].mxu0 }
 0x2d0   : > { %v1772_v49 = vadd.f32 %v1645_v45, %v712_v37  ;;  %v1771_v51 = vadd.f32 %v1486_v46, %v711_v39  ;;  %v1647_v52 = vpop.f32.mrb[59].mxu1 }
 0x2d1   : > { %1898 = vst [vmem:[#allocation2 + $0x360] sm:$0xff] %v1770_v44  ;;  %v1773_v54 = vadd.f32 %v1647_v52, %v713_v42 }
 0x2d2   : > { %1900 = vst [vmem:[#allocation2 + $0x370] sm:$0xff] %v1772_v49  ;;  %1899 = vst [vmem:[#allocation2 + $0x368] sm:$0xff] %v1771_v51  ;;  %v1490_v60 = vpop.f32.mrb[60].mxu0 }
 0x2d3   : > { %1901 = vst [vmem:[#allocation2 + $0x378] sm:$0xff] %v1773_v54  ;;  %v1778_v62 = vadd.f32 %v1490_v60, %v718_v53  ;;  %v1651_v63 = vpop.f32.mrb[60].mxu1  ;;  %v1492_v2 = vpop.f32.mrb[61].mxu0 }
 0x2d4   : > { %v1780_v4 = vadd.f32 %v1651_v63, %v720_v55  ;;  %v1779_v5 = vadd.f32 %v1492_v2, %v719_v59  ;;  %v1653_v6 = vpop.f32.mrb[61].mxu1 }
 0x2d5   : > { %1906 = vst [vmem:[#allocation2 + $0x3a0] sm:$0xff] %v1778_v62  ;;  %v1781_v10 = vadd.f32 %v1653_v6, %v721_v61  ;;  %1921 = sbr.rel (%p10948_p6) target bundleno = 1578 (0x62a), region = 68 }
 0x2d6   : > { %1908 = vst [vmem:[#allocation2 + $0x3b0] sm:$0xff] %v1780_v4  ;;  %1907 = vst [vmem:[#allocation2 + $0x3a8] sm:$0xff] %v1779_v5  ;;  %v1496_v16 = vpop.f32.mrb[62].mxu0 }
 0x2d7   : > { %1909 = vst [vmem:[#allocation2 + $0x3b8] sm:$0xff] %v1781_v10  ;;  %v1786_v20 = vadd.f32 %v1496_v16, %v726_v8  ;;  %v1657_v21 = vpop.f32.mrb[62].mxu1  ;;  %v1498_v23 = vpop.f32.mrb[63].mxu0 }
 0x2d8   : > { %v1788_v26 = vadd.f32 %v1657_v21, %v728_v11  ;;  %v1787_v27 = vadd.f32 %v1498_v23, %v727_v13  ;;  %v1659_v30 = vpop.f32.mrb[63].mxu1 }
 0x2d9   : > { %1914 = vst [vmem:[#allocation2 + $0x3e0] sm:$0xff] %v1786_v20  ;;  %v1789_v31 = vadd.f32 %v1659_v30, %v729_v18 }
 0x2da   : > { %1916 = vst [vmem:[#allocation2 + $0x3f0] sm:$0xff] %v1788_v26  ;;  %1915 = vst [vmem:[#allocation2 + $0x3e8] sm:$0xff] %v1787_v27 }
 0x2db   : > { %1917 = vst [vmem:[#allocation2 + $0x3f8] sm:$0xff] %v1789_v31 }
 0x2dc   : > { %v2052_v17 = vlaneseq  ;;  %v11823_v14 = vmov 1966171168   ;;  %v11824_v36 = vmov 1983009808   ;;  %v11825_v50 = vmov 1934713408  }
 0x2dd   : > { %v2254_v22 = vunpack.c.l.s4 %v11823_v14  ;;  %v3855_v43 = vunpack.c.l.s4 %v11824_v36  ;;  %v3887_v57 = vunpack.c.l.s4 %v11825_v50  ;;  %v1922_v40 = vld [vmem:[#allocation2] sm:$0xff]  ;;  %v1923_v48 = vld [vmem:[#allocation2 + $0x8] sm:$0xff]  ;;  %v1924_v56 = vld [vmem:[#allocation2 + $0x10] sm:$0xff]  ;;  %s11826_s6 = smov 64  }
 0x2de   : > { %v12899_v29 = vshrl.u32 %v2052_v17, 7  ;;  %v1925_v1 = vld [vmem:[#allocation2 + $0x18] sm:$0xff]  ;;  %v1928_v47 = vld [vmem:[#allocation2 + $0x30] sm:$0xff]  ;;  %v2050_v37 = vld [vmem:[#allocation8] sm:$0xff] }
 0x2df   : > { %v2255_v0 = vunpack.c.0.s8 %v2254_v22  ;;  %v3856_v28 = vunpack.c.0.s8 %v3855_v43  ;;  %v3888_v38 = vunpack.c.0.s8 %v3887_v57  ;;  %v1929_v58 = vld [vmem:[#allocation2 + $0x38] sm:$0xff]  ;;  %v1936_v3 = vld [vmem:[#allocation2 + $0x70] sm:$0xff] }
 0x2e0   : > { %18491 = vst [vmem:[#allocation39_spill] sm:$0xff] %v12899_v29  ;;  %v12902_v7 = vsub.s32 0, %v12899_v29  ;;  %v2058_v15 = vsub.s32 1, %v12899_v29  ;;  %v2062_v24 = vsub.s32 2, %v12899_v29  ;;  %v2066_v32 = vsub.s32 3, %v12899_v29  ;;  %v1937_v12 = vld [vmem:[#allocation2 + $0x78] sm:$0xff] }
 0x2e1   : > { %v2078_v9 = vsub.s32 6, %v12899_v29  ;;  %v2082_v19 = vsub.s32 7, %v12899_v29  ;;  %v1944_v25 = vld [vmem:[#allocation2 + $0xb0] sm:$0xff]  ;;  %v1945_v33 = vld [vmem:[#allocation2 + $0xb8] sm:$0xff]  ;;  %v12910_v39 = vsub.s32 %v2255_v0, %v12899_v29  ;;  %v12926_v60 = vsub.s32 %v3856_v28, %v12899_v29 }
 0x2e2   : > { %v1952_v34 = vld [vmem:[#allocation2 + $0xf0] sm:$0xff]  ;;  %v1953_v35 = vld [vmem:[#allocation2 + $0xf8] sm:$0xff]  ;;  %v12913_v45 = vrot.slane %v2050_v37, %v12902_v7  ;;  %v12915_v46 = vrot.slane %v2050_v37, %v2058_v15  ;;  %v12917_v49 = vrot.slane %v2050_v37, %v2062_v24  ;;  %v12919_v51 = vrot.slane %v2050_v37, %v2066_v32 }
 0x2e3   : > { %v1960_v41 = vld [vmem:[#allocation2 + $0x130] sm:$0xff]  ;;  %v1961_v42 = vld [vmem:[#allocation2 + $0x138] sm:$0xff]  ;;  %v12921_v55 = vrot.slane %v2050_v37, %v2078_v9  ;;  %v12923_v59 = vrot.slane %v2050_v37, %v2082_v19  ;;  %v12929_v61 = vsub.s32 %v3888_v38, %v12899_v29  ;;  %v1930_v37 = vld [vmem:[#allocation2 + $0x40] sm:$0xff] }
 0x2e4   : > { %v1968_v44 = vld [vmem:[#allocation2 + $0x170] sm:$0xff]  ;;  %18492 = vst [vmem:[#allocation40_spill] sm:$0xff] %v12915_v46  ;;  %18493 = vst [vmem:[#allocation41_spill] sm:$0xff] %v12917_v49  ;;  %v1969_v52 = vld [vmem:[#allocation2 + $0x178] sm:$0xff]  ;;  %v12932_v4 = vadd.f32 %v12913_v45, %v1922_v40  ;;  %v12935_v5 = vadd.f32 %v12915_v46, %v1923_v48  ;;  %v12938_v6 = vadd.f32 %v12917_v49, %v1924_v56 }
 0x2e5   : > { %18494 = vst [vmem:[#allocation42_spill] sm:$0xff] %v12919_v51  ;;  %v1976_v53 = vld [vmem:[#allocation2 + $0x1b0] sm:$0xff]  ;;  %v1977_v54 = vld [vmem:[#allocation2 + $0x1b8] sm:$0xff]  ;;  %v12941_v8 = vadd.f32 %v12919_v51, %v1925_v1  ;;  %v2098_v16 = vadd.f32 %v12921_v55, %v1928_v47  ;;  %v2099_v18 = vadd.f32 %v12923_v59, %v1929_v58  ;;  %v2106_v20 = vadd.f32 %v12921_v55, %v1936_v3 }
 0x2e6   : > { %v1984_v62 = vld [vmem:[#allocation2 + $0x1f0] sm:$0xff]  ;;  %v1985_v63 = vld [vmem:[#allocation2 + $0x1f8] sm:$0xff]  ;;  %v2107_v21 = vadd.f32 %v12923_v59, %v1937_v12  ;;  %v2114_v30 = vadd.f32 %v12921_v55, %v1944_v25  ;;  %v2115_v31 = vadd.f32 %v12923_v59, %v1945_v33  ;;  %v2122_v17 = vadd.f32 %v12921_v55, %v1952_v34 }
 0x2e7   : > { %v1992_v2 = vld [vmem:[#allocation2 + $0x230] sm:$0xff]  ;;  %v1993_v10 = vld [vmem:[#allocation2 + $0x238] sm:$0xff]  ;;  %v2123_v14 = vadd.f32 %v12923_v59, %v1953_v35  ;;  %v2130_v50 = vadd.f32 %v12921_v55, %v1960_v41  ;;  %v2131_v57 = vadd.f32 %v12923_v59, %v1961_v42  ;;  %v2138_v0 = vadd.f32 %v12921_v55, %v1968_v44  ;;  %10604 = vst [vmem:[%s12287_s25] sm:$0xff] %v2098_v16 }
 0x2e8   : > { %v2000_v11 = vld [vmem:[#allocation2 + $0x270] sm:$0xff]  ;;  %v2001_v13 = vld [vmem:[#allocation2 + $0x278] sm:$0xff]  ;;  %v2139_v15 = vadd.f32 %v12923_v59, %v1969_v52  ;;  %10605 = vst [vmem:[%s12287_s25 + $0x8] sm:$0xff] %v2099_v18  ;;  %10606 = vst [vmem:[%s12287_s25 + $0x10] sm:$0xff] %v2106_v20  ;;  %v2146_v48 = vadd.f32 %v12921_v55, %v1976_v53  ;;  %v2147_v56 = vadd.f32 %v12923_v59, %v1977_v54 }
 0x2e9   : > { %v2008_v23 = vld [vmem:[#allocation2 + $0x2b0] sm:$0xff]  ;;  %v2009_v26 = vld [vmem:[#allocation2 + $0x2b8] sm:$0xff]  ;;  %10607 = vst [vmem:[%s12287_s25 + $0x18] sm:$0xff] %v2107_v21  ;;  %v2154_v1 = vadd.f32 %v12921_v55, %v1984_v62  ;;  %v2155_v9 = vadd.f32 %v12923_v59, %v1985_v63  ;;  %10608 = vst [vmem:[%s12287_s25 + $0x20] sm:$0xff] %v2114_v30  ;;  %v2162_v47 = vadd.f32 %v12921_v55, %v1992_v2 }
 0x2ea   : > { %v2016_v27 = vld [vmem:[#allocation2 + $0x2f0] sm:$0xff]  ;;  %v2017_v22 = vld [vmem:[#allocation2 + $0x2f8] sm:$0xff]  ;;  %10609 = vst [vmem:[%s12287_s25 + $0x28] sm:$0xff] %v2115_v31  ;;  %10610 = vst [vmem:[%s12287_s25 + $0x30] sm:$0xff] %v2122_v17  ;;  %v2163_v58 = vadd.f32 %v12923_v59, %v1993_v10  ;;  %v2170_v3 = vadd.f32 %v12921_v55, %v2000_v11  ;;  %v2171_v12 = vadd.f32 %v12923_v59, %v2001_v13 }
 0x2eb   : > { %v2024_v36 = vld [vmem:[#allocation2 + $0x330] sm:$0xff]  ;;  %v2025_v43 = vld [vmem:[#allocation2 + $0x338] sm:$0xff]  ;;  %10611 = vst [vmem:[%s12287_s25 + $0x38] sm:$0xff] %v2123_v14  ;;  %10612 = vst [vmem:[%s12287_s25 + $0x40] sm:$0xff] %v2130_v50  ;;  %v2178_v25 = vadd.f32 %v12921_v55, %v2008_v23  ;;  %v2179_v33 = vadd.f32 %v12923_v59, %v2009_v26  ;;  %v2186_v34 = vadd.f32 %v12921_v55, %v2016_v27 }
 0x2ec   : > { %v2032_v24 = vld [vmem:[#allocation2 + $0x370] sm:$0xff]  ;;  %v2033_v32 = vld [vmem:[#allocation2 + $0x378] sm:$0xff]  ;;  %10613 = vst [vmem:[%s12287_s25 + $0x48] sm:$0xff] %v2131_v57  ;;  %10614 = vst [vmem:[%s12287_s25 + $0x50] sm:$0xff] %v2138_v0  ;;  %v2187_v35 = vadd.f32 %v12923_v59, %v2017_v22  ;;  %v2194_v41 = vadd.f32 %v12921_v55, %v2024_v36  ;;  %v2195_v42 = vadd.f32 %v12923_v59, %v2025_v43 }
 0x2ed   : > { %v2040_v40 = vld [vmem:[#allocation2 + $0x3b0] sm:$0xff]  ;;  %v2041_v19 = vld [vmem:[#allocation2 + $0x3b8] sm:$0xff]  ;;  %10615 = vst [vmem:[%s12287_s25 + $0x58] sm:$0xff] %v2139_v15  ;;  %10616 = vst [vmem:[%s12287_s25 + $0x60] sm:$0xff] %v2146_v48  ;;  %v2202_v44 = vadd.f32 %v12921_v55, %v2032_v24  ;;  %v2203_v52 = vadd.f32 %v12923_v59, %v2033_v32  ;;  %v3852_v13 = vcombine.low %v12932_v4, %v12938_v6 }
 0x2ee   : > { %v2048_v28 = vld [vmem:[#allocation2 + $0x3f0] sm:$0xff]  ;;  %v2049_v38 = vld [vmem:[#allocation2 + $0x3f8] sm:$0xff]  ;;  %10617 = vst [vmem:[%s12287_s25 + $0x68] sm:$0xff] %v2147_v56  ;;  %10618 = vst [vmem:[%s12287_s25 + $0x70] sm:$0xff] %v2154_v1  ;;  %v2210_v63 = vadd.f32 %v12921_v55, %v2040_v40  ;;  %v2211_v2 = vadd.f32 %v12923_v59, %v2041_v19  ;;  %v3868_v16 = vcombine.low %v12935_v5, %v12941_v8 }
 0x2ef   : > { %10619 = vst [vmem:[%s12287_s25 + $0x78] sm:$0xff] %v2155_v9  ;;  %10620 = vst [vmem:[%s12287_s25 + $0x80] sm:$0xff] %v2162_v47  ;;  %v1931_v53 = vld [vmem:[#allocation2 + $0x48] sm:$0xff]  ;;  %v1932_v54 = vld [vmem:[#allocation2 + $0x50] sm:$0xff]  ;;  %v2218_v10 = vadd.f32 %v12921_v55, %v2048_v28  ;;  %v2219_v11 = vadd.f32 %v12923_v59, %v2049_v38  ;;  %v3853_v55 = vcombine.high %v12932_v4, %v12938_v6  ;;  %v17985_v47 = vmov 0.0  }
 0x2f0   : > { %10621 = vst [vmem:[%s12287_s25 + $0x88] sm:$0xff] %v2163_v58  ;;  %10622 = vst [vmem:[%s12287_s25 + $0x90] sm:$0xff] %v2170_v3  ;;  %v1933_v62 = vld [vmem:[#allocation2 + $0x58] sm:$0xff]  ;;  %v3869_v59 = vcombine.high %v12935_v5, %v12941_v8  ;;  %v2100_v18 = vadd.f32 %v12913_v45, %v1930_v37  ;;  %v2101_v20 = vadd.f32 %v12915_v46, %v1931_v53  ;;  %v1938_v19 = vld [vmem:[#allocation2 + $0x80] sm:$0xff] }
 0x2f1   : > { %10623 = vst [vmem:[%s12287_s25 + $0x98] sm:$0xff] %v2171_v12  ;;  %10624 = vst [vmem:[%s12287_s25 + $0xa0] sm:$0xff] %v2178_v25  ;;  %v2102_v21 = vadd.f32 %v12917_v49, %v1932_v54  ;;  %v2103_v23 = vadd.f32 %v12919_v51, %v1933_v62  ;;  %v3860_v26 = vrot.slane %v3852_v13, %v12926_v60  ;;  %v1939_v28 = vld [vmem:[#allocation2 + $0x88] sm:$0xff]  ;;  %v1940_v38 = vld [vmem:[#allocation2 + $0x90] sm:$0xff] }
 0x2f2   : > { %10625 = vst [vmem:[%s12287_s25 + $0xa8] sm:$0xff] %v2179_v33  ;;  %10626 = vst [vmem:[%s12287_s25 + $0xb0] sm:$0xff] %v2186_v34  ;;  %v3876_v27 = vrot.slane %v3868_v16, %v12926_v60  ;;  %v3867_v4 = vrot.slane %v3853_v55, %v12926_v60  ;;  %v3883_v5 = vrot.slane %v3869_v59, %v12926_v60  ;;  %v1941_v25 = vld [vmem:[#allocation2 + $0x98] sm:$0xff]  ;;  %v1946_v53 = vld [vmem:[#allocation2 + $0xc0] sm:$0xff] }
 0x2f3   : > { %10627 = vst [vmem:[%s12287_s25 + $0xb8] sm:$0xff] %v2187_v35  ;;  %10628 = vst [vmem:[%s12287_s25 + $0xc0] sm:$0xff] %v2194_v41  ;;  %v3920_v6 = vcombine.low %v2100_v18, %v2102_v21  ;;  %v3921_v8 = vcombine.high %v2100_v18, %v2102_v21  ;;  %v3936_v30 = vcombine.low %v2101_v20, %v2103_v23  ;;  %v1947_v54 = vld [vmem:[#allocation2 + $0xc8] sm:$0xff]  ;;  %v1949_v13 = vld [vmem:[#allocation2 + $0xd8] sm:$0xff] }
 0x2f4   : > { %10629 = vst [vmem:[%s12287_s25 + $0xc8] sm:$0xff] %v2195_v42  ;;  %10630 = vst [vmem:[%s12287_s25 + $0xd0] sm:$0xff] %v2202_v44  ;;  %v3937_v31 = vcombine.high %v2101_v20, %v2103_v23  ;;  %v3885_v17 = vcombine.high %v3860_v26, %v3876_v27  ;;  %v3884_v14 = vcombine.low %v3860_v26, %v3876_v27  ;;  %v1954_v18 = vld [vmem:[#allocation2 + $0x100] sm:$0xff]  ;;  %v1955_v20 = vld [vmem:[#allocation2 + $0x108] sm:$0xff] }
 0x2f5   : > { %10631 = vst [vmem:[%s12287_s25 + $0xd8] sm:$0xff] %v2203_v52  ;;  %10632 = vst [vmem:[%s12287_s25 + $0xe0] sm:$0xff] %v2210_v63  ;;  %v3900_v22 = vcombine.low %v3867_v4, %v3883_v5  ;;  %v3901_v36 = vcombine.high %v3867_v4, %v3883_v5  ;;  %v3928_v43 = vrot.slane %v3920_v6, %v12926_v60 }
 0x2f6   : > { %10633 = vst [vmem:[%s12287_s25 + $0xe8] sm:$0xff] %v2211_v2  ;;  %10634 = vst [vmem:[%s12287_s25 + $0xf0] sm:$0xff] %v2218_v10  ;;  %v3944_v50 = vrot.slane %v3936_v30, %v12926_v60  ;;  %v3935_v57 = vrot.slane %v3921_v8, %v12926_v60  ;;  %v3951_v0 = vrot.slane %v3937_v31, %v12926_v60 }
 0x2f7   : > { %10635 = vst [vmem:[%s12287_s25 + $0xf8] sm:$0xff] %v2219_v11  ;;  %v13028_v15 = vrot.slane %v3885_v17, %v12929_v61  ;;  %v13031_v24 = vrot.slane %v3884_v14, %v12929_v61  ;;  %v13034_v32 = vrot.slane %v3900_v22, %v12929_v61  ;;  %v13037_v40 = vrot.slane %v3901_v36, %v12929_v61  ;;  %v1948_v11 = vld [vmem:[#allocation2 + $0xd0] sm:$0xff] }
 0x2f8   : > { %v3952_v48 = vcombine.low %v3928_v43, %v3944_v50  ;;  %v3953_v56 = vcombine.high %v3928_v43, %v3944_v50  ;;  %v3968_v1 = vcombine.low %v3935_v57, %v3951_v0  ;;  %v3969_v9 = vcombine.high %v3935_v57, %v3951_v0 }
 0x2f9   : > { %4944 = vrot.lane.b32.xlu1 %v13028_v15, %s11826_s6  ;;  %4940 = vrot.lane.b32.xlu0 %v13031_v24, %s11826_s6  ;;  %v13045_v58 = vcombine.high %v13028_v15, %v17985_v47  ;;  %v13049_v3 = vcombine.high %v13034_v32, %v17985_v47  ;;  %v13053_v12 = vcombine.high %v13037_v40, %v17985_v47 }
 0x2fa   : > { %v13056_v33 = vrot.slane %v3952_v48, %v12929_v61  ;;  %v13059_v34 = vrot.slane %v3953_v56, %v12929_v61  ;;  %v13063_v35 = vcombine.high %v13031_v24, %v17985_v47  ;;  %v13066_v37 = vrot.slane %v3968_v1, %v12929_v61 }
 0x2fb   : > { %v13069_v41 = vrot.slane %v3969_v9, %v12929_v61  ;;  %v2108_v42 = vadd.f32 %v12913_v45, %v1938_v19  ;;  %v2109_v44 = vadd.f32 %v12915_v46, %v1939_v28  ;;  %v2110_v52 = vadd.f32 %v12917_v49, %v1940_v38 }
 0x2fc   : > { %18495 = vst [vmem:[#allocation43_spill] sm:$0xff] %v13066_v37  ;;  %v13076_v62 = vcombine.high %v13056_v33, %v17985_v47  ;;  %v13080_v63 = vcombine.high %v13059_v34, %v17985_v47  ;;  %v13084_v2 = vcombine.high %v13066_v37, %v17985_v47  ;;  %v2111_v10 = vadd.f32 %v12919_v51, %v1941_v25 }
 0x2fd   : > { %18496 = vst [vmem:[#allocation44_spill] sm:$0xff] %v13069_v41  ;;  %4946 = vrot.lane.b32.xlu1 %v13045_v58, %s11826_s6  ;;  %4948 = vrot.lane.b32.xlu0 %v13034_v32, %s11826_s6  ;;  %v13093_v16 = vcombine.high %v13069_v41, %v17985_v47  ;;  %v3988_v55 = vcombine.low %v2108_v42, %v2110_v52 }
 0x2fe   : > { %18497 = vst [vmem:[#allocation45_spill] sm:$0xff] %v13084_v2  ;;  %v3989_v59 = vcombine.high %v2108_v42, %v2110_v52  ;;  %v4004_v21 = vcombine.low %v2109_v44, %v2111_v10  ;;  %v4005_v23 = vcombine.high %v2109_v44, %v2111_v10  ;;  %v2116_v26 = vadd.f32 %v12913_v45, %v1946_v53  ;;  %v1956_v44 = vld [vmem:[#allocation2 + $0x110] sm:$0xff]  ;;  %v1957_v10 = vld [vmem:[#allocation2 + $0x118] sm:$0xff] }
 0x2ff   : > { %18498 = vst [vmem:[#allocation46_spill] sm:$0xff] %v13093_v16  ;;  %v2117_v27 = vadd.f32 %v12915_v46, %v1947_v54  ;;  %v3996_v4 = vrot.slane %v3988_v55, %v12926_v60  ;;  %v2118_v6 = vadd.f32 %v12917_v49, %v1948_v11  ;;  %v2119_v8 = vadd.f32 %v12919_v51, %v1949_v13  ;;  %v1962_v11 = vld [vmem:[#allocation2 + $0x140] sm:$0xff]  ;;  %v1963_v13 = vld [vmem:[#allocation2 + $0x148] sm:$0xff] }
 0x300   : > { %v4003_v5 = vrot.slane %v3989_v59, %v12926_v60  ;;  %v4012_v30 = vrot.slane %v4004_v21, %v12926_v60  ;;  %v4019_v31 = vrot.slane %v4005_v23, %v12926_v60  ;;  %v2124_v17 = vadd.f32 %v12913_v45, %v1954_v18 }
 0x301   : > { %v2125_v14 = vadd.f32 %v12915_v46, %v1955_v20  ;;  %4950 = vrot.lane.b32.xlu1 %v13049_v3, %s11826_s6  ;;  %4952 = vrot.lane.b32.xlu0 %v13037_v40, %s11826_s6  ;;  %v4056_v22 = vcombine.low %v2116_v26, %v2118_v6  ;;  %v4072_v36 = vcombine.low %v2117_v27, %v2119_v8 }
 0x302   : > { %v4057_v43 = vcombine.high %v2116_v26, %v2118_v6  ;;  %v4020_v50 = vcombine.low %v3996_v4, %v4012_v30  ;;  %v4021_v57 = vcombine.high %v3996_v4, %v4012_v30  ;;  %v4036_v0 = vcombine.low %v4003_v5, %v4019_v31  ;;  %v1964_v6 = vld [vmem:[#allocation2 + $0x150] sm:$0xff] }
 0x303   : > { %v4037_v48 = vcombine.high %v4003_v5, %v4019_v31  ;;  %v4064_v56 = vrot.slane %v4056_v22, %v12926_v60  ;;  %v4080_v1 = vrot.slane %v4072_v36, %v12926_v60  ;;  %v4073_v19 = vcombine.high %v2117_v27, %v2119_v8  ;;  %v1965_v8 = vld [vmem:[#allocation2 + $0x158] sm:$0xff] }
 0x304   : > { %v4071_v9 = vrot.slane %v4057_v43, %v12926_v60  ;;  %v13113_v28 = vrot.slane %v4020_v50, %v12929_v61  ;;  %v13116_v38 = vrot.slane %v4021_v57, %v12929_v61  ;;  %v13119_v25 = vrot.slane %v4036_v0, %v12929_v61 }
 0x305   : > { %v13122_v42 = vrot.slane %v4037_v48, %v12929_v61  ;;  %4954 = vrot.lane.b32.xlu1 %v13053_v12, %s11826_s6  ;;  %4956 = vrot.lane.b32.xlu0 %v13056_v33, %s11826_s6  ;;  %v4088_v52 = vcombine.low %v4064_v56, %v4080_v1  ;;  %v4089_v53 = vcombine.high %v4064_v56, %v4080_v1 }
 0x306   : > { %18499 = vst [vmem:[#allocation47_spill] sm:$0xff] %v13113_v28  ;;  %v4087_v54 = vrot.slane %v4073_v19, %v12926_v60  ;;  %v13131_v55 = vcombine.high %v13113_v28, %v17985_v47  ;;  %v13135_v59 = vcombine.high %v13116_v38, %v17985_v47  ;;  %v13139_v18 = vcombine.high %v13119_v25, %v17985_v47 }
 0x307   : > { %v13143_v20 = vcombine.high %v13122_v42, %v17985_v47  ;;  %v13146_v21 = vrot.slane %v4088_v52, %v12929_v61  ;;  %v13149_v23 = vrot.slane %v4089_v53, %v12929_v61  ;;  %v2126_v4 = vadd.f32 %v12917_v49, %v1956_v44 }
 0x308   : > { %18500 = vst [vmem:[#allocation48_spill] sm:$0xff] %v13131_v55  ;;  %v4104_v26 = vcombine.low %v4071_v9, %v4087_v54  ;;  %v4105_v27 = vcombine.high %v4071_v9, %v4087_v54  ;;  %v2127_v5 = vadd.f32 %v12919_v51, %v1957_v10  ;;  %v2132_v30 = vadd.f32 %v12913_v45, %v1962_v11 }
 0x309   : > { %v2133_v31 = vadd.f32 %v12915_v46, %v1963_v13  ;;  %4958 = vrot.lane.b32.xlu1 %v13076_v62, %s11826_s6  ;;  %4960 = vrot.lane.b32.xlu0 %v13059_v34, %s11826_s6  ;;  %v13161_v22 = vcombine.high %v13146_v21, %v17985_v47  ;;  %v13165_v36 = vcombine.high %v13149_v23, %v17985_v47 }
 0x30a   : > { %v13168_v43 = vrot.slane %v4104_v26, %v12929_v61  ;;  %v13171_v50 = vrot.slane %v4105_v27, %v12929_v61  ;;  %v4124_v57 = vcombine.low %v2124_v17, %v2126_v4  ;;  %v4140_v0 = vcombine.low %v2125_v14, %v2127_v5 }
 0x30b   : > { %v4125_v48 = vcombine.high %v2124_v17, %v2126_v4  ;;  %v4141_v1 = vcombine.high %v2125_v14, %v2127_v5  ;;  %v2134_v9 = vadd.f32 %v12917_v49, %v1964_v6  ;;  %v2135_v19 = vadd.f32 %v12919_v51, %v1965_v8 }
 0x30c   : > { %v13175_v56 = vcombine.high %v13168_v43, %v17985_v47  ;;  %v13181_v44 = vcombine.high %v13171_v50, %v17985_v47  ;;  %v4132_v52 = vrot.slane %v4124_v57, %v12926_v60  ;;  %v4148_v53 = vrot.slane %v4140_v0, %v12926_v60 }
 0x30d   : > { %v4139_v54 = vrot.slane %v4125_v48, %v12926_v60  ;;  %4962 = vrot.lane.b32.xlu1 %v13080_v63, %s11826_s6  ;;  %4942 = vrot.lane.b32.xlu0 %v13063_v35, %s11826_s6  ;;  %v4155_v17 = vrot.slane %v4141_v1, %v12926_v60  ;;  %v4192_v14 = vcombine.low %v2132_v30, %v2134_v9 }
 0x30e   : > { %v4208_v10 = vcombine.low %v2133_v31, %v2135_v19  ;;  %v4156_v11 = vcombine.low %v4132_v52, %v4148_v53  ;;  %v4157_v13 = vcombine.high %v4132_v52, %v4148_v53  ;;  %v4193_v26 = vcombine.high %v2132_v30, %v2134_v9  ;;  %v1971_v52 = vld [vmem:[#allocation2 + $0x188] sm:$0xff] }
 0x30f   : > { %v4209_v27 = vcombine.high %v2133_v31, %v2135_v19  ;;  %v4172_v4 = vcombine.low %v4139_v54, %v4155_v17  ;;  %v4173_v5 = vcombine.high %v4139_v54, %v4155_v17  ;;  %v4200_v6 = vrot.slane %v4192_v14, %v12926_v60  ;;  %v1970_v19 = vld [vmem:[#allocation2 + $0x180] sm:$0xff] }
 0x310   : > { %v4216_v8 = vrot.slane %v4208_v10, %v12926_v60  ;;  %v13194_v57 = vrot.slane %v4156_v11, %v12929_v61  ;;  %v13197_v0 = vrot.slane %v4157_v13, %v12929_v61  ;;  %v4207_v48 = vrot.slane %v4193_v26, %v12926_v60  ;;  %v1972_v10 = vld [vmem:[#allocation2 + $0x190] sm:$0xff] }
 0x311   : > { %v4223_v1 = vrot.slane %v4209_v27, %v12926_v60  ;;  %4966 = vrot.lane.b32.xlu1 %v13084_v2, %s11826_s6  ;;  %4964 = vrot.lane.b32.xlu0 %v13066_v37, %s11826_s6  ;;  %v13206_v30 = vrot.slane %v4172_v4, %v12929_v61  ;;  %v13209_v31 = vrot.slane %v4173_v5, %v12929_v61  ;;  %v1973_v4 = vld [vmem:[#allocation2 + $0x198] sm:$0xff]  ;;  %v1978_v5 = vld [vmem:[#allocation2 + $0x1c0] sm:$0xff]  ;;  %v1979_v37 = vld [vmem:[#allocation2 + $0x1c8] sm:$0xff] }
 0x312   : > { %v4224_v9 = vcombine.low %v4200_v6, %v4216_v8  ;;  %v13213_v53 = vcombine.high %v13194_v57, %v17985_v47  ;;  %v13217_v54 = vcombine.high %v13197_v0, %v17985_v47  ;;  %v4225_v17 = vcombine.high %v4200_v6, %v4216_v8 }
 0x313   : > { %18501 = vst [vmem:[#allocation49_spill] sm:$0xff] %v13206_v30  ;;  %18502 = vst [vmem:[#allocation50_spill] sm:$0xff] %v13209_v31  ;;  %v4240_v14 = vcombine.low %v4207_v48, %v4223_v1  ;;  %v13221_v11 = vcombine.high %v13206_v30, %v17985_v47  ;;  %v13225_v13 = vcombine.high %v13209_v31, %v17985_v47 }
 0x314   : > { %v13228_v26 = vrot.slane %v4224_v9, %v12929_v61  ;;  %v4241_v27 = vcombine.high %v4207_v48, %v4223_v1  ;;  %v13231_v29 = vrot.slane %v4225_v17, %v12929_v61  ;;  %v2140_v8 = vadd.f32 %v12913_v45, %v1970_v19  ;;  %v1980_v19 = vld [vmem:[#allocation2 + $0x1d0] sm:$0xff]  ;;  %v1981_v17 = vld [vmem:[#allocation2 + $0x1d8] sm:$0xff] }
 0x315   : > { %18503 = vst [vmem:[#allocation51_spill] sm:$0xff] %v13221_v11  ;;  %18504 = vst [vmem:[#allocation52_spill] sm:$0xff] %v13225_v13  ;;  %v13234_v6 = vrot.slane %v4240_v14, %v12929_v61  ;;  %v2141_v2 = vadd.f32 %v12915_v46, %v1971_v52  ;;  %4970 = vrot.lane.b32.xlu1 %v13093_v16, %s11826_s6  ;;  %4968 = vrot.lane.b32.xlu0 %v13069_v41, %s11826_s6 }
 0x316   : > { %18505 = vst [vmem:[#allocation53_spill] sm:$0xff] %v13228_v26  ;;  %18506 = vst [vmem:[#allocation54_spill] sm:$0xff] %v13231_v29  ;;  %v13244_v48 = vcombine.high %v13228_v26, %v17985_v47  ;;  %v13247_v1 = vrot.slane %v4241_v27, %v12929_v61  ;;  %v2142_v9 = vadd.f32 %v12917_v49, %v1972_v10  ;;  %v2220_v27 = vld [vmem:[%s12273_s2] sm:$0xff] }
 0x317   : > { %18507 = vst [vmem:[#allocation55_spill] sm:$0xff] %v13234_v6  ;;  %v13252_v52 = vcombine.high %v13231_v29, %v17985_v47  ;;  %v13256_v14 = vcombine.high %v13234_v6, %v17985_v47  ;;  %v2143_v16 = vadd.f32 %v12919_v51, %v1973_v4  ;;  %v13260_v26 = vadd.f32 %v12913_v45, %v1978_v5  ;;  %v3036_v5 = vld [vmem:[%s12281_s11] sm:$0xff] }
 0x318   : > { %18508 = vst [vmem:[#allocation56_spill] sm:$0xff] %v13244_v48  ;;  %18509 = vst [vmem:[#allocation57_spill] sm:$0xff] %v13247_v1  ;;  %v13265_v10 = vcombine.high %v13247_v1, %v17985_v47  ;;  %v4260_v48 = vcombine.low %v2140_v8, %v2142_v9  ;;  %v4261_v41 = vcombine.high %v2140_v8, %v2142_v9 }
 0x319   : > { %18510 = vst [vmem:[#allocation58_spill] sm:$0xff] %v13252_v52  ;;  %18511 = vst [vmem:[#allocation59_spill] sm:$0xff] %v13256_v14  ;;  %v13268_v31 = vadd.f32 %v12915_v46, %v1979_v37  ;;  %v4276_v29 = vcombine.low %v2141_v2, %v2143_v16  ;;  %v4277_v52 = vcombine.high %v2141_v2, %v2143_v16  ;;  %4974 = vrot.lane.b32.xlu1 %v13131_v55, %s11826_s6 }
 0x31a   : > { %18512 = vst [vmem:[#allocation60_spill] sm:$0xff] %v13265_v10  ;;  %v13271_v6 = vadd.f32 %v12917_v49, %v1980_v19  ;;  %v13274_v4 = vadd.f32 %v12919_v51, %v1981_v17  ;;  %4972 = vrot.lane.b32.xlu0 %v13113_v28, %s11826_s6  ;;  %v4268_v8 = vrot.slane %v4260_v48, %v12926_v60 }
 0x31b   : > { %v4275_v37 = vrot.slane %v4261_v41, %v12926_v60  ;;  %v2259_v9 = vrot.slane %v2220_v27, %v12910_v39  ;;  %v4284_v2 = vrot.slane %v4276_v29, %v12926_v60  ;;  %v4291_v16 = vrot.slane %v4277_v52, %v12926_v60 }
 0x31c   : > { %v4328_v19 = vcombine.low %v13260_v26, %v13271_v6  ;;  %v4344_v17 = vcombine.low %v13268_v31, %v13274_v4  ;;  %v3075_v1 = vrot.slane %v3036_v5, %v12910_v39  ;;  %v2252_v48 = vcombine.high %v2220_v27, %v2220_v27 }
 0x31d   : > { %v2275_v47 = vrot.slane %v2259_v9, %v12910_v39  ;;  %v2267_v10 = vcombine.high %v2259_v9, %v2259_v9  ;;  %v4292_v14 = vcombine.low %v4268_v8, %v4284_v2  ;;  %v4293_v41 = vcombine.high %v4268_v8, %v4284_v2  ;;  %4978 = vrot.lane.b32.xlu1 %v13135_v59, %s11826_s6 }
 0x31e   : > { %v4308_v55 = vcombine.low %v4275_v37, %v4291_v16  ;;  %v4309_v28 = vcombine.high %v4275_v37, %v4291_v16  ;;  %4976 = vrot.lane.b32.xlu0 %v13116_v38, %s11826_s6  ;;  %v4336_v29 = vrot.slane %v4328_v19, %v12926_v60  ;;  %v4352_v52 = vrot.slane %v4344_v17, %v12926_v60 }
 0x31f   : > { %v2297_v13 = vcombine.high %v2275_v47, %v2275_v47  ;;  %v13299_v30 = vrot.slane %v4292_v14, %v12929_v61  ;;  %v13302_v27 = vrot.slane %v4293_v41, %v12929_v61  ;;  %v3091_v2 = vrot.slane %v3075_v1, %v12910_v39 }
 0x320   : > { %v13305_v8 = vrot.slane %v4308_v55, %v12929_v61  ;;  %v13308_v37 = vrot.slane %v4309_v28, %v12929_v61  ;;  %v4360_v9 = vcombine.low %v4336_v29, %v4352_v52  ;;  %v13315_v19 = vrot.slane %v2275_v47, %v12902_v7 }
 0x321   : > { %18513 = vst [vmem:[#allocation61_spill] sm:$0xff] %v13299_v30  ;;  %18514 = vst [vmem:[#allocation62_spill] sm:$0xff] %v13302_v27  ;;  %v13312_v16 = vrot.slane %v2297_v13, %v12902_v7  ;;  %v18519_v14 = vmov 0.0   ;;  %4982 = vrot.lane.b32.xlu1 %v13139_v18, %s11826_s6  ;;  %v3113_v13 = vcombine.high %v3091_v2, %v3091_v2 }
 0x322   : > { %18515 = vst [vmem:[#allocation63_spill] sm:$0xff] %v13305_v8  ;;  %18516 = vst [vmem:[#allocation64_spill] sm:$0xff] %v13308_v37  ;;  %v13319_v17 = vcombine.high %v13299_v30, %v18519_v14  ;;  %v13323_v55 = vcombine.high %v13302_v27, %v18519_v14  ;;  %v13327_v28 = vcombine.high %v13305_v8, %v18519_v14  ;;  %4980 = vrot.lane.b32.xlu0 %v13119_v25, %s11826_s6 }
 0x323   : > { %18517 = vst [vmem:[#allocation65_spill] sm:$0xff] %v13312_v16  ;;  %18518 = vst [vmem:[#allocation66_spill] sm:$0xff] %v13315_v19  ;;  %v13331_v41 = vcombine.high %v13308_v37, %v18519_v14  ;;  %v13338_v47 = vrot.slane %v4360_v9, %v12929_v61  ;;  %v13342_v27 = vmul.f32 %v13312_v16, %v13028_v15 }
 0x324   : > { %18520 = vst [vmem:[#allocation67_spill] sm:$0xff] %v13319_v17  ;;  %18521 = vst [vmem:[#allocation68_spill] sm:$0xff] %v13323_v55  ;;  %v13345_v8 = vrot.slane %v3091_v2, %v12902_v7  ;;  %v13349_v37 = vmul.f32 %v13315_v19, %v13031_v24  ;;  %v13359_v55 = vrot.slane %v3113_v13, %v12902_v7 }
 0x325   : > { %18522 = vst [vmem:[#allocation69_spill] sm:$0xff] %v13327_v28  ;;  %18523 = vst [vmem:[#allocation70_spill] sm:$0xff] %v13331_v41  ;;  %v4361_v41 = vcombine.high %v4336_v29, %v4352_v52  ;;  %v13352_v28 = vrot.slane %v2267_v10, %v12910_v39  ;;  %v13356_v9 = vcombine.high %v13338_v47, %v18519_v14  ;;  %4986 = vrot.lane.b32.xlu1 %v13143_v20, %s11826_s6 }
 0x326   : > { %18524 = vst [vmem:[#allocation71_spill] sm:$0xff] %v13338_v47  ;;  %18525 = vst [vmem:[#allocation72_spill] sm:$0xff] %v13342_v27  ;;  %v3083_v15 = vcombine.high %v3075_v1, %v3075_v1  ;;  %v2266_v16 = vrot.slane %v2252_v48, %v12910_v39  ;;  %v3068_v29 = vcombine.high %v3036_v5, %v3036_v5  ;;  %4984 = vrot.lane.b32.xlu0 %v13122_v42, %s11826_s6 }
 0x327   : > { %18526 = vst [vmem:[#allocation73_spill] sm:$0xff] %v13345_v8  ;;  %18527 = vst [vmem:[#allocation74_spill] sm:$0xff] %v13349_v37  ;;  %v13363_v2 = vrot.slane %v4361_v41, %v12929_v61  ;;  %v2299_v24 = vcombine.high %v13352_v28, %v13352_v28  ;;  %v4329_v10 = vcombine.high %v13260_v26, %v13271_v6 }
 0x328   : > { %18528 = vst [vmem:[#allocation75_spill] sm:$0xff] %v13356_v9  ;;  %18529 = vst [vmem:[#allocation76_spill] sm:$0xff] %v13359_v55  ;;  %v13374_v1 = vrot.slane %v3083_v15, %v12910_v39  ;;  %v2282_v48 = vrot.slane %v2266_v16, %v12910_v39  ;;  %v4345_v52 = vcombine.high %v13268_v31, %v13274_v4 }
 0x329   : > { %18530 = vst [vmem:[#allocation77_spill] sm:$0xff] %v13363_v2  ;;  %v13381_v5 = vcombine.high %v13363_v2, %v18519_v14  ;;  %v13384_v26 = vrot.slane %v2299_v24, %v12902_v7  ;;  %v3082_v6 = vrot.slane %v3068_v29, %v12910_v39  ;;  %v4343_v41 = vrot.slane %v4329_v10, %v12926_v60 }
 0x32a   : > { %v3115_v13 = vcombine.high %v13374_v1, %v13374_v1  ;;  %v13391_v15 = vrot.slane %v2282_v48, %v12902_v7  ;;  %v4359_v31 = vrot.slane %v4345_v52, %v12926_v60  ;;  %v2268_v4 = vcombine.high %v2266_v16, %v2266_v16  ;;  %4990 = vrot.lane.b32.xlu1 %v13161_v22, %s11826_s6 }
 0x32b   : > { %18531 = vst [vmem:[#allocation78_spill] sm:$0xff] %v13381_v5  ;;  %18532 = vst [vmem:[#allocation79_spill] sm:$0xff] %v13384_v26  ;;  %v13396_v19 = vmul.f32 %v13384_v26, %v13045_v58  ;;  %v3098_v24 = vrot.slane %v3082_v6, %v12910_v39  ;;  %v3084_v37 = vcombine.high %v3082_v6, %v3082_v6  ;;  %4988 = vrot.lane.b32.xlu0 %v13146_v21, %s11826_s6 }
 0x32c   : > { %18533 = vst [vmem:[#allocation80_spill] sm:$0xff] %v13391_v15  ;;  %v2298_v29 = vcombine.high %v2282_v48, %v2282_v48  ;;  %v13404_v10 = vrot.slane %v3115_v13, %v12902_v7  ;;  %v13408_v16 = vmul.f32 %v13391_v15, %v13034_v32  ;;  %v4376_v58 = vcombine.low %v4343_v41, %v4359_v31 }
 0x32d   : > { %18534 = vst [vmem:[#allocation81_spill] sm:$0xff] %v13396_v19  ;;  %v13411_v52 = vrot.slane %v3098_v24, %v12902_v7  ;;  %v2296_v48 = vrot.slane %v2268_v4, %v12910_v39  ;;  %v3112_v6 = vrot.slane %v3084_v37, %v12910_v39  ;;  %v3114_v26 = vcombine.high %v3098_v24, %v3098_v24  ;;  %v13416_v19 = vld [vmem:[%s12273_s2 + $0x8] sm:$0xff] }
 0x32e   : > { %18535 = vst [vmem:[#allocation82_spill] sm:$0xff] %v13404_v10  ;;  %18536 = vst [vmem:[#allocation83_spill] sm:$0xff] %v13408_v16  ;;  %v13419_v27 = vrot.slane %v4376_v58, %v12929_v61  ;;  %v13422_v13 = vrot.slane %v2298_v29, %v12902_v7  ;;  %v4377_v10 = vcombine.high %v4343_v41, %v4359_v31  ;;  %v13436_v16 = vld [vmem:[%s12281_s11 + $0x8] sm:$0xff]  ;;  %v1986_v58 = vld [vmem:[#allocation2 + $0x200] sm:$0xff]  ;;  %4994 = vrot.lane.b32.xlu1 %v13165_v36, %s11826_s6 }
 0x32f   : > { %18537 = vst [vmem:[#allocation84_spill] sm:$0xff] %v13411_v52  ;;  %v13427_v15 = vrot.slane %v2296_v48, %v12902_v7  ;;  %v13430_v4 = vrot.slane %v3112_v6, %v12902_v7  ;;  %v13433_v37 = vrot.slane %v3114_v26, %v12902_v7  ;;  %v2300_v24 = vcombine.high %v2296_v48, %v2296_v48  ;;  %v1987_v29 = vld [vmem:[#allocation2 + $0x208] sm:$0xff] }
 0x330   : > { %18538 = vst [vmem:[#allocation85_spill] sm:$0xff] %v13419_v27  ;;  %18539 = vst [vmem:[#allocation86_spill] sm:$0xff] %v13422_v13  ;;  %4992 = vrot.lane.b32.xlu0 %v13149_v23, %s11826_s6  ;;  %v13444_v41 = vcombine.high %v13419_v27, %v18519_v14  ;;  %v13448_v31 = vmul.f32 %v13422_v13, %v13037_v40  ;;  %v13451_v26 = vrot.slane %v4377_v10, %v12929_v61  ;;  %v1988_v27 = vld [vmem:[#allocation2 + $0x210] sm:$0xff] }
 0x331   : > { %18540 = vst [vmem:[#allocation87_spill] sm:$0xff] %v13427_v15  ;;  %18541 = vst [vmem:[#allocation88_spill] sm:$0xff] %v13430_v4  ;;  %v13455_v48 = vmul.f32 %v13427_v15, %v13049_v3  ;;  %v3116_v32 = vcombine.high %v3112_v6, %v3112_v6  ;;  %v2308_v4 = vrot.slane %v13416_v19, %v12910_v39 }
 0x332   : > { %18542 = vst [vmem:[#allocation89_spill] sm:$0xff] %v13433_v37  ;;  %18543 = vst [vmem:[#allocation90_spill] sm:$0xff] %v13444_v41  ;;  %v13458_v37 = vrot.slane %v2300_v24, %v12902_v7  ;;  %v1989_v41 = vld [vmem:[#allocation2 + $0x218] sm:$0xff]  ;;  %v13464_v40 = vcombine.high %v13451_v26, %v18519_v14  ;;  %v3117_v10 = vcombine.high %v13436_v16, %v13436_v16  ;;  %4998 = vrot.lane.b32.xlu1 %v13175_v56, %s11826_s6 }
 0x333   : > { %18544 = vst [vmem:[#allocation91_spill] sm:$0xff] %v13448_v31  ;;  %18545 = vst [vmem:[#allocation92_spill] sm:$0xff] %v13451_v26  ;;  %v3124_v3 = vrot.slane %v13436_v16, %v12910_v39  ;;  %v2156_v6 = vadd.f32 %v12913_v45, %v1986_v58  ;;  %v13476_v13 = vrot.slane %v3116_v32, %v12902_v7 }
 0x334   : > { %18546 = vst [vmem:[#allocation93_spill] sm:$0xff] %v13455_v48  ;;  %18547 = vst [vmem:[#allocation94_spill] sm:$0xff] %v13458_v37  ;;  %v13473_v24 = vmul.f32 %v13458_v37, %v13053_v12  ;;  %v2324_v15 = vrot.slane %v2308_v4, %v12910_v39  ;;  %v2157_v31 = vadd.f32 %v12915_v46, %v1987_v29  ;;  %4996 = vrot.lane.b32.xlu0 %v13168_v43, %s11826_s6 }
 0x335   : > { %18548 = vst [vmem:[#allocation95_spill] sm:$0xff] %v13464_v40  ;;  %18550 = vst [vmem:[#allocation97_spill] sm:$0xff] %v13476_v13  ;;  %v3140_v16 = vrot.slane %v3124_v3, %v12910_v39  ;;  %v2158_v58 = vadd.f32 %v12917_v49, %v1988_v27  ;;  %v2159_v12 = vadd.f32 %v12919_v51, %v1989_v41 }
 0x336   : > { %18549 = vst [vmem:[#allocation96_spill] sm:$0xff] %v13473_v24  ;;  %v13488_v37 = vrot.slane %v2324_v15, %v12902_v7  ;;  %v2316_v32 = vcombine.high %v2308_v4, %v2308_v4  ;;  %v3132_v24 = vcombine.high %v3124_v3, %v3124_v3  ;;  %v2346_v13 = vcombine.high %v2324_v15, %v2324_v15 }
 0x337   : > { %v13491_v29 = vrot.slane %v3140_v16, %v12902_v7  ;;  %v4396_v48 = vcombine.low %v2156_v6, %v2158_v58  ;;  %v4412_v26 = vcombine.low %v2157_v31, %v2159_v12  ;;  %v3162_v40 = vcombine.high %v3140_v16, %v3140_v16  ;;  %5002 = vrot.lane.b32.xlu1 %v13181_v44, %s11826_s6 }
 0x338   : > { %18551 = vst [vmem:[#allocation98_spill] sm:$0xff] %v13488_v37  ;;  %v13495_v52 = vmul.f32 %v13488_v37, %v13056_v33  ;;  %v2338_v27 = vrot.slane %v2316_v32, %v12910_v39  ;;  %v3154_v41 = vrot.slane %v3132_v24, %v12910_v39  ;;  %v13500_v2 = vrot.slane %v2346_v13, %v12902_v7 }
 0x339   : > { %18552 = vst [vmem:[#allocation99_spill] sm:$0xff] %v13491_v29  ;;  %5000 = vrot.lane.b32.xlu0 %v13171_v50, %s11826_s6  ;;  %v4404_v15 = vrot.slane %v4396_v48, %v12926_v60  ;;  %v4420_v4 = vrot.slane %v4412_v26, %v12926_v60  ;;  %v13509_v33 = vrot.slane %v3162_v40, %v12902_v7 }
 0x33a   : > { %18553 = vst [vmem:[#allocation100_spill] sm:$0xff] %v13495_v52  ;;  %18554 = vst [vmem:[#allocation101_spill] sm:$0xff] %v13500_v2  ;;  %v13512_v3 = vrot.slane %v2338_v27, %v12902_v7  ;;  %v13515_v24 = vrot.slane %v3154_v41, %v12902_v7  ;;  %v13519_v13 = vmul.f32 %v13500_v2, %v13059_v34 }
 0x33b   : > { %18555 = vst [vmem:[#allocation102_spill] sm:$0xff] %v13509_v33  ;;  %v2348_v16 = vcombine.high %v2338_v27, %v2338_v27  ;;  %v4428_v32 = vcombine.low %v4404_v15, %v4420_v4  ;;  %v4429_v37 = vcombine.high %v4404_v15, %v4420_v4  ;;  %v3164_v52 = vcombine.high %v3154_v41, %v3154_v41  ;;  %v1994_v41 = vld [vmem:[#allocation2 + $0x240] sm:$0xff]  ;;  %v1995_v15 = vld [vmem:[#allocation2 + $0x248] sm:$0xff] }
 0x33c   : > { %18556 = vst [vmem:[#allocation103_spill] sm:$0xff] %v13512_v3  ;;  %18557 = vst [vmem:[#allocation104_spill] sm:$0xff] %v13515_v24  ;;  %v13523_v26 = vrot.slane %v13352_v28, %v12902_v7  ;;  %v13527_v48 = vmul.f32 %v13512_v3, %v13076_v62  ;;  %v13534_v33 = vrot.slane %v13374_v1, %v12902_v7  ;;  %5006 = vrot.lane.b32.xlu1 %v13213_v53, %s11826_s6  ;;  %v1996_v1 = vld [vmem:[#allocation2 + $0x250] sm:$0xff] }
 0x33d   : > { %v13530_v40 = vrot.slane %v2348_v16, %v12902_v7  ;;  %v4397_v34 = vcombine.high %v2156_v6, %v2158_v58  ;;  %5004 = vrot.lane.b32.xlu0 %v13194_v57, %s11826_s6  ;;  %v13541_v28 = vrot.slane %v4428_v32, %v12929_v61  ;;  %v13544_v62 = vrot.slane %v4429_v37, %v12929_v61 }
 0x33e   : > { %18558 = vst [vmem:[#allocation105_spill] sm:$0xff] %v13523_v26  ;;  %18560 = vst [vmem:[#allocation107_spill] sm:$0xff] %v13534_v33  ;;  %v13547_v27 = vrot.slane %v3164_v52, %v12902_v7  ;;  %v13555_v58 = vmul.f32 %v13523_v26, %v13063_v35  ;;  %v4413_v16 = vcombine.high %v2157_v31, %v2159_v12  ;;  %v1997_v35 = vld [vmem:[#allocation2 + $0x258] sm:$0xff] }
 0x33f   : > { %18559 = vst [vmem:[#allocation106_spill] sm:$0xff] %v13530_v40  ;;  %18561 = vst [vmem:[#allocation108_spill] sm:$0xff] %v13541_v28  ;;  %v13551_v6 = vmul.f32 %v13530_v40, %v13080_v63  ;;  %v4411_v4 = vrot.slane %v4397_v34, %v12926_v60  ;;  %v13560_v37 = vcombine.high %v13541_v28, %v18519_v14 }
 0x340   : > { %18562 = vst [vmem:[#allocation109_spill] sm:$0xff] %v13544_v62  ;;  %18563 = vst [vmem:[#allocation110_spill] sm:$0xff] %v13547_v27  ;;  %v13564_v52 = vcombine.high %v13544_v62, %v18519_v14  ;;  %v18568_v63 = vcombine.high %v13416_v19, %v13416_v19  ;;  %v3131_v2 = vrot.slane %v3117_v10, %v12910_v39  ;;  %5010 = vrot.lane.b32.xlu1 %v13217_v54, %s11826_s6  ;;  %v18580_v27 = vld [vmem:[#allocation45_spill] sm:$0xff] }
 0x341   : > { %18564 = vst [vmem:[#allocation111_spill] sm:$0xff] %v13551_v6  ;;  %18565 = vst [vmem:[#allocation112_spill] sm:$0xff] %v13555_v58  ;;  %v4427_v40 = vrot.slane %v4413_v16, %v12926_v60  ;;  %v13573_v31 = vadd.f32 %v12913_v45, %v1994_v41  ;;  %v13576_v12 = vadd.f32 %v12915_v46, %v1995_v15  ;;  %5008 = vrot.lane.b32.xlu0 %v13197_v0, %s11826_s6 }
 0x342   : > { %18566 = vst [vmem:[#allocation113_spill] sm:$0xff] %v13560_v37  ;;  %18567 = vst [vmem:[#allocation114_spill] sm:$0xff] %v13564_v52  ;;  %v2315_v32 = vrot.slane %v18568_v63, %v12910_v39  ;;  %v13579_v34 = vadd.f32 %v12917_v49, %v1996_v1  ;;  %v3133_v10 = vcombine.high %v3131_v2, %v3131_v2 }
 0x343   : > { %v4444_v16 = vcombine.low %v4411_v4, %v4427_v40  ;;  %v3147_v41 = vrot.slane %v3131_v2, %v12910_v39  ;;  %v4445_v3 = vcombine.high %v4411_v4, %v4427_v40  ;;  %v13588_v15 = vadd.f32 %v12919_v51, %v1997_v35  ;;  %v18573_v4 = vld [vmem:[#allocation49_spill] sm:$0xff] }
 0x344   : > { %v2317_v19 = vcombine.high %v2315_v32, %v2315_v32  ;;  %v2331_v63 = vrot.slane %v2315_v32, %v12910_v39  ;;  %v3161_v26 = vrot.slane %v3133_v10, %v12910_v39  ;;  %5014 = vrot.lane.b32.xlu1 %v13221_v11, %s11826_s6  ;;  %v18576_v10 = vld [vmem:[#allocation43_spill] sm:$0xff] }
 0x345   : > { %v13596_v33 = vrot.slane %v4444_v16, %v12929_v61  ;;  %v13599_v32 = vrot.slane %v3147_v41, %v12902_v7  ;;  %v13602_v2 = vrot.slane %v4445_v3, %v12929_v61  ;;  %v3163_v40 = vcombine.high %v3147_v41, %v3147_v41  ;;  %5012 = vrot.lane.b32.xlu0 %v18573_v4, %s11826_s6  ;;  %v13619_v16 = vld [vmem:[%s12273_s2 + $0x10] sm:$0xff] }
 0x346   : > { %v2345_v1 = vrot.slane %v2317_v19, %v12910_v39  ;;  %v13593_v58 = vrot.slane %v2331_v63, %v12902_v7  ;;  %v2347_v6 = vcombine.high %v2331_v63, %v2331_v63  ;;  %v13612_v19 = vrot.slane %v3161_v26, %v12902_v7 }
 0x347   : > { %18570 = vst [vmem:[#allocation116_spill] sm:$0xff] %v13596_v33  ;;  %18571 = vst [vmem:[#allocation117_spill] sm:$0xff] %v13599_v32  ;;  %v13623_v3 = vcombine.high %v13596_v33, %v18519_v14  ;;  %v13627_v41 = vcombine.high %v13602_v2, %v18519_v14  ;;  %v3165_v11 = vcombine.high %v3161_v26, %v3161_v26  ;;  %v13630_v32 = vld [vmem:[%s12281_s11 + $0x10] sm:$0xff] }
 0x348   : > { %18569 = vst [vmem:[#allocation115_spill] sm:$0xff] %v13593_v58  ;;  %18572 = vst [vmem:[#allocation118_spill] sm:$0xff] %v13602_v2  ;;  %v13609_v35 = vrot.slane %v2345_v1, %v12902_v7  ;;  %v13616_v63 = vmul.f32 %v13593_v58, %v18576_v10  ;;  %v2349_v4 = vcombine.high %v2345_v1, %v2345_v1 }
 0x349   : > { %18575 = vst [vmem:[#allocation120_spill] sm:$0xff] %v13612_v19  ;;  %18578 = vst [vmem:[#allocation121_spill] sm:$0xff] %v13623_v3  ;;  %v13637_v10 = vrot.slane %v2347_v6, %v12902_v7  ;;  %v13640_v58 = vrot.slane %v3163_v40, %v12902_v7  ;;  %v13648_v26 = vrot.slane %v3165_v11, %v12902_v7  ;;  %v18586_v6 = vld [vmem:[#allocation52_spill] sm:$0xff]  ;;  %v18587_v40 = vld [vmem:[#allocation50_spill] sm:$0xff] }
 0x34a   : > { %18574 = vst [vmem:[#allocation119_spill] sm:$0xff] %v13609_v35  ;;  %18577 = vst [vmem:[#allocation43_spill] sm:$0xff] %v13616_v63  ;;  %v13634_v19 = vmul.f32 %v13609_v35, %v18580_v27  ;;  %v4464_v63 = vcombine.low %v13573_v31, %v13579_v34  ;;  %v13645_v2 = vrot.slane %v2349_v4, %v12902_v7  ;;  %5018 = vrot.lane.b32.xlu1 %v18586_v6, %s11826_s6  ;;  %v18588_v35 = vld [vmem:[#allocation44_spill] sm:$0xff] }
 0x34b   : > { %18579 = vst [vmem:[#allocation122_spill] sm:$0xff] %v13627_v41  ;;  %18582 = vst [vmem:[#allocation123_spill] sm:$0xff] %v13637_v10  ;;  %v4480_v1 = vcombine.low %v13576_v12, %v13588_v15  ;;  %v2357_v27 = vrot.slane %v13619_v16, %v12910_v39  ;;  %5016 = vrot.lane.b32.xlu0 %v18587_v40, %s11826_s6  ;;  %v3173_v11 = vrot.slane %v13630_v32, %v12910_v39 }
 0x34c   : > { %18581 = vst [vmem:[#allocation45_spill] sm:$0xff] %v13634_v19  ;;  %18583 = vst [vmem:[#allocation124_spill] sm:$0xff] %v13640_v58  ;;  %v13660_v58 = vmul.f32 %v13637_v10, %v18588_v35  ;;  %v4472_v4 = vrot.slane %v4464_v63, %v12926_v60  ;;  %v4465_v35 = vcombine.high %v13573_v31, %v13579_v34 }
 0x34d   : > { %18584 = vst [vmem:[#allocation125_spill] sm:$0xff] %v13645_v2  ;;  %18585 = vst [vmem:[#allocation126_spill] sm:$0xff] %v13648_v26  ;;  %v18590_v26 = vld [vmem:[#allocation46_spill] sm:$0xff]  ;;  %v4488_v41 = vrot.slane %v4480_v1, %v12926_v60  ;;  %v2365_v33 = vcombine.high %v2357_v27, %v2357_v27  ;;  %v2373_v6 = vrot.slane %v2357_v27, %v12910_v39  ;;  %v18593_v1 = vld [vmem:[#allocation56_spill] sm:$0xff] }
 0x34e   : > { %18589 = vst [vmem:[#allocation44_spill] sm:$0xff] %v13660_v58  ;;  %v13667_v19 = vmul.f32 %v13645_v2, %v18590_v26  ;;  %v3181_v3 = vcombine.high %v3173_v11, %v3173_v11  ;;  %v3189_v40 = vrot.slane %v3173_v11, %v12910_v39  ;;  %v4481_v63 = vcombine.high %v13576_v12, %v13588_v15  ;;  %v18594_v27 = vld [vmem:[#allocation53_spill] sm:$0xff]  ;;  %v18598_v15 = vld [vmem:[#allocation47_spill] sm:$0xff] }
 0x34f   : > { %v4496_v10 = vcombine.low %v4472_v4, %v4488_v41  ;;  %v2387_v58 = vrot.slane %v2365_v33, %v12910_v39  ;;  %v13678_v26 = vrot.slane %v2373_v6, %v12902_v7  ;;  %v4497_v2 = vcombine.high %v4472_v4, %v4488_v41  ;;  %5022 = vrot.lane.b32.xlu1 %v18593_v1, %s11826_s6 }
 0x350   : > { %18591 = vst [vmem:[#allocation46_spill] sm:$0xff] %v13667_v19  ;;  %5020 = vrot.lane.b32.xlu0 %v18594_v27, %s11826_s6  ;;  %v3203_v11 = vrot.slane %v3181_v3, %v12910_v39  ;;  %v13686_v31 = vrot.slane %v3189_v40, %v12902_v7  ;;  %v2395_v34 = vcombine.high %v2373_v6, %v2373_v6  ;;  %v18603_v6 = vld [vmem:[#allocation48_spill] sm:$0xff] }
 0x351   : > { %18592 = vst [vmem:[#allocation127_spill] sm:$0xff] %v13678_v26  ;;  %v13689_v12 = vrot.slane %v4496_v10, %v12929_v61  ;;  %v13692_v33 = vrot.slane %v2387_v58, %v12902_v7  ;;  %v13696_v41 = vmul.f32 %v13678_v26, %v18598_v15  ;;  %v13699_v4 = vrot.slane %v4497_v2, %v12929_v61  ;;  %v2002_v26 = vld [vmem:[#allocation2 + $0x280] sm:$0xff] }
 0x352   : > { %18595 = vst [vmem:[#allocation128_spill] sm:$0xff] %v13686_v31  ;;  %v13702_v27 = vrot.slane %v3203_v11, %v12902_v7  ;;  %v2397_v3 = vcombine.high %v2387_v58, %v2387_v58  ;;  %v3213_v1 = vcombine.high %v3203_v11, %v3203_v11  ;;  %v3211_v31 = vcombine.high %v3189_v40, %v3189_v40  ;;  %v2003_v58 = vld [vmem:[#allocation2 + $0x288] sm:$0xff]  ;;  %v18607_v40 = vld [vmem:[#allocation58_spill] sm:$0xff] }
 0x353   : > { %18596 = vst [vmem:[#allocation129_spill] sm:$0xff] %v13689_v12  ;;  %18597 = vst [vmem:[#allocation130_spill] sm:$0xff] %v13692_v33  ;;  %v13706_v10 = vcombine.high %v13689_v12, %v18519_v14  ;;  %v13710_v19 = vmul.f32 %v13692_v33, %v18603_v6  ;;  %v13714_v15 = vcombine.high %v13699_v4, %v18519_v14  ;;  %5026 = vrot.lane.b32.xlu1 %v18607_v40, %s11826_s6  ;;  %v18608_v11 = vld [vmem:[#allocation54_spill] sm:$0xff] }
 0x354   : > { %18599 = vst [vmem:[#allocation47_spill] sm:$0xff] %v13696_v41  ;;  %18600 = vst [vmem:[#allocation131_spill] sm:$0xff] %v13699_v4  ;;  %v13717_v2 = vrot.slane %v2395_v34, %v12902_v7  ;;  %5024 = vrot.lane.b32.xlu0 %v18608_v11, %s11826_s6  ;;  %v13724_v41 = vrot.slane %v2397_v3, %v12902_v7  ;;  %v13727_v6 = vrot.slane %v3213_v1, %v12902_v7  ;;  %v2004_v4 = vld [vmem:[#allocation2 + $0x290] sm:$0xff]  ;;  %v2005_v3 = vld [vmem:[#allocation2 + $0x298] sm:$0xff] }
 0x355   : > { %18601 = vst [vmem:[#allocation132_spill] sm:$0xff] %v13702_v27  ;;  %18602 = vst [vmem:[#allocation133_spill] sm:$0xff] %v13706_v10  ;;  %v13730_v33 = vrot.slane %v3211_v31, %v12902_v7  ;;  %v4495_v40 = vrot.slane %v4481_v63, %v12926_v60  ;;  %v2350_v11 = vcombine.high %v13619_v16, %v13619_v16 }
 0x356   : > { %18604 = vst [vmem:[#allocation48_spill] sm:$0xff] %v13710_v19  ;;  %18605 = vst [vmem:[#allocation134_spill] sm:$0xff] %v13714_v15  ;;  %v13734_v34 = vmul.f32 %v13717_v2, %v13116_v38  ;;  %v4479_v19 = vrot.slane %v4465_v35, %v12926_v60  ;;  %v13741_v15 = vld [vmem:[%s12273_s2 + $0x18] sm:$0xff]  ;;  %v13745_v1 = vmul.f32 %v13724_v41, %v13135_v59  ;;  %v18615_v59 = vld [vmem:[#allocation55_spill] sm:$0xff] }
 0x357   : > { %18606 = vst [vmem:[#allocation135_spill] sm:$0xff] %v13717_v2  ;;  %18609 = vst [vmem:[#allocation136_spill] sm:$0xff] %v13724_v41  ;;  %v3166_v31 = vcombine.high %v13630_v32, %v13630_v32  ;;  %v13750_v38 = vadd.f32 %v12913_v45, %v2002_v26  ;;  %v13753_v35 = vadd.f32 %v12915_v46, %v2003_v58 }
 0x358   : > { %18610 = vst [vmem:[#allocation137_spill] sm:$0xff] %v13727_v6  ;;  %18611 = vst [vmem:[#allocation138_spill] sm:$0xff] %v13730_v33  ;;  %v4512_v63 = vcombine.low %v4479_v19, %v4495_v40  ;;  %v2364_v2 = vrot.slane %v2350_v11, %v12910_v39  ;;  %v4513_v16 = vcombine.high %v4479_v19, %v4495_v40  ;;  %v18614_v33 = vld [vmem:[#allocation59_spill] sm:$0xff]  ;;  %5028 = vrot.lane.b32.xlu0 %v18615_v59, %s11826_s6 }
 0x359   : > { %18612 = vst [vmem:[#allocation139_spill] sm:$0xff] %v13734_v34  ;;  %18613 = vst [vmem:[#allocation140_spill] sm:$0xff] %v13745_v1  ;;  %v13757_v34 = vadd.f32 %v12917_v49, %v2004_v4  ;;  %5030 = vrot.lane.b32.xlu1 %v18614_v33, %s11826_s6  ;;  %v3180_v32 = vrot.slane %v3166_v31, %v12910_v39  ;;  %v13765_v26 = vadd.f32 %v12919_v51, %v2005_v3  ;;  %v18622_v1 = vld [vmem:[#allocation57_spill] sm:$0xff] }
 0x35a   : > { %v2406_v58 = vrot.slane %v13741_v15, %v12910_v39  ;;  %v13770_v11 = vrot.slane %v4512_v63, %v12929_v61  ;;  %v2366_v19 = vcombine.high %v2364_v2, %v2364_v2  ;;  %v2380_v4 = vrot.slane %v2364_v2, %v12910_v39 }
 0x35b   : > { %v13774_v40 = vrot.slane %v4513_v16, %v12929_v61  ;;  %v3182_v41 = vcombine.high %v3180_v32, %v3180_v32  ;;  %v3196_v59 = vrot.slane %v3180_v32, %v12910_v39  ;;  %v4532_v31 = vcombine.low %v13750_v38, %v13757_v34  ;;  %v18621_v32 = vld [vmem:[#allocation60_spill] sm:$0xff] }
 0x35c   : > { %18616 = vst [vmem:[#allocation141_spill] sm:$0xff] %v13770_v11  ;;  %v4548_v3 = vcombine.low %v13753_v35, %v13765_v26  ;;  %v13783_v33 = vcombine.high %v13770_v11, %v18519_v14  ;;  %v2394_v63 = vrot.slane %v2366_v19, %v12910_v39  ;;  %v13787_v2 = vrot.slane %v2380_v4, %v12902_v7 }
 0x35d   : > { %18617 = vst [vmem:[#allocation142_spill] sm:$0xff] %v13774_v40  ;;  %v13791_v16 = vcombine.high %v13774_v40, %v18519_v14  ;;  %5034 = vrot.lane.b32.xlu1 %v18621_v32, %s11826_s6  ;;  %5032 = vrot.lane.b32.xlu0 %v18622_v1, %s11826_s6  ;;  %v3210_v6 = vrot.slane %v3182_v41, %v12910_v39 }
 0x35e   : > { %18618 = vst [vmem:[#allocation143_spill] sm:$0xff] %v13783_v33  ;;  %18619 = vst [vmem:[#allocation144_spill] sm:$0xff] %v13787_v2  ;;  %v13799_v11 = vrot.slane %v3196_v59, %v12902_v7  ;;  %v2396_v19 = vcombine.high %v2380_v4, %v2380_v4  ;;  %v13802_v33 = vrot.slane %v2394_v63, %v12902_v7 }
 0x35f   : > { %18620 = vst [vmem:[#allocation145_spill] sm:$0xff] %v13791_v16  ;;  %v13806_v27 = vmul.f32 %v13787_v2, %v13119_v25  ;;  %v2398_v40 = vcombine.high %v2394_v63, %v2394_v63  ;;  %v3212_v16 = vcombine.high %v3196_v59, %v3196_v59  ;;  %v13809_v32 = vrot.slane %v3210_v6, %v12902_v7 }
 0x360   : > { %18623 = vst [vmem:[#allocation146_spill] sm:$0xff] %v13799_v11  ;;  %18624 = vst [vmem:[#allocation147_spill] sm:$0xff] %v13802_v33  ;;  %v3214_v12 = vcombine.high %v3210_v6, %v3210_v6  ;;  %v13812_v1 = vrot.slane %v2396_v19, %v12902_v7  ;;  %v4540_v41 = vrot.slane %v4532_v31, %v12926_v60  ;;  %v3039_v11 = vld [vmem:[%s12281_s11 + $0x18] sm:$0xff] }
 0x361   : > { %18625 = vst [vmem:[#allocation148_spill] sm:$0xff] %v13809_v32  ;;  %v13818_v4 = vmul.f32 %v13802_v33, %v13139_v18  ;;  %v13821_v10 = vrot.slane %v2398_v40, %v12902_v7  ;;  %v13824_v25 = vrot.slane %v3212_v16, %v12902_v7  ;;  %v4556_v59 = vrot.slane %v4548_v3, %v12926_v60 }
 0x362   : > { %18626 = vst [vmem:[#allocation149_spill] sm:$0xff] %v13812_v1  ;;  %5038 = vrot.lane.b32.xlu1 %v13319_v17, %s11826_s6  ;;  %5036 = vrot.lane.b32.xlu0 %v13299_v30, %s11826_s6  ;;  %v13832_v6 = vrot.slane %v3214_v12, %v12902_v7  ;;  %v13836_v18 = vmul.f32 %v13812_v1, %v13122_v42  ;;  %v2010_v17 = vld [vmem:[#allocation2 + $0x2c0] sm:$0xff]  ;;  %v18642_v30 = vld [vmem:[#allocation69_spill] sm:$0xff] }
 0x363   : > { %18627 = vst [vmem:[#allocation150_spill] sm:$0xff] %v13821_v10  ;;  %18628 = vst [vmem:[#allocation151_spill] sm:$0xff] %v13824_v25  ;;  %v2414_v40 = vcombine.high %v2406_v58, %v2406_v58  ;;  %v13840_v31 = vmul.f32 %v13821_v10, %v13143_v20  ;;  %v4564_v63 = vcombine.low %v4540_v41, %v4556_v59 }
 0x364   : > { %18629 = vst [vmem:[#allocation152_spill] sm:$0xff] %v13832_v6  ;;  %v3222_v3 = vrot.slane %v3039_v11, %v12910_v39  ;;  %v2422_v16 = vrot.slane %v2406_v58, %v12910_v39  ;;  %v4565_v2 = vcombine.high %v4540_v41, %v4556_v59  ;;  %v4533_v12 = vcombine.high %v13750_v38, %v13757_v34  ;;  %v18632_v58 = vld [vmem:[#allocation68_spill] sm:$0xff]  ;;  %v18633_v41 = vld [vmem:[#allocation62_spill] sm:$0xff] }
 0x365   : > { %v2436_v19 = vrot.slane %v2414_v40, %v12910_v39  ;;  %v4549_v42 = vcombine.high %v13753_v35, %v13765_v26  ;;  %v13850_v1 = vrot.slane %v4564_v63, %v12929_v61 }
 0x366   : > { %v3230_v33 = vcombine.high %v3222_v3, %v3222_v3  ;;  %v3238_v20 = vrot.slane %v3222_v3, %v12910_v39  ;;  %v13854_v10 = vrot.slane %v2422_v16, %v12902_v7  ;;  %5042 = vrot.lane.b32.xlu1 %v18632_v58, %s11826_s6  ;;  %5040 = vrot.lane.b32.xlu0 %v18633_v41, %s11826_s6 }
 0x367   : > { %18630 = vst [vmem:[#allocation153_spill] sm:$0xff] %v13850_v1  ;;  %v13861_v34 = vrot.slane %v2436_v19, %v12902_v7  ;;  %v13864_v38 = vrot.slane %v4565_v2, %v12929_v61  ;;  %v2446_v35 = vcombine.high %v2436_v19, %v2436_v19  ;;  %v13868_v26 = vcombine.high %v13850_v1, %v18519_v14 }
 0x368   : > { %18631 = vst [vmem:[#allocation154_spill] sm:$0xff] %v13854_v10  ;;  %v3252_v59 = vrot.slane %v3230_v33, %v12910_v39  ;;  %v13873_v40 = vmul.f32 %v13854_v10, %v13146_v21  ;;  %v13876_v63 = vrot.slane %v3238_v20, %v12902_v7  ;;  %v2444_v41 = vcombine.high %v2422_v16, %v2422_v16 }
 0x369   : > { %18634 = vst [vmem:[#allocation155_spill] sm:$0xff] %v13861_v34  ;;  %18635 = vst [vmem:[#allocation156_spill] sm:$0xff] %v13864_v38  ;;  %v13880_v3 = vmul.f32 %v13861_v34, %v13161_v22  ;;  %v13884_v2 = vcombine.high %v13864_v38, %v18519_v14  ;;  %v13887_v19 = vrot.slane %v2446_v35, %v12902_v7  ;;  %v18643_v22 = vld [vmem:[#allocation63_spill] sm:$0xff] }
 0x36a   : > { %18636 = vst [vmem:[#allocation157_spill] sm:$0xff] %v13868_v26  ;;  %18637 = vst [vmem:[#allocation158_spill] sm:$0xff] %v13873_v40  ;;  %v13890_v33 = vrot.slane %v3252_v59, %v12902_v7  ;;  %v3262_v21 = vcombine.high %v3252_v59, %v3252_v59  ;;  %v3260_v10 = vcombine.high %v3238_v20, %v3238_v20  ;;  %5046 = vrot.lane.b32.xlu1 %v18642_v30, %s11826_s6  ;;  %v2011_v59 = vld [vmem:[#allocation2 + $0x2c8] sm:$0xff]  ;;  %v2012_v20 = vld [vmem:[#allocation2 + $0x2d0] sm:$0xff] }
 0x36b   : > { %18638 = vst [vmem:[#allocation159_spill] sm:$0xff] %v13876_v63  ;;  %18639 = vst [vmem:[#allocation160_spill] sm:$0xff] %v13884_v2  ;;  %v4547_v58 = vrot.slane %v4533_v12, %v12926_v60  ;;  %5044 = vrot.lane.b32.xlu0 %v18643_v22, %s11826_s6  ;;  %v13899_v34 = vmul.f32 %v13887_v19, %v13165_v36  ;;  %v13902_v16 = vrot.slane %v2444_v41, %v12902_v7  ;;  %v2013_v40 = vld [vmem:[#allocation2 + $0x2d8] sm:$0xff] }
 0x36c   : > { %18640 = vst [vmem:[#allocation161_spill] sm:$0xff] %v13887_v19  ;;  %18641 = vst [vmem:[#allocation162_spill] sm:$0xff] %v13890_v33  ;;  %v4563_v35 = vrot.slane %v4549_v42, %v12926_v60  ;;  %v13906_v12 = vrot.slane %v3262_v21, %v12902_v7  ;;  %v13909_v38 = vrot.slane %v3260_v10, %v12902_v7 }
 0x36d   : > { %18644 = vst [vmem:[#allocation163_spill] sm:$0xff] %v13899_v34  ;;  %18645 = vst [vmem:[#allocation164_spill] sm:$0xff] %v13902_v16  ;;  %v2399_v30 = vcombine.high %v13741_v15, %v13741_v15  ;;  %v3215_v22 = vcombine.high %v3039_v11, %v3039_v11  ;;  %v13915_v36 = vmul.f32 %v13902_v16, %v13149_v23  ;;  %v18649_v11 = vld [vmem:[#allocation70_spill] sm:$0xff]  ;;  %v18650_v23 = vld [vmem:[#allocation64_spill] sm:$0xff] }
 0x36e   : > { %18646 = vst [vmem:[#allocation165_spill] sm:$0xff] %v13906_v12  ;;  %18647 = vst [vmem:[#allocation166_spill] sm:$0xff] %v13909_v38  ;;  %v4580_v41 = vcombine.low %v4547_v58, %v4563_v35  ;;  %v4581_v19 = vcombine.high %v4547_v58, %v4563_v35  ;;  %v13918_v42 = vadd.f32 %v12913_v45, %v2010_v17  ;;  %5050 = vrot.lane.b32.xlu1 %v18649_v11, %s11826_s6 }
 0x36f   : > { %18648 = vst [vmem:[#allocation167_spill] sm:$0xff] %v13915_v36  ;;  %v2413_v21 = vrot.slane %v2399_v30, %v12910_v39  ;;  %v3229_v34 = vrot.slane %v3215_v22, %v12910_v39  ;;  %v13923_v10 = vadd.f32 %v12915_v46, %v2011_v59  ;;  %v13926_v15 = vadd.f32 %v12917_v49, %v2012_v20 }
 0x370   : > { %5048 = vrot.lane.b32.xlu0 %v18650_v23, %s11826_s6  ;;  %v13933_v58 = vrot.slane %v4580_v41, %v12929_v61  ;;  %v13936_v17 = vrot.slane %v4581_v19, %v12929_v61  ;;  %v13939_v30 = vadd.f32 %v12919_v51, %v2013_v40 }
 0x371   : > { %v2415_v22 = vcombine.high %v2413_v21, %v2413_v21  ;;  %v3231_v35 = vcombine.high %v3229_v34, %v3229_v34  ;;  %v2429_v59 = vrot.slane %v2413_v21, %v12910_v39  ;;  %v3245_v20 = vrot.slane %v3229_v34, %v12910_v39 }
 0x372   : > { %18651 = vst [vmem:[#allocation168_spill] sm:$0xff] %v13933_v58  ;;  %18652 = vst [vmem:[#allocation169_spill] sm:$0xff] %v13936_v17  ;;  %v13945_v16 = vcombine.high %v13933_v58, %v18519_v14  ;;  %v13949_v41 = vcombine.high %v13936_v17, %v18519_v14  ;;  %v4600_v19 = vcombine.low %v13918_v42, %v13926_v15  ;;  %5054 = vrot.lane.b32.xlu1 %v13356_v9, %s11826_s6  ;;  %v4945_v9 = vpop.permute.xlu1 %4944 }
 0x373   : > { %v4616_v40 = vcombine.low %v13923_v10, %v13939_v30  ;;  %v2443_v23 = vrot.slane %v2415_v22, %v12910_v39  ;;  %v3259_v21 = vrot.slane %v3231_v35, %v12910_v39  ;;  %v13958_v34 = vrot.slane %v2429_v59, %v12902_v7 }
 0x374   : > { %18653 = vst [vmem:[#allocation170_spill] sm:$0xff] %v13945_v16  ;;  %18654 = vst [vmem:[#allocation171_spill] sm:$0xff] %v13949_v41  ;;  %v13961_v11 = vrot.slane %v3245_v20, %v12902_v7  ;;  %5052 = vrot.lane.b32.xlu0 %v13338_v47, %s11826_s6  ;;  %v2445_v17 = vcombine.high %v2429_v59, %v2429_v59  ;;  %v3261_v41 = vcombine.high %v3245_v20, %v3245_v20  ;;  %v4941_v16 = vpop.permute.xlu0 %4940  ;;  %v13986_v47 = vld [vmem:[%s12273_s2 + $0x20] sm:$0xff] }
 0x375   : > { %18655 = vst [vmem:[#allocation172_spill] sm:$0xff] %v13958_v34  ;;  %v4608_v58 = vrot.slane %v4600_v19, %v12926_v60  ;;  %v13969_v22 = vrot.slane %v2443_v23, %v12902_v7  ;;  %v13972_v35 = vrot.slane %v3259_v21, %v12902_v7  ;;  %v2447_v36 = vcombine.high %v2443_v23, %v2443_v23 }
 0x376   : > { %18656 = vst [vmem:[#allocation173_spill] sm:$0xff] %v13961_v11  ;;  %v13976_v11 = vmul.f32 %v13958_v34, %v13168_v43  ;;  %v3263_v38 = vcombine.high %v3259_v21, %v3259_v21  ;;  %v13979_v59 = vrot.slane %v2445_v17, %v12902_v7  ;;  %v13982_v20 = vrot.slane %v3261_v41, %v12902_v7  ;;  %v13998_v17 = vld [vmem:[%s12281_s11 + $0x20] sm:$0xff]  ;;  %v18662_v41 = vld [vmem:[#allocation77_spill] sm:$0xff] }
 0x377   : > { %18657 = vst [vmem:[#allocation174_spill] sm:$0xff] %v13969_v22  ;;  %18658 = vst [vmem:[#allocation175_spill] sm:$0xff] %v13972_v35  ;;  %v4624_v19 = vrot.slane %v4616_v40, %v12926_v60  ;;  %v6606_v35 = vmul.f32 %v13359_v55, %v4945_v9  ;;  %v6604_v12 = vmul.f32 %v13345_v8, %v4941_v16  ;;  %5058 = vrot.lane.b32.xlu1 %v13381_v5, %s11826_s6  ;;  %v18665_v16 = vld [vmem:[#allocation72_spill] sm:$0xff]  ;;  %v4947_v8 = vpop.permute.xlu1 %4946 }
 0x378   : > { %18659 = vst [vmem:[#allocation176_spill] sm:$0xff] %v13979_v59  ;;  %18660 = vst [vmem:[#allocation177_spill] sm:$0xff] %v13982_v20  ;;  %v13992_v43 = vmul.f32 %v13969_v22, %v13175_v56  ;;  %v13995_v23 = vrot.slane %v2447_v36, %v12902_v7  ;;  %5056 = vrot.lane.b32.xlu0 %v18662_v41, %s11826_s6  ;;  %v14005_v40 = vrot.slane %v3263_v38, %v12902_v7  ;;  %v18666_v36 = vld [vmem:[#allocation74_spill] sm:$0xff]  ;;  %v4949_v41 = vpop.permute.xlu0 %4948 }
 0x379   : > { %v14009_v9 = vmul.f32 %v13979_v59, %v13171_v50  ;;  %v4632_v56 = vcombine.low %v4608_v58, %v4624_v19  ;;  %v6734_v21 = vadd.f32 %v6606_v35, %v18665_v16  ;;  %v6732_v34 = vadd.f32 %v6604_v12, %v18666_v36  ;;  %v18669_v16 = vld [vmem:[#allocation82_spill] sm:$0xff] }
 0x37a   : > { %18661 = vst [vmem:[#allocation178_spill] sm:$0xff] %v13995_v23  ;;  %18663 = vst [vmem:[#allocation179_spill] sm:$0xff] %v14005_v40  ;;  %v14015_v22 = vmul.f32 %v13995_v23, %v13181_v44  ;;  %v2455_v55 = vrot.slane %v13986_v47, %v12910_v39  ;;  %v3271_v50 = vrot.slane %v13998_v17, %v12910_v39  ;;  %v18670_v44 = vld [vmem:[#allocation84_spill] sm:$0xff] }
 0x37b   : > { %18664 = vst [vmem:[#allocation180_spill] sm:$0xff] %v14009_v9  ;;  %v14020_v38 = vrot.slane %v4632_v56, %v12929_v61  ;;  %v4633_v59 = vcombine.high %v4608_v58, %v4624_v19  ;;  %v4601_v35 = vcombine.high %v13918_v42, %v13926_v15  ;;  %v6860_v12 = vcombine.low %v6732_v34, %v6734_v21  ;;  %v18671_v9 = vld [vmem:[#allocation90_spill] sm:$0xff]  ;;  %v18675_v34 = vld [vmem:[#allocation83_spill] sm:$0xff] }
 0x37c   : > { %18667 = vst [vmem:[#allocation72_spill] sm:$0xff] %v14015_v22  ;;  %v6607_v36 = vmul.f32 %v18669_v16, %v4947_v8  ;;  %v6608_v23 = vmul.f32 %v18670_v44, %v4949_v41  ;;  %v2463_v5 = vcombine.high %v2455_v55, %v2455_v55  ;;  %5062 = vrot.lane.b32.xlu1 %v18671_v9, %s11826_s6  ;;  %v18672_v22 = vld [vmem:[#allocation85_spill] sm:$0xff]  ;;  %v4951_v44 = vpop.permute.xlu1 %4950  ;;  %v4953_v16 = vpop.permute.xlu0 %4952 }
 0x37d   : > { %18668 = vst [vmem:[#allocation74_spill] sm:$0xff] %v14020_v38  ;;  %5060 = vrot.lane.b32.xlu0 %v18672_v22, %s11826_s6  ;;  %v14034_v56 = vcombine.high %v14020_v38, %v18519_v14  ;;  %v3279_v58 = vcombine.high %v3271_v50, %v3271_v50  ;;  %v2471_v19 = vrot.slane %v2455_v55, %v12910_v39  ;;  %v18674_v8 = vld [vmem:[#allocation81_spill] sm:$0xff] }
 0x37e   : > { %v14038_v42 = vrot.slane %v6860_v12, %v12926_v60  ;;  %v14041_v15 = vadd.f32 %v6607_v36, %v18674_v8  ;;  %v6736_v41 = vadd.f32 %v6608_v23, %v18675_v34  ;;  %v2485_v21 = vrot.slane %v2463_v5, %v12910_v39  ;;  %v18677_v12 = vld [vmem:[#allocation88_spill] sm:$0xff]  ;;  %v18678_v36 = vld [vmem:[#allocation89_spill] sm:$0xff]  ;;  %v18680_v34 = vld [vmem:[#allocation95_spill] sm:$0xff] }
 0x37f   : > { %18673 = vst [vmem:[#allocation181_spill] sm:$0xff] %v14034_v56  ;;  %v3301_v9 = vrot.slane %v3279_v58, %v12910_v39  ;;  %v3287_v22 = vrot.slane %v3271_v50, %v12910_v39  ;;  %v14048_v38 = vrot.slane %v2471_v19, %v12902_v7  ;;  %v14051_v55 = vrot.slane %v4633_v59, %v12929_v61  ;;  %v18681_v58 = vld [vmem:[#allocation92_spill] sm:$0xff] }
 0x380   : > { %v6609_v56 = vmul.f32 %v18677_v12, %v4951_v44  ;;  %v6610_v8 = vmul.f32 %v18678_v36, %v4953_v16  ;;  %v14056_v23 = vrot.slane %v2485_v21, %v12902_v7  ;;  %v2495_v5 = vcombine.high %v2485_v21, %v2485_v21  ;;  %5066 = vrot.lane.b32.xlu1 %v18680_v34, %s11826_s6  ;;  %v18685_v16 = vld [vmem:[#allocation93_spill] sm:$0xff]  ;;  %v18686_v12 = vld [vmem:[#allocation91_spill] sm:$0xff]  ;;  %v4957_v20 = vpop.permute.xlu0 %4956 }
 0x381   : > { %18676 = vst [vmem:[#allocation81_spill] sm:$0xff] %v14048_v38  ;;  %5064 = vrot.lane.b32.xlu0 %v18681_v58, %s11826_s6  ;;  %v14063_v50 = vrot.slane %v3301_v9, %v12902_v7  ;;  %v14067_v59 = vmul.f32 %v14048_v38, %v13194_v57  ;;  %v14070_v44 = vrot.slane %v3287_v22, %v12902_v7 }
 0x382   : > { %18679 = vst [vmem:[#allocation83_spill] sm:$0xff] %v14056_v23  ;;  %v6737_v36 = vadd.f32 %v6609_v56, %v18685_v16  ;;  %v6738_v21 = vadd.f32 %v6610_v8, %v18686_v12  ;;  %v14076_v34 = vmul.f32 %v14056_v23, %v13213_v53  ;;  %v14080_v58 = vcombine.high %v14051_v55, %v18519_v14  ;;  %v18688_v56 = vld [vmem:[#allocation97_spill] sm:$0xff] }
 0x383   : > { %18682 = vst [vmem:[#allocation182_spill] sm:$0xff] %v14063_v50  ;;  %18683 = vst [vmem:[#allocation183_spill] sm:$0xff] %v14067_v59  ;;  %v4955_v50 = vpop.permute.xlu1 %4954  ;;  %v3311_v40 = vcombine.high %v3301_v9, %v3301_v9  ;;  %v14083_v57 = vrot.slane %v2495_v5, %v12902_v7  ;;  %v2493_v38 = vcombine.high %v2471_v19, %v2471_v19  ;;  %v18692_v5 = vld [vmem:[#allocation100_spill] sm:$0xff] }
 0x384   : > { %18684 = vst [vmem:[#allocation184_spill] sm:$0xff] %v14070_v44  ;;  %v3309_v59 = vcombine.high %v3287_v22, %v3287_v22  ;;  %v6876_v44 = vcombine.low %v6736_v41, %v6738_v21  ;;  %v6611_v16 = vmul.f32 %v18688_v56, %v4955_v50  ;;  %v6612_v12 = vmul.f32 %v13491_v29, %v4957_v20  ;;  %v2018_v20 = vld [vmem:[#allocation2 + $0x300] sm:$0xff]  ;;  %v18691_v41 = vld [vmem:[#allocation96_spill] sm:$0xff]  ;;  %v4961_v29 = vpop.permute.xlu0 %4960 }
 0x385   : > { %18687 = vst [vmem:[#allocation93_spill] sm:$0xff] %v14083_v57  ;;  %v14088_v53 = vrot.slane %v4601_v35, %v12926_v60  ;;  %5070 = vrot.lane.b32.xlu1 %v13560_v37, %s11826_s6  ;;  %5068 = vrot.lane.b32.xlu0 %v13541_v28, %s11826_s6  ;;  %v14096_v9 = vmul.f32 %v14083_v57, %v13217_v54 }
 0x386   : > { %v14099_v22 = vrot.slane %v3311_v40, %v12902_v7  ;;  %v14102_v19 = vrot.slane %v2493_v38, %v12902_v7  ;;  %v6883_v35 = vrot.slane %v6876_v44, %v12926_v60  ;;  %v6739_v8 = vadd.f32 %v6611_v16, %v18691_v41  ;;  %v2019_v16 = vld [vmem:[#allocation2 + $0x308] sm:$0xff]  ;;  %v18694_v41 = vld [vmem:[#allocation102_spill] sm:$0xff] }
 0x387   : > { %v6740_v50 = vadd.f32 %v6612_v12, %v18692_v5  ;;  %v14108_v21 = vrot.slane %v3309_v59, %v12902_v7  ;;  %v4959_v23 = vpop.permute.xlu1 %4958  ;;  %v4617_v40 = vcombine.high %v13923_v10, %v13939_v30  ;;  %v2448_v38 = vcombine.high %v13986_v47, %v13986_v47 }
 0x388   : > { %18689 = vst [vmem:[#allocation91_spill] sm:$0xff] %v14099_v22  ;;  %18690 = vst [vmem:[#allocation185_spill] sm:$0xff] %v14102_v19  ;;  %v14112_v54 = vmul.f32 %v14102_v19, %v13197_v0  ;;  %v3264_v44 = vcombine.high %v13998_v17, %v13998_v17  ;;  %v6884_v12 = vcombine.low %v6737_v36, %v6739_v8 }
 0x389   : > { %18693 = vst [vmem:[#allocation96_spill] sm:$0xff] %v14108_v21  ;;  %v6613_v59 = vmul.f32 %v13515_v24, %v4959_v23  ;;  %v6614_v5 = vmul.f32 %v18694_v41, %v4961_v29  ;;  %v14123_v57 = vadd.f32 %v12913_v45, %v2018_v20  ;;  %5074 = vrot.lane.b32.xlu1 %v13564_v52, %s11826_s6  ;;  %v4943_v20 = vpop.permute.xlu0 %4942  ;;  %v18695_v24 = vld [vmem:[#allocation110_spill] sm:$0xff]  ;;  %v18706_v52 = vld [vmem:[#allocation51_spill] sm:$0xff] }
 0x38a   : > { %5072 = vrot.lane.b32.xlu0 %v13544_v62, %s11826_s6  ;;  %v14130_v0 = vrot.slane %v4617_v40, %v12926_v60  ;;  %v2462_v47 = vrot.slane %v2448_v38, %v12910_v39  ;;  %v3278_v10 = vrot.slane %v3264_v44, %v12910_v39  ;;  %v6891_v30 = vrot.slane %v6884_v12, %v12926_v60 }
 0x38b   : > { %v6741_v29 = vadd.f32 %v6613_v59, %v13527_v48  ;;  %v6742_v17 = vadd.f32 %v6614_v5, %v13519_v13  ;;  %v14138_v36 = vadd.f32 %v12915_v46, %v2019_v16  ;;  %v4963_v23 = vpop.permute.xlu1 %4962  ;;  %v18696_v59 = vld [vmem:[#allocation107_spill] sm:$0xff]  ;;  %v18697_v16 = vld [vmem:[#allocation121_spill] sm:$0xff]  ;;  %v18698_v5 = vld [vmem:[#allocation116_spill] sm:$0xff] }
 0x38c   : > { %v4648_v8 = vcombine.low %v14088_v53, %v14130_v0  ;;  %v2464_v40 = vcombine.high %v2462_v47, %v2462_v47  ;;  %v3280_v19 = vcombine.high %v3278_v10, %v3278_v10  ;;  %v14143_v38 = vrot.slane %v2462_v47, %v12910_v39 }
 0x38d   : > { %v6908_v44 = vcombine.low %v6883_v35, %v6891_v30  ;;  %v6909_v41 = vcombine.high %v6883_v35, %v6891_v30  ;;  %v6928_v12 = vcombine.low %v6740_v50, %v6742_v17  ;;  %v6615_v48 = vmul.f32 %v18695_v24, %v4963_v23  ;;  %5078 = vrot.lane.b32.xlu1 %v18697_v16, %s11826_s6  ;;  %v18699_v30 = vld [vmem:[#allocation111_spill] sm:$0xff]  ;;  %v18700_v23 = vld [vmem:[#allocation112_spill] sm:$0xff] }
 0x38e   : > { %v6605_v13 = vmul.f32 %v18696_v59, %v4943_v20  ;;  %5076 = vrot.lane.b32.xlu0 %v18698_v5, %s11826_s6  ;;  %v14152_v56 = vrot.slane %v4648_v8, %v12929_v61  ;;  %v14155_v62 = vrot.slane %v2464_v40, %v12910_v39  ;;  %v4965_v59 = vpop.permute.xlu0 %4964  ;;  %v14171_v40 = vrot.slane %v3280_v19, %v12910_v39  ;;  %v18702_v16 = vld [vmem:[#allocation120_spill] sm:$0xff]  ;;  %v18703_v5 = vld [vmem:[#allocation117_spill] sm:$0xff]  ;;  %v18705_v19 = vld [vmem:[#allocation118_spill] sm:$0xff] }
 0x38f   : > { %v14158_v47 = vrot.slane %v6908_v44, %v12929_v61  ;;  %v14161_v35 = vrot.slane %v6909_v41, %v12929_v61  ;;  %v6935_v50 = vrot.slane %v6928_v12, %v12926_v60  ;;  %v6743_v17 = vadd.f32 %v6615_v48, %v18699_v30  ;;  %v4967_v24 = vpop.permute.xlu1 %4966 }
 0x390   : > { %v6733_v20 = vadd.f32 %v6605_v13, %v18700_v23  ;;  %v14168_v8 = vcombine.high %v14152_v56, %v18519_v14  ;;  %v14175_v44 = vrot.slane %v14155_v62, %v12902_v7  ;;  %v6617_v12 = vmul.f32 %v18702_v16, %v4967_v24  ;;  %v18704_v23 = vld [vmem:[#allocation122_spill] sm:$0xff] }
 0x391   : > { %v6936_v41 = vcombine.low %v6741_v29, %v6743_v17  ;;  %v6616_v48 = vmul.f32 %v18703_v5, %v4965_v59  ;;  %v14180_v13 = vrot.slane %v3278_v10, %v12910_v39  ;;  %5082 = vrot.lane.b32.xlu1 %v18704_v23, %s11826_s6  ;;  %v14193_v24 = vrot.slane %v14171_v40, %v12902_v7  ;;  %v18709_v10 = vld [vmem:[#allocation45_spill] sm:$0xff]  ;;  %v18710_v17 = vld [vmem:[#allocation43_spill] sm:$0xff]  ;;  %v18714_v23 = vld [vmem:[#allocation124_spill] sm:$0xff] }
 0x392   : > { %18701 = vst [vmem:[#allocation100_spill] sm:$0xff] %v14175_v44  ;;  %v6868_v30 = vcombine.low %v6733_v20, %v14041_v15  ;;  %5080 = vrot.lane.b32.xlu0 %v18705_v19, %s11826_s6  ;;  %v14189_v37 = vmul.f32 %v14175_v44, %v18706_v52  ;;  %v6745_v59 = vadd.f32 %v6617_v12, %v18709_v10  ;;  %v4969_v19 = vpop.permute.xlu0 %4968  ;;  %v18713_v10 = vld [vmem:[#allocation126_spill] sm:$0xff] }
 0x393   : > { %18708 = vst [vmem:[#allocation112_spill] sm:$0xff] %v14193_v24  ;;  %v6943_v29 = vrot.slane %v6936_v41, %v12926_v60  ;;  %v6744_v15 = vadd.f32 %v6616_v48, %v18710_v17  ;;  %v14200_v20 = vrot.slane %v14143_v38, %v12902_v7  ;;  %v4971_v16 = vpop.permute.xlu1 %4970  ;;  %v14205_v52 = vrot.slane %v14180_v13, %v12902_v7  ;;  %v18722_v24 = vld [vmem:[#allocation128_spill] sm:$0xff] }
 0x394   : > { %18707 = vst [vmem:[#allocation111_spill] sm:$0xff] %v14189_v37  ;;  %v6875_v5 = vrot.slane %v6868_v30, %v12926_v60  ;;  %v4649_v44 = vcombine.high %v14088_v53, %v14130_v0  ;;  %v2496_v41 = vcombine.high %v14155_v62, %v14155_v62  ;;  %v6619_v17 = vmul.f32 %v18713_v10, %v4971_v16  ;;  %v18715_v37 = vld [vmem:[#allocation133_spill] sm:$0xff] }
 0x395   : > { %18711 = vst [vmem:[#allocation51_spill] sm:$0xff] %v14200_v20  ;;  %18712 = vst [vmem:[#allocation45_spill] sm:$0xff] %v14205_v52  ;;  %v6960_v12 = vcombine.low %v6935_v50, %v6943_v29  ;;  %v6961_v48 = vcombine.high %v6935_v50, %v6943_v29  ;;  %v6618_v28 = vmul.f32 %v18714_v23, %v4969_v19  ;;  %5086 = vrot.lane.b32.xlu1 %v18715_v37, %s11826_s6  ;;  %v18716_v52 = vld [vmem:[#allocation129_spill] sm:$0xff]  ;;  %v18719_v50 = vld [vmem:[#allocation46_spill] sm:$0xff] }
 0x396   : > { %v6892_v30 = vcombine.low %v14038_v42, %v6875_v5  ;;  %v6893_v46 = vcombine.high %v14038_v42, %v6875_v5  ;;  %5084 = vrot.lane.b32.xlu0 %v18716_v52, %s11826_s6  ;;  %v18717_v53 = vld [vmem:[#allocation49_spill] sm:$0xff]  ;;  %v6747_v19 = vadd.f32 %v6619_v17, %v18719_v50  ;;  %v18720_v29 = vld [vmem:[#allocation44_spill] sm:$0xff]  ;;  %v4973_v37 = vpop.permute.xlu0 %4972  ;;  %v14234_v52 = vrot.slane %v4649_v44, %v12929_v61  ;;  %v18723_v44 = vld [vmem:[#allocation134_spill] sm:$0xff] }
 0x397   : > { %v14221_v0 = vmul.f32 %v14200_v20, %v18717_v53  ;;  %v14224_v62 = vrot.slane %v6960_v12, %v12929_v61  ;;  %v14227_v16 = vrot.slane %v6961_v48, %v12929_v61  ;;  %v6746_v42 = vadd.f32 %v6618_v28, %v18720_v29  ;;  %v4975_v10 = vpop.permute.xlu1 %4974  ;;  %v18721_v48 = vld [vmem:[#allocation132_spill] sm:$0xff] }
 0x398   : > { %v6900_v5 = vrot.slane %v6892_v30, %v12929_v61  ;;  %v6907_v23 = vrot.slane %v6893_v46, %v12929_v61  ;;  %v3312_v12 = vcombine.high %v14171_v40, %v14171_v40  ;;  %v6952_v53 = vcombine.low %v6745_v59, %v6747_v19  ;;  %v18724_v59 = vld [vmem:[#allocation48_spill] sm:$0xff] }
 0x399   : > { %18718 = vst [vmem:[#allocation43_spill] sm:$0xff] %v14221_v0  ;;  %v6944_v20 = vcombine.low %v6744_v15, %v6746_v42  ;;  %v6621_v0 = vmul.f32 %v18721_v48, %v4975_v10  ;;  %v6620_v17 = vmul.f32 %v18722_v24, %v4973_v37  ;;  %5090 = vrot.lane.b32.xlu1 %v18723_v44, %s11826_s6  ;;  %v18725_v37 = vld [vmem:[#allocation47_spill] sm:$0xff]  ;;  %v2020_v44 = vld [vmem:[#allocation2 + $0x310] sm:$0xff] }
 0x39a   : > { %v6924_v28 = vcombine.low %v6900_v5, %v14158_v47  ;;  %v6925_v30 = vcombine.high %v6900_v5, %v14158_v47  ;;  %v6926_v46 = vcombine.low %v6907_v23, %v14161_v35  ;;  %v6927_v50 = vcombine.high %v6907_v23, %v14161_v35  ;;  %v18726_v47 = vld [vmem:[#allocation131_spill] sm:$0xff]  ;;  %v4977_v5 = vpop.permute.xlu0 %4976 }
 0x39b   : > { %v6959_v29 = vrot.slane %v6952_v53, %v12926_v60  ;;  %v6951_v40 = vrot.slane %v6944_v20, %v12926_v60  ;;  %v6749_v15 = vadd.f32 %v6621_v0, %v18724_v59  ;;  %v6748_v10 = vadd.f32 %v6620_v17, %v18725_v37  ;;  %5088 = vrot.lane.b32.xlu0 %v18726_v47, %s11826_s6  ;;  %v4979_v23 = vpop.permute.xlu1 %4978  ;;  %v18727_v0 = vld [vmem:[#allocation137_spill] sm:$0xff]  ;;  %v18728_v17 = vld [vmem:[#allocation138_spill] sm:$0xff]  ;;  %v18758_v47 = vld [vmem:[#allocation175_spill] sm:$0xff] }
 0x39c   : > { %v7948_v19 = vmul.f32 0.088388346, %v6924_v28  ;;  %v7949_v42 = vmul.f32 0.088388346, %v6925_v30  ;;  %v7950_v35 = vmul.f32 0.088388346, %v6926_v46  ;;  %v14254_v53 = vcombine.high %v14234_v52, %v18519_v14 }
 0x39d   : > { %v7951_v20 = vmul.f32 0.088388346, %v6927_v50  ;;  %v6976_v24 = vcombine.low %v6951_v40, %v6959_v29  ;;  %v6977_v48 = vcombine.high %v6951_v40, %v6959_v29  ;;  %v6623_v59 = vmul.f32 %v18727_v0, %v4979_v23  ;;  %v18729_v30 = vld [vmem:[#allocation143_spill] sm:$0xff]  ;;  %v18735_v0 = vld [vmem:[#allocation52_spill] sm:$0xff] }
 0x39e   : > { %8012 = vst [vmem:[%s12283_s5] sm:$0xff] %v7948_v19  ;;  %8013 = vst [vmem:[%s12283_s5 + $0x8] sm:$0xff] %v7949_v42  ;;  %v6622_v28 = vmul.f32 %v18728_v17, %v4977_v5  ;;  %5094 = vrot.lane.b32.xlu1 %v18729_v30, %s11826_s6  ;;  %v14264_v46 = vrot.slane %v2496_v41, %v12902_v7  ;;  %v14267_v37 = vrot.slane %v3312_v12, %v12902_v7  ;;  %v18732_v19 = vld [vmem:[#allocation140_spill] sm:$0xff]  ;;  %v18734_v23 = vld [vmem:[#allocation139_spill] sm:$0xff]  ;;  %v4981_v17 = vpop.permute.xlu0 %4980 }
 0x39f   : > { %8014 = vst [vmem:[%s12283_s5 + $0x10] sm:$0xff] %v7950_v35  ;;  %v2494_v50 = vcombine.high %v14143_v38, %v14143_v38  ;;  %8015 = vst [vmem:[%s12283_s5 + $0x18] sm:$0xff] %v7951_v20  ;;  %v6984_v29 = vrot.slane %v6976_v24, %v12929_v61  ;;  %v6991_v40 = vrot.slane %v6977_v48, %v12929_v61  ;;  %v18733_v35 = vld [vmem:[#allocation141_spill] sm:$0xff]  ;;  %v4983_v12 = vpop.permute.xlu1 %4982 }
 0x3a0   : > { %18730 = vst [vmem:[#allocation49_spill] sm:$0xff] %v14264_v46  ;;  %18731 = vst [vmem:[#allocation46_spill] sm:$0xff] %v14267_v37  ;;  %v6751_v42 = vadd.f32 %v6623_v59, %v18732_v19  ;;  %5092 = vrot.lane.b32.xlu0 %v18733_v35, %s11826_s6  ;;  %v3310_v41 = vcombine.high %v14180_v13, %v14180_v13  ;;  %v6750_v5 = vadd.f32 %v6622_v28, %v18734_v23  ;;  %v18738_v30 = vld [vmem:[#allocation145_spill] sm:$0xff] }
 0x3a1   : > { %v14282_v38 = vmul.f32 %v14264_v46, %v18735_v0  ;;  %v14285_v24 = vrot.slane %v2494_v50, %v12902_v7  ;;  %v14288_v48 = vadd.f32 %v12917_v49, %v2020_v44  ;;  %v6992_v20 = vcombine.low %v14224_v62, %v6984_v29  ;;  %v18737_v46 = vld [vmem:[#allocation146_spill] sm:$0xff]  ;;  %v2021_v44 = vld [vmem:[#allocation2 + $0x318] sm:$0xff] }
 0x3a2   : > { %v6993_v59 = vcombine.high %v14224_v62, %v6984_v29  ;;  %v6994_v13 = vcombine.low %v14227_v16, %v6991_v40  ;;  %v6995_v28 = vcombine.high %v14227_v16, %v6991_v40  ;;  %v7004_v19 = vcombine.low %v6749_v15, %v6751_v42  ;;  %5098 = vrot.lane.b32.xlu1 %v18738_v30, %s11826_s6  ;;  %v18739_v16 = vld [vmem:[#allocation142_spill] sm:$0xff] }
 0x3a3   : > { %18736 = vst [vmem:[#allocation44_spill] sm:$0xff] %v14285_v24  ;;  %v6996_v23 = vcombine.low %v6748_v10, %v6750_v5  ;;  %v6625_v0 = vmul.f32 %v13809_v32, %v4983_v12  ;;  %v6624_v50 = vmul.f32 %v18737_v46, %v4981_v17  ;;  %v7952_v62 = vmul.f32 0.088388346, %v6992_v20  ;;  %v18740_v15 = vld [vmem:[#allocation50_spill] sm:$0xff]  ;;  %v4987_v12 = vpop.permute.xlu1 %4986  ;;  %v4985_v46 = vpop.permute.xlu0 %4984  ;;  %v14308_v20 = vld [vmem:[%s12273_s2 + $0x28] sm:$0xff] }
 0x3a4   : > { %v7953_v29 = vmul.f32 0.088388346, %v6993_v59  ;;  %v7954_v35 = vmul.f32 0.088388346, %v6994_v13  ;;  %5096 = vrot.lane.b32.xlu0 %v18739_v16, %s11826_s6  ;;  %v14302_v10 = vmul.f32 %v14285_v24, %v18740_v15  ;;  %v7955_v40 = vmul.f32 0.088388346, %v6995_v28 }
 0x3a5   : > { %v7011_v17 = vrot.slane %v7004_v19, %v12926_v60  ;;  %v7003_v42 = vrot.slane %v6996_v23, %v12926_v60  ;;  %v6753_v5 = vadd.f32 %v6625_v0, %v13818_v4  ;;  %v14311_v59 = vld [vmem:[%s12281_s11 + $0x28] sm:$0xff]  ;;  %8016 = vst [vmem:[%s12283_s5 + $0x20] sm:$0xff] %v7952_v62  ;;  %v6752_v13 = vadd.f32 %v6624_v50, %v13806_v27 }
 0x3a6   : > { %8017 = vst [vmem:[%s12283_s5 + $0x28] sm:$0xff] %v7953_v29  ;;  %8018 = vst [vmem:[%s12283_s5 + $0x30] sm:$0xff] %v7954_v35  ;;  %v6627_v15 = vmul.f32 %v13832_v6, %v4987_v12  ;;  %v6626_v28 = vmul.f32 %v13824_v25, %v4985_v46  ;;  %v14320_v19 = vrot.slane %v3310_v41, %v12902_v7  ;;  %5102 = vrot.lane.b32.xlu1 %v13868_v26, %s11826_s6  ;;  %v18746_v6 = vld [vmem:[#allocation170_spill] sm:$0xff] }
 0x3a7   : > { %8019 = vst [vmem:[%s12283_s5 + $0x38] sm:$0xff] %v7955_v40  ;;  %v7028_v4 = vcombine.low %v7003_v42, %v7011_v17  ;;  %v7029_v23 = vcombine.high %v7003_v42, %v7011_v17  ;;  %v14326_v0 = vadd.f32 %v12919_v51, %v2021_v44  ;;  %v4668_v35 = vcombine.low %v14123_v57, %v14288_v48  ;;  %v4991_v29 = vpop.permute.xlu1 %4990  ;;  %v4989_v40 = vpop.permute.xlu0 %4988 }
 0x3a8   : > { %18741 = vst [vmem:[#allocation48_spill] sm:$0xff] %v14320_v19  ;;  %v6755_v27 = vadd.f32 %v6627_v15, %v13840_v31  ;;  %v6754_v50 = vadd.f32 %v6626_v28, %v13836_v18  ;;  %5100 = vrot.lane.b32.xlu0 %v13850_v1, %s11826_s6  ;;  %v2504_v46 = vrot.slane %v14308_v20, %v12910_v39  ;;  %v18753_v1 = vld [vmem:[#allocation56_spill] sm:$0xff] }
 0x3a9   : > { %v3320_v41 = vrot.slane %v14311_v59, %v12910_v39  ;;  %v7036_v62 = vrot.slane %v7028_v4, %v12929_v61  ;;  %v7043_v44 = vrot.slane %v7029_v23, %v12929_v61  ;;  %v14341_v17 = vrot.slane %v4668_v35, %v12926_v60 }
 0x3aa   : > { %v4684_v18 = vcombine.low %v14138_v36, %v14326_v0  ;;  %v7020_v31 = vcombine.low %v6753_v5, %v6755_v27  ;;  %v7012_v42 = vcombine.low %v6752_v13, %v6754_v50  ;;  %v6629_v12 = vmul.f32 %v13890_v33, %v4991_v29  ;;  %5106 = vrot.lane.b32.xlu1 %v13884_v2, %s11826_s6  ;;  %v18742_v13 = vld [vmem:[#allocation158_spill] sm:$0xff]  ;;  %v18743_v50 = vld [vmem:[#allocation156_spill] sm:$0xff] }
 0x3ab   : > { %v6628_v15 = vmul.f32 %v13876_v63, %v4989_v40  ;;  %v2512_v4 = vcombine.high %v2504_v46, %v2504_v46  ;;  %v3328_v23 = vcombine.high %v3320_v41, %v3320_v41  ;;  %v14351_v24 = vrot.slane %v2504_v46, %v12910_v39  ;;  %v4995_v29 = vpop.permute.xlu1 %4994  ;;  %v4993_v40 = vpop.permute.xlu0 %4992 }
 0x3ac   : > { %v4692_v28 = vrot.slane %v4684_v18, %v12926_v60  ;;  %v7027_v35 = vrot.slane %v7020_v31, %v12926_v60  ;;  %v7019_v25 = vrot.slane %v7012_v42, %v12926_v60  ;;  %v6757_v5 = vadd.f32 %v6629_v12, %v13880_v3  ;;  %5104 = vrot.lane.b32.xlu0 %v18743_v50, %s11826_s6  ;;  %v18744_v12 = vld [vmem:[#allocation165_spill] sm:$0xff] }
 0x3ad   : > { %v6756_v27 = vadd.f32 %v6628_v15, %v18742_v13  ;;  %v14361_v63 = vrot.slane %v2512_v4, %v12910_v39  ;;  %v14364_v46 = vrot.slane %v3328_v23, %v12910_v39  ;;  %v14367_v31 = vrot.slane %v3320_v41, %v12910_v39  ;;  %v18745_v13 = vld [vmem:[#allocation166_spill] sm:$0xff] }
 0x3ae   : > { %v4700_v18 = vcombine.low %v14341_v17, %v4692_v28  ;;  %v7044_v42 = vcombine.low %v7019_v25, %v7027_v35  ;;  %v7045_v3 = vcombine.high %v7019_v25, %v7027_v35  ;;  %v6631_v15 = vmul.f32 %v18744_v12, %v4995_v29  ;;  %5110 = vrot.lane.b32.xlu1 %v18746_v6, %s11826_s6  ;;  %v18750_v29 = vld [vmem:[#allocation163_spill] sm:$0xff]  ;;  %v18752_v12 = vld [vmem:[#allocation168_spill] sm:$0xff] }
 0x3af   : > { %v6630_v33 = vmul.f32 %v18745_v13, %v4993_v40  ;;  %v14378_v4 = vrot.slane %v14361_v63, %v12902_v7  ;;  %v14382_v41 = vrot.slane %v14364_v46, %v12902_v7  ;;  %v14386_v25 = vrot.slane %v14351_v24, %v12902_v7  ;;  %v4999_v6 = vpop.permute.xlu1 %4998  ;;  %v4997_v50 = vpop.permute.xlu0 %4996 }
 0x3b0   : > { %v14374_v32 = vrot.slane %v4700_v18, %v12929_v61  ;;  %v7052_v23 = vrot.slane %v7044_v42, %v12929_v61  ;;  %v7059_v35 = vrot.slane %v7045_v3, %v12929_v61  ;;  %v6759_v40 = vadd.f32 %v6631_v15, %v18750_v29  ;;  %v18751_v18 = vld [vmem:[#allocation167_spill] sm:$0xff]  ;;  %5108 = vrot.lane.b32.xlu0 %v18752_v12, %s11826_s6  ;;  %v18755_v42 = vld [vmem:[#allocation53_spill] sm:$0xff] }
 0x3b1   : > { %18747 = vst [vmem:[#allocation47_spill] sm:$0xff] %v14378_v4  ;;  %18748 = vst [vmem:[#allocation140_spill] sm:$0xff] %v14382_v41  ;;  %v6758_v13 = vadd.f32 %v6630_v33, %v18751_v18  ;;  %v14400_v26 = vmul.f32 %v14378_v4, %v18753_v1  ;;  %v14404_v3 = vmul.f32 %v14386_v25, %v18755_v42  ;;  %v18759_v1 = vld [vmem:[#allocation173_spill] sm:$0xff]  ;;  %v18760_v42 = vld [vmem:[#allocation171_spill] sm:$0xff] }
 0x3b2   : > { %18749 = vst [vmem:[#allocation139_spill] sm:$0xff] %v14386_v25  ;;  %v14396_v2 = vcombine.high %v14374_v32, %v18519_v14  ;;  %v14408_v33 = vrot.slane %v14367_v31, %v12902_v7  ;;  %v7060_v15 = vcombine.low %v7036_v62, %v7052_v23  ;;  %v7061_v29 = vcombine.high %v7036_v62, %v7052_v23 }
 0x3b3   : > { %18754 = vst [vmem:[#allocation52_spill] sm:$0xff] %v14400_v26  ;;  %18756 = vst [vmem:[#allocation50_spill] sm:$0xff] %v14404_v3  ;;  %v7062_v18 = vcombine.low %v7043_v44, %v7059_v35  ;;  %v7063_v12 = vcombine.high %v7043_v44, %v7059_v35  ;;  %v7072_v16 = vcombine.low %v6757_v5, %v6759_v40  ;;  %5114 = vrot.lane.b32.xlu1 %v18760_v42, %s11826_s6  ;;  %v18761_v26 = vld [vmem:[#allocation169_spill] sm:$0xff]  ;;  %v18762_v35 = vld [vmem:[#allocation179_spill] sm:$0xff] }
 0x3b4   : > { %18757 = vst [vmem:[#allocation158_spill] sm:$0xff] %v14408_v33  ;;  %v7064_v30 = vcombine.low %v6756_v27, %v6758_v13  ;;  %v6633_v51 = vmul.f32 %v18758_v47, %v4999_v6  ;;  %v6632_v4 = vmul.f32 %v18759_v1, %v4997_v50  ;;  %v7956_v25 = vmul.f32 0.088388346, %v7060_v15  ;;  %5112 = vrot.lane.b32.xlu0 %v18761_v26, %s11826_s6  ;;  %v5003_v50 = vpop.permute.xlu1 %5002  ;;  %v5001_v13 = vpop.permute.xlu0 %5000  ;;  %v18763_v15 = vld [vmem:[#allocation177_spill] sm:$0xff] }
 0x3b5   : > { %v7957_v49 = vmul.f32 0.088388346, %v7061_v29  ;;  %v7958_v3 = vmul.f32 0.088388346, %v7062_v18  ;;  %v4701_v62 = vcombine.high %v14341_v17, %v4692_v28  ;;  %v7959_v44 = vmul.f32 0.088388346, %v7063_v12 }
 0x3b6   : > { %v7079_v5 = vrot.slane %v7072_v16, %v12926_v60  ;;  %v7071_v6 = vrot.slane %v7064_v30, %v12926_v60  ;;  %v6761_v27 = vadd.f32 %v6633_v51, %v13992_v43  ;;  %8020 = vst [vmem:[%s12283_s5 + $0x40] sm:$0xff] %v7956_v25  ;;  %v6760_v23 = vadd.f32 %v6632_v4, %v13976_v11  ;;  %v18764_v30 = vld [vmem:[#allocation181_spill] sm:$0xff]  ;;  %v18765_v11 = vld [vmem:[#allocation72_spill] sm:$0xff]  ;;  %v18767_v25 = vld [vmem:[#allocation74_spill] sm:$0xff] }
 0x3b7   : > { %8021 = vst [vmem:[%s12283_s5 + $0x48] sm:$0xff] %v7957_v49  ;;  %8022 = vst [vmem:[%s12283_s5 + $0x50] sm:$0xff] %v7958_v3  ;;  %v6635_v40 = vmul.f32 %v18762_v35, %v5003_v50  ;;  %v6634_v29 = vmul.f32 %v18763_v15, %v5001_v13  ;;  %v14427_v17 = vrot.slane %v4701_v62, %v12929_v61  ;;  %5118 = vrot.lane.b32.xlu1 %v18764_v30, %s11826_s6  ;;  %v18766_v12 = vld [vmem:[#allocation180_spill] sm:$0xff]  ;;  %v2037_v47 = vld [vmem:[#allocation2 + $0x398] sm:$0xff] }
 0x3b8   : > { %8023 = vst [vmem:[%s12283_s5 + $0x58] sm:$0xff] %v7959_v44  ;;  %v7096_v16 = vcombine.low %v7071_v6, %v7079_v5  ;;  %v7097_v28 = vcombine.high %v7071_v6, %v7079_v5  ;;  %v2544_v51 = vcombine.high %v14361_v63, %v14361_v63  ;;  %v3360_v49 = vcombine.high %v14364_v46, %v14364_v46  ;;  %v5007_v44 = vpop.permute.xlu1 %5006  ;;  %v5005_v46 = vpop.permute.xlu0 %5004 }
 0x3b9   : > { %v6763_v43 = vadd.f32 %v6635_v40, %v18765_v11  ;;  %v6762_v4 = vadd.f32 %v6634_v29, %v18766_v12  ;;  %5116 = vrot.lane.b32.xlu0 %v18767_v25, %s11826_s6  ;;  %v14442_v3 = vcombine.high %v14427_v17, %v18519_v14  ;;  %v2542_v18 = vcombine.high %v14351_v24, %v14351_v24  ;;  %v18770_v40 = vld [vmem:[#allocation182_spill] sm:$0xff]  ;;  %v18771_v11 = vld [vmem:[#allocation184_spill] sm:$0xff] }
 0x3ba   : > { %v7104_v62 = vrot.slane %v7096_v16, %v12929_v61  ;;  %v7111_v63 = vrot.slane %v7097_v28, %v12929_v61  ;;  %v14449_v5 = vrot.slane %v2544_v51, %v12902_v7  ;;  %v14452_v6 = vrot.slane %v3360_v49, %v12902_v7  ;;  %v18772_v24 = vld [vmem:[#allocation58_spill] sm:$0xff] }
 0x3bb   : > { %v7088_v50 = vcombine.low %v6761_v27, %v6763_v43  ;;  %v7080_v13 = vcombine.low %v6760_v23, %v6762_v4  ;;  %v6637_v29 = vmul.f32 %v18770_v40, %v5007_v44  ;;  %v6636_v12 = vmul.f32 %v18771_v11, %v5005_v46  ;;  %5122 = vrot.lane.b32.xlu1 %v14080_v58, %s11826_s6  ;;  %v18774_v4 = vld [vmem:[#allocation183_spill] sm:$0xff]  ;;  %v2026_v46 = vld [vmem:[#allocation2 + $0x340] sm:$0xff] }
 0x3bc   : > { %18768 = vst [vmem:[#allocation163_spill] sm:$0xff] %v14449_v5  ;;  %18769 = vst [vmem:[#allocation167_spill] sm:$0xff] %v14452_v6  ;;  %v14460_v16 = vmul.f32 %v14449_v5, %v18772_v24  ;;  %v3358_v28 = vcombine.high %v14367_v31, %v14367_v31  ;;  %v14465_v51 = vrot.slane %v2542_v18, %v12902_v7  ;;  %v5011_v24 = vpop.permute.xlu1 %5010  ;;  %v5009_v31 = vpop.permute.xlu0 %5008  ;;  %v18775_v5 = vld [vmem:[#allocation54_spill] sm:$0xff] }
 0x3bd   : > { %v4669_v27 = vcombine.high %v14123_v57, %v14288_v48  ;;  %v7095_v23 = vrot.slane %v7088_v50, %v12926_v60  ;;  %v7087_v49 = vrot.slane %v7080_v13, %v12926_v60  ;;  %v6765_v43 = vadd.f32 %v6637_v29, %v14076_v34  ;;  %5120 = vrot.lane.b32.xlu0 %v14051_v55, %s11826_s6 }
 0x3be   : > { %18773 = vst [vmem:[#allocation56_spill] sm:$0xff] %v14465_v51  ;;  %v6764_v44 = vadd.f32 %v6636_v12, %v18774_v4  ;;  %v14477_v18 = vmul.f32 %v14465_v51, %v18775_v5  ;;  %v14480_v57 = vrot.slane %v3358_v28, %v12902_v7  ;;  %v4685_v34 = vcombine.high %v14138_v36, %v14326_v0  ;;  %v18777_v51 = vld [vmem:[#allocation112_spill] sm:$0xff] }
 0x3bf   : > { %v14483_v48 = vrot.slane %v4669_v27, %v12926_v60  ;;  %v7112_v50 = vcombine.low %v7087_v49, %v7095_v23  ;;  %v7113_v13 = vcombine.high %v7087_v49, %v7095_v23  ;;  %v6639_v29 = vmul.f32 %v14099_v22, %v5011_v24  ;;  %5126 = vrot.lane.b32.xlu1 %v14168_v8, %s11826_s6  ;;  %v18778_v22 = vld [vmem:[#allocation45_spill] sm:$0xff] }
 0x3c0   : > { %18776 = vst [vmem:[#allocation53_spill] sm:$0xff] %v14480_v57  ;;  %v6638_v12 = vmul.f32 %v14108_v21, %v5009_v31  ;;  %v14492_v5 = vrot.slane %v4685_v34, %v12926_v60  ;;  %v2497_v28 = vcombine.high %v14308_v20, %v14308_v20  ;;  %v3313_v27 = vcombine.high %v14311_v59, %v14311_v59  ;;  %v5015_v24 = vpop.permute.xlu1 %5014  ;;  %v5013_v31 = vpop.permute.xlu0 %5012  ;;  %v18790_v34 = vld [vmem:[#allocation55_spill] sm:$0xff] }
 0x3c1   : > { %v14499_v36 = vadd.f32 %v12913_v45, %v2026_v46  ;;  %v7120_v0 = vrot.slane %v7112_v50, %v12929_v61  ;;  %v7127_v23 = vrot.slane %v7113_v13, %v12929_v61  ;;  %v6767_v49 = vadd.f32 %v6639_v29, %v14096_v9  ;;  %5124 = vrot.lane.b32.xlu0 %v14152_v56, %s11826_s6 }
 0x3c2   : > { %v6766_v4 = vadd.f32 %v6638_v12, %v14112_v54  ;;  %v4716_v20 = vcombine.low %v14483_v48, %v14492_v5  ;;  %v2511_v59 = vrot.slane %v2497_v28, %v12910_v39  ;;  %v3327_v46 = vrot.slane %v3313_v27, %v12910_v39 }
 0x3c3   : > { %v7128_v50 = vcombine.low %v7104_v62, %v7120_v0  ;;  %v7129_v13 = vcombine.high %v7104_v62, %v7120_v0  ;;  %v7130_v9 = vcombine.low %v7111_v63, %v7127_v23  ;;  %v7131_v29 = vcombine.high %v7111_v63, %v7127_v23  ;;  %5130 = vrot.lane.b32.xlu1 %v14254_v53, %s11826_s6  ;;  %v18780_v0 = vld [vmem:[#allocation111_spill] sm:$0xff] }
 0x3c4   : > { %v7140_v54 = vcombine.low %v6765_v43, %v6767_v49  ;;  %v7132_v12 = vcombine.low %v6764_v44, %v6766_v4  ;;  %v6641_v21 = vmul.f32 %v18777_v51, %v5015_v24  ;;  %v6640_v11 = vmul.f32 %v18778_v22, %v5013_v31  ;;  %v5019_v49 = vpop.permute.xlu1 %5018  ;;  %v5017_v4 = vpop.permute.xlu0 %5016  ;;  %v18781_v24 = vld [vmem:[#allocation43_spill] sm:$0xff] }
 0x3c5   : > { %v7960_v28 = vmul.f32 0.088388346, %v7128_v50  ;;  %v7961_v27 = vmul.f32 0.088388346, %v7129_v13  ;;  %v7962_v40 = vmul.f32 0.088388346, %v7130_v9  ;;  %5128 = vrot.lane.b32.xlu0 %v14234_v52, %s11826_s6  ;;  %v14520_v62 = vrot.slane %v4716_v20, %v12929_v61 }
 0x3c6   : > { %v7963_v63 = vmul.f32 0.088388346, %v7131_v29  ;;  %v7147_v43 = vrot.slane %v7140_v54, %v12926_v60  ;;  %v7139_v44 = vrot.slane %v7132_v12, %v12926_v60  ;;  %v6769_v23 = vadd.f32 %v6641_v21, %v18780_v0  ;;  %v18810_v51 = vld [vmem:[#allocation67_spill] sm:$0xff] }
 0x3c7   : > { %18779 = vst [vmem:[#allocation171_spill] sm:$0xff] %v14520_v62  ;;  %8024 = vst [vmem:[%s12283_s5 + $0x60] sm:$0xff] %v7960_v28  ;;  %v6768_v31 = vadd.f32 %v6640_v11, %v18781_v24  ;;  %v6643_v50 = vmul.f32 %v14267_v37, %v5019_v49  ;;  %v6642_v13 = vmul.f32 %v14320_v19, %v5017_v4  ;;  %5134 = vrot.lane.b32.xlu1 %v14396_v2, %s11826_s6 }
 0x3c8   : > { %8025 = vst [vmem:[%s12283_s5 + $0x68] sm:$0xff] %v7961_v27  ;;  %8026 = vst [vmem:[%s12283_s5 + $0x70] sm:$0xff] %v7962_v40  ;;  %v14533_v20 = vcombine.high %v14520_v62, %v18519_v14  ;;  %v7164_v9 = vcombine.low %v7139_v44, %v7147_v43  ;;  %v7165_v29 = vcombine.high %v7139_v44, %v7147_v43  ;;  %v5023_v43 = vpop.permute.xlu1 %5022  ;;  %v5021_v44 = vpop.permute.xlu0 %5020 }
 0x3c9   : > { %8027 = vst [vmem:[%s12283_s5 + $0x78] sm:$0xff] %v7963_v63  ;;  %v2513_v21 = vcombine.high %v2511_v59, %v2511_v59  ;;  %v3329_v54 = vcombine.high %v3327_v46, %v3327_v46  ;;  %v6771_v40 = vadd.f32 %v6643_v50, %v14282_v38  ;;  %v6770_v11 = vadd.f32 %v6642_v13, %v14302_v10 }
 0x3ca   : > { %18782 = vst [vmem:[#allocation169_spill] sm:$0xff] %v14533_v20  ;;  %5132 = vrot.lane.b32.xlu0 %v14374_v32, %s11826_s6  ;;  %v2527_v12 = vrot.slane %v2511_v59, %v12910_v39  ;;  %v14544_v28 = vrot.slane %v3327_v46, %v12910_v39  ;;  %v7172_v27 = vrot.slane %v7164_v9, %v12929_v61  ;;  %v18787_v9 = vld [vmem:[#allocation52_spill] sm:$0xff] }
 0x3cb   : > { %v7179_v63 = vrot.slane %v7165_v29, %v12929_v61  ;;  %v2541_v0 = vrot.slane %v2513_v21, %v12910_v39  ;;  %v3357_v38 = vrot.slane %v3329_v54, %v12910_v39  ;;  %v7156_v49 = vcombine.low %v6769_v23, %v6771_v40  ;;  %5138 = vrot.lane.b32.xlu1 %v14442_v3, %s11826_s6  ;;  %v18788_v21 = vld [vmem:[#allocation50_spill] sm:$0xff] }
 0x3cc   : > { %v7148_v10 = vcombine.low %v6768_v31, %v6770_v11  ;;  %v6645_v4 = vmul.f32 %v14382_v41, %v5023_v43  ;;  %v6644_v24 = vmul.f32 %v14408_v33, %v5021_v44  ;;  %v14561_v50 = vrot.slane %v2527_v12, %v12902_v7  ;;  %v5027_v40 = vpop.permute.xlu1 %5026  ;;  %v5025_v11 = vpop.permute.xlu0 %5024  ;;  %v18789_v43 = vld [vmem:[#allocation59_spill] sm:$0xff] }
 0x3cd   : > { %v14555_v59 = vrot.slane %v2541_v0, %v12902_v7  ;;  %v14558_v46 = vrot.slane %v3357_v38, %v12902_v7  ;;  %v14565_v23 = vrot.slane %v14544_v28, %v12902_v7  ;;  %v7163_v31 = vrot.slane %v7156_v49, %v12926_v60 }
 0x3ce   : > { %18785 = vst [vmem:[#allocation180_spill] sm:$0xff] %v14561_v50  ;;  %v7155_v13 = vrot.slane %v7148_v10, %v12926_v60  ;;  %v6773_v29 = vadd.f32 %v6645_v4, %v18787_v9  ;;  %v6772_v54 = vadd.f32 %v6644_v24, %v18788_v21  ;;  %5136 = vrot.lane.b32.xlu0 %v14427_v17, %s11826_s6 }
 0x3cf   : > { %18783 = vst [vmem:[#allocation181_spill] sm:$0xff] %v14555_v59  ;;  %18784 = vst [vmem:[#allocation72_spill] sm:$0xff] %v14558_v46  ;;  %v5881_v44 = vmul.f32 %v14555_v59, %v18789_v43  ;;  %v5880_v33 = vmul.f32 %v14561_v50, %v18790_v34  ;;  %v18791_v49 = vcombine.high %v14483_v48, %v14492_v5  ;;  %5142 = vrot.lane.b32.xlu1 %v14533_v20, %s11826_s6 }
 0x3d0   : > { %18786 = vst [vmem:[#allocation74_spill] sm:$0xff] %v14565_v23  ;;  %v2545_v4 = vcombine.high %v2541_v0, %v2541_v0  ;;  %v7180_v9 = vcombine.low %v7155_v13, %v7163_v31  ;;  %v7181_v24 = vcombine.high %v7155_v13, %v7163_v31  ;;  %v6647_v21 = vmul.f32 %v14452_v6, %v5027_v40  ;;  %v5031_v40 = vpop.permute.xlu1 %5030 }
 0x3d1   : > { %v14581_v10 = vrot.slane %v18791_v49, %v12929_v61  ;;  %v6646_v41 = vmul.f32 %v14480_v57, %v5025_v11  ;;  %v3361_v34 = vcombine.high %v3357_v38, %v3357_v38  ;;  %v2543_v48 = vcombine.high %v2527_v12, %v2527_v12  ;;  %v5029_v11 = vpop.permute.xlu0 %5028  ;;  %v18795_v49 = vld [vmem:[#allocation60_spill] sm:$0xff] }
 0x3d2   : > { %v14592_v50 = vrot.slane %v2545_v4, %v12902_v7  ;;  %v7188_v5 = vrot.slane %v7180_v9, %v12929_v61  ;;  %v7195_v0 = vrot.slane %v7181_v24, %v12929_v61  ;;  %v6775_v31 = vadd.f32 %v6647_v21, %v14460_v16  ;;  %5140 = vrot.lane.b32.xlu0 %v14520_v62, %s11826_s6 }
 0x3d3   : > { %18792 = vst [vmem:[#allocation58_spill] sm:$0xff] %v14581_v10  ;;  %v14589_v43 = vcombine.high %v14581_v10, %v18519_v14  ;;  %v6774_v13 = vadd.f32 %v6646_v41, %v14477_v18  ;;  %v14603_v4 = vrot.slane %v3361_v34, %v12902_v7  ;;  %v3359_v12 = vcombine.high %v14544_v28, %v14544_v28  ;;  %v2027_v34 = vld [vmem:[#allocation2 + $0x348] sm:$0xff]  ;;  %v2028_v28 = vld [vmem:[#allocation2 + $0x350] sm:$0xff] }
 0x3d4   : > { %18794 = vst [vmem:[#allocation54_spill] sm:$0xff] %v14592_v50  ;;  %v5883_v38 = vmul.f32 %v14592_v50, %v18795_v49  ;;  %v14608_v9 = vrot.slane %v2543_v48, %v12902_v7  ;;  %v7196_v16 = vcombine.low %v7172_v27, %v7188_v5  ;;  %v7197_v24 = vcombine.high %v7172_v27, %v7188_v5  ;;  %v2029_v48 = vld [vmem:[#allocation2 + $0x358] sm:$0xff] }
 0x3d5   : > { %18793 = vst [vmem:[#allocation183_spill] sm:$0xff] %v14589_v43  ;;  %18796 = vst [vmem:[#allocation111_spill] sm:$0xff] %v14603_v4  ;;  %v7198_v41 = vcombine.low %v7179_v63, %v7195_v0  ;;  %v7199_v18 = vcombine.high %v7179_v63, %v7195_v0  ;;  %v7208_v21 = vcombine.low %v6773_v29, %v6775_v31  ;;  %5146 = vrot.lane.b32.xlu1 %v14589_v43, %s11826_s6  ;;  %v18798_v29 = vld [vmem:[#allocation57_spill] sm:$0xff]  ;;  %v5033_v49 = vpop.permute.xlu0 %5032 }
 0x3d6   : > { %18797 = vst [vmem:[#allocation43_spill] sm:$0xff] %v14608_v9  ;;  %v7200_v59 = vcombine.low %v6772_v54, %v6774_v13  ;;  %v6649_v57 = vmul.f32 %v14558_v46, %v5031_v40  ;;  %v6648_v6 = vmul.f32 %v14565_v23, %v5029_v11  ;;  %v7964_v27 = vmul.f32 0.088388346, %v7196_v16  ;;  %5144 = vrot.lane.b32.xlu0 %v14581_v10, %s11826_s6  ;;  %v5035_v11 = vpop.permute.xlu1 %5034  ;;  %v14621_v50 = vld [vmem:[%s12273_s2 + $0x30] sm:$0xff]  ;;  %v18802_v23 = vld [vmem:[#allocation42_spill] sm:$0xff] }
 0x3d7   : > { %v7965_v5 = vmul.f32 0.088388346, %v7197_v24  ;;  %v7966_v63 = vmul.f32 0.088388346, %v7198_v41  ;;  %v5882_v54 = vmul.f32 %v14608_v9, %v18798_v29  ;;  %v7967_v0 = vmul.f32 0.088388346, %v7199_v18 }
 0x3d8   : > { %v7215_v31 = vrot.slane %v7208_v21, %v12926_v60  ;;  %v7207_v13 = vrot.slane %v7200_v59, %v12926_v60  ;;  %v6777_v40 = vadd.f32 %v6649_v57, %v5881_v44  ;;  %v14624_v16 = vld [vmem:[%s12281_s11 + $0x30] sm:$0xff]  ;;  %8028 = vst [vmem:[%s12283_s5 + $0x80] sm:$0xff] %v7964_v27  ;;  %v6776_v24 = vadd.f32 %v6648_v6, %v5880_v33  ;;  %v18800_v18 = vld [vmem:[#allocation40_spill] sm:$0xff] }
 0x3d9   : > { %8029 = vst [vmem:[%s12283_s5 + $0x88] sm:$0xff] %v7965_v5  ;;  %8030 = vst [vmem:[%s12283_s5 + $0x90] sm:$0xff] %v7966_v63  ;;  %v6651_v41 = vmul.f32 %v14603_v4, %v5035_v11  ;;  %v14631_v29 = vrot.slane %v3359_v12, %v12902_v7  ;;  %v14634_v21 = vadd.f32 %v18800_v18, %v2027_v34  ;;  %v18801_v44 = vld [vmem:[#allocation41_spill] sm:$0xff]  ;;  %v5037_v63 = vpop.permute.xlu0 %5036 }
 0x3da   : > { %8031 = vst [vmem:[%s12283_s5 + $0x98] sm:$0xff] %v7967_v0  ;;  %v7232_v57 = vcombine.low %v7207_v13, %v7215_v31  ;;  %v7233_v59 = vcombine.high %v7207_v13, %v7215_v31  ;;  %v14638_v9 = vadd.f32 %v18801_v44, %v2028_v28  ;;  %v14641_v46 = vadd.f32 %v18802_v23, %v2029_v48  ;;  %v5039_v48 = vpop.permute.xlu1 %5038 }
 0x3db   : > { %18799 = vst [vmem:[#allocation52_spill] sm:$0xff] %v14631_v29  ;;  %v6779_v27 = vadd.f32 %v6651_v41, %v5883_v38  ;;  %v6650_v33 = vmul.f32 %v14631_v29, %v5033_v49  ;;  %v2553_v6 = vrot.slane %v14621_v50, %v12910_v39  ;;  %v3369_v12 = vrot.slane %v14624_v16, %v12910_v39 }
 0x3dc   : > { %v14649_v34 = vrot.slane %v7232_v57, %v12929_v61  ;;  %v14652_v5 = vrot.slane %v7233_v59, %v12929_v61  ;;  %v4736_v28 = vcombine.low %v14499_v36, %v14638_v9  ;;  %v4752_v38 = vcombine.low %v14634_v21, %v14641_v46 }
 0x3dd   : > { %v7224_v0 = vcombine.low %v6777_v40, %v6779_v27  ;;  %v6778_v31 = vadd.f32 %v6650_v33, %v5882_v54  ;;  %v2561_v13 = vcombine.high %v2553_v6, %v2553_v6  ;;  %v3377_v11 = vcombine.high %v3369_v12, %v3369_v12 }
 0x3de   : > { %v4744_v49 = vrot.slane %v4736_v28, %v12926_v60  ;;  %v4760_v41 = vrot.slane %v4752_v38, %v12926_v60  ;;  %v2569_v57 = vrot.slane %v2553_v6, %v12910_v39  ;;  %v3385_v59 = vrot.slane %v3369_v12, %v12910_v39  ;;  %v5043_v33 = vpop.permute.xlu1 %5042  ;;  %v5041_v28 = vpop.permute.xlu0 %5040 }
 0x3df   : > { %v7231_v29 = vrot.slane %v7224_v0, %v12926_v60  ;;  %v7216_v4 = vcombine.low %v6776_v24, %v6778_v31  ;;  %v2583_v19 = vrot.slane %v2561_v13, %v12910_v39  ;;  %v3399_v37 = vrot.slane %v3377_v11, %v12910_v39  ;;  %v18808_v31 = vld [vmem:[#allocation61_spill] sm:$0xff] }
 0x3e0   : > { %v4768_v22 = vcombine.low %v4744_v49, %v4760_v41  ;;  %v14666_v54 = vrot.slane %v2569_v57, %v12902_v7  ;;  %v14669_v40 = vrot.slane %v3385_v59, %v12902_v7  ;;  %v4769_v27 = vcombine.high %v4744_v49, %v4760_v41 }
 0x3e1   : > { %v7223_v6 = vrot.slane %v7216_v4, %v12926_v60  ;;  %v14673_v12 = vrot.slane %v2583_v19, %v12902_v7  ;;  %v14676_v24 = vrot.slane %v3399_v37, %v12902_v7  ;;  %v2593_v38 = vcombine.high %v2583_v19, %v2583_v19 }
 0x3e2   : > { %18803 = vst [vmem:[#allocation50_spill] sm:$0xff] %v14666_v54  ;;  %18804 = vst [vmem:[#allocation59_spill] sm:$0xff] %v14669_v40  ;;  %v14679_v0 = vrot.slane %v4768_v22, %v12929_v61  ;;  %v5884_v13 = vmul.f32 %v14666_v54, %v18808_v31  ;;  %v6652_v11 = vmul.f32 %v14669_v40, %v5037_v63 }
 0x3e3   : > { %18805 = vst [vmem:[#allocation55_spill] sm:$0xff] %v14673_v12  ;;  %18806 = vst [vmem:[#allocation60_spill] sm:$0xff] %v14676_v24  ;;  %v14685_v49 = vrot.slane %v4769_v27, %v12929_v61  ;;  %v7248_v41 = vcombine.low %v7223_v6, %v7231_v29  ;;  %v7249_v4 = vcombine.high %v7223_v6, %v7231_v29  ;;  %v14702_v29 = vpop.permute.xlu1 %5046  ;;  %v14704_v6 = vpop.permute.xlu0 %5044 }
 0x3e4   : > { %18807 = vst [vmem:[#allocation57_spill] sm:$0xff] %v14679_v0  ;;  %v5885_v15 = vmul.f32 %v14673_v12, %v18810_v51  ;;  %v6653_v35 = vmul.f32 %v14676_v24, %v5039_v48  ;;  %v14692_v19 = vcombine.high %v14679_v0, %v18519_v14  ;;  %5148 = vrot.lane.b32.xlu0 %v14679_v0, %s11826_s6 }
 0x3e5   : > { %18809 = vst [vmem:[#allocation40_spill] sm:$0xff] %v14685_v49  ;;  %v14696_v22 = vadd.f32 %v6652_v11, %v5884_v13  ;;  %v14700_v63 = vcombine.high %v14685_v49, %v18519_v14  ;;  %v3409_v27 = vcombine.high %v3399_v37, %v3399_v37  ;;  %v7256_v51 = vrot.slane %v7248_v41, %v12929_v61 }
 0x3e6   : > { %18811 = vst [vmem:[#allocation41_spill] sm:$0xff] %v14692_v19  ;;  %v7263_v48 = vrot.slane %v7249_v4, %v12929_v61  ;;  %v6781_v31 = vadd.f32 %v6653_v35, %v5885_v15  ;;  %v14709_v40 = vrot.slane %v2593_v38, %v12902_v7  ;;  %5150 = vrot.lane.b32.xlu1 %v14692_v19, %s11826_s6  ;;  %v18815_v38 = vld [vmem:[#allocation68_spill] sm:$0xff] }
 0x3e7   : > { %18812 = vst [vmem:[#allocation42_spill] sm:$0xff] %v14700_v63  ;;  %v14714_v13 = vrot.slane %v3409_v27, %v12902_v7  ;;  %v2591_v11 = vcombine.high %v2569_v57, %v2569_v57  ;;  %v3407_v37 = vcombine.high %v3385_v59, %v3385_v59  ;;  %v4737_v54 = vcombine.high %v14499_v36, %v14638_v9  ;;  %v14733_v9 = vpop.permute.xlu1 %5050  ;;  %v2035_v27 = vld [vmem:[#allocation2 + $0x388] sm:$0xff] }
 0x3e8   : > { %18813 = vst [vmem:[#allocation61_spill] sm:$0xff] %v14709_v40  ;;  %v7264_v24 = vcombine.low %v14649_v34, %v7256_v51  ;;  %v7265_v41 = vcombine.high %v14649_v34, %v7256_v51  ;;  %v7266_v35 = vcombine.low %v14652_v5, %v7263_v48  ;;  %v7267_v15 = vcombine.high %v14652_v5, %v7263_v48  ;;  %v14735_v34 = vpop.permute.xlu0 %5048  ;;  %v2034_v5 = vld [vmem:[#allocation2 + $0x380] sm:$0xff]  ;;  %v2036_v51 = vld [vmem:[#allocation2 + $0x390] sm:$0xff] }
 0x3e9   : > { %18814 = vst [vmem:[#allocation67_spill] sm:$0xff] %v14714_v13  ;;  %5152 = vrot.lane.b32.xlu0 %v14685_v49, %s11826_s6  ;;  %v5887_v4 = vmul.f32 %v14709_v40, %v18815_v38  ;;  %v6655_v57 = vmul.f32 %v14714_v13, %v5043_v33  ;;  %v14728_v59 = vrot.slane %v2591_v11, %v12902_v7  ;;  %v18818_v13 = vld [vmem:[#allocation62_spill] sm:$0xff] }
 0x3ea   : > { %v14731_v36 = vrot.slane %v3407_v37, %v12902_v7  ;;  %v7968_v48 = vmul.f32 0.088388346, %v7264_v24  ;;  %v7969_v38 = vmul.f32 0.088388346, %v7265_v41  ;;  %v7970_v33 = vmul.f32 0.088388346, %v7266_v35  ;;  %5154 = vrot.lane.b32.xlu1 %v14700_v63, %s11826_s6 }
 0x3eb   : > { %18816 = vst [vmem:[#allocation68_spill] sm:$0xff] %v14728_v59  ;;  %v4751_v11 = vrot.slane %v4737_v54, %v12926_v60  ;;  %v7971_v12 = vmul.f32 0.088388346, %v7267_v15  ;;  %v6783_v37 = vadd.f32 %v6655_v57, %v5887_v4  ;;  %v5886_v40 = vmul.f32 %v14728_v59, %v18818_v13  ;;  %v14756_v15 = vld [vmem:[%s12273_s2 + $0x38] sm:$0xff] }
 0x3ec   : > { %18817 = vst [vmem:[#allocation186_spill] sm:$0xff] %v14731_v36  ;;  %v6654_v1 = vmul.f32 %v14731_v36, %v5041_v28  ;;  %8032 = vst [vmem:[%s12283_s5 + $0xa0] sm:$0xff] %v7968_v48  ;;  %v4753_v24 = vcombine.high %v14634_v21, %v14641_v46  ;;  %v2546_v54 = vcombine.high %v14621_v50, %v14621_v50  ;;  %v14765_v46 = vpop.permute.xlu1 %5054  ;;  %v14767_v50 = vpop.permute.xlu0 %5052 }
 0x3ed   : > { %8033 = vst [vmem:[%s12283_s5 + $0xa8] sm:$0xff] %v7969_v38  ;;  %8034 = vst [vmem:[%s12283_s5 + $0xb0] sm:$0xff] %v7970_v33  ;;  %v3362_v41 = vcombine.high %v14624_v16, %v14624_v16  ;;  %v14753_v35 = vadd.f32 %v12913_v45, %v2034_v5  ;;  %v7276_v28 = vcombine.low %v6781_v31, %v6783_v37 }
 0x3ee   : > { %8035 = vst [vmem:[%s12283_s5 + $0xb8] sm:$0xff] %v7971_v12  ;;  %v6782_v13 = vadd.f32 %v6654_v1, %v5886_v40  ;;  %v14760_v4 = vadd.f32 %v18800_v18, %v2035_v27  ;;  %v14763_v57 = vadd.f32 %v18801_v44, %v2036_v51  ;;  %v4767_v16 = vrot.slane %v4753_v24, %v12926_v60 }
 0x3ef   : > { %v2560_v21 = vrot.slane %v2546_v54, %v12910_v39  ;;  %v3376_v5 = vrot.slane %v3362_v41, %v12910_v39  ;;  %v14773_v12 = vadd.f32 %v18802_v23, %v2037_v47  ;;  %v7283_v1 = vrot.slane %v7276_v28, %v12926_v60 }
 0x3f0   : > { %v7268_v40 = vcombine.low %v14696_v22, %v6782_v13  ;;  %v4804_v31 = vcombine.low %v14753_v35, %v14763_v57  ;;  %v2602_v27 = vrot.slane %v14756_v15, %v12910_v39  ;;  %v4784_v51 = vcombine.low %v4751_v11, %v4767_v16  ;;  %v14787_v22 = vpop.permute.xlu1 %5058  ;;  %v14789_v41 = vpop.permute.xlu0 %5056 }
 0x3f1   : > { %v2562_v48 = vcombine.high %v2560_v21, %v2560_v21  ;;  %v3378_v38 = vcombine.high %v3376_v5, %v3376_v5  ;;  %v2576_v33 = vrot.slane %v2560_v21, %v12910_v39  ;;  %v3392_v47 = vrot.slane %v3376_v5, %v12910_v39 }
 0x3f2   : > { %v7275_v37 = vrot.slane %v7268_v40, %v12926_v60  ;;  %v4785_v24 = vcombine.high %v4751_v11, %v4767_v16  ;;  %v14785_v54 = vrot.slane %v4804_v31, %v12926_v60  ;;  %v14792_v28 = vrot.slane %v4784_v51, %v12929_v61 }
 0x3f3   : > { %v2590_v13 = vrot.slane %v2562_v48, %v12910_v39  ;;  %v3406_v36 = vrot.slane %v3378_v38, %v12910_v39  ;;  %v14797_v21 = vrot.slane %v2576_v33, %v12902_v7  ;;  %v14800_v11 = vrot.slane %v3392_v47, %v12902_v7 }
 0x3f4   : > { %18819 = vst [vmem:[#allocation62_spill] sm:$0xff] %v14792_v28  ;;  %v7300_v40 = vcombine.low %v7275_v37, %v7283_v1  ;;  %v7301_v5 = vcombine.high %v7275_v37, %v7283_v1  ;;  %v14803_v16 = vrot.slane %v4785_v24, %v12929_v61  ;;  %v14807_v31 = vcombine.high %v14792_v28, %v18519_v14  ;;  %v18826_v1 = vld [vmem:[#allocation63_spill] sm:$0xff]  ;;  %v14831_v49 = vpop.permute.xlu1 %5062  ;;  %v14833_v63 = vpop.permute.xlu0 %5060 }
 0x3f5   : > { %18820 = vst [vmem:[#allocation187_spill] sm:$0xff] %v14797_v21  ;;  %18821 = vst [vmem:[#allocation188_spill] sm:$0xff] %v14800_v11  ;;  %5156 = vrot.lane.b32.xlu0 %v14792_v28, %s11826_s6  ;;  %v14812_v51 = vrot.slane %v2590_v13, %v12902_v7  ;;  %v14815_v48 = vrot.slane %v3406_v36, %v12902_v7  ;;  %v5888_v38 = vmul.f32 %v14797_v21, %v18826_v1  ;;  %v18828_v1 = vld [vmem:[#allocation69_spill] sm:$0xff] }
 0x3f6   : > { %18822 = vst [vmem:[#allocation189_spill] sm:$0xff] %v14803_v16  ;;  %18823 = vst [vmem:[#allocation190_spill] sm:$0xff] %v14807_v31  ;;  %v14820_v37 = vrot.slane %v7300_v40, %v12929_v61  ;;  %v14823_v24 = vrot.slane %v7301_v5, %v12929_v61  ;;  %v6656_v59 = vmul.f32 %v14800_v11, %v14704_v6  ;;  %5158 = vrot.lane.b32.xlu1 %v14807_v31, %s11826_s6  ;;  %v14842_v6 = vld [vmem:[%s12281_s11 + $0x38] sm:$0xff] }
 0x3f7   : > { %18824 = vst [vmem:[#allocation191_spill] sm:$0xff] %v14812_v51  ;;  %18825 = vst [vmem:[#allocation192_spill] sm:$0xff] %v14815_v48  ;;  %v14829_v28 = vcombine.high %v14803_v16, %v18519_v14  ;;  %v5889_v40 = vmul.f32 %v14812_v51, %v18828_v1  ;;  %v6657_v5 = vmul.f32 %v14815_v48, %v14702_v29 }
 0x3f8   : > { %v2594_v21 = vcombine.high %v2590_v13, %v2590_v13  ;;  %v3410_v19 = vcombine.high %v3406_v36, %v3406_v36  ;;  %v6784_v11 = vadd.f32 %v6656_v59, %v5888_v38  ;;  %v2592_v0 = vcombine.high %v2576_v33, %v2576_v33  ;;  %v14863_v13 = vpop.permute.xlu0 %5064 }
 0x3f9   : > { %18827 = vst [vmem:[#allocation63_spill] sm:$0xff] %v14829_v28  ;;  %v3408_v10 = vcombine.high %v3392_v47, %v3392_v47  ;;  %v4820_v43 = vcombine.low %v14760_v4, %v14773_v12  ;;  %v6785_v20 = vadd.f32 %v6657_v5, %v5889_v40  ;;  %5160 = vrot.lane.b32.xlu0 %v14803_v16, %s11826_s6  ;;  %v14873_v40 = vpop.permute.xlu1 %5066 }
 0x3fa   : > { %v14849_v31 = vrot.slane %v2594_v21, %v12902_v7  ;;  %v14852_v1 = vrot.slane %v3410_v19, %v12902_v7  ;;  %v2610_v29 = vcombine.high %v2602_v27, %v2602_v27  ;;  %v14855_v36 = vrot.slane %v2592_v0, %v12902_v7  ;;  %5162 = vrot.lane.b32.xlu1 %v14829_v28, %s11826_s6  ;;  %v18833_v21 = vld [vmem:[#allocation70_spill] sm:$0xff] }
 0x3fb   : > { %v14858_v59 = vrot.slane %v3408_v10, %v12902_v7  ;;  %v4828_v33 = vrot.slane %v4820_v43, %v12926_v60  ;;  %v3418_v47 = vrot.slane %v14842_v6, %v12910_v39  ;;  %v2618_v10 = vrot.slane %v2602_v27, %v12910_v39  ;;  %v18834_v43 = vld [vmem:[#allocation64_spill] sm:$0xff] }
 0x3fc   : > { %18829 = vst [vmem:[#allocation69_spill] sm:$0xff] %v14849_v31  ;;  %18830 = vst [vmem:[#allocation193_spill] sm:$0xff] %v14852_v1  ;;  %v5891_v19 = vmul.f32 %v14849_v31, %v18833_v21  ;;  %v6659_v0 = vmul.f32 %v14852_v1, %v14733_v9  ;;  %v2632_v38 = vrot.slane %v2610_v29, %v12910_v39  ;;  %v14899_v62 = vpop.permute.xlu0 %5068 }
 0x3fd   : > { %18831 = vst [vmem:[#allocation194_spill] sm:$0xff] %v14855_v36  ;;  %18832 = vst [vmem:[#allocation195_spill] sm:$0xff] %v14858_v59  ;;  %v5890_v5 = vmul.f32 %v14855_v36, %v18834_v43  ;;  %v6658_v48 = vmul.f32 %v14858_v59, %v14735_v34  ;;  %v4836_v51 = vcombine.low %v14785_v54, %v4828_v33  ;;  %v18837_v36 = vld [vmem:[#allocation75_spill] sm:$0xff] }
 0x3fe   : > { %v3426_v16 = vcombine.high %v3418_v47, %v3418_v47  ;;  %v6787_v28 = vadd.f32 %v6659_v0, %v5891_v19  ;;  %v14881_v21 = vrot.slane %v2632_v38, %v12902_v7  ;;  %v3434_v9 = vrot.slane %v3418_v47, %v12910_v39  ;;  %v18838_v0 = vld [vmem:[#allocation71_spill] sm:$0xff] }
 0x3ff   : > { %v14885_v29 = vrot.slane %v2618_v10, %v12902_v7  ;;  %v6786_v27 = vadd.f32 %v6658_v48, %v5890_v5  ;;  %v14888_v1 = vrot.slane %v4836_v51, %v12929_v61  ;;  %v4837_v34 = vcombine.high %v14785_v54, %v4828_v33  ;;  %v14916_v33 = vpop.permute.xlu1 %5070 }
 0x400   : > { %18835 = vst [vmem:[#allocation70_spill] sm:$0xff] %v14881_v21  ;;  %v3448_v43 = vrot.slane %v3426_v16, %v12910_v39  ;;  %v7292_v59 = vcombine.low %v6785_v20, %v6787_v28  ;;  %v5893_v19 = vmul.f32 %v14881_v21, %v18837_v36  ;;  %v14897_v47 = vrot.slane %v3434_v9, %v12902_v7 }
 0x401   : > { %18836 = vst [vmem:[#allocation64_spill] sm:$0xff] %v14885_v29  ;;  %v5892_v31 = vmul.f32 %v14885_v29, %v18838_v0  ;;  %v7284_v48 = vcombine.low %v6784_v11, %v6786_v27  ;;  %v14903_v51 = vcombine.high %v14888_v1, %v18519_v14  ;;  %5164 = vrot.lane.b32.xlu0 %v14888_v1, %s11826_s6 }
 0x402   : > { %18839 = vst [vmem:[#allocation75_spill] sm:$0xff] %v14897_v47  ;;  %v14908_v20 = vrot.slane %v3448_v43, %v12902_v7  ;;  %v14911_v54 = vrot.slane %v4837_v34, %v12929_v61  ;;  %v7299_v28 = vrot.slane %v7292_v59, %v12926_v60  ;;  %v6660_v16 = vmul.f32 %v14897_v47, %v14767_v50 }
 0x403   : > { %18840 = vst [vmem:[#allocation71_spill] sm:$0xff] %v14903_v51  ;;  %v2642_v36 = vcombine.high %v2632_v38, %v2632_v38  ;;  %v3458_v11 = vcombine.high %v3448_v43, %v3448_v43  ;;  %v7291_v5 = vrot.slane %v7284_v48, %v12926_v60  ;;  %5166 = vrot.lane.b32.xlu1 %v14903_v51, %s11826_s6 }
 0x404   : > { %18841 = vst [vmem:[#allocation196_spill] sm:$0xff] %v14908_v20  ;;  %18842 = vst [vmem:[#allocation197_spill] sm:$0xff] %v14911_v54  ;;  %v6661_v27 = vmul.f32 %v14908_v20, %v14765_v46  ;;  %v14925_v34 = vcombine.high %v14911_v54, %v18519_v14  ;;  %v2640_v59 = vcombine.high %v2618_v10, %v2618_v10  ;;  %v18847_v20 = vld [vmem:[#allocation78_spill] sm:$0xff] }
 0x405   : > { %v6788_v0 = vadd.f32 %v6660_v16, %v5892_v31  ;;  %v14928_v50 = vrot.slane %v2642_v36, %v12902_v7  ;;  %v14931_v38 = vrot.slane %v3458_v11, %v12902_v7  ;;  %v3456_v43 = vcombine.high %v3434_v9, %v3434_v9  ;;  %5168 = vrot.lane.b32.xlu0 %v14911_v54, %s11826_s6  ;;  %v18849_v11 = vld [vmem:[#allocation77_spill] sm:$0xff] }
 0x406   : > { %18843 = vst [vmem:[#allocation198_spill] sm:$0xff] %v14925_v34  ;;  %v7316_v48 = vcombine.low %v7291_v5, %v7299_v28  ;;  %v7317_v47 = vcombine.high %v7291_v5, %v7299_v28  ;;  %v6789_v29 = vadd.f32 %v6661_v27, %v5893_v19  ;;  %v14936_v46 = vrot.slane %v2640_v59, %v12902_v7  ;;  %v14947_v28 = vpop.permute.xlu0 %5072  ;;  %v14962_v59 = vpop.permute.xlu1 %5074 }
 0x407   : > { %18844 = vst [vmem:[#allocation199_spill] sm:$0xff] %v14928_v50  ;;  %18845 = vst [vmem:[#allocation200_spill] sm:$0xff] %v14931_v38  ;;  %v5895_v10 = vmul.f32 %v14928_v50, %v18847_v20  ;;  %v6663_v31 = vmul.f32 %v14931_v38, %v14787_v22  ;;  %v14943_v16 = vrot.slane %v3456_v43, %v12902_v7  ;;  %5170 = vrot.lane.b32.xlu1 %v14925_v34, %s11826_s6 }
 0x408   : > { %18846 = vst [vmem:[#allocation201_spill] sm:$0xff] %v14936_v46  ;;  %v4805_v9 = vcombine.high %v14753_v35, %v14763_v57  ;;  %v7324_v19 = vrot.slane %v7316_v48, %v12929_v61  ;;  %v7331_v36 = vrot.slane %v7317_v47, %v12929_v61  ;;  %v5894_v20 = vmul.f32 %v14936_v46, %v18849_v11  ;;  %v15046_v46 = vld [vmem:[%s12273_s2 + $0x40] sm:$0xff] }
 0x409   : > { %18848 = vst [vmem:[#allocation78_spill] sm:$0xff] %v14943_v16  ;;  %v4821_v22 = vcombine.high %v14760_v4, %v14773_v12  ;;  %v6791_v5 = vadd.f32 %v6663_v31, %v5895_v10  ;;  %v6662_v27 = vmul.f32 %v14943_v16, %v14789_v41  ;;  %v2595_v57 = vcombine.high %v14756_v15, %v14756_v15  ;;  %v2042_v15 = vld [vmem:[#allocation2 + $0x3c0] sm:$0xff]  ;;  %v2043_v31 = vld [vmem:[#allocation2 + $0x3c8] sm:$0xff] }
 0x40a   : > { %v4819_v35 = vrot.slane %v4805_v9, %v12926_v60  ;;  %v7332_v47 = vcombine.low %v14820_v37, %v7324_v19  ;;  %v7333_v43 = vcombine.high %v14820_v37, %v7324_v19  ;;  %v7334_v48 = vcombine.low %v14823_v24, %v7331_v36 }
 0x40b   : > { %v7335_v11 = vcombine.high %v14823_v24, %v7331_v36  ;;  %v7344_v4 = vcombine.low %v6789_v29, %v6791_v5  ;;  %v6790_v12 = vadd.f32 %v6662_v27, %v5894_v20  ;;  %v4835_v41 = vrot.slane %v4821_v22, %v12926_v60  ;;  %v14973_v20 = vpop.permute.xlu0 %5076 }
 0x40c   : > { %v2609_v10 = vrot.slane %v2595_v57, %v12910_v39  ;;  %v7972_v9 = vmul.f32 0.088388346, %v7332_v47  ;;  %v7973_v38 = vmul.f32 0.088388346, %v7333_v43  ;;  %v7974_v50 = vmul.f32 0.088388346, %v7334_v48 }
 0x40d   : > { %v3411_v37 = vcombine.high %v14842_v6, %v14842_v6  ;;  %v7975_v19 = vmul.f32 0.088388346, %v7335_v11  ;;  %v7351_v24 = vrot.slane %v7344_v4, %v12926_v60  ;;  %v7336_v29 = vcombine.low %v6788_v0, %v6790_v12 }
 0x40e   : > { %v4852_v36 = vcombine.low %v4819_v35, %v4835_v41  ;;  %8036 = vst [vmem:[%s12283_s5 + $0xc0] sm:$0xff] %v7972_v9  ;;  %8037 = vst [vmem:[%s12283_s5 + $0xc8] sm:$0xff] %v7973_v38  ;;  %v2611_v22 = vcombine.high %v2609_v10, %v2609_v10  ;;  %v2625_v27 = vrot.slane %v2609_v10, %v12910_v39  ;;  %v14991_v38 = vpop.permute.xlu1 %5078 }
 0x40f   : > { %8038 = vst [vmem:[%s12283_s5 + $0xd0] sm:$0xff] %v7974_v50  ;;  %v3425_v5 = vrot.slane %v3411_v37, %v12910_v39  ;;  %v4853_v57 = vcombine.high %v4819_v35, %v4835_v41  ;;  %8039 = vst [vmem:[%s12283_s5 + $0xd8] sm:$0xff] %v7975_v19  ;;  %v7343_v47 = vrot.slane %v7336_v29, %v12926_v60  ;;  %v2044_v37 = vld [vmem:[#allocation2 + $0x3d0] sm:$0xff] }
 0x410   : > { %v14983_v6 = vrot.slane %v4852_v36, %v12929_v61  ;;  %v14986_v0 = vadd.f32 %v12913_v45, %v2042_v15  ;;  %v14989_v43 = vadd.f32 %v18800_v18, %v2043_v31  ;;  %v2639_v50 = vrot.slane %v2611_v22, %v12910_v39  ;;  %v18855_v15 = vld [vmem:[#allocation85_spill] sm:$0xff] }
 0x411   : > { %v3427_v48 = vcombine.high %v3425_v5, %v3425_v5  ;;  %v3441_v11 = vrot.slane %v3425_v5, %v12910_v39  ;;  %v14996_v35 = vrot.slane %v2625_v27, %v12902_v7  ;;  %v7368_v4 = vcombine.low %v7343_v47, %v7351_v24  ;;  %v2045_v22 = vld [vmem:[#allocation2 + $0x3d8] sm:$0xff]  ;;  %v15028_v5 = vpop.permute.xlu0 %5080 }
 0x412   : > { %18850 = vst [vmem:[#allocation77_spill] sm:$0xff] %v14983_v6  ;;  %v7369_v12 = vcombine.high %v7343_v47, %v7351_v24  ;;  %v15000_v41 = vcombine.high %v14983_v6, %v18519_v14  ;;  %5172 = vrot.lane.b32.xlu0 %v14983_v6, %s11826_s6  ;;  %v15005_v45 = vrot.slane %v4853_v57, %v12929_v61  ;;  %v18858_v57 = vld [vmem:[#allocation90_spill] sm:$0xff] }
 0x413   : > { %18851 = vst [vmem:[#allocation202_spill] sm:$0xff] %v14996_v35  ;;  %v3455_v18 = vrot.slane %v3427_v48, %v12910_v39  ;;  %v15009_v10 = vrot.slane %v2639_v50, %v12902_v7  ;;  %v5896_v31 = vmul.f32 %v14996_v35, %v18855_v15  ;;  %v15014_v9 = vrot.slane %v3441_v11, %v12902_v7 }
 0x414   : > { %18852 = vst [vmem:[#allocation203_spill] sm:$0xff] %v15000_v41  ;;  %18853 = vst [vmem:[#allocation204_spill] sm:$0xff] %v15005_v45  ;;  %v15017_v19 = vrot.slane %v7368_v4, %v12929_v61  ;;  %v15020_v24 = vrot.slane %v7369_v12, %v12929_v61  ;;  %5174 = vrot.lane.b32.xlu1 %v15000_v41, %s11826_s6  ;;  %v15026_v29 = vcombine.high %v15005_v45, %v18519_v14 }
 0x415   : > { %18854 = vst [vmem:[#allocation205_spill] sm:$0xff] %v15009_v10  ;;  %18856 = vst [vmem:[#allocation85_spill] sm:$0xff] %v15014_v9  ;;  %v2643_v36 = vcombine.high %v2639_v50, %v2639_v50  ;;  %v5897_v47 = vmul.f32 %v15009_v10, %v18858_v57  ;;  %v15033_v48 = vrot.slane %v3455_v18, %v12902_v7  ;;  %v15048_v57 = vpop.permute.xlu1 %5082 }
 0x416   : > { %18857 = vst [vmem:[#allocation206_spill] sm:$0xff] %v15026_v29  ;;  %v6664_v4 = vmul.f32 %v15014_v9, %v14833_v63  ;;  %v3459_v12 = vcombine.high %v3455_v18, %v3455_v18  ;;  %5176 = vrot.lane.b32.xlu0 %v15005_v45, %s11826_s6  ;;  %v2641_v50 = vcombine.high %v2625_v27, %v2625_v27 }
 0x417   : > { %18859 = vst [vmem:[#allocation90_spill] sm:$0xff] %v15033_v48  ;;  %v15040_v15 = vrot.slane %v2643_v36, %v12902_v7  ;;  %v3457_v35 = vcombine.high %v3441_v11, %v3441_v11  ;;  %v15043_v16 = vadd.f32 %v18801_v44, %v2044_v37  ;;  %v6665_v10 = vmul.f32 %v15033_v48, %v14831_v49  ;;  %v15059_v36 = vld [vmem:[%s12281_s11 + $0x40] sm:$0xff] }
 0x418   : > { %v6792_v63 = vadd.f32 %v6664_v4, %v5896_v31  ;;  %v15053_v18 = vrot.slane %v3459_v12, %v12902_v7  ;;  %v15056_v9 = vadd.f32 %v18802_v23, %v2045_v22  ;;  %5178 = vrot.lane.b32.xlu1 %v15026_v29, %s11826_s6  ;;  %v18862_v44 = vld [vmem:[#allocation95_spill] sm:$0xff]  ;;  %v15066_v11 = vrot.slane %v2641_v50, %v12902_v7  ;;  %v18865_v12 = vld [vmem:[#allocation92_spill] sm:$0xff] }
 0x419   : > { %18860 = vst [vmem:[#allocation207_spill] sm:$0xff] %v15040_v15  ;;  %v5899_v27 = vmul.f32 %v15040_v15, %v18862_v44  ;;  %v15069_v49 = vrot.slane %v3457_v35, %v12902_v7  ;;  %v4872_v31 = vcombine.low %v14986_v0, %v15043_v16  ;;  %v6793_v37 = vadd.f32 %v6665_v10, %v5897_v47  ;;  %v15086_v47 = vpop.permute.xlu0 %5084 }
 0x41a   : > { %18861 = vst [vmem:[#allocation208_spill] sm:$0xff] %v15053_v18  ;;  %18863 = vst [vmem:[#allocation95_spill] sm:$0xff] %v15066_v11  ;;  %v6667_v23 = vmul.f32 %v15053_v18, %v14873_v40  ;;  %v4888_v22 = vcombine.low %v14989_v43, %v15056_v9  ;;  %v2651_v4 = vrot.slane %v15046_v46, %v12910_v39 }
 0x41b   : > { %18864 = vst [vmem:[#allocation209_spill] sm:$0xff] %v15069_v49  ;;  %v5898_v50 = vmul.f32 %v15066_v11, %v18865_v12  ;;  %v6666_v35 = vmul.f32 %v15069_v49, %v14863_v13  ;;  %v4880_v44 = vrot.slane %v4872_v31, %v12926_v60  ;;  %v3467_v10 = vrot.slane %v15059_v36, %v12910_v39  ;;  %v15093_v49 = vpop.permute.xlu1 %5086 }
 0x41c   : > { %v6795_v40 = vadd.f32 %v6667_v23, %v5899_v27  ;;  %v4896_v18 = vrot.slane %v4888_v22, %v12926_v60  ;;  %v2659_v15 = vcombine.high %v2651_v4, %v2651_v4  ;;  %v2667_v48 = vrot.slane %v2651_v4, %v12910_v39 }
 0x41d   : > { %v6794_v21 = vadd.f32 %v6666_v35, %v5898_v50  ;;  %v3475_v29 = vcombine.high %v3467_v10, %v3467_v10  ;;  %v3483_v12 = vrot.slane %v3467_v10, %v12910_v39  ;;  %v4873_v13 = vcombine.high %v14986_v0, %v15043_v16 }
 0x41e   : > { %v7360_v31 = vcombine.low %v6793_v37, %v6795_v40  ;;  %v4904_v11 = vcombine.low %v4880_v44, %v4896_v18  ;;  %v2681_v45 = vrot.slane %v2659_v15, %v12910_v39  ;;  %v15097_v27 = vrot.slane %v2667_v48, %v12902_v7  ;;  %v18870_v37 = vld [vmem:[#allocation108_spill] sm:$0xff] }
 0x41f   : > { %v7352_v23 = vcombine.low %v6792_v63, %v6794_v21  ;;  %v3497_v22 = vrot.slane %v3475_v29, %v12910_v39  ;;  %v15101_v4 = vrot.slane %v3483_v12, %v12902_v7  ;;  %v4905_v50 = vcombine.high %v4880_v44, %v4896_v18  ;;  %v15121_v18 = vpop.permute.xlu0 %5088  ;;  %v18874_v44 = vld [vmem:[#allocation113_spill] sm:$0xff] }
 0x420   : > { %18866 = vst [vmem:[#allocation92_spill] sm:$0xff] %v15097_v27  ;;  %v7367_v35 = vrot.slane %v7360_v31, %v12926_v60  ;;  %v15105_v16 = vrot.slane %v4904_v11, %v12929_v61  ;;  %v15108_v0 = vrot.slane %v2681_v45, %v12902_v7  ;;  %v5900_v15 = vmul.f32 %v15097_v27, %v18870_v37 }
 0x421   : > { %18867 = vst [vmem:[#allocation210_spill] sm:$0xff] %v15101_v4  ;;  %v7359_v10 = vrot.slane %v7352_v23, %v12926_v60  ;;  %v15114_v21 = vrot.slane %v3497_v22, %v12902_v7  ;;  %v6668_v29 = vmul.f32 %v15101_v4, %v14899_v62  ;;  %v15119_v63 = vrot.slane %v4905_v50, %v12929_v61  ;;  %v15135_v4 = vpop.permute.xlu1 %5090 }
 0x422   : > { %18868 = vst [vmem:[#allocation211_spill] sm:$0xff] %v15105_v16  ;;  %18869 = vst [vmem:[#allocation212_spill] sm:$0xff] %v15108_v0  ;;  %v15125_v11 = vcombine.high %v15105_v16, %v18519_v14  ;;  %5180 = vrot.lane.b32.xlu0 %v15105_v16, %s11826_s6  ;;  %v5901_v40 = vmul.f32 %v15108_v0, %v18874_v44  ;;  %v2691_v31 = vcombine.high %v2681_v45, %v2681_v45 }
 0x423   : > { %18871 = vst [vmem:[#allocation108_spill] sm:$0xff] %v15114_v21  ;;  %18872 = vst [vmem:[#allocation213_spill] sm:$0xff] %v15119_v63  ;;  %v3507_v23 = vcombine.high %v3497_v22, %v3497_v22  ;;  %v7384_v37 = vcombine.low %v7359_v10, %v7367_v35  ;;  %v7385_v27 = vcombine.high %v7359_v10, %v7367_v35 }
 0x424   : > { %18873 = vst [vmem:[#allocation214_spill] sm:$0xff] %v15125_v11  ;;  %v6669_v62 = vmul.f32 %v15114_v21, %v14916_v33  ;;  %v15133_v50 = vadd.f32 %v6668_v29, %v5900_v15  ;;  %5182 = vrot.lane.b32.xlu1 %v15125_v11, %s11826_s6  ;;  %v15141_v16 = vcombine.high %v15119_v63, %v18519_v14  ;;  %v18878_v29 = vld [vmem:[#allocation114_spill] sm:$0xff] }
 0x425   : > { %v15144_v44 = vrot.slane %v2691_v31, %v12902_v7  ;;  %v15147_v45 = vrot.slane %v3507_v23, %v12902_v7  ;;  %v2689_v22 = vcombine.high %v2667_v48, %v2667_v48  ;;  %v7392_v33 = vrot.slane %v7384_v37, %v12929_v61  ;;  %v15165_v37 = vpop.permute.xlu0 %5092 }
 0x426   : > { %18875 = vst [vmem:[#allocation113_spill] sm:$0xff] %v15141_v16  ;;  %v7399_v35 = vrot.slane %v7385_v27, %v12929_v61  ;;  %v6797_v15 = vadd.f32 %v6669_v62, %v5901_v40  ;;  %v3505_v10 = vcombine.high %v3483_v12, %v3483_v12  ;;  %5184 = vrot.lane.b32.xlu0 %v15119_v63, %s11826_s6  ;;  %v18880_v62 = vld [vmem:[#allocation109_spill] sm:$0xff]  ;;  %v1927_v63 = vld [vmem:[#allocation2 + $0x28] sm:$0xff] }
 0x427   : > { %18876 = vst [vmem:[#allocation215_spill] sm:$0xff] %v15144_v44  ;;  %18877 = vst [vmem:[#allocation216_spill] sm:$0xff] %v15147_v45  ;;  %v5903_v21 = vmul.f32 %v15144_v44, %v18878_v29  ;;  %v6671_v31 = vmul.f32 %v15147_v45, %v14962_v59  ;;  %v15158_v0 = vrot.slane %v2689_v22, %v12902_v7  ;;  %v15178_v45 = vpop.permute.xlu1 %5094 }
 0x428   : > { %v4887_v48 = vrot.slane %v4873_v13, %v12926_v60  ;;  %v7400_v23 = vcombine.low %v15017_v19, %v7392_v33  ;;  %v7401_v27 = vcombine.high %v15017_v19, %v7392_v33  ;;  %v7402_v12 = vcombine.low %v15020_v24, %v7399_v35  ;;  %5186 = vrot.lane.b32.xlu1 %v15141_v16, %s11826_s6 }
 0x429   : > { %18879 = vst [vmem:[#allocation114_spill] sm:$0xff] %v15158_v0  ;;  %v7403_v40 = vcombine.high %v15020_v24, %v7399_v35  ;;  %v6799_v59 = vadd.f32 %v6671_v31, %v5903_v21  ;;  %v5902_v13 = vmul.f32 %v15158_v0, %v18880_v62  ;;  %v15172_v22 = vrot.slane %v3505_v10, %v12902_v7 }
 0x42a   : > { %v4889_v19 = vcombine.high %v14989_v43, %v15056_v9  ;;  %v7976_v33 = vmul.f32 0.088388346, %v7400_v23  ;;  %v7977_v24 = vmul.f32 0.088388346, %v7401_v27  ;;  %v7978_v35 = vmul.f32 0.088388346, %v7402_v12 }
 0x42b   : > { %18881 = vst [vmem:[#allocation109_spill] sm:$0xff] %v15172_v22  ;;  %v2644_v29 = vcombine.high %v15046_v46, %v15046_v46  ;;  %v7979_v44 = vmul.f32 0.088388346, %v7403_v40  ;;  %v7412_v21 = vcombine.low %v6797_v15, %v6799_v59  ;;  %v6670_v31 = vmul.f32 %v15172_v22, %v14947_v28  ;;  %v18882_v23 = vld [vmem:[#allocation39_spill] sm:$0xff] }
 0x42c   : > { %v4903_v10 = vrot.slane %v4889_v19, %v12926_v60  ;;  %8040 = vst [vmem:[%s12283_s5 + $0xe0] sm:$0xff] %v7976_v33  ;;  %8041 = vst [vmem:[%s12283_s5 + $0xe8] sm:$0xff] %v7977_v24  ;;  %v3460_v9 = vcombine.high %v15059_v36, %v15059_v36  ;;  %v2070_v27 = vsub.s32 4, %v18882_v23  ;;  %v2074_v46 = vsub.s32 5, %v18882_v23  ;;  %v11441_v33 = vld [vmem:[#allocation8] sm:$0xff] }
 0x42d   : > { %8042 = vst [vmem:[%s12283_s5 + $0xf0] sm:$0xff] %v7978_v35  ;;  %v2658_v43 = vrot.slane %v2644_v29, %v12910_v39  ;;  %8043 = vst [vmem:[%s12283_s5 + $0xf8] sm:$0xff] %v7979_v44  ;;  %v7419_v15 = vrot.slane %v7412_v21, %v12926_v60  ;;  %v6798_v12 = vadd.f32 %v6670_v31, %v5902_v13  ;;  %v15197_v35 = vpop.permute.xlu0 %5096 }
 0x42e   : > { %v4920_v40 = vcombine.low %v4887_v48, %v4903_v10  ;;  %v4921_v28 = vcombine.high %v4887_v48, %v4903_v10  ;;  %v3474_v62 = vrot.slane %v3460_v9, %v12910_v39  ;;  %v15195_v24 = vrot.slane %v11441_v33, %v2070_v27 }
 0x42f   : > { %v2660_v59 = vcombine.high %v2658_v43, %v2658_v43  ;;  %v2674_v19 = vrot.slane %v2658_v43, %v12910_v39  ;;  %v7404_v36 = vcombine.low %v15133_v50, %v6798_v12  ;;  %v15206_v13 = vrot.slane %v11441_v33, %v2074_v46  ;;  %v15213_v43 = vpop.permute.xlu1 %5098 }
 0x430   : > { %v15201_v29 = vrot.slane %v4920_v40, %v12929_v61  ;;  %v15204_v44 = vrot.slane %v4921_v28, %v12929_v61  ;;  %v3476_v21 = vcombine.high %v3474_v62, %v3474_v62  ;;  %v3490_v31 = vrot.slane %v3474_v62, %v12910_v39  ;;  %v18889_v40 = vld [vmem:[#allocation116_spill] sm:$0xff] }
 0x431   : > { %v2688_v48 = vrot.slane %v2660_v59, %v12910_v39  ;;  %v15211_v10 = vrot.slane %v2674_v19, %v12902_v7  ;;  %v7411_v50 = vrot.slane %v7404_v36, %v12926_v60  ;;  %v2690_v27 = vcombine.high %v2674_v19, %v2674_v19  ;;  %v18891_v19 = vld [vmem:[#allocation121_spill] sm:$0xff] }
 0x432   : > { %18883 = vst [vmem:[#allocation39_spill] sm:$0xff] %v15201_v29  ;;  %18884 = vst [vmem:[#allocation217_spill] sm:$0xff] %v15204_v44  ;;  %v15218_v9 = vcombine.high %v15201_v29, %v18519_v14  ;;  %5188 = vrot.lane.b32.xlu0 %v15201_v29, %s11826_s6  ;;  %v15224_v23 = vcombine.high %v15204_v44, %v18519_v14  ;;  %v3504_v46 = vrot.slane %v3476_v21, %v12910_v39  ;;  %v1926_v29 = vld [vmem:[#allocation2 + $0x20] sm:$0xff] }
 0x433   : > { %18885 = vst [vmem:[#allocation218_spill] sm:$0xff] %v15211_v10  ;;  %v15228_v12 = vrot.slane %v2688_v48, %v12902_v7  ;;  %v5904_v28 = vmul.f32 %v15211_v10, %v18889_v40  ;;  %v15233_v59 = vrot.slane %v3490_v31, %v12902_v7  ;;  %v7436_v62 = vcombine.low %v7411_v50, %v7419_v15 }
 0x434   : > { %18886 = vst [vmem:[#allocation219_spill] sm:$0xff] %v15218_v9  ;;  %18887 = vst [vmem:[#allocation220_spill] sm:$0xff] %v15224_v23  ;;  %v7437_v33 = vcombine.high %v7411_v50, %v7419_v15  ;;  %5190 = vrot.lane.b32.xlu1 %v15218_v9, %s11826_s6  ;;  %v2692_v36 = vcombine.high %v2688_v48, %v2688_v48  ;;  %v3506_v22 = vcombine.high %v3490_v31, %v3490_v31  ;;  %v15244_v15 = vpop.permute.xlu0 %5100  ;;  %v18898_v9 = vld [vmem:[#allocation118_spill] sm:$0xff] }
 0x435   : > { %18888 = vst [vmem:[#allocation221_spill] sm:$0xff] %v15228_v12  ;;  %18890 = vst [vmem:[#allocation116_spill] sm:$0xff] %v15233_v59  ;;  %v5905_v21 = vmul.f32 %v15228_v12, %v18891_v19  ;;  %v15240_v0 = vrot.slane %v3504_v46, %v12902_v7  ;;  %v6672_v40 = vmul.f32 %v15233_v59, %v14973_v20  ;;  %v15261_v20 = vld [vmem:[%s12273_s2 + $0x48] sm:$0xff] }
 0x436   : > { %v3508_v10 = vcombine.high %v3504_v46, %v3504_v46  ;;  %v15247_v50 = vrot.slane %v7436_v62, %v12929_v61  ;;  %v15250_v48 = vrot.slane %v7437_v33, %v12929_v61  ;;  %5192 = vrot.lane.b32.xlu0 %v15204_v44, %s11826_s6  ;;  %v15255_v31 = vrot.slane %v2692_v36, %v12902_v7  ;;  %v15272_v59 = vld [vmem:[%s12281_s11 + $0x48] sm:$0xff]  ;;  %v15274_v44 = vpop.permute.xlu1 %5102 }
 0x437   : > { %18892 = vst [vmem:[#allocation121_spill] sm:$0xff] %v15240_v0  ;;  %v15258_v19 = vrot.slane %v2690_v27, %v12902_v7  ;;  %v6673_v46 = vmul.f32 %v15240_v0, %v14991_v38  ;;  %v6800_v12 = vadd.f32 %v6672_v40, %v5904_v28  ;;  %v15269_v33 = vrot.slane %v3506_v22, %v12902_v7  ;;  %v18897_v27 = vld [vmem:[#allocation122_spill] sm:$0xff] }
 0x438   : > { %18893 = vst [vmem:[#allocation222_spill] sm:$0xff] %v15255_v31  ;;  %v15266_v62 = vrot.slane %v3508_v10, %v12902_v7  ;;  %5194 = vrot.lane.b32.xlu1 %v15224_v23, %s11826_s6  ;;  %v5907_v36 = vmul.f32 %v15255_v31, %v18897_v27  ;;  %v2096_v28 = vadd.f32 %v15195_v24, %v1926_v29 }
 0x439   : > { %18894 = vst [vmem:[#allocation223_spill] sm:$0xff] %v15258_v19  ;;  %18896 = vst [vmem:[#allocation225_spill] sm:$0xff] %v15269_v33  ;;  %v5906_v38 = vmul.f32 %v15258_v19, %v18898_v9  ;;  %v15284_v10 = vadd.f32 %v15206_v13, %v1927_v63  ;;  %v6801_v22 = vadd.f32 %v6673_v46, %v5905_v21 }
 0x43a   : > { %18895 = vst [vmem:[#allocation224_spill] sm:$0xff] %v15266_v62  ;;  %v6675_v40 = vmul.f32 %v15266_v62, %v15048_v57  ;;  %v6674_v0 = vmul.f32 %v15269_v33, %v15028_v5  ;;  %v2700_v23 = vrot.slane %v15261_v20, %v12910_v39  ;;  %v8083_v27 = vrot.slane %v2096_v28, %v12926_v60  ;;  %v15299_v62 = vpop.permute.xlu0 %5104 }
 0x43b   : > { %v8098_v9 = vrot.slane %v15284_v10, %v12926_v60  ;;  %v3516_v29 = vrot.slane %v15272_v59, %v12910_v39  ;;  %v8076_v63 = vcombine.high %v2096_v28, %v18519_v14  ;;  %v15306_v28 = vpop.permute.xlu1 %5106 }
 0x43c   : > { %v6803_v21 = vadd.f32 %v6675_v40, %v5907_v36  ;;  %v6802_v46 = vadd.f32 %v6674_v0, %v5906_v38  ;;  %v2708_v31 = vcombine.high %v2700_v23, %v2700_v23  ;;  %v2716_v57 = vrot.slane %v2700_v23, %v12910_v39  ;;  %v18904_v40 = vld [vmem:[#allocation129_spill] sm:$0xff] }
 0x43d   : > { %v8106_v5 = vcombine.low %v8083_v27, %v8098_v9  ;;  %v3524_v33 = vcombine.high %v3516_v29, %v3516_v29  ;;  %v3532_v19 = vrot.slane %v3516_v29, %v12910_v39  ;;  %v8107_v16 = vcombine.high %v8083_v27, %v8098_v9 }
 0x43e   : > { %v7428_v11 = vcombine.low %v6801_v22, %v6803_v21  ;;  %v7420_v41 = vcombine.low %v6800_v12, %v6802_v46  ;;  %v2730_v6 = vrot.slane %v2708_v31, %v12910_v39  ;;  %v15304_v54 = vrot.slane %v2716_v57, %v12902_v7  ;;  %v18908_v21 = vld [vmem:[#allocation133_spill] sm:$0xff] }
 0x43f   : > { %v15309_v0 = vrot.slane %v8106_v5, %v12929_v61  ;;  %v3546_v23 = vrot.slane %v3524_v33, %v12910_v39  ;;  %v15313_v36 = vrot.slane %v3532_v19, %v12902_v7  ;;  %v15316_v38 = vrot.slane %v8107_v16, %v12929_v61 }
 0x440   : > { %18899 = vst [vmem:[#allocation122_spill] sm:$0xff] %v15304_v54  ;;  %v7435_v12 = vrot.slane %v7428_v11, %v12926_v60  ;;  %v7427_v31 = vrot.slane %v7420_v41, %v12926_v60  ;;  %v15321_v22 = vrot.slane %v2730_v6, %v12902_v7  ;;  %v5908_v27 = vmul.f32 %v15304_v54, %v18904_v40  ;;  %v15342_v40 = vpop.permute.xlu0 %5108 }
 0x441   : > { %18900 = vst [vmem:[#allocation118_spill] sm:$0xff] %v15309_v0  ;;  %18901 = vst [vmem:[#allocation226_spill] sm:$0xff] %v15313_v36  ;;  %v15327_v9 = vcombine.high %v15309_v0, %v18519_v14  ;;  %9132 = vrot.lane.b32.xlu0 %v15309_v0, %s11826_s6  ;;  %v15332_v16 = vrot.slane %v3546_v23, %v12902_v7  ;;  %v6676_v11 = vmul.f32 %v15313_v36, %v15086_v47 }
 0x442   : > { %18902 = vst [vmem:[#allocation227_spill] sm:$0xff] %v15316_v38  ;;  %18903 = vst [vmem:[#allocation228_spill] sm:$0xff] %v15321_v22  ;;  %v15338_v41 = vcombine.high %v15316_v38, %v18519_v14  ;;  %v7452_v33 = vcombine.low %v7427_v31, %v7435_v12  ;;  %v7453_v29 = vcombine.high %v7427_v31, %v7435_v12 }
 0x443   : > { %18905 = vst [vmem:[#allocation129_spill] sm:$0xff] %v15327_v9  ;;  %18906 = vst [vmem:[#allocation229_spill] sm:$0xff] %v15332_v16  ;;  %v5909_v46 = vmul.f32 %v15321_v22, %v18908_v21  ;;  %v2740_v5 = vcombine.high %v2730_v6, %v2730_v6  ;;  %9134 = vrot.lane.b32.xlu1 %v15327_v9, %s11826_s6  ;;  %v6677_v54 = vmul.f32 %v15332_v16, %v15093_v49  ;;  %v15353_v6 = vpop.permute.xlu1 %5110 }
 0x444   : > { %18907 = vst [vmem:[#allocation230_spill] sm:$0xff] %v15338_v41  ;;  %v6804_v0 = vadd.f32 %v6676_v11, %v5908_v27  ;;  %v3556_v47 = vcombine.high %v3546_v23, %v3546_v23  ;;  %v2738_v36 = vcombine.high %v2716_v57, %v2716_v57  ;;  %v7460_v34 = vrot.slane %v7452_v33, %v12929_v61  ;;  %v18912_v33 = vld [vmem:[#allocation134_spill] sm:$0xff] }
 0x445   : > { %v7467_v51 = vrot.slane %v7453_v29, %v12929_v61  ;;  %v15351_v12 = vrot.slane %v2740_v5, %v12902_v7  ;;  %v3554_v31 = vcombine.high %v3532_v19, %v3532_v19  ;;  %v6805_v21 = vadd.f32 %v6677_v54, %v5909_v46  ;;  %9136 = vrot.lane.b32.xlu0 %v15316_v38, %s11826_s6  ;;  %v18913_v46 = vld [vmem:[#allocation131_spill] sm:$0xff] }
 0x446   : > { %v15358_v49 = vrot.slane %v3556_v47, %v12902_v7  ;;  %v15361_v57 = vrot.slane %v2738_v36, %v12902_v7  ;;  %v8090_v23 = vrot.slane %v8076_v63, %v12926_v60  ;;  %v7468_v27 = vcombine.low %v15247_v50, %v7460_v34 }
 0x447   : > { %18909 = vst [vmem:[#allocation133_spill] sm:$0xff] %v15351_v12  ;;  %v7469_v11 = vcombine.high %v15247_v50, %v7460_v34  ;;  %v7470_v19 = vcombine.low %v15250_v48, %v7467_v51  ;;  %v7471_v54 = vcombine.high %v15250_v48, %v7467_v51  ;;  %9138 = vrot.lane.b32.xlu1 %v15338_v41, %s11826_s6  ;;  %v1934_v50 = vld [vmem:[#allocation2 + $0x60] sm:$0xff]  ;;  %v1935_v51 = vld [vmem:[#allocation2 + $0x68] sm:$0xff]  ;;  %v15380_v48 = vld [vmem:[%s12273_s2 + $0x50] sm:$0xff] }
 0x448   : > { %18910 = vst [vmem:[#allocation231_spill] sm:$0xff] %v15358_v49  ;;  %18911 = vst [vmem:[#allocation232_spill] sm:$0xff] %v15361_v57  ;;  %v5911_v29 = vmul.f32 %v15351_v12, %v18912_v33  ;;  %v6679_v36 = vmul.f32 %v15358_v49, %v15135_v4  ;;  %v5910_v63 = vmul.f32 %v15361_v57, %v18913_v46  ;;  %v7980_v5 = vmul.f32 0.088388346, %v7468_v27  ;;  %v15384_v4 = vpop.permute.xlu0 %5112  ;;  %v15466_v41 = vld [vmem:[%s12281_s11 + $0x50] sm:$0xff] }
 0x449   : > { %v15377_v34 = vrot.slane %v3554_v31, %v12902_v7  ;;  %v7981_v47 = vmul.f32 0.088388346, %v7469_v11  ;;  %v7982_v33 = vmul.f32 0.088388346, %v7470_v19  ;;  %v8091_v16 = vcombine.high %v15284_v10, %v18519_v14 }
 0x44a   : > { %v7983_v49 = vmul.f32 0.088388346, %v7471_v54  ;;  %v6807_v22 = vadd.f32 %v6679_v36, %v5911_v29  ;;  %v2693_v31 = vcombine.high %v15261_v20, %v15261_v20  ;;  %8044 = vst [vmem:[%s12283_s5 + $0x100] sm:$0xff] %v7980_v5  ;;  %v3509_v11 = vcombine.high %v15272_v59, %v15272_v59  ;;  %v15402_v54 = vpop.permute.xlu1 %5114 }
 0x44b   : > { %18914 = vst [vmem:[#allocation134_spill] sm:$0xff] %v15377_v34  ;;  %v6678_v46 = vmul.f32 %v15377_v34, %v15121_v18  ;;  %8045 = vst [vmem:[%s12283_s5 + $0x108] sm:$0xff] %v7981_v47  ;;  %v8105_v27 = vrot.slane %v8091_v16, %v12926_v60  ;;  %v15397_v10 = vadd.f32 %v15195_v24, %v1934_v50 }
 0x44c   : > { %8046 = vst [vmem:[%s12283_s5 + $0x110] sm:$0xff] %v7982_v33  ;;  %v15400_v19 = vadd.f32 %v15206_v13, %v1935_v51  ;;  %8047 = vst [vmem:[%s12283_s5 + $0x118] sm:$0xff] %v7983_v49  ;;  %v7480_v18 = vcombine.low %v6805_v21, %v6807_v22  ;;  %v2707_v20 = vrot.slane %v2693_v31, %v12910_v39 }
 0x44d   : > { %v6806_v29 = vadd.f32 %v6678_v46, %v5910_v63  ;;  %v2749_v36 = vrot.slane %v15380_v48, %v12910_v39  ;;  %v8122_v16 = vcombine.low %v8090_v23, %v8105_v27  ;;  %v3523_v5 = vrot.slane %v3509_v11, %v12910_v39 }
 0x44e   : > { %v8123_v59 = vcombine.high %v8090_v23, %v8105_v27  ;;  %v15411_v50 = vrot.slane %v15397_v10, %v12926_v60  ;;  %v7487_v51 = vrot.slane %v7480_v18, %v12926_v60  ;;  %v2709_v33 = vcombine.high %v2707_v20, %v2707_v20  ;;  %v15422_v23 = vpop.permute.xlu0 %5116 }
 0x44f   : > { %v7472_v47 = vcombine.low %v6804_v0, %v6806_v29  ;;  %v2723_v22 = vrot.slane %v2707_v20, %v12910_v39  ;;  %v15416_v21 = vrot.slane %v8122_v16, %v12929_v61  ;;  %v3525_v49 = vcombine.high %v3523_v5, %v3523_v5 }
 0x450   : > { %v3539_v63 = vrot.slane %v3523_v5, %v12910_v39  ;;  %v15420_v46 = vrot.slane %v8123_v59, %v12929_v61  ;;  %v2737_v27 = vrot.slane %v2709_v33, %v12910_v39  ;;  %v15443_v5 = vpop.permute.xlu1 %5118 }
 0x451   : > { %18915 = vst [vmem:[#allocation131_spill] sm:$0xff] %v15416_v21  ;;  %v7479_v31 = vrot.slane %v7472_v47, %v12926_v60  ;;  %v15427_v0 = vrot.slane %v2723_v22, %v12902_v7  ;;  %v2739_v11 = vcombine.high %v2723_v22, %v2723_v22  ;;  %v15431_v18 = vcombine.high %v15416_v21, %v18519_v14  ;;  %v18922_v22 = vld [vmem:[#allocation141_spill] sm:$0xff] }
 0x452   : > { %18916 = vst [vmem:[#allocation233_spill] sm:$0xff] %v15420_v46  ;;  %9140 = vrot.lane.b32.xlu0 %v15416_v21, %s11826_s6  ;;  %v3553_v29 = vrot.slane %v3525_v49, %v12910_v39  ;;  %v15437_v20 = vrot.slane %v3539_v63, %v12902_v7  ;;  %v15441_v16 = vcombine.high %v15420_v46, %v18519_v14 }
 0x453   : > { %18917 = vst [vmem:[#allocation234_spill] sm:$0xff] %v15427_v0  ;;  %18918 = vst [vmem:[#allocation235_spill] sm:$0xff] %v15431_v18  ;;  %v7504_v59 = vcombine.low %v7479_v31, %v7487_v51  ;;  %v7505_v47 = vcombine.high %v7479_v31, %v7487_v51  ;;  %v15446_v33 = vrot.slane %v2737_v27, %v12902_v7  ;;  %9142 = vrot.lane.b32.xlu1 %v15431_v18, %s11826_s6  ;;  %v18924_v31 = vld [vmem:[#allocation143_spill] sm:$0xff] }
 0x454   : > { %18919 = vst [vmem:[#allocation236_spill] sm:$0xff] %v15437_v20  ;;  %18920 = vst [vmem:[#allocation237_spill] sm:$0xff] %v15441_v16  ;;  %v5912_v34 = vmul.f32 %v15427_v0, %v18922_v22  ;;  %v15453_v49 = vrot.slane %v3553_v29, %v12902_v7  ;;  %v6680_v12 = vmul.f32 %v15437_v20, %v15165_v37 }
 0x455   : > { %18921 = vst [vmem:[#allocation238_spill] sm:$0xff] %v15446_v33  ;;  %v2741_v57 = vcombine.high %v2737_v27, %v2737_v27  ;;  %v3557_v21 = vcombine.high %v3553_v29, %v3553_v29  ;;  %v15458_v38 = vrot.slane %v7504_v59, %v12929_v61  ;;  %v15461_v51 = vrot.slane %v7505_v47, %v12929_v61  ;;  %v15478_v29 = vpop.permute.xlu0 %5120 }
 0x456   : > { %18923 = vst [vmem:[#allocation141_spill] sm:$0xff] %v15453_v49  ;;  %v5913_v22 = vmul.f32 %v15446_v33, %v18924_v31  ;;  %v3555_v0 = vcombine.high %v3539_v63, %v3539_v63  ;;  %v6681_v18 = vmul.f32 %v15453_v49, %v15178_v45  ;;  %v6808_v9 = vadd.f32 %v6680_v12, %v5912_v34  ;;  %v15496_v31 = vpop.permute.xlu1 %5122 }
 0x457   : > { %9144 = vrot.lane.b32.xlu0 %v15420_v46, %s11826_s6  ;;  %v15473_v37 = vrot.slane %v2741_v57, %v12902_v7  ;;  %v15476_v27 = vrot.slane %v3557_v21, %v12902_v7  ;;  %v15481_v59 = vrot.slane %v2739_v11, %v12902_v7  ;;  %v8164_v45 = vrot.slane %v15400_v19, %v12926_v60  ;;  %v18929_v57 = vld [vmem:[#allocation145_spill] sm:$0xff] }
 0x458   : > { %v15484_v63 = vrot.slane %v3555_v0, %v12902_v7  ;;  %v2757_v12 = vcombine.high %v2749_v36, %v2749_v36  ;;  %v6809_v34 = vadd.f32 %v6681_v18, %v5913_v22  ;;  %9146 = vrot.lane.b32.xlu1 %v15441_v16, %s11826_s6  ;;  %v3565_v11 = vrot.slane %v15466_v41, %v12910_v39  ;;  %v18930_v0 = vld [vmem:[#allocation142_spill] sm:$0xff] }
 0x459   : > { %18925 = vst [vmem:[#allocation143_spill] sm:$0xff] %v15473_v37  ;;  %18926 = vst [vmem:[#allocation239_spill] sm:$0xff] %v15476_v27  ;;  %v5915_v21 = vmul.f32 %v15473_v37, %v18929_v57  ;;  %v6683_v47 = vmul.f32 %v15476_v27, %v15213_v43  ;;  %v5914_v49 = vmul.f32 %v15481_v59, %v18930_v0 }
 0x45a   : > { %18927 = vst [vmem:[#allocation240_spill] sm:$0xff] %v15481_v59  ;;  %18928 = vst [vmem:[#allocation241_spill] sm:$0xff] %v15484_v63  ;;  %v6682_v18 = vmul.f32 %v15484_v63, %v15197_v35  ;;  %v8172_v22 = vcombine.low %v15411_v50, %v8164_v45  ;;  %v2779_v33 = vrot.slane %v2757_v12, %v12910_v39 }
 0x45b   : > { %v6811_v20 = vadd.f32 %v6683_v47, %v5915_v21  ;;  %v3573_v57 = vcombine.high %v3565_v11, %v3565_v11  ;;  %v2765_v37 = vrot.slane %v2749_v36, %v12910_v39  ;;  %v3581_v43 = vrot.slane %v3565_v11, %v12910_v39  ;;  %v15520_v36 = vpop.permute.xlu0 %5124 }
 0x45c   : > { %v6810_v27 = vadd.f32 %v6682_v18, %v5914_v49  ;;  %v15507_v46 = vrot.slane %v8172_v22, %v12929_v61  ;;  %v15510_v16 = vrot.slane %v2779_v33, %v12902_v7  ;;  %v8173_v0 = vcombine.high %v15411_v50, %v8164_v45  ;;  %v18936_v50 = vld [vmem:[#allocation157_spill] sm:$0xff]  ;;  %v15541_v22 = vpop.permute.xlu1 %5126 }
 0x45d   : > { %v7496_v35 = vcombine.low %v6809_v34, %v6811_v20  ;;  %v3595_v63 = vrot.slane %v3573_v57, %v12910_v39  ;;  %v15515_v12 = vrot.slane %v2765_v37, %v12902_v7  ;;  %v15518_v21 = vrot.slane %v3581_v43, %v12902_v7  ;;  %v18939_v18 = vld [vmem:[#allocation153_spill] sm:$0xff] }
 0x45e   : > { %18931 = vst [vmem:[#allocation145_spill] sm:$0xff] %v15507_v46  ;;  %18932 = vst [vmem:[#allocation142_spill] sm:$0xff] %v15510_v16  ;;  %v7488_v49 = vcombine.low %v6808_v9, %v6810_v27  ;;  %v15524_v47 = vcombine.high %v15507_v46, %v18519_v14  ;;  %9148 = vrot.lane.b32.xlu0 %v15507_v46, %s11826_s6  ;;  %v5917_v20 = vmul.f32 %v15510_v16, %v18936_v50 }
 0x45f   : > { %18933 = vst [vmem:[#allocation242_spill] sm:$0xff] %v15515_v12  ;;  %18934 = vst [vmem:[#allocation243_spill] sm:$0xff] %v15518_v21  ;;  %v15531_v45 = vrot.slane %v8173_v0, %v12929_v61  ;;  %v7503_v34 = vrot.slane %v7496_v35, %v12926_v60  ;;  %v15535_v11 = vrot.slane %v3595_v63, %v12902_v7 }
 0x460   : > { %18935 = vst [vmem:[#allocation244_spill] sm:$0xff] %v15524_v47  ;;  %v5916_v9 = vmul.f32 %v15515_v12, %v18939_v18  ;;  %v6684_v27 = vmul.f32 %v15518_v21, %v15244_v15  ;;  %v7495_v57 = vrot.slane %v7488_v49, %v12926_v60  ;;  %9150 = vrot.lane.b32.xlu1 %v15524_v47, %s11826_s6 }
 0x461   : > { %18937 = vst [vmem:[#allocation157_spill] sm:$0xff] %v15531_v45  ;;  %18938 = vst [vmem:[#allocation245_spill] sm:$0xff] %v15535_v11  ;;  %v15548_v0 = vcombine.high %v15531_v45, %v18519_v14  ;;  %v2789_v35 = vcombine.high %v2779_v33, %v2779_v33  ;;  %v3605_v50 = vcombine.high %v3595_v63, %v3595_v63  ;;  %v15568_v63 = vpop.permute.xlu0 %5128 }
 0x462   : > { %v6685_v16 = vmul.f32 %v15535_v11, %v15274_v44  ;;  %v6812_v18 = vadd.f32 %v6684_v27, %v5916_v9  ;;  %v2787_v12 = vcombine.high %v2765_v37, %v2765_v37  ;;  %v3603_v59 = vcombine.high %v3581_v43, %v3581_v43  ;;  %9152 = vrot.lane.b32.xlu0 %v15531_v45, %s11826_s6  ;;  %v18945_v9 = vld [vmem:[#allocation160_spill] sm:$0xff] }
 0x463   : > { %18940 = vst [vmem:[#allocation153_spill] sm:$0xff] %v15548_v0  ;;  %v7520_v15 = vcombine.low %v7495_v57, %v7503_v34  ;;  %v7521_v21 = vcombine.high %v7495_v57, %v7503_v34  ;;  %v15555_v49 = vrot.slane %v2789_v35, %v12902_v7  ;;  %v15558_v46 = vrot.slane %v3605_v50, %v12902_v7  ;;  %v15585_v57 = vpop.permute.xlu1 %5130 }
 0x464   : > { %v6813_v47 = vadd.f32 %v6685_v16, %v5917_v20  ;;  %v15561_v33 = vrot.slane %v2787_v12, %v12902_v7  ;;  %v15564_v44 = vrot.slane %v3603_v59, %v12902_v7  ;;  %v8142_v37 = vcombine.high %v15397_v10, %v18519_v14  ;;  %9154 = vrot.lane.b32.xlu1 %v15548_v0, %s11826_s6  ;;  %v18946_v59 = vld [vmem:[#allocation156_spill] sm:$0xff] }
 0x465   : > { %18941 = vst [vmem:[#allocation246_spill] sm:$0xff] %v15555_v49  ;;  %18942 = vst [vmem:[#allocation247_spill] sm:$0xff] %v15558_v46  ;;  %v7528_v43 = vrot.slane %v7520_v15, %v12929_v61  ;;  %v7535_v34 = vrot.slane %v7521_v21, %v12929_v61  ;;  %v5919_v16 = vmul.f32 %v15555_v49, %v18945_v9  ;;  %v15667_v49 = vld [vmem:[%s12281_s11 + $0x58] sm:$0xff] }
 0x466   : > { %18943 = vst [vmem:[#allocation248_spill] sm:$0xff] %v15561_v33  ;;  %18944 = vst [vmem:[#allocation249_spill] sm:$0xff] %v15564_v44  ;;  %v6687_v12 = vmul.f32 %v15558_v46, %v15306_v28  ;;  %v5918_v20 = vmul.f32 %v15561_v33, %v18946_v59  ;;  %v6686_v10 = vmul.f32 %v15564_v44, %v15299_v62  ;;  %v1943_v46 = vld [vmem:[#allocation2 + $0xa8] sm:$0xff]  ;;  %v15664_v33 = vld [vmem:[%s12273_s2 + $0x58] sm:$0xff] }
 0x467   : > { %v8156_v27 = vrot.slane %v8142_v37, %v12926_v60  ;;  %v8157_v21 = vcombine.high %v15400_v19, %v18519_v14  ;;  %v7536_v35 = vcombine.low %v15458_v38, %v7528_v43  ;;  %v7537_v50 = vcombine.high %v15458_v38, %v7528_v43  ;;  %v1942_v37 = vld [vmem:[#allocation2 + $0xa0] sm:$0xff] }
 0x468   : > { %v7538_v15 = vcombine.low %v15461_v51, %v7535_v34  ;;  %v7539_v28 = vcombine.high %v15461_v51, %v7535_v34  ;;  %v6815_v9 = vadd.f32 %v6687_v12, %v5919_v16  ;;  %v6814_v59 = vadd.f32 %v6686_v10, %v5918_v20  ;;  %v15596_v20 = vpop.permute.xlu0 %5132 }
 0x469   : > { %v8171_v62 = vrot.slane %v8157_v21, %v12926_v60  ;;  %v2742_v19 = vcombine.high %v15380_v48, %v15380_v48  ;;  %v7984_v44 = vmul.f32 0.088388346, %v7536_v35  ;;  %v7985_v11 = vmul.f32 0.088388346, %v7537_v50 }
 0x46a   : > { %v7986_v38 = vmul.f32 0.088388346, %v7538_v15  ;;  %v3558_v43 = vcombine.high %v15466_v41, %v15466_v41  ;;  %v7987_v51 = vmul.f32 0.088388346, %v7539_v28  ;;  %v7548_v34 = vcombine.low %v6813_v47, %v6815_v9 }
 0x46b   : > { %v7540_v16 = vcombine.low %v6812_v18, %v6814_v59  ;;  %v8188_v12 = vcombine.low %v8156_v27, %v8171_v62  ;;  %8048 = vst [vmem:[%s12283_s5 + $0x120] sm:$0xff] %v7984_v44  ;;  %8049 = vst [vmem:[%s12283_s5 + $0x128] sm:$0xff] %v7985_v11  ;;  %v2756_v48 = vrot.slane %v2742_v19, %v12910_v39  ;;  %v15613_v11 = vpop.permute.xlu1 %5134 }
 0x46c   : > { %8050 = vst [vmem:[%s12283_s5 + $0x130] sm:$0xff] %v7986_v38  ;;  %v3572_v10 = vrot.slane %v3558_v43, %v12910_v39  ;;  %v8189_v21 = vcombine.high %v8156_v27, %v8171_v62  ;;  %v2112_v35 = vadd.f32 %v15195_v24, %v1942_v37  ;;  %8051 = vst [vmem:[%s12283_s5 + $0x138] sm:$0xff] %v7987_v51 }
 0x46d   : > { %v7555_v50 = vrot.slane %v7548_v34, %v12926_v60  ;;  %v7547_v41 = vrot.slane %v7540_v16, %v12926_v60  ;;  %v15608_v47 = vrot.slane %v8188_v12, %v12929_v61  ;;  %v15611_v18 = vadd.f32 %v15206_v13, %v1943_v46 }
 0x46e   : > { %v2758_v44 = vcombine.high %v2756_v48, %v2756_v48  ;;  %v3574_v15 = vcombine.high %v3572_v10, %v3572_v10  ;;  %v2772_v28 = vrot.slane %v2756_v48, %v12910_v39  ;;  %v3588_v27 = vrot.slane %v3572_v10, %v12910_v39  ;;  %v15646_v48 = vpop.permute.xlu0 %5136 }
 0x46f   : > { %18947 = vst [vmem:[#allocation160_spill] sm:$0xff] %v15608_v47  ;;  %v7572_v9 = vcombine.low %v7547_v41, %v7555_v50  ;;  %v7573_v59 = vcombine.high %v7547_v41, %v7555_v50  ;;  %v15619_v62 = vcombine.high %v15608_v47, %v18519_v14  ;;  %9156 = vrot.lane.b32.xlu0 %v15608_v47, %s11826_s6  ;;  %v18955_v50 = vld [vmem:[#allocation168_spill] sm:$0xff]  ;;  %v15669_v47 = vpop.permute.xlu1 %5138 }
 0x470   : > { %v15624_v46 = vrot.slane %v8189_v21, %v12929_v61  ;;  %v2786_v19 = vrot.slane %v2758_v44, %v12910_v39  ;;  %v3602_v37 = vrot.slane %v3574_v15, %v12910_v39  ;;  %v15629_v38 = vrot.slane %v2772_v28, %v12902_v7 }
 0x471   : > { %18948 = vst [vmem:[#allocation156_spill] sm:$0xff] %v15619_v62  ;;  %v15632_v43 = vrot.slane %v3588_v27, %v12902_v7  ;;  %v15635_v51 = vrot.slane %v7572_v9, %v12929_v61  ;;  %v15638_v34 = vrot.slane %v7573_v59, %v12929_v61  ;;  %9158 = vrot.lane.b32.xlu1 %v15619_v62, %s11826_s6  ;;  %v18957_v62 = vld [vmem:[#allocation170_spill] sm:$0xff] }
 0x472   : > { %18949 = vst [vmem:[#allocation250_spill] sm:$0xff] %v15624_v46  ;;  %18950 = vst [vmem:[#allocation251_spill] sm:$0xff] %v15629_v38  ;;  %v15644_v16 = vcombine.high %v15624_v46, %v18519_v14  ;;  %v2788_v12 = vcombine.high %v2772_v28, %v2772_v28  ;;  %v15649_v10 = vrot.slane %v2786_v19, %v12902_v7 }
 0x473   : > { %18951 = vst [vmem:[#allocation252_spill] sm:$0xff] %v15632_v43  ;;  %v15652_v21 = vrot.slane %v3602_v37, %v12902_v7  ;;  %v5920_v41 = vmul.f32 %v15629_v38, %v18955_v50  ;;  %v6688_v44 = vmul.f32 %v15632_v43, %v15342_v40  ;;  %9160 = vrot.lane.b32.xlu0 %v15624_v46, %s11826_s6 }
 0x474   : > { %18952 = vst [vmem:[#allocation253_spill] sm:$0xff] %v15644_v16  ;;  %18953 = vst [vmem:[#allocation254_spill] sm:$0xff] %v15649_v10  ;;  %v2790_v15 = vcombine.high %v2786_v19, %v2786_v19  ;;  %v3606_v9 = vcombine.high %v3602_v37, %v3602_v37  ;;  %v3604_v28 = vcombine.high %v3588_v27, %v3588_v27 }
 0x475   : > { %18954 = vst [vmem:[#allocation255_spill] sm:$0xff] %v15652_v21  ;;  %v15661_v59 = vrot.slane %v2788_v12, %v12902_v7  ;;  %v5921_v50 = vmul.f32 %v15649_v10, %v18957_v62  ;;  %v6689_v40 = vmul.f32 %v15652_v21, %v15353_v6  ;;  %v6816_v43 = vadd.f32 %v6688_v44, %v5920_v41 }
 0x476   : > { %v8215_v19 = vrot.slane %v2112_v35, %v12926_v60  ;;  %9162 = vrot.lane.b32.xlu1 %v15644_v16, %s11826_s6  ;;  %v15679_v27 = vrot.slane %v2790_v15, %v12902_v7  ;;  %v15682_v37 = vrot.slane %v3606_v9, %v12902_v7  ;;  %v15687_v62 = vrot.slane %v3604_v28, %v12902_v7 }
 0x477   : > { %18956 = vst [vmem:[#allocation168_spill] sm:$0xff] %v15661_v59  ;;  %v5922_v12 = vmul.f32 %v15661_v59, %v18761_v26  ;;  %v6817_v10 = vadd.f32 %v6689_v40, %v5921_v50  ;;  %v8230_v6 = vrot.slane %v15611_v18, %v12926_v60  ;;  %v2798_v41 = vrot.slane %v15664_v33, %v12910_v39  ;;  %v15702_v50 = vpop.permute.xlu0 %5140 }
 0x478   : > { %18958 = vst [vmem:[#allocation170_spill] sm:$0xff] %v15679_v27  ;;  %18959 = vst [vmem:[#allocation256_spill] sm:$0xff] %v15682_v37  ;;  %v3614_v44 = vrot.slane %v15667_v49, %v12910_v39  ;;  %v5923_v15 = vmul.f32 %v15679_v27, %v18760_v42  ;;  %v6691_v9 = vmul.f32 %v15682_v37, %v15402_v54  ;;  %v15706_v27 = vpop.permute.xlu1 %5142 }
 0x479   : > { %18960 = vst [vmem:[#allocation257_spill] sm:$0xff] %v15687_v62  ;;  %v6690_v26 = vmul.f32 %v15687_v62, %v15384_v4  ;;  %v8208_v28 = vcombine.high %v2112_v35, %v18519_v14  ;;  %v8238_v40 = vcombine.low %v8215_v19, %v8230_v6  ;;  %v2806_v21 = vcombine.high %v2798_v41, %v2798_v41 }
 0x47a   : > { %v3622_v59 = vcombine.high %v3614_v44, %v3614_v44  ;;  %v2814_v38 = vrot.slane %v2798_v41, %v12910_v39  ;;  %v6819_v46 = vadd.f32 %v6691_v9, %v5923_v15  ;;  %v3630_v45 = vrot.slane %v3614_v44, %v12910_v39 }
 0x47b   : > { %v6818_v16 = vadd.f32 %v6690_v26, %v5922_v12  ;;  %v8239_v42 = vcombine.high %v8215_v19, %v8230_v6  ;;  %v15709_v54 = vrot.slane %v8238_v40, %v12929_v61  ;;  %v2828_v4 = vrot.slane %v2806_v21, %v12910_v39  ;;  %v15744_v44 = vpop.permute.xlu0 %5144 }
 0x47c   : > { %v3644_v35 = vrot.slane %v3622_v59, %v12910_v39  ;;  %v15714_v37 = vrot.slane %v2814_v38, %v12902_v7  ;;  %v7564_v62 = vcombine.low %v6817_v10, %v6819_v46  ;;  %v15717_v41 = vrot.slane %v3630_v45, %v12902_v7 }
 0x47d   : > { %v7556_v0 = vcombine.low %v6816_v43, %v6818_v16  ;;  %v15720_v12 = vrot.slane %v8239_v42, %v12929_v61  ;;  %v15724_v19 = vcombine.high %v15709_v54, %v18519_v14  ;;  %9164 = vrot.lane.b32.xlu0 %v15709_v54, %s11826_s6  ;;  %v15729_v21 = vrot.slane %v2828_v4, %v12902_v7  ;;  %v15752_v42 = vpop.permute.xlu1 %5146 }
 0x47e   : > { %18961 = vst [vmem:[#allocation258_spill] sm:$0xff] %v15714_v37  ;;  %18962 = vst [vmem:[#allocation259_spill] sm:$0xff] %v15717_v41  ;;  %v15732_v59 = vrot.slane %v3644_v35, %v12902_v7  ;;  %v5924_v46 = vmul.f32 %v15714_v37, %v18767_v25  ;;  %v7571_v43 = vrot.slane %v7564_v62, %v12926_v60 }
 0x47f   : > { %18963 = vst [vmem:[#allocation260_spill] sm:$0xff] %v15729_v21  ;;  %v7563_v16 = vrot.slane %v7556_v0, %v12926_v60  ;;  %v6692_v10 = vmul.f32 %v15717_v41, %v15422_v23  ;;  %v15742_v6 = vcombine.high %v15720_v12, %v18519_v14  ;;  %9166 = vrot.lane.b32.xlu1 %v15724_v19, %s11826_s6 }
 0x480   : > { %18964 = vst [vmem:[#allocation261_spill] sm:$0xff] %v15732_v59  ;;  %v5925_v15 = vmul.f32 %v15729_v21, %v18764_v30  ;;  %v6693_v25 = vmul.f32 %v15732_v59, %v15443_v5  ;;  %v2838_v62 = vcombine.high %v2828_v4, %v2828_v4  ;;  %v3654_v0 = vcombine.high %v3644_v35, %v3644_v35 }
 0x481   : > { %v7588_v9 = vcombine.low %v7563_v16, %v7571_v43  ;;  %v7589_v26 = vcombine.high %v7563_v16, %v7571_v43  ;;  %v6820_v23 = vadd.f32 %v6692_v10, %v5924_v46  ;;  %v2836_v40 = vcombine.high %v2814_v38, %v2814_v38  ;;  %9168 = vrot.lane.b32.xlu0 %v15720_v12, %s11826_s6 }
 0x482   : > { %v6821_v41 = vadd.f32 %v6693_v25, %v5925_v15  ;;  %v15757_v37 = vrot.slane %v2838_v62, %v12902_v7  ;;  %v15760_v30 = vrot.slane %v3654_v0, %v12902_v7  ;;  %v3652_v21 = vcombine.high %v3630_v45, %v3630_v45  ;;  %v15783_v62 = vpop.permute.xlu0 %5148  ;;  %v1950_v0 = vld [vmem:[#allocation2 + $0xe0] sm:$0xff] }
 0x483   : > { %v7596_v5 = vrot.slane %v7588_v9, %v12929_v61  ;;  %v7603_v4 = vrot.slane %v7589_v26, %v12929_v61  ;;  %v15765_v35 = vrot.slane %v2836_v40, %v12902_v7  ;;  %v8222_v38 = vrot.slane %v8208_v28, %v12926_v60  ;;  %9170 = vrot.lane.b32.xlu1 %v15742_v6, %s11826_s6 }
 0x484   : > { %18965 = vst [vmem:[#allocation262_spill] sm:$0xff] %v15757_v37  ;;  %18966 = vst [vmem:[#allocation263_spill] sm:$0xff] %v15760_v30  ;;  %v5927_v46 = vmul.f32 %v15757_v37, %v14080_v58  ;;  %v6695_v43 = vmul.f32 %v15760_v30, %v15496_v31  ;;  %v15775_v45 = vrot.slane %v3652_v21, %v12902_v7 }
 0x485   : > { %18967 = vst [vmem:[#allocation264_spill] sm:$0xff] %v15765_v35  ;;  %v8223_v16 = vcombine.high %v15611_v18, %v18519_v14  ;;  %v7604_v10 = vcombine.low %v15635_v51, %v7596_v5  ;;  %v7605_v15 = vcombine.high %v15635_v51, %v7596_v5  ;;  %v7606_v28 = vcombine.low %v15638_v34, %v7603_v4  ;;  %v1951_v51 = vld [vmem:[#allocation2 + $0xe8] sm:$0xff]  ;;  %v15792_v5 = vpop.permute.xlu1 %5150 }
 0x486   : > { %18968 = vst [vmem:[#allocation265_spill] sm:$0xff] %v15775_v45  ;;  %v7607_v25 = vcombine.high %v15638_v34, %v7603_v4  ;;  %v6823_v58 = vadd.f32 %v6695_v43, %v5927_v46  ;;  %v5926_v31 = vmul.f32 %v15765_v35, %v14051_v55  ;;  %v6694_v18 = vmul.f32 %v15775_v45, %v15478_v29 }
 0x487   : > { %v8237_v21 = vrot.slane %v8223_v16, %v12926_v60  ;;  %v7988_v9 = vmul.f32 0.088388346, %v7604_v10  ;;  %v7989_v26 = vmul.f32 0.088388346, %v7605_v15  ;;  %v7990_v34 = vmul.f32 0.088388346, %v7606_v28 }
 0x488   : > { %v2791_v40 = vcombine.high %v15664_v33, %v15664_v33  ;;  %v7991_v4 = vmul.f32 0.088388346, %v7607_v25  ;;  %v7616_v46 = vcombine.low %v6821_v41, %v6823_v58  ;;  %v6822_v55 = vadd.f32 %v6694_v18, %v5926_v31 }
 0x489   : > { %v8254_v43 = vcombine.low %v8222_v38, %v8237_v21  ;;  %8052 = vst [vmem:[%s12283_s5 + $0x140] sm:$0xff] %v7988_v9  ;;  %8053 = vst [vmem:[%s12283_s5 + $0x148] sm:$0xff] %v7989_v26  ;;  %v3607_v16 = vcombine.high %v15667_v49, %v15667_v49  ;;  %v8255_v10 = vcombine.high %v8222_v38, %v8237_v21  ;;  %v15816_v38 = vpop.permute.xlu0 %5152 }
 0x48a   : > { %8054 = vst [vmem:[%s12283_s5 + $0x150] sm:$0xff] %v7990_v34  ;;  %v2805_v29 = vrot.slane %v2791_v40, %v12910_v39  ;;  %v15801_v15 = vadd.f32 %v15195_v24, %v1950_v0  ;;  %8055 = vst [vmem:[%s12283_s5 + $0x158] sm:$0xff] %v7991_v4  ;;  %v7623_v33 = vrot.slane %v7616_v46, %v12926_v60  ;;  %v15834_v4 = vpop.permute.xlu1 %5154 }
 0x48b   : > { %v7608_v28 = vcombine.low %v6820_v23, %v6822_v55  ;;  %v15806_v41 = vrot.slane %v8254_v43, %v12929_v61  ;;  %v15809_v25 = vadd.f32 %v15206_v13, %v1951_v51  ;;  %v3621_v31 = vrot.slane %v3607_v16, %v12910_v39 }
 0x48c   : > { %v2807_v58 = vcombine.high %v2805_v29, %v2805_v29  ;;  %v2821_v18 = vrot.slane %v2805_v29, %v12910_v39  ;;  %v15814_v49 = vrot.slane %v8255_v10, %v12929_v61  ;;  %v8281_v0 = vrot.slane %v15801_v15, %v12926_v60 }
 0x48d   : > { %v7615_v21 = vrot.slane %v7608_v28, %v12926_v60  ;;  %v15821_v23 = vcombine.high %v15806_v41, %v18519_v14  ;;  %9172 = vrot.lane.b32.xlu0 %v15806_v41, %s11826_s6  ;;  %v8296_v51 = vrot.slane %v15809_v25, %v12926_v60  ;;  %v3623_v26 = vcombine.high %v3621_v31, %v3621_v31  ;;  %v15869_v45 = vpop.permute.xlu0 %5156 }
 0x48e   : > { %v2835_v9 = vrot.slane %v2807_v58, %v12910_v39  ;;  %v3637_v34 = vrot.slane %v3621_v31, %v12910_v39  ;;  %v15832_v40 = vrot.slane %v2821_v18, %v12902_v7  ;;  %v15840_v43 = vcombine.high %v15814_v49, %v18519_v14  ;;  %v15892_v37 = vpop.permute.xlu1 %5158 }
 0x48f   : > { %v7640_v46 = vcombine.low %v7615_v21, %v7623_v33  ;;  %v7641_v55 = vcombine.high %v7615_v21, %v7623_v33  ;;  %9174 = vrot.lane.b32.xlu1 %v15821_v23, %s11826_s6  ;;  %v2837_v29 = vcombine.high %v2821_v18, %v2821_v18  ;;  %v3651_v16 = vrot.slane %v3623_v26, %v12910_v39  ;;  %v15860_v26 = vld [vmem:[%s12273_s2 + $0x60] sm:$0xff] }
 0x490   : > { %18969 = vst [vmem:[#allocation266_spill] sm:$0xff] %v15832_v40  ;;  %v15844_v10 = vrot.slane %v2835_v9, %v12902_v7  ;;  %v5928_v28 = vmul.f32 %v15832_v40, %v14152_v56  ;;  %v15849_v58 = vrot.slane %v3637_v34, %v12902_v7  ;;  %v2839_v18 = vcombine.high %v2835_v9, %v2835_v9 }
 0x491   : > { %v15852_v33 = vrot.slane %v7640_v46, %v12929_v61  ;;  %v15855_v31 = vrot.slane %v7641_v55, %v12929_v61  ;;  %9176 = vrot.lane.b32.xlu0 %v15814_v49, %s11826_s6  ;;  %v3653_v21 = vcombine.high %v3637_v34, %v3637_v34  ;;  %v15865_v40 = vrot.slane %v3651_v16, %v12902_v7 }
 0x492   : > { %18970 = vst [vmem:[#allocation267_spill] sm:$0xff] %v15844_v10  ;;  %18971 = vst [vmem:[#allocation268_spill] sm:$0xff] %v15849_v58  ;;  %v5929_v56 = vmul.f32 %v15844_v10, %v14168_v8  ;;  %v6696_v46 = vmul.f32 %v15849_v58, %v15520_v36  ;;  %v3655_v30 = vcombine.high %v3651_v16, %v3651_v16  ;;  %v15883_v10 = vld [vmem:[%s12281_s11 + $0x60] sm:$0xff] }
 0x493   : > { %18972 = vst [vmem:[#allocation269_spill] sm:$0xff] %v15865_v40  ;;  %9178 = vrot.lane.b32.xlu1 %v15840_v43, %s11826_s6  ;;  %v15874_v9 = vrot.slane %v2839_v18, %v12902_v7  ;;  %v15877_v34 = vrot.slane %v2837_v29, %v12902_v7  ;;  %v15880_v8 = vrot.slane %v3653_v21, %v12902_v7 }
 0x494   : > { %v8304_v55 = vcombine.low %v8281_v0, %v8296_v51  ;;  %v6697_v36 = vmul.f32 %v15865_v40, %v15541_v22  ;;  %v6824_v16 = vadd.f32 %v6696_v46, %v5928_v28  ;;  %v15888_v58 = vrot.slane %v3655_v30, %v12902_v7 }
 0x495   : > { %18973 = vst [vmem:[#allocation270_spill] sm:$0xff] %v15874_v9  ;;  %18974 = vst [vmem:[#allocation271_spill] sm:$0xff] %v15877_v34  ;;  %v2847_v18 = vrot.slane %v15860_v26, %v12910_v39  ;;  %v5931_v29 = vmul.f32 %v15874_v9, %v14254_v53  ;;  %v5930_v21 = vmul.f32 %v15877_v34, %v14234_v52 }
 0x496   : > { %18975 = vst [vmem:[#allocation272_spill] sm:$0xff] %v15880_v8  ;;  %18976 = vst [vmem:[#allocation273_spill] sm:$0xff] %v15888_v58  ;;  %v6698_v59 = vmul.f32 %v15880_v8, %v15568_v63  ;;  %v15901_v22 = vrot.slane %v8304_v55, %v12929_v61  ;;  %v6825_v28 = vadd.f32 %v6697_v36, %v5929_v56 }
 0x497   : > { %v6699_v30 = vmul.f32 %v15888_v58, %v15585_v57  ;;  %v2855_v46 = vcombine.high %v2847_v18, %v2847_v18  ;;  %v3663_v40 = vrot.slane %v15883_v10, %v12910_v39  ;;  %v2863_v52 = vrot.slane %v2847_v18, %v12910_v39  ;;  %v15916_v58 = vpop.permute.xlu0 %5160 }
 0x498   : > { %18977 = vst [vmem:[#allocation274_spill] sm:$0xff] %v15901_v22  ;;  %v6826_v35 = vadd.f32 %v6698_v59, %v5930_v21  ;;  %v15909_v53 = vcombine.high %v15901_v22, %v18519_v14  ;;  %9180 = vrot.lane.b32.xlu0 %v15901_v22, %s11826_s6  ;;  %v8305_v63 = vcombine.high %v8281_v0, %v8296_v51 }
 0x499   : > { %v6827_v55 = vadd.f32 %v6699_v30, %v5931_v29  ;;  %v2877_v56 = vrot.slane %v2855_v46, %v12910_v39  ;;  %v3671_v36 = vcombine.high %v3663_v40, %v3663_v40  ;;  %v3679_v57 = vrot.slane %v3663_v40, %v12910_v39 }
 0x49a   : > { %18978 = vst [vmem:[#allocation275_spill] sm:$0xff] %v15909_v53  ;;  %v7624_v8 = vcombine.low %v6824_v16, %v6826_v35  ;;  %9182 = vrot.lane.b32.xlu1 %v15909_v53, %s11826_s6  ;;  %v15921_v59 = vrot.slane %v2863_v52, %v12902_v7  ;;  %v15924_v21 = vrot.slane %v8305_v63, %v12929_v61  ;;  %v15933_v35 = vpop.permute.xlu1 %5162 }
 0x49b   : > { %v2885_v18 = vcombine.high %v2863_v52, %v2863_v52  ;;  %v7632_v0 = vcombine.low %v6825_v28, %v6827_v55  ;;  %v3693_v51 = vrot.slane %v3671_v36, %v12910_v39  ;;  %v15928_v29 = vrot.slane %v2877_v56, %v12902_v7  ;;  %v15962_v34 = vpop.permute.xlu0 %5164 }
 0x49c   : > { %18979 = vst [vmem:[#allocation276_spill] sm:$0xff] %v15921_v59  ;;  %18980 = vst [vmem:[#allocation277_spill] sm:$0xff] %v15924_v21  ;;  %v15931_v40 = vrot.slane %v3679_v57, %v12902_v7  ;;  %v7631_v16 = vrot.slane %v7624_v8, %v12926_v60  ;;  %v5932_v30 = vmul.f32 %v15921_v59, %v14374_v32  ;;  %9184 = vrot.lane.b32.xlu0 %v15924_v21, %s11826_s6 }
 0x49d   : > { %18981 = vst [vmem:[#allocation278_spill] sm:$0xff] %v15928_v29  ;;  %v15940_v46 = vcombine.high %v15924_v21, %v18519_v14  ;;  %v2887_v28 = vcombine.high %v2877_v56, %v2877_v56  ;;  %v7639_v52 = vrot.slane %v7632_v0, %v12926_v60  ;;  %v5933_v63 = vmul.f32 %v15928_v29, %v14396_v2 }
 0x49e   : > { %18982 = vst [vmem:[#allocation279_spill] sm:$0xff] %v15931_v40  ;;  %v15948_v55 = vrot.slane %v3693_v51, %v12902_v7  ;;  %v6700_v8 = vmul.f32 %v15931_v40, %v15596_v20  ;;  %v3703_v32 = vcombine.high %v3693_v51, %v3693_v51  ;;  %v3701_v59 = vcombine.high %v3679_v57, %v3679_v57 }
 0x49f   : > { %18983 = vst [vmem:[#allocation280_spill] sm:$0xff] %v15940_v46  ;;  %9186 = vrot.lane.b32.xlu1 %v15940_v46, %s11826_s6  ;;  %v15955_v36 = vrot.slane %v2887_v28, %v12902_v7  ;;  %v15958_v56 = vrot.slane %v2885_v18, %v12902_v7  ;;  %v7656_v0 = vcombine.low %v7631_v16, %v7639_v52 }
 0x4a0   : > { %18984 = vst [vmem:[#allocation281_spill] sm:$0xff] %v15948_v55  ;;  %v7657_v9 = vcombine.high %v7631_v16, %v7639_v52  ;;  %v6701_v2 = vmul.f32 %v15948_v55, %v15613_v11  ;;  %v6828_v29 = vadd.f32 %v6700_v8, %v5932_v30  ;;  %v15967_v51 = vrot.slane %v3703_v32, %v12902_v7  ;;  %v15978_v52 = vpop.permute.xlu1 %5166 }
 0x4a1   : > { %18985 = vst [vmem:[#allocation282_spill] sm:$0xff] %v15955_v36  ;;  %18986 = vst [vmem:[#allocation283_spill] sm:$0xff] %v15958_v56  ;;  %v5935_v20 = vmul.f32 %v15955_v36, %v14442_v3  ;;  %v5934_v57 = vmul.f32 %v15958_v56, %v14427_v17  ;;  %v15972_v18 = vrot.slane %v3701_v59, %v12902_v7  ;;  %v19003_v56 = vld [vmem:[#allocation58_spill] sm:$0xff] }
 0x4a2   : > { %18987 = vst [vmem:[#allocation284_spill] sm:$0xff] %v15967_v51  ;;  %v7664_v16 = vrot.slane %v7656_v0, %v12929_v61  ;;  %v7671_v28 = vrot.slane %v7657_v9, %v12929_v61  ;;  %v6829_v11 = vadd.f32 %v6701_v2, %v5933_v63  ;;  %v8274_v30 = vcombine.high %v15801_v15, %v18519_v14  ;;  %v1958_v2 = vld [vmem:[#allocation2 + $0x120] sm:$0xff] }
 0x4a3   : > { %18988 = vst [vmem:[#allocation285_spill] sm:$0xff] %v15972_v18  ;;  %v6703_v3 = vmul.f32 %v15967_v51, %v15669_v47  ;;  %v6702_v8 = vmul.f32 %v15972_v18, %v15646_v48  ;;  %v8289_v17 = vcombine.high %v15809_v25, %v18519_v14  ;;  %v2840_v59 = vcombine.high %v15860_v26, %v15860_v26 }
 0x4a4   : > { %v7672_v9 = vcombine.low %v15852_v33, %v7664_v16  ;;  %v7673_v63 = vcombine.high %v15852_v33, %v7664_v16  ;;  %v7674_v15 = vcombine.low %v15855_v31, %v7671_v28  ;;  %v7675_v32 = vcombine.high %v15855_v31, %v7671_v28  ;;  %v15995_v16 = vpop.permute.xlu0 %5168 }
 0x4a5   : > { %v6831_v47 = vadd.f32 %v6703_v3, %v5935_v20  ;;  %v6830_v0 = vadd.f32 %v6702_v8, %v5934_v57  ;;  %v8288_v48 = vrot.slane %v8274_v30, %v12926_v60  ;;  %v8303_v25 = vrot.slane %v8289_v17, %v12926_v60  ;;  %v16003_v8 = vpop.permute.xlu1 %5170 }
 0x4a6   : > { %v7992_v51 = vmul.f32 0.088388346, %v7672_v9  ;;  %v7993_v26 = vmul.f32 0.088388346, %v7673_v63  ;;  %v7994_v18 = vmul.f32 0.088388346, %v7674_v15  ;;  %v2854_v33 = vrot.slane %v2840_v59, %v12910_v39 }
 0x4a7   : > { %v7995_v36 = vmul.f32 0.088388346, %v7675_v32  ;;  %v7684_v55 = vcombine.low %v6829_v11, %v6831_v47  ;;  %v7676_v31 = vcombine.low %v6828_v29, %v6830_v0  ;;  %v8320_v28 = vcombine.low %v8288_v48, %v8303_v25 }
 0x4a8   : > { %8056 = vst [vmem:[%s12283_s5 + $0x160] sm:$0xff] %v7992_v51  ;;  %8057 = vst [vmem:[%s12283_s5 + $0x168] sm:$0xff] %v7993_v26  ;;  %v2856_v20 = vcombine.high %v2854_v33, %v2854_v33  ;;  %v3656_v57 = vcombine.high %v15883_v10, %v15883_v10  ;;  %v2870_v30 = vrot.slane %v2854_v33, %v12910_v39  ;;  %v16034_v26 = vpop.permute.xlu0 %5172 }
 0x4a9   : > { %8058 = vst [vmem:[%s12283_s5 + $0x170] sm:$0xff] %v7994_v18  ;;  %v8321_v3 = vcombine.high %v8288_v48, %v8303_v25  ;;  %8059 = vst [vmem:[%s12283_s5 + $0x178] sm:$0xff] %v7995_v36  ;;  %v7691_v17 = vrot.slane %v7684_v55, %v12926_v60  ;;  %v7683_v59 = vrot.slane %v7676_v31, %v12926_v60  ;;  %v18994_v48 = vld [vmem:[#allocation171_spill] sm:$0xff] }
 0x4aa   : > { %v16009_v29 = vrot.slane %v8320_v28, %v12929_v61  ;;  %v16012_v51 = vadd.f32 %v15195_v24, %v1958_v2  ;;  %v2884_v18 = vrot.slane %v2856_v20, %v12910_v39  ;;  %v3670_v10 = vrot.slane %v3656_v57, %v12910_v39  ;;  %v1959_v2 = vld [vmem:[#allocation2 + $0x128] sm:$0xff] }
 0x4ab   : > { %v16017_v11 = vrot.slane %v2870_v30, %v12902_v7  ;;  %v16020_v9 = vrot.slane %v8321_v3, %v12929_v61  ;;  %v7708_v36 = vcombine.low %v7683_v59, %v7691_v17  ;;  %v7709_v55 = vcombine.high %v7683_v59, %v7691_v17 }
 0x4ac   : > { %18989 = vst [vmem:[#allocation286_spill] sm:$0xff] %v16009_v29  ;;  %v16024_v63 = vcombine.high %v16009_v29, %v18519_v14  ;;  %9188 = vrot.lane.b32.xlu0 %v16009_v29, %s11826_s6  ;;  %v2886_v15 = vcombine.high %v2870_v30, %v2870_v30  ;;  %v3672_v32 = vcombine.high %v3670_v10, %v3670_v10  ;;  %v18996_v30 = vld [vmem:[#allocation169_spill] sm:$0xff] }
 0x4ad   : > { %18990 = vst [vmem:[#allocation287_spill] sm:$0xff] %v16017_v11  ;;  %18991 = vst [vmem:[#allocation288_spill] sm:$0xff] %v16020_v9  ;;  %v16029_v47 = vrot.slane %v2884_v18, %v12902_v7  ;;  %v3686_v0 = vrot.slane %v3670_v10, %v12910_v39  ;;  %v5936_v25 = vmul.f32 %v16017_v11, %v18994_v48  ;;  %v16055_v10 = vld [vmem:[%s12273_s2 + $0x68] sm:$0xff] }
 0x4ae   : > { %18992 = vst [vmem:[#allocation289_spill] sm:$0xff] %v16024_v63  ;;  %v16037_v33 = vrot.slane %v7708_v36, %v12929_v61  ;;  %v16040_v31 = vrot.slane %v7709_v55, %v12929_v61  ;;  %9190 = vrot.lane.b32.xlu1 %v16024_v63, %s11826_s6  ;;  %v16046_v28 = vcombine.high %v16020_v9, %v18519_v14  ;;  %v16057_v36 = vpop.permute.xlu1 %5174 }
 0x4af   : > { %18993 = vst [vmem:[#allocation290_spill] sm:$0xff] %v16029_v47  ;;  %v2888_v20 = vcombine.high %v2884_v18, %v2884_v18  ;;  %v3700_v57 = vrot.slane %v3672_v32, %v12910_v39  ;;  %v5937_v3 = vmul.f32 %v16029_v47, %v18996_v30  ;;  %v16052_v17 = vrot.slane %v3686_v0, %v12902_v7 }
 0x4b0   : > { %18995 = vst [vmem:[#allocation171_spill] sm:$0xff] %v16046_v28  ;;  %v3702_v59 = vcombine.high %v3686_v0, %v3686_v0  ;;  %9192 = vrot.lane.b32.xlu0 %v16020_v9, %s11826_s6  ;;  %v16065_v18 = vrot.slane %v2886_v15, %v12902_v7  ;;  %v16068_v32 = vadd.f32 %v15206_v13, %v1959_v2  ;;  %v19002_v15 = vld [vmem:[#allocation183_spill] sm:$0xff] }
 0x4b1   : > { %18997 = vst [vmem:[#allocation169_spill] sm:$0xff] %v16052_v17  ;;  %v16062_v55 = vrot.slane %v2888_v20, %v12902_v7  ;;  %v8347_v48 = vrot.slane %v16012_v51, %v12926_v60  ;;  %v16073_v0 = vrot.slane %v3700_v57, %v12902_v7  ;;  %v6704_v30 = vmul.f32 %v16052_v17, %v15702_v50  ;;  %v16081_v20 = vld [vmem:[%s12281_s11 + $0x68] sm:$0xff] }
 0x4b2   : > { %18999 = vst [vmem:[#allocation292_spill] sm:$0xff] %v16065_v18  ;;  %v3704_v47 = vcombine.high %v3700_v57, %v3700_v57  ;;  %v16078_v11 = vrot.slane %v3702_v59, %v12902_v7  ;;  %9194 = vrot.lane.b32.xlu1 %v16046_v28, %s11826_s6  ;;  %v5938_v40 = vmul.f32 %v16065_v18, %v19003_v56 }
 0x4b3   : > { %18998 = vst [vmem:[#allocation291_spill] sm:$0xff] %v16062_v55  ;;  %19000 = vst [vmem:[#allocation293_spill] sm:$0xff] %v16073_v0  ;;  %v5939_v2 = vmul.f32 %v16062_v55, %v19002_v15  ;;  %v8362_v9 = vrot.slane %v16068_v32, %v12926_v60  ;;  %v2896_v50 = vrot.slane %v16055_v10, %v12910_v39  ;;  %v16100_v15 = vpop.permute.xlu0 %5176 }
 0x4b4   : > { %19001 = vst [vmem:[#allocation294_spill] sm:$0xff] %v16078_v11  ;;  %v6705_v57 = vmul.f32 %v16073_v0, %v15706_v27  ;;  %v6832_v59 = vadd.f32 %v6704_v30, %v5936_v25  ;;  %v16096_v17 = vrot.slane %v3704_v47, %v12902_v7  ;;  %v6706_v28 = vmul.f32 %v16078_v11, %v15744_v44  ;;  %v16107_v47 = vpop.permute.xlu1 %5178 }
 0x4b5   : > { %v8370_v55 = vcombine.low %v8347_v48, %v8362_v9  ;;  %v2904_v56 = vcombine.high %v2896_v50, %v2896_v50  ;;  %v3712_v18 = vrot.slane %v16081_v20, %v12910_v39  ;;  %v2912_v29 = vrot.slane %v2896_v50, %v12910_v39 }
 0x4b6   : > { %19004 = vst [vmem:[#allocation183_spill] sm:$0xff] %v16096_v17  ;;  %v6833_v63 = vadd.f32 %v6705_v57, %v5937_v3  ;;  %v6707_v27 = vmul.f32 %v16096_v17, %v15752_v42  ;;  %v6834_v25 = vadd.f32 %v6706_v28, %v5938_v40  ;;  %v8371_v30 = vcombine.high %v8347_v48, %v8362_v9  ;;  %v19011_v48 = vld [vmem:[#allocation57_spill] sm:$0xff] }
 0x4b7   : > { %v16110_v0 = vrot.slane %v8370_v55, %v12929_v61  ;;  %v2926_v44 = vrot.slane %v2904_v56, %v12910_v39  ;;  %v3720_v11 = vcombine.high %v3712_v18, %v3712_v18  ;;  %v3728_v21 = vrot.slane %v3712_v18, %v12910_v39 }
 0x4b8   : > { %v6835_v46 = vadd.f32 %v6707_v27, %v5939_v2  ;;  %v7692_v22 = vcombine.low %v6832_v59, %v6834_v25  ;;  %v16115_v50 = vrot.slane %v2912_v29, %v12902_v7  ;;  %v16118_v3 = vrot.slane %v8371_v30, %v12929_v61  ;;  %v16140_v59 = vpop.permute.xlu0 %5180 }
 0x4b9   : > { %19005 = vst [vmem:[#allocation58_spill] sm:$0xff] %v16110_v0  ;;  %v16122_v42 = vcombine.high %v16110_v0, %v18519_v14  ;;  %9196 = vrot.lane.b32.xlu0 %v16110_v0, %s11826_s6  ;;  %v3742_v40 = vrot.slane %v3720_v11, %v12910_v39  ;;  %v16128_v9 = vrot.slane %v2926_v44, %v12902_v7  ;;  %v19013_v11 = vld [vmem:[#allocation41_spill] sm:$0xff] }
 0x4ba   : > { %19006 = vst [vmem:[#allocation295_spill] sm:$0xff] %v16115_v50  ;;  %19007 = vst [vmem:[#allocation296_spill] sm:$0xff] %v16118_v3  ;;  %v16131_v28 = vrot.slane %v3728_v21, %v12902_v7  ;;  %v7700_v55 = vcombine.low %v6833_v63, %v6835_v46  ;;  %v7699_v18 = vrot.slane %v7692_v22, %v12926_v60 }
 0x4bb   : > { %19008 = vst [vmem:[#allocation297_spill] sm:$0xff] %v16122_v42  ;;  %19009 = vst [vmem:[#allocation298_spill] sm:$0xff] %v16128_v9  ;;  %v5940_v2 = vmul.f32 %v16115_v50, %v19011_v48  ;;  %v16138_v57 = vcombine.high %v16118_v3, %v18519_v14  ;;  %9198 = vrot.lane.b32.xlu1 %v16122_v42, %s11826_s6  ;;  %v5941_v56 = vmul.f32 %v16128_v9, %v19013_v11  ;;  %v16152_v50 = vpop.permute.xlu1 %5182 }
 0x4bc   : > { %19010 = vst [vmem:[#allocation299_spill] sm:$0xff] %v16131_v28  ;;  %v16147_v27 = vrot.slane %v3742_v40, %v12902_v7  ;;  %v6708_v22 = vmul.f32 %v16131_v28, %v15783_v62  ;;  %v2936_v46 = vcombine.high %v2926_v44, %v2926_v44  ;;  %v7707_v63 = vrot.slane %v7700_v55, %v12926_v60 }
 0x4bd   : > { %19012 = vst [vmem:[#allocation57_spill] sm:$0xff] %v16138_v57  ;;  %v3752_v25 = vcombine.high %v3742_v40, %v3742_v40  ;;  %v2934_v30 = vcombine.high %v2912_v29, %v2912_v29  ;;  %v3750_v48 = vcombine.high %v3728_v21, %v3728_v21  ;;  %9200 = vrot.lane.b32.xlu0 %v16118_v3, %s11826_s6 }
 0x4be   : > { %19014 = vst [vmem:[#allocation41_spill] sm:$0xff] %v16147_v27  ;;  %v6709_v17 = vmul.f32 %v16147_v27, %v15792_v5  ;;  %v6836_v0 = vadd.f32 %v6708_v22, %v5940_v2  ;;  %v16159_v11 = vrot.slane %v2936_v46, %v12902_v7  ;;  %v8340_v62 = vcombine.high %v16012_v51, %v18519_v14  ;;  %v19018_v5 = vld [vmem:[#allocation42_spill] sm:$0xff] }
 0x4bf   : > { %v7724_v44 = vcombine.low %v7699_v18, %v7707_v63  ;;  %v7725_v55 = vcombine.high %v7699_v18, %v7707_v63  ;;  %v16164_v29 = vrot.slane %v3752_v25, %v12902_v7  ;;  %v16167_v21 = vrot.slane %v2934_v30, %v12902_v7  ;;  %9202 = vrot.lane.b32.xlu1 %v16138_v57, %s11826_s6  ;;  %v19020_v25 = vld [vmem:[#allocation40_spill] sm:$0xff] }
 0x4c0   : > { %19015 = vst [vmem:[#allocation300_spill] sm:$0xff] %v16159_v11  ;;  %v6837_v40 = vadd.f32 %v6709_v17, %v5941_v56  ;;  %v5943_v2 = vmul.f32 %v16159_v11, %v19018_v5  ;;  %v16174_v22 = vrot.slane %v3750_v48, %v12902_v7  ;;  %v8354_v51 = vrot.slane %v8340_v62, %v12926_v60  ;;  %v16183_v56 = vpop.permute.xlu0 %5184 }
 0x4c1   : > { %19016 = vst [vmem:[#allocation301_spill] sm:$0xff] %v16164_v29  ;;  %19017 = vst [vmem:[#allocation302_spill] sm:$0xff] %v16167_v21  ;;  %v7732_v18 = vrot.slane %v7724_v44, %v12929_v61  ;;  %v7739_v46 = vrot.slane %v7725_v55, %v12929_v61  ;;  %v6711_v63 = vmul.f32 %v16164_v29, %v15834_v4 }
 0x4c2   : > { %19019 = vst [vmem:[#allocation42_spill] sm:$0xff] %v16174_v22  ;;  %v5942_v17 = vmul.f32 %v16167_v21, %v19020_v25  ;;  %v6710_v30 = vmul.f32 %v16174_v22, %v15816_v38  ;;  %v8355_v48 = vcombine.high %v16068_v32, %v18519_v14  ;;  %v2889_v62 = vcombine.high %v16055_v10, %v16055_v10  ;;  %v16197_v38 = vpop.permute.xlu1 %5186 }
 0x4c3   : > { %v3705_v44 = vcombine.high %v16081_v20, %v16081_v20  ;;  %v7740_v55 = vcombine.low %v16037_v33, %v7732_v18  ;;  %v7741_v4 = vcombine.high %v16037_v33, %v7732_v18  ;;  %v7742_v5 = vcombine.low %v16040_v31, %v7739_v46 }
 0x4c4   : > { %v7743_v25 = vcombine.high %v16040_v31, %v7739_v46  ;;  %v6839_v32 = vadd.f32 %v6711_v63, %v5943_v2  ;;  %v6838_v29 = vadd.f32 %v6710_v30, %v5942_v17  ;;  %v8369_v10 = vrot.slane %v8355_v48, %v12926_v60  ;;  %v16207_v17 = vpop.permute.xlu0 %5188 }
 0x4c5   : > { %v2903_v22 = vrot.slane %v2889_v62, %v12910_v39  ;;  %v7996_v20 = vmul.f32 0.088388346, %v7740_v55  ;;  %v7997_v11 = vmul.f32 0.088388346, %v7741_v4  ;;  %v7998_v27 = vmul.f32 0.088388346, %v7742_v5 }
 0x4c6   : > { %v3719_v33 = vrot.slane %v3705_v44, %v12910_v39  ;;  %v7999_v18 = vmul.f32 0.088388346, %v7743_v25  ;;  %v7752_v9 = vcombine.low %v6837_v40, %v6839_v32  ;;  %v7744_v21 = vcombine.low %v6836_v0, %v6838_v29  ;;  %v16223_v62 = vpop.permute.xlu1 %5190  ;;  %v19028_v4 = vld [vmem:[#allocation62_spill] sm:$0xff] }
 0x4c7   : > { %v8386_v28 = vcombine.low %v8354_v51, %v8369_v10  ;;  %8060 = vst [vmem:[%s12283_s5 + $0x180] sm:$0xff] %v7996_v20  ;;  %8061 = vst [vmem:[%s12283_s5 + $0x188] sm:$0xff] %v7997_v11  ;;  %v2905_v31 = vcombine.high %v2903_v22, %v2903_v22  ;;  %v2919_v46 = vrot.slane %v2903_v22, %v12910_v39  ;;  %v1966_v32 = vld [vmem:[#allocation2 + $0x160] sm:$0xff] }
 0x4c8   : > { %8062 = vst [vmem:[%s12283_s5 + $0x190] sm:$0xff] %v7998_v27  ;;  %v3721_v2 = vcombine.high %v3719_v33, %v3719_v33  ;;  %v3735_v63 = vrot.slane %v3719_v33, %v12910_v39  ;;  %8063 = vst [vmem:[%s12283_s5 + $0x198] sm:$0xff] %v7999_v18  ;;  %v7759_v30 = vrot.slane %v7752_v9, %v12926_v60 }
 0x4c9   : > { %v7751_v48 = vrot.slane %v7744_v21, %v12926_v60  ;;  %v16213_v40 = vrot.slane %v8386_v28, %v12929_v61  ;;  %v8387_v0 = vcombine.high %v8354_v51, %v8369_v10  ;;  %v2933_v11 = vrot.slane %v2905_v31, %v12910_v39  ;;  %v1967_v31 = vld [vmem:[#allocation2 + $0x168] sm:$0xff] }
 0x4ca   : > { %v3749_v27 = vrot.slane %v3721_v2, %v12910_v39  ;;  %v16218_v29 = vrot.slane %v2919_v46, %v12902_v7  ;;  %v16221_v22 = vrot.slane %v3735_v63, %v12902_v7  ;;  %v16257_v2 = vld [vmem:[%s12273_s2 + $0x70] sm:$0xff] }
 0x4cb   : > { %19021 = vst [vmem:[#allocation40_spill] sm:$0xff] %v16213_v40  ;;  %v7776_v44 = vcombine.low %v7751_v48, %v7759_v30  ;;  %v7777_v9 = vcombine.high %v7751_v48, %v7759_v30  ;;  %v16227_v28 = vcombine.high %v16213_v40, %v18519_v14  ;;  %9204 = vrot.lane.b32.xlu0 %v16213_v40, %s11826_s6  ;;  %v16272_v40 = vld [vmem:[%s12281_s11 + $0x70] sm:$0xff] }
 0x4cc   : > { %19022 = vst [vmem:[#allocation303_spill] sm:$0xff] %v16218_v29  ;;  %19023 = vst [vmem:[#allocation304_spill] sm:$0xff] %v16221_v22  ;;  %v16232_v21 = vrot.slane %v8387_v0, %v12929_v61  ;;  %v16235_v51 = vrot.slane %v2933_v11, %v12902_v7  ;;  %v16238_v55 = vrot.slane %v3749_v27, %v12902_v7 }
 0x4cd   : > { %19024 = vst [vmem:[#allocation305_spill] sm:$0xff] %v16227_v28  ;;  %v5944_v5 = vmul.f32 %v16218_v29, %v19028_v4  ;;  %v6712_v25 = vmul.f32 %v16221_v22, %v15869_v45  ;;  %v16245_v10 = vrot.slane %v7776_v44, %v12929_v61  ;;  %v16248_v20 = vrot.slane %v7777_v9, %v12929_v61  ;;  %v19030_v45 = vld [vmem:[#allocation190_spill] sm:$0xff]  ;;  %v16263_v9 = vpop.permute.xlu0 %5192 }
 0x4ce   : > { %19025 = vst [vmem:[#allocation306_spill] sm:$0xff] %v16232_v21  ;;  %19026 = vst [vmem:[#allocation307_spill] sm:$0xff] %v16235_v51  ;;  %9206 = vrot.lane.b32.xlu1 %v16227_v28, %s11826_s6  ;;  %v16254_v33 = vcombine.high %v16232_v21, %v18519_v14  ;;  %v2937_v18 = vcombine.high %v2933_v11, %v2933_v11  ;;  %v5945_v30 = vmul.f32 %v16235_v51, %v19030_v45 }
 0x4cf   : > { %19027 = vst [vmem:[#allocation308_spill] sm:$0xff] %v16238_v55  ;;  %v6713_v48 = vmul.f32 %v16238_v55, %v15892_v37  ;;  %v6840_v0 = vadd.f32 %v6712_v25, %v5944_v5  ;;  %v3753_v44 = vcombine.high %v3749_v27, %v3749_v27  ;;  %9208 = vrot.lane.b32.xlu0 %v16232_v21, %s11826_s6  ;;  %v16282_v5 = vpop.permute.xlu1 %5194  ;;  %v19036_v55 = vld [vmem:[#allocation189_spill] sm:$0xff] }
 0x4d0   : > { %19029 = vst [vmem:[#allocation62_spill] sm:$0xff] %v16254_v33  ;;  %v16268_v4 = vrot.slane %v2937_v18, %v12902_v7  ;;  %v2935_v11 = vcombine.high %v2919_v46, %v2919_v46  ;;  %v3751_v22 = vcombine.high %v3735_v63, %v3735_v63  ;;  %v2136_v29 = vadd.f32 %v15195_v24, %v1966_v32  ;;  %v19033_v46 = vld [vmem:[#allocation63_spill] sm:$0xff] }
 0x4d1   : > { %v6841_v45 = vadd.f32 %v6713_v48, %v5945_v30  ;;  %v16275_v51 = vrot.slane %v3753_v44, %v12902_v7  ;;  %v16278_v37 = vadd.f32 %v15206_v13, %v1967_v31  ;;  %v2945_v27 = vrot.slane %v16257_v2, %v12910_v39  ;;  %v16308_v28 = vpop.permute.xlu0 %9132 }
 0x4d2   : > { %19031 = vst [vmem:[#allocation190_spill] sm:$0xff] %v16268_v4  ;;  %9210 = vrot.lane.b32.xlu1 %v16254_v33, %s11826_s6  ;;  %v5947_v63 = vmul.f32 %v16268_v4, %v19033_v46  ;;  %v16289_v25 = vrot.slane %v2935_v11, %v12902_v7  ;;  %v16292_v32 = vrot.slane %v3751_v22, %v12902_v7 }
 0x4d3   : > { %19032 = vst [vmem:[#allocation309_spill] sm:$0xff] %v16275_v51  ;;  %v8413_v18 = vrot.slane %v2136_v29, %v12926_v60  ;;  %v6715_v31 = vmul.f32 %v16275_v51, %v15933_v35  ;;  %v8428_v30 = vrot.slane %v16278_v37, %v12926_v60  ;;  %v2953_v48 = vcombine.high %v2945_v27, %v2945_v27 }
 0x4d4   : > { %19034 = vst [vmem:[#allocation63_spill] sm:$0xff] %v16289_v25  ;;  %19035 = vst [vmem:[#allocation310_spill] sm:$0xff] %v16292_v32  ;;  %v3761_v44 = vrot.slane %v16272_v40, %v12910_v39  ;;  %v5946_v46 = vmul.f32 %v16289_v25, %v19036_v55  ;;  %v6714_v11 = vmul.f32 %v16292_v32, %v15916_v58 }
 0x4d5   : > { %v2961_v22 = vrot.slane %v2945_v27, %v12910_v39  ;;  %v8406_v4 = vcombine.high %v2136_v29, %v18519_v14  ;;  %v6843_v21 = vadd.f32 %v6715_v31, %v5947_v63  ;;  %v8436_v33 = vcombine.low %v8413_v18, %v8428_v30  ;;  %v16321_v63 = vpop.permute.xlu1 %9134 }
 0x4d6   : > { %v2975_v35 = vrot.slane %v2953_v48, %v12910_v39  ;;  %v3769_v51 = vcombine.high %v3761_v44, %v3761_v44  ;;  %v6842_v3 = vadd.f32 %v6714_v11, %v5946_v46  ;;  %v3777_v57 = vrot.slane %v3761_v44, %v12910_v39 }
 0x4d7   : > { %v16312_v42 = vrot.slane %v2961_v22, %v12902_v7  ;;  %v8437_v55 = vcombine.high %v8413_v18, %v8428_v30  ;;  %v7768_v25 = vcombine.low %v6841_v45, %v6843_v21  ;;  %v16315_v58 = vrot.slane %v8436_v33, %v12929_v61  ;;  %v19043_v33 = vld [vmem:[#allocation71_spill] sm:$0xff] }
 0x4d8   : > { %v3791_v29 = vrot.slane %v3769_v51, %v12910_v39  ;;  %v16319_v27 = vrot.slane %v2975_v35, %v12902_v7  ;;  %v7760_v31 = vcombine.low %v6840_v0, %v6842_v3  ;;  %v16326_v44 = vrot.slane %v3777_v57, %v12902_v7 }
 0x4d9   : > { %19037 = vst [vmem:[#allocation189_spill] sm:$0xff] %v16312_v42  ;;  %19038 = vst [vmem:[#allocation311_spill] sm:$0xff] %v16315_v58  ;;  %v5948_v48 = vmul.f32 %v16312_v42, %v14888_v1  ;;  %v16329_v18 = vrot.slane %v8437_v55, %v12929_v61  ;;  %v7775_v21 = vrot.slane %v7768_v25, %v12926_v60  ;;  %9212 = vrot.lane.b32.xlu0 %v16315_v58, %s11826_s6 }
 0x4da   : > { %19039 = vst [vmem:[#allocation312_spill] sm:$0xff] %v16319_v27  ;;  %19040 = vst [vmem:[#allocation313_spill] sm:$0xff] %v16326_v44  ;;  %v16334_v51 = vcombine.high %v16315_v58, %v18519_v14  ;;  %v5949_v3 = vmul.f32 %v16319_v27, %v19043_v33  ;;  %v16341_v1 = vrot.slane %v3791_v29, %v12902_v7  ;;  %v16354_v27 = vpop.permute.xlu0 %9136 }
 0x4db   : > { %19041 = vst [vmem:[#allocation314_spill] sm:$0xff] %v16329_v18  ;;  %v7767_v0 = vrot.slane %v7760_v31, %v12926_v60  ;;  %v6716_v45 = vmul.f32 %v16326_v44, %v15962_v34  ;;  %v16348_v25 = vcombine.high %v16329_v18, %v18519_v14  ;;  %v2985_v30 = vcombine.high %v2975_v35, %v2975_v35 }
 0x4dc   : > { %19042 = vst [vmem:[#allocation315_spill] sm:$0xff] %v16334_v51  ;;  %19044 = vst [vmem:[#allocation71_spill] sm:$0xff] %v16341_v1  ;;  %9214 = vrot.lane.b32.xlu1 %v16334_v51, %s11826_s6  ;;  %v6717_v46 = vmul.f32 %v16341_v1, %v15978_v52  ;;  %v3801_v11 = vcombine.high %v3791_v29, %v3791_v29  ;;  %v2983_v55 = vcombine.high %v2961_v22, %v2961_v22  ;;  %v16370_v22 = vpop.permute.xlu1 %9138 }
 0x4dd   : > { %19045 = vst [vmem:[#allocation316_spill] sm:$0xff] %v16348_v25  ;;  %v3799_v33 = vcombine.high %v3777_v57, %v3777_v57  ;;  %v7792_v31 = vcombine.low %v7767_v0, %v7775_v21  ;;  %v7793_v42 = vcombine.high %v7767_v0, %v7775_v21  ;;  %v6844_v32 = vadd.f32 %v6716_v45, %v5948_v48  ;;  %v19050_v21 = vld [vmem:[#allocation198_spill] sm:$0xff] }
 0x4de   : > { %v16357_v34 = vrot.slane %v2985_v30, %v12902_v7  ;;  %v6845_v44 = vadd.f32 %v6717_v46, %v5949_v3  ;;  %9216 = vrot.lane.b32.xlu0 %v16329_v18, %s11826_s6  ;;  %v16362_v35 = vrot.slane %v3801_v11, %v12902_v7  ;;  %v16365_v52 = vrot.slane %v2983_v55, %v12902_v7  ;;  %v19051_v30 = vld [vmem:[#allocation197_spill] sm:$0xff] }
 0x4df   : > { %v16368_v57 = vrot.slane %v3799_v33, %v12902_v7  ;;  %v7800_v29 = vrot.slane %v7792_v31, %v12929_v61  ;;  %v7807_v48 = vrot.slane %v7793_v42, %v12929_v61  ;;  %v8420_v0 = vrot.slane %v8406_v4, %v12926_v60 }
 0x4e0   : > { %19046 = vst [vmem:[#allocation317_spill] sm:$0xff] %v16357_v34  ;;  %19047 = vst [vmem:[#allocation318_spill] sm:$0xff] %v16362_v35  ;;  %v5951_v3 = vmul.f32 %v16357_v34, %v19050_v21  ;;  %9218 = vrot.lane.b32.xlu1 %v16348_v25, %s11826_s6  ;;  %v6719_v45 = vmul.f32 %v16362_v35, %v16003_v8  ;;  %v5950_v46 = vmul.f32 %v16365_v52, %v19051_v30  ;;  %v1974_v35 = vld [vmem:[#allocation2 + $0x1a0] sm:$0xff] }
 0x4e1   : > { %19048 = vst [vmem:[#allocation319_spill] sm:$0xff] %v16365_v52  ;;  %19049 = vst [vmem:[#allocation320_spill] sm:$0xff] %v16368_v57  ;;  %v6718_v11 = vmul.f32 %v16368_v57, %v15995_v16  ;;  %v8421_v42 = vcombine.high %v16278_v37, %v18519_v14  ;;  %v7808_v55 = vcombine.low %v16245_v10, %v7800_v29  ;;  %v1975_v37 = vld [vmem:[#allocation2 + $0x1a8] sm:$0xff]  ;;  %v16394_v57 = vpop.permute.xlu0 %9140  ;;  %v16466_v52 = vld [vmem:[%s12273_s2 + $0x78] sm:$0xff] }
 0x4e2   : > { %v7809_v33 = vcombine.high %v16245_v10, %v7800_v29  ;;  %v7810_v4 = vcombine.low %v16248_v20, %v7807_v48  ;;  %v7811_v31 = vcombine.high %v16248_v20, %v7807_v48  ;;  %v6847_v21 = vadd.f32 %v6719_v45, %v5951_v3 }
 0x4e3   : > { %v6846_v8 = vadd.f32 %v6718_v11, %v5950_v46  ;;  %v8435_v30 = vrot.slane %v8421_v42, %v12926_v60  ;;  %v2938_v16 = vcombine.high %v16257_v2, %v16257_v2  ;;  %v8000_v34 = vmul.f32 0.088388346, %v7808_v55  ;;  %v16398_v11 = vpop.permute.xlu1 %9142 }
 0x4e4   : > { %v8001_v10 = vmul.f32 0.088388346, %v7809_v33  ;;  %v8002_v29 = vmul.f32 0.088388346, %v7810_v4  ;;  %v3754_v20 = vcombine.high %v16272_v40, %v16272_v40  ;;  %v8003_v48 = vmul.f32 0.088388346, %v7811_v31 }
 0x4e5   : > { %v7820_v3 = vcombine.low %v6845_v44, %v6847_v21  ;;  %v7812_v45 = vcombine.low %v6844_v32, %v6846_v8  ;;  %v8452_v46 = vcombine.low %v8420_v0, %v8435_v30  ;;  %8064 = vst [vmem:[%s12283_s5 + $0x1a0] sm:$0xff] %v8000_v34  ;;  %v2952_v2 = vrot.slane %v2938_v16, %v12910_v39 }
 0x4e6   : > { %8065 = vst [vmem:[%s12283_s5 + $0x1a8] sm:$0xff] %v8001_v10  ;;  %8066 = vst [vmem:[%s12283_s5 + $0x1b0] sm:$0xff] %v8002_v29  ;;  %v3768_v42 = vrot.slane %v3754_v20, %v12910_v39  ;;  %v8453_v55 = vcombine.high %v8420_v0, %v8435_v30  ;;  %v2144_v33 = vadd.f32 %v15195_v24, %v1974_v35 }
 0x4e7   : > { %8067 = vst [vmem:[%s12283_s5 + $0x1b8] sm:$0xff] %v8003_v48  ;;  %v7827_v4 = vrot.slane %v7820_v3, %v12926_v60  ;;  %v7819_v40 = vrot.slane %v7812_v45, %v12926_v60  ;;  %v16410_v32 = vrot.slane %v8452_v46, %v12929_v61  ;;  %v16413_v44 = vadd.f32 %v15206_v13, %v1975_v37  ;;  %v16426_v37 = vpop.permute.xlu0 %9144 }
 0x4e8   : > { %v2954_v34 = vcombine.high %v2952_v2, %v2952_v2  ;;  %v3770_v31 = vcombine.high %v3768_v42, %v3768_v42  ;;  %v2968_v21 = vrot.slane %v2952_v2, %v12910_v39  ;;  %v3784_v8 = vrot.slane %v3768_v42, %v12910_v39  ;;  %v16448_v42 = vpop.permute.xlu1 %9146 }
 0x4e9   : > { %19052 = vst [vmem:[#allocation198_spill] sm:$0xff] %v16410_v32  ;;  %v7844_v0 = vcombine.low %v7819_v40, %v7827_v4  ;;  %v7845_v30 = vcombine.high %v7819_v40, %v7827_v4  ;;  %v16419_v35 = vcombine.high %v16410_v32, %v18519_v14  ;;  %9220 = vrot.lane.b32.xlu0 %v16410_v32, %s11826_s6  ;;  %v19060_v40 = vld [vmem:[#allocation77_spill] sm:$0xff]  ;;  %v16469_v32 = vld [vmem:[%s12281_s11 + $0x78] sm:$0xff] }
 0x4ea   : > { %v16424_v16 = vrot.slane %v8453_v55, %v12929_v61  ;;  %v2982_v10 = vrot.slane %v2954_v34, %v12910_v39  ;;  %v3798_v29 = vrot.slane %v3770_v31, %v12910_v39  ;;  %v16431_v20 = vrot.slane %v2968_v21, %v12902_v7 }
 0x4eb   : > { %19053 = vst [vmem:[#allocation197_spill] sm:$0xff] %v16419_v35  ;;  %v16434_v48 = vrot.slane %v3784_v8, %v12902_v7  ;;  %v16437_v3 = vrot.slane %v7844_v0, %v12929_v61  ;;  %v16440_v45 = vrot.slane %v7845_v30, %v12929_v61  ;;  %9222 = vrot.lane.b32.xlu1 %v16419_v35, %s11826_s6  ;;  %v19062_v35 = vld [vmem:[#allocation203_spill] sm:$0xff] }
 0x4ec   : > { %19054 = vst [vmem:[#allocation321_spill] sm:$0xff] %v16424_v16  ;;  %19055 = vst [vmem:[#allocation322_spill] sm:$0xff] %v16431_v20  ;;  %v16446_v46 = vcombine.high %v16424_v16, %v18519_v14  ;;  %v2984_v2 = vcombine.high %v2968_v21, %v2968_v21  ;;  %v16451_v55 = vrot.slane %v2982_v10, %v12902_v7 }
 0x4ed   : > { %19056 = vst [vmem:[#allocation323_spill] sm:$0xff] %v16434_v48  ;;  %v16454_v4 = vrot.slane %v3798_v29, %v12902_v7  ;;  %v5952_v34 = vmul.f32 %v16431_v20, %v19060_v40  ;;  %v6720_v31 = vmul.f32 %v16434_v48, %v16034_v26  ;;  %9224 = vrot.lane.b32.xlu0 %v16424_v16, %s11826_s6 }
 0x4ee   : > { %19057 = vst [vmem:[#allocation324_spill] sm:$0xff] %v16446_v46  ;;  %19058 = vst [vmem:[#allocation325_spill] sm:$0xff] %v16451_v55  ;;  %v2986_v0 = vcombine.high %v2982_v10, %v2982_v10  ;;  %v3802_v30 = vcombine.high %v3798_v29, %v3798_v29  ;;  %v3800_v21 = vcombine.high %v3784_v8, %v3784_v8  ;;  %v19065_v29 = vld [vmem:[#allocation204_spill] sm:$0xff] }
 0x4ef   : > { %19059 = vst [vmem:[#allocation326_spill] sm:$0xff] %v16454_v4  ;;  %v16463_v1 = vrot.slane %v2984_v2, %v12902_v7  ;;  %v5953_v18 = vmul.f32 %v16451_v55, %v19062_v35  ;;  %v6721_v40 = vmul.f32 %v16454_v4, %v16057_v36  ;;  %v6848_v26 = vadd.f32 %v6720_v31, %v5952_v34  ;;  %v16489_v55 = vpop.permute.xlu0 %9148 }
 0x4f0   : > { %v8479_v48 = vrot.slane %v2144_v33, %v12926_v60  ;;  %9226 = vrot.lane.b32.xlu1 %v16446_v46, %s11826_s6  ;;  %v16479_v8 = vrot.slane %v2986_v0, %v12902_v7  ;;  %v16482_v10 = vrot.slane %v3802_v30, %v12902_v7  ;;  %v16487_v35 = vrot.slane %v3800_v21, %v12902_v7  ;;  %v19067_v30 = vld [vmem:[#allocation206_spill] sm:$0xff] }
 0x4f1   : > { %19061 = vst [vmem:[#allocation77_spill] sm:$0xff] %v16463_v1  ;;  %v5954_v2 = vmul.f32 %v16463_v1, %v19065_v29  ;;  %v6849_v36 = vadd.f32 %v6721_v40, %v5953_v18  ;;  %v8494_v34 = vrot.slane %v16413_v44, %v12926_v60  ;;  %v2994_v31 = vrot.slane %v16466_v52, %v12910_v39  ;;  %v16504_v40 = vpop.permute.xlu1 %9150 }
 0x4f2   : > { %19063 = vst [vmem:[#allocation203_spill] sm:$0xff] %v16479_v8  ;;  %19064 = vst [vmem:[#allocation327_spill] sm:$0xff] %v16482_v10  ;;  %v3810_v0 = vrot.slane %v16469_v32, %v12910_v39  ;;  %v5955_v4 = vmul.f32 %v16479_v8, %v19067_v30  ;;  %v6723_v29 = vmul.f32 %v16482_v10, %v16107_v47 }
 0x4f3   : > { %19066 = vst [vmem:[#allocation204_spill] sm:$0xff] %v16487_v35  ;;  %v6722_v21 = vmul.f32 %v16487_v35, %v16100_v15  ;;  %v8472_v18 = vcombine.high %v2144_v33, %v18519_v14  ;;  %v8502_v1 = vcombine.low %v8479_v48, %v8494_v34  ;;  %v3002_v20 = vcombine.high %v2994_v31, %v2994_v31 }
 0x4f4   : > { %v3818_v16 = vcombine.high %v3810_v0, %v3810_v0  ;;  %v3010_v46 = vrot.slane %v2994_v31, %v12910_v39  ;;  %v6851_v58 = vadd.f32 %v6723_v29, %v5955_v4  ;;  %v3826_v51 = vrot.slane %v3810_v0, %v12910_v39  ;;  %v19075_v0 = vld [vmem:[#allocation214_spill] sm:$0xff] }
 0x4f5   : > { %v6850_v25 = vadd.f32 %v6722_v21, %v5954_v2  ;;  %v8503_v30 = vcombine.high %v8479_v48, %v8494_v34  ;;  %v16509_v8 = vrot.slane %v8502_v1, %v12929_v61  ;;  %v3024_v47 = vrot.slane %v3002_v20, %v12910_v39  ;;  %v16522_v2 = vpop.permute.xlu0 %9152  ;;  %v16546_v31 = vpop.permute.xlu1 %9154 }
 0x4f6   : > { %v3840_v15 = vrot.slane %v3818_v16, %v12910_v39  ;;  %v16514_v33 = vrot.slane %v3010_v46, %v12902_v7  ;;  %v7836_v10 = vcombine.low %v6849_v36, %v6851_v58  ;;  %v16517_v53 = vrot.slane %v3826_v51, %v12902_v7 }
 0x4f7   : > { %19068 = vst [vmem:[#allocation206_spill] sm:$0xff] %v16509_v8  ;;  %v7828_v35 = vcombine.low %v6848_v26, %v6850_v25  ;;  %v16520_v4 = vrot.slane %v8503_v30, %v12929_v61  ;;  %v16526_v1 = vcombine.high %v16509_v8, %v18519_v14  ;;  %9228 = vrot.lane.b32.xlu0 %v16509_v8, %s11826_s6  ;;  %v19074_v25 = vld [vmem:[#allocation211_spill] sm:$0xff] }
 0x4f8   : > { %19069 = vst [vmem:[#allocation328_spill] sm:$0xff] %v16514_v33  ;;  %19070 = vst [vmem:[#allocation329_spill] sm:$0xff] %v16517_v53  ;;  %v16531_v16 = vrot.slane %v3024_v47, %v12902_v7  ;;  %v16534_v58 = vrot.slane %v3840_v15, %v12902_v7  ;;  %v5956_v20 = vmul.f32 %v16514_v33, %v19074_v25 }
 0x4f9   : > { %19071 = vst [vmem:[#allocation330_spill] sm:$0xff] %v16526_v1  ;;  %v7843_v48 = vrot.slane %v7836_v10, %v12926_v60  ;;  %v7835_v26 = vrot.slane %v7828_v35, %v12926_v60  ;;  %v6724_v36 = vmul.f32 %v16517_v53, %v16140_v59  ;;  %v16544_v34 = vcombine.high %v16520_v4, %v18519_v14 }
 0x4fa   : > { %19072 = vst [vmem:[#allocation331_spill] sm:$0xff] %v16531_v16  ;;  %19073 = vst [vmem:[#allocation332_spill] sm:$0xff] %v16534_v58  ;;  %9230 = vrot.lane.b32.xlu1 %v16526_v1, %s11826_s6  ;;  %v5957_v29 = vmul.f32 %v16531_v16, %v19075_v0  ;;  %v6725_v10 = vmul.f32 %v16534_v58, %v16152_v50  ;;  %v3034_v21 = vcombine.high %v3024_v47, %v3024_v47 }
 0x4fb   : > { %v3850_v35 = vcombine.high %v3840_v15, %v3840_v15  ;;  %v7860_v30 = vcombine.low %v7835_v26, %v7843_v48  ;;  %v7861_v25 = vcombine.high %v7835_v26, %v7843_v48  ;;  %v6852_v59 = vadd.f32 %v6724_v36, %v5956_v20  ;;  %9232 = vrot.lane.b32.xlu0 %v16520_v4, %s11826_s6  ;;  %v16568_v15 = vpop.permute.xlu0 %9156  ;;  %v19079_v20 = vld [vmem:[#allocation113_spill] sm:$0xff] }
 0x4fc   : > { %v3032_v53 = vcombine.high %v3010_v46, %v3010_v46  ;;  %v6853_v33 = vadd.f32 %v6725_v10, %v5957_v29  ;;  %v16557_v8 = vrot.slane %v3034_v21, %v12902_v7  ;;  %v3848_v0 = vcombine.high %v3826_v51, %v3826_v51  ;;  %v16585_v21 = vpop.permute.xlu1 %9158 }
 0x4fd   : > { %v16560_v1 = vrot.slane %v3850_v35, %v12902_v7  ;;  %v7868_v16 = vrot.slane %v7860_v30, %v12929_v61  ;;  %v7875_v50 = vrot.slane %v7861_v25, %v12929_v61  ;;  %v8486_v46 = vrot.slane %v8472_v18, %v12926_v60 }
 0x4fe   : > { %19076 = vst [vmem:[#allocation211_spill] sm:$0xff] %v16557_v8  ;;  %v16565_v47 = vrot.slane %v3032_v53, %v12902_v7  ;;  %9234 = vrot.lane.b32.xlu1 %v16544_v34, %s11826_s6  ;;  %v5959_v48 = vmul.f32 %v16557_v8, %v19079_v20  ;;  %v16577_v26 = vrot.slane %v3848_v0, %v12902_v7  ;;  %v1982_v0 = vld [vmem:[#allocation2 + $0x1e0] sm:$0xff] }
 0x4ff   : > { %19077 = vst [vmem:[#allocation214_spill] sm:$0xff] %v16560_v1  ;;  %v6727_v51 = vmul.f32 %v16560_v1, %v16197_v38  ;;  %v8487_v53 = vcombine.high %v16413_v44, %v18519_v14  ;;  %v7876_v36 = vcombine.low %v16437_v3, %v7868_v16  ;;  %v7877_v18 = vcombine.high %v16437_v3, %v7868_v16  ;;  %v19081_v38 = vld [vmem:[#allocation213_spill] sm:$0xff]  ;;  %v1983_v3 = vld [vmem:[#allocation2 + $0x1e8] sm:$0xff] }
 0x500   : > { %19078 = vst [vmem:[#allocation333_spill] sm:$0xff] %v16565_v47  ;;  %19080 = vst [vmem:[#allocation113_spill] sm:$0xff] %v16577_v26  ;;  %v7878_v29 = vcombine.low %v16440_v45, %v7875_v50  ;;  %v7879_v10 = vcombine.high %v16440_v45, %v7875_v50  ;;  %v5958_v30 = vmul.f32 %v16565_v47, %v19081_v38 }
 0x501   : > { %v6855_v35 = vadd.f32 %v6727_v51, %v5959_v48  ;;  %v6726_v44 = vmul.f32 %v16577_v26, %v16183_v56  ;;  %v8501_v25 = vrot.slane %v8487_v53, %v12926_v60  ;;  %v8004_v16 = vmul.f32 0.088388346, %v7876_v36  ;;  %v19090_v26 = vld [vmem:[#allocation219_spill] sm:$0xff] }
 0x502   : > { %v8005_v20 = vmul.f32 0.088388346, %v7877_v18  ;;  %v8006_v45 = vmul.f32 0.088388346, %v7878_v29  ;;  %v2987_v50 = vcombine.high %v16466_v52, %v16466_v52  ;;  %v8007_v1 = vmul.f32 0.088388346, %v7879_v10  ;;  %v16603_v18 = vpop.permute.xlu0 %9160 }
 0x503   : > { %v7888_v48 = vcombine.low %v6853_v33, %v6855_v35  ;;  %v6854_v51 = vadd.f32 %v6726_v44, %v5958_v30  ;;  %v8518_v8 = vcombine.low %v8486_v46, %v8501_v25  ;;  %8068 = vst [vmem:[%s12283_s5 + $0x1c0] sm:$0xff] %v8004_v16  ;;  %v3803_v53 = vcombine.high %v16469_v32, %v16469_v32  ;;  %v16620_v44 = vpop.permute.xlu1 %9162 }
 0x504   : > { %8069 = vst [vmem:[%s12283_s5 + $0x1c8] sm:$0xff] %v8005_v20  ;;  %8070 = vst [vmem:[%s12283_s5 + $0x1d0] sm:$0xff] %v8006_v45  ;;  %v3001_v56 = vrot.slane %v2987_v50, %v12910_v39  ;;  %v8519_v38 = vcombine.high %v8486_v46, %v8501_v25  ;;  %v16601_v36 = vadd.f32 %v15195_v24, %v1982_v0 }
 0x505   : > { %8071 = vst [vmem:[%s12283_s5 + $0x1d8] sm:$0xff] %v8007_v1  ;;  %v16607_v52 = vrot.slane %v7888_v48, %v12926_v60  ;;  %v7880_v33 = vcombine.low %v6852_v59, %v6854_v51  ;;  %v16610_v29 = vrot.slane %v8518_v8, %v12929_v61  ;;  %v16613_v10 = vadd.f32 %v15206_v13, %v1983_v3 }
 0x506   : > { %v3003_v35 = vcombine.high %v3001_v56, %v3001_v56  ;;  %v3817_v32 = vrot.slane %v3803_v53, %v12910_v39  ;;  %v3017_v46 = vrot.slane %v3001_v56, %v12910_v39  ;;  %v16618_v30 = vrot.slane %v8519_v38, %v12929_v61  ;;  %v19088_v53 = vld [vmem:[#allocation39_spill] sm:$0xff] }
 0x507   : > { %19082 = vst [vmem:[#allocation213_spill] sm:$0xff] %v16610_v29  ;;  %v16623_v1 = vrot.slane %v7880_v33, %v12926_v60  ;;  %v16627_v8 = vcombine.high %v16610_v29, %v18519_v14  ;;  %9236 = vrot.lane.b32.xlu0 %v16610_v29, %s11826_s6  ;;  %v8545_v59 = vrot.slane %v16601_v36, %v12926_v60  ;;  %v16673_v29 = vpop.permute.xlu1 %9166 }
 0x508   : > { %19083 = vst [vmem:[#allocation334_spill] sm:$0xff] %v16618_v30  ;;  %v3031_v25 = vrot.slane %v3003_v35, %v12910_v39  ;;  %v3819_v0 = vcombine.high %v3817_v32, %v3817_v32  ;;  %v3833_v3 = vrot.slane %v3817_v32, %v12910_v39  ;;  %v16636_v16 = vrot.slane %v3017_v46, %v12902_v7  ;;  %v16657_v35 = vpop.permute.xlu0 %9164 }
 0x509   : > { %19084 = vst [vmem:[#allocation335_spill] sm:$0xff] %v16627_v8  ;;  %v7912_v20 = vcombine.low %v16623_v1, %v16607_v52  ;;  %9238 = vrot.lane.b32.xlu1 %v16627_v8, %s11826_s6  ;;  %v16644_v45 = vcombine.high %v16618_v30, %v18519_v14  ;;  %v3033_v50 = vcombine.high %v3017_v46, %v3017_v46 }
 0x50a   : > { %19085 = vst [vmem:[#allocation336_spill] sm:$0xff] %v16636_v16  ;;  %v8560_v48 = vrot.slane %v16613_v10, %v12926_v60  ;;  %v3847_v51 = vrot.slane %v3819_v0, %v12910_v39  ;;  %v16650_v56 = vrot.slane %v3031_v25, %v12902_v7  ;;  %v5960_v38 = vmul.f32 %v16636_v16, %v19088_v53 }
 0x50b   : > { %19086 = vst [vmem:[#allocation337_spill] sm:$0xff] %v16644_v45  ;;  %v16655_v33 = vrot.slane %v3833_v3, %v12902_v7  ;;  %v7913_v32 = vcombine.high %v16623_v1, %v16607_v52  ;;  %v16662_v46 = vrot.slane %v7912_v20, %v12929_v61  ;;  %9240 = vrot.lane.b32.xlu0 %v16618_v30, %s11826_s6  ;;  %v19098_v30 = vld [vmem:[#allocation220_spill] sm:$0xff] }
 0x50c   : > { %19087 = vst [vmem:[#allocation338_spill] sm:$0xff] %v16650_v56  ;;  %v3035_v39 = vcombine.high %v3031_v25, %v3031_v25  ;;  %v3849_v0 = vcombine.high %v3833_v3, %v3833_v3  ;;  %v5961_v58 = vmul.f32 %v16650_v56, %v19090_v26  ;;  %v16669_v53 = vrot.slane %v3847_v51, %v12902_v7  ;;  %v19097_v56 = vld [vmem:[#allocation129_spill] sm:$0xff] }
 0x50d   : > { %19089 = vst [vmem:[#allocation39_spill] sm:$0xff] %v16655_v33  ;;  %v6728_v16 = vmul.f32 %v16655_v33, %v16207_v17  ;;  %v3851_v47 = vcombine.high %v3847_v51, %v3847_v51  ;;  %9242 = vrot.lane.b32.xlu1 %v16644_v45, %s11826_s6  ;;  %v16681_v1 = vrot.slane %v3033_v50, %v12902_v7  ;;  %v19096_v51 = vld [vmem:[#allocation105_spill] sm:$0xff] }
 0x50e   : > { %19091 = vst [vmem:[#allocation219_spill] sm:$0xff] %v16669_v53  ;;  %v16678_v52 = vrot.slane %v3035_v39, %v12902_v7  ;;  %v16684_v26 = vrot.slane %v3849_v0, %v12902_v7  ;;  %v8568_v25 = vcombine.low %v8545_v59, %v8560_v48  ;;  %v6729_v3 = vmul.f32 %v16669_v53, %v16223_v62  ;;  %v19099_v45 = vld [vmem:[#allocation217_spill] sm:$0xff] }
 0x50f   : > { %19093 = vst [vmem:[#allocation340_spill] sm:$0xff] %v16681_v1  ;;  %v6856_v17 = vadd.f32 %v6728_v16, %v5960_v38  ;;  %v16689_v20 = vrot.slane %v3851_v47, %v12902_v7  ;;  %v9389_v33 = vmul.f32 %v19097_v56, %v19096_v51  ;;  %v5962_v50 = vmul.f32 %v16681_v1, %v19099_v45  ;;  %v19100_v47 = vld [vmem:[#allocation107_spill] sm:$0xff]  ;;  %v19101_v56 = vld [vmem:[#allocation66_spill] sm:$0xff] }
 0x510   : > { %19092 = vst [vmem:[#allocation339_spill] sm:$0xff] %v16678_v52  ;;  %19094 = vst [vmem:[#allocation341_spill] sm:$0xff] %v16684_v26  ;;  %v5963_v39 = vmul.f32 %v16678_v52, %v19098_v30  ;;  %v6730_v0 = vmul.f32 %v16684_v26, %v16263_v9  ;;  %v16700_v8 = vrot.slane %v8568_v25, %v12929_v61  ;;  %v19102_v38 = vld [vmem:[#allocation118_spill] sm:$0xff]  ;;  %v16708_v30 = vpop.permute.xlu0 %9168  ;;  %v19103_v9 = vld [vmem:[#allocation73_spill] sm:$0xff] }
 0x511   : > { %19095 = vst [vmem:[#allocation342_spill] sm:$0xff] %v16689_v20  ;;  %v6857_v62 = vadd.f32 %v6729_v3, %v5961_v58  ;;  %v6731_v7 = vmul.f32 %v16689_v20, %v16282_v5  ;;  %v9517_v16 = vmul.f32 %v16321_v63, %v19100_v47  ;;  %v9388_v51 = vmul.f32 %v19102_v38, %v19101_v56  ;;  %v19104_v63 = vld [vmem:[#allocation79_spill] sm:$0xff]  ;;  %v19105_v47 = vld [vmem:[#allocation230_spill] sm:$0xff] }
 0x512   : > { %v6858_v52 = vadd.f32 %v6730_v0, %v5962_v50  ;;  %v16712_v45 = vcombine.high %v16700_v8, %v18519_v14  ;;  %9244 = vrot.lane.b32.xlu0 %v16700_v8, %s11826_s6  ;;  %v9516_v58 = vmul.f32 %v16308_v28, %v19103_v9  ;;  %v8569_v5 = vcombine.high %v8545_v59, %v8560_v48  ;;  %v19106_v56 = vld [vmem:[#allocation82_spill] sm:$0xff]  ;;  %v16722_v50 = vpop.permute.xlu1 %9170  ;;  %v19107_v28 = vld [vmem:[#allocation65_spill] sm:$0xff]  ;;  %v19108_v59 = vld [vmem:[#allocation227_spill] sm:$0xff] }
 0x513   : > { %v6859_v25 = vadd.f32 %v6731_v7, %v5963_v39  ;;  %v9645_v3 = vadd.f32 %v9517_v16, %v9389_v33  ;;  %v9391_v20 = vmul.f32 %v19105_v47, %v19104_v63  ;;  %v9519_v38 = vmul.f32 %v16370_v22, %v19106_v56  ;;  %v19109_v7 = vld [vmem:[#allocation76_spill] sm:$0xff] }
 0x514   : > { %v7896_v0 = vcombine.low %v6856_v17, %v6858_v52  ;;  %9246 = vrot.lane.b32.xlu1 %v16712_v45, %s11826_s6  ;;  %v9644_v26 = vadd.f32 %v9516_v58, %v9388_v51  ;;  %v16727_v53 = vrot.slane %v8569_v5, %v12929_v61  ;;  %v9390_v48 = vmul.f32 %v19108_v59, %v19107_v28  ;;  %v19112_v56 = vld [vmem:[#allocation88_spill] sm:$0xff] }
 0x515   : > { %v7904_v33 = vcombine.low %v6857_v62, %v6859_v25  ;;  %v9647_v39 = vadd.f32 %v9519_v38, %v9391_v20  ;;  %v9518_v16 = vmul.f32 %v16354_v27, %v19109_v7  ;;  %v8538_v22 = vcombine.high %v16601_v36, %v18519_v14  ;;  %v19110_v62 = vld [vmem:[#allocation87_spill] sm:$0xff]  ;;  %v16748_v25 = vpop.permute.xlu0 %9172  ;;  %v19113_v38 = vld [vmem:[#allocation80_spill] sm:$0xff] }
 0x516   : > { %v7903_v52 = vrot.slane %v7896_v0, %v12926_v60  ;;  %v16738_v17 = vcombine.high %v16727_v53, %v18519_v14  ;;  %9248 = vrot.lane.b32.xlu0 %v16727_v53, %s11826_s6  ;;  %v8553_v51 = vcombine.high %v16613_v10, %v18519_v14  ;;  %v19111_v20 = vld [vmem:[#allocation235_spill] sm:$0xff]  ;;  %v7927_v63 = vrot.slane %v7913_v32, %v12929_v61  ;;  %v16760_v7 = vpop.permute.xlu1 %9174 }
 0x517   : > { %v9393_v9 = vmul.f32 %v19111_v20, %v19110_v62  ;;  %v7911_v27 = vrot.slane %v7904_v33, %v12926_v60  ;;  %v9780_v58 = vcombine.low %v9645_v3, %v9647_v39  ;;  %v9646_v5 = vadd.f32 %v9518_v16, %v9390_v48  ;;  %v19114_v0 = vld [vmem:[#allocation131_spill] sm:$0xff]  ;;  %v19115_v33 = vld [vmem:[#allocation84_spill] sm:$0xff] }
 0x518   : > { %v8552_v36 = vrot.slane %v8538_v22, %v12926_v60  ;;  %9250 = vrot.lane.b32.xlu1 %v16738_v17, %s11826_s6  ;;  %v8567_v47 = vrot.slane %v8553_v51, %v12926_v60  ;;  %v9521_v10 = vmul.f32 %v16398_v11, %v19112_v56  ;;  %v9392_v28 = vmul.f32 %v19114_v0, %v19113_v38  ;;  %v19116_v56 = vld [vmem:[#allocation94_spill] sm:$0xff]  ;;  %v19117_v38 = vld [vmem:[#allocation237_spill] sm:$0xff] }
 0x519   : > { %v7928_v59 = vcombine.low %v7903_v52, %v7911_v27  ;;  %v7929_v3 = vcombine.high %v7903_v52, %v7911_v27  ;;  %v9772_v48 = vcombine.low %v9644_v26, %v9646_v5  ;;  %v9520_v39 = vmul.f32 %v16394_v57, %v19115_v33  ;;  %v19118_v27 = vld [vmem:[#allocation97_spill] sm:$0xff] }
 0x51a   : > { %v9787_v32 = vrot.slane %v9780_v58, %v12926_v60  ;;  %v8584_v16 = vcombine.low %v8552_v36, %v8567_v47  ;;  %v9649_v22 = vadd.f32 %v9521_v10, %v9393_v9  ;;  %v8585_v62 = vcombine.high %v8552_v36, %v8567_v47  ;;  %v19119_v9 = vld [vmem:[#allocation86_spill] sm:$0xff]  ;;  %v19120_v5 = vld [vmem:[#allocation233_spill] sm:$0xff] }
 0x51b   : > { %v7936_v51 = vrot.slane %v7928_v59, %v12929_v61  ;;  %v7943_v11 = vrot.slane %v7929_v3, %v12929_v61  ;;  %v9779_v20 = vrot.slane %v9772_v48, %v12926_v60  ;;  %v9395_v52 = vmul.f32 %v19117_v38, %v19116_v56  ;;  %v1990_v3 = vld [vmem:[#allocation2 + $0x220] sm:$0xff]  ;;  %v16780_v48 = vpop.permute.xlu0 %9176  ;;  %v1991_v56 = vld [vmem:[#allocation2 + $0x228] sm:$0xff] }
 0x51c   : > { %v16769_v26 = vrot.slane %v8584_v16, %v12929_v61  ;;  %v16772_v57 = vrot.slane %v8585_v62, %v12929_v61  ;;  %v9523_v58 = vmul.f32 %v16448_v42, %v19118_v27  ;;  %v9394_v36 = vmul.f32 %v19120_v5, %v19119_v9  ;;  %v19124_v9 = vld [vmem:[#allocation244_spill] sm:$0xff] }
 0x51d   : > { %v7944_v47 = vcombine.low %v16662_v46, %v7936_v51  ;;  %v7945_v10 = vcombine.high %v16662_v46, %v7936_v51  ;;  %v7946_v0 = vcombine.low %v7927_v63, %v7943_v11  ;;  %v7947_v59 = vcombine.high %v7927_v63, %v7943_v11  ;;  %v19121_v11 = vld [vmem:[#allocation89_spill] sm:$0xff] }
 0x51e   : > { %v9804_v33 = vcombine.low %v9779_v20, %v9787_v32  ;;  %v16784_v16 = vcombine.high %v16769_v26, %v18519_v14  ;;  %9252 = vrot.lane.b32.xlu0 %v16769_v26, %s11826_s6  ;;  %v9648_v42 = vadd.f32 %v9520_v39, %v9392_v28  ;;  %v9651_v62 = vadd.f32 %v9523_v58, %v9395_v52  ;;  %v16790_v20 = vpop.permute.xlu1 %9178 }
 0x51f   : > { %v8008_v46 = vmul.f32 0.088388346, %v7944_v47  ;;  %v8009_v51 = vmul.f32 0.088388346, %v7945_v10  ;;  %v8010_v63 = vmul.f32 0.088388346, %v7946_v0  ;;  %v9522_v32 = vmul.f32 %v16426_v37, %v19121_v11 }
 0x520   : > { %v8011_v38 = vmul.f32 0.088388346, %v7947_v59  ;;  %9254 = vrot.lane.b32.xlu1 %v16784_v16, %s11826_s6  ;;  %v16796_v27 = vcombine.high %v16772_v57, %v18519_v14  ;;  %v9796_v28 = vcombine.low %v9649_v22, %v9651_v62  ;;  %v2160_v39 = vadd.f32 %v15195_v24, %v1990_v3  ;;  %v19123_v37 = vld [vmem:[#allocation103_spill] sm:$0xff]  ;;  %v19125_v47 = vld [vmem:[#allocation104_spill] sm:$0xff]  ;;  %v19126_v59 = vld [vmem:[#allocation98_spill] sm:$0xff] }
 0x521   : > { %8072 = vst [vmem:[%s12283_s5 + $0x1e0] sm:$0xff] %v8008_v46  ;;  %8073 = vst [vmem:[%s12283_s5 + $0x1e8] sm:$0xff] %v8009_v51  ;;  %v9650_v52 = vadd.f32 %v9522_v32, %v9394_v36  ;;  %v2161_v58 = vadd.f32 %v15206_v13, %v1991_v56  ;;  %v9397_v5 = vmul.f32 %v19124_v9, %v19123_v37  ;;  %v19127_v3 = vld [vmem:[#allocation145_spill] sm:$0xff]  ;;  %v19128_v36 = vld [vmem:[#allocation99_spill] sm:$0xff] }
 0x522   : > { %19122 = vst [vmem:[#allocation105_spill] sm:$0xff] %v16796_v27  ;;  %8074 = vst [vmem:[%s12283_s5 + $0x1f0] sm:$0xff] %v8010_v63  ;;  %v9525_v10 = vmul.f32 %v16504_v40, %v19125_v47  ;;  %v9811_v0 = vrot.slane %v9804_v33, %v12929_v61  ;;  %9256 = vrot.lane.b32.xlu0 %v16772_v57, %s11826_s6  ;;  %v8611_v22 = vrot.slane %v2160_v39, %v12926_v60  ;;  %v19129_v40 = vld [vmem:[#allocation106_spill] sm:$0xff]  ;;  %v19130_v11 = vld [vmem:[#allocation153_spill] sm:$0xff]  ;;  %v16820_v33 = vpop.permute.xlu0 %9180 }
 0x523   : > { %8075 = vst [vmem:[%s12283_s5 + $0x1f8] sm:$0xff] %v8011_v38  ;;  %v9396_v62 = vmul.f32 %v19127_v3, %v19126_v59  ;;  %v9524_v56 = vmul.f32 %v16489_v55, %v19128_v36  ;;  %v9803_v46 = vrot.slane %v9796_v28, %v12926_v60  ;;  %v9788_v51 = vcombine.low %v9648_v42, %v9650_v52  ;;  %v19131_v37 = vld [vmem:[#allocation110_spill] sm:$0xff]  ;;  %v19132_v47 = vld [vmem:[#allocation101_spill] sm:$0xff] }
 0x524   : > { %v8626_v63 = vrot.slane %v2161_v58, %v12926_v60  ;;  %v9399_v32 = vmul.f32 %v19130_v11, %v19129_v40  ;;  %9258 = vrot.lane.b32.xlu1 %v16796_v27, %s11826_s6  ;;  %v9653_v38 = vadd.f32 %v9525_v10, %v9397_v5  ;;  %v9527_v9 = vmul.f32 %v16546_v31, %v19131_v37  ;;  %v19133_v59 = vld [vmem:[#allocation157_spill] sm:$0xff]  ;;  %v19134_v3 = vld [vmem:[#allocation102_spill] sm:$0xff]  ;;  %v16832_v11 = vpop.permute.xlu1 %9182 }
 0x525   : > { %v9398_v55 = vmul.f32 %v19133_v59, %v19132_v47  ;;  %v9526_v42 = vmul.f32 %v16522_v2, %v19134_v3  ;;  %v9795_v28 = vrot.slane %v9788_v51, %v12926_v60  ;;  %v8604_v40 = vcombine.high %v2160_v39, %v18519_v14  ;;  %v19136_v59 = vld [vmem:[#allocation156_spill] sm:$0xff] }
 0x526   : > { %v8634_v52 = vcombine.low %v8611_v22, %v8626_v63  ;;  %v8635_v36 = vcombine.high %v8611_v22, %v8626_v63  ;;  %v9652_v1 = vadd.f32 %v9524_v56, %v9396_v62  ;;  %v9655_v27 = vadd.f32 %v9527_v9, %v9399_v32  ;;  %v19135_v63 = vld [vmem:[#allocation119_spill] sm:$0xff] }
 0x527   : > { %v9654_v5 = vadd.f32 %v9526_v42, %v9398_v55  ;;  %v8619_v10 = vcombine.high %v2161_v58, %v18519_v14  ;;  %v9812_v31 = vcombine.low %v9795_v28, %v9803_v46  ;;  %v8618_v2 = vrot.slane %v8604_v40, %v12926_v60  ;;  %v19137_v46 = vld [vmem:[#allocation120_spill] sm:$0xff]  ;;  %v19138_v9 = vld [vmem:[#allocation115_spill] sm:$0xff] }
 0x528   : > { %v16836_v37 = vrot.slane %v8634_v52, %v12929_v61  ;;  %v16839_v47 = vrot.slane %v8635_v36, %v12929_v61  ;;  %v9830_v51 = vcombine.low %v9653_v38, %v9655_v27  ;;  %v9401_v62 = vmul.f32 %v19136_v59, %v19135_v63  ;;  %v19139_v27 = vld [vmem:[#allocation160_spill] sm:$0xff]  ;;  %v16856_v38 = vpop.permute.xlu0 %9184 }
 0x529   : > { %v9822_v22 = vcombine.low %v9652_v1, %v9654_v5  ;;  %v8633_v39 = vrot.slane %v8619_v10, %v12926_v60  ;;  %v9819_v56 = vrot.slane %v9812_v31, %v12929_v61  ;;  %v9529_v32 = vmul.f32 %v16585_v21, %v19137_v46  ;;  %v19140_v21 = vld [vmem:[#allocation117_spill] sm:$0xff]  ;;  %v1998_v10 = vld [vmem:[#allocation2 + $0x260] sm:$0xff]  ;;  %v16868_v31 = vpop.permute.xlu1 %9186 }
 0x52a   : > { %v16848_v58 = vcombine.high %v16836_v37, %v18519_v14  ;;  %9260 = vrot.lane.b32.xlu0 %v16836_v37, %s11826_s6  ;;  %v9400_v1 = vmul.f32 %v19139_v27, %v19138_v9  ;;  %v16860_v55 = vcombine.high %v16839_v47, %v18519_v14  ;;  %v9837_v3 = vrot.slane %v9830_v51, %v12926_v60  ;;  %v19141_v51 = vld [vmem:[#allocation125_spill] sm:$0xff]  ;;  %v19143_v9 = vld [vmem:[#allocation126_spill] sm:$0xff] }
 0x52b   : > { %v9829_v42 = vrot.slane %v9822_v22, %v12926_v60  ;;  %v8650_v28 = vcombine.low %v8618_v2, %v8633_v39  ;;  %v9820_v52 = vcombine.low %v9811_v0, %v9819_v56  ;;  %v9821_v36 = vcombine.high %v9811_v0, %v9819_v56  ;;  %v19142_v46 = vld [vmem:[#allocation253_spill] sm:$0xff]  ;;  %v1999_v56 = vld [vmem:[#allocation2 + $0x268] sm:$0xff]  ;;  %v19145_v27 = vld [vmem:[#allocation250_spill] sm:$0xff] }
 0x52c   : > { %9262 = vrot.lane.b32.xlu1 %v16848_v58, %s11826_s6  ;;  %v9528_v40 = vmul.f32 %v16568_v15, %v19140_v21  ;;  %v8651_v5 = vcombine.high %v8618_v2, %v8633_v39  ;;  %v9403_v22 = vmul.f32 %v19142_v46, %v19141_v51  ;;  %v9531_v0 = vmul.f32 %v16620_v44, %v19143_v9  ;;  %v19144_v39 = vld [vmem:[#allocation123_spill] sm:$0xff]  ;;  %v19148_v46 = vld [vmem:[#allocation132_spill] sm:$0xff] }
 0x52d   : > { %v9854_v63 = vcombine.low %v9829_v42, %v9837_v3  ;;  %v16871_v59 = vrot.slane %v8650_v28, %v12929_v61  ;;  %10572 = vst [vmem:[%s12285_s16] sm:$0xff] %v9820_v52  ;;  %10573 = vst [vmem:[%s12285_s16 + $0x8] sm:$0xff] %v9821_v36  ;;  %v9657_v15 = vadd.f32 %v9529_v32, %v9401_v62  ;;  %v19146_v42 = vld [vmem:[#allocation124_spill] sm:$0xff] }
 0x52e   : > { %9264 = vrot.lane.b32.xlu0 %v16839_v47, %s11826_s6  ;;  %v9656_v2 = vadd.f32 %v9528_v40, %v9400_v1  ;;  %v9402_v3 = vmul.f32 %v19145_v27, %v19144_v39  ;;  %v9530_v28 = vmul.f32 %v16603_v18, %v19146_v42  ;;  %v16889_v51 = vrot.slane %v8651_v5, %v12929_v61  ;;  %v19147_v18 = vld [vmem:[#allocation130_spill] sm:$0xff]  ;;  %v16901_v40 = vpop.permute.xlu0 %9188  ;;  %v19150_v39 = vld [vmem:[#allocation128_spill] sm:$0xff]  ;;  %v19152_v42 = vld [vmem:[#allocation137_spill] sm:$0xff] }
 0x52f   : > { %v16886_v21 = vrot.slane %v9854_v63, %v12929_v61  ;;  %v9659_v44 = vadd.f32 %v9531_v0, %v9403_v22  ;;  %v2168_v52 = vadd.f32 %v15195_v24, %v1998_v10  ;;  %v16896_v62 = vcombine.high %v16871_v59, %v18519_v14  ;;  %v19149_v22 = vld [vmem:[#allocation127_spill] sm:$0xff]  ;;  %v19151_v27 = vld [vmem:[#allocation136_spill] sm:$0xff] }
 0x530   : > { %9266 = vrot.lane.b32.xlu1 %v16860_v55, %s11826_s6  ;;  %v9658_v32 = vadd.f32 %v9530_v28, %v9402_v3  ;;  %v2169_v1 = vadd.f32 %v15206_v13, %v1999_v56  ;;  %v9405_v36 = vmul.f32 %v15724_v19, %v19147_v18  ;;  %v9533_v10 = vmul.f32 %v16673_v29, %v19148_v46  ;;  %v16915_v3 = vpop.permute.xlu1 %9190 }
 0x531   : > { %v9846_v5 = vcombine.low %v9657_v15, %v9659_v44  ;;  %v8677_v63 = vrot.slane %v2168_v52, %v12926_v60  ;;  %v9404_v9 = vmul.f32 %v15709_v54, %v19149_v22  ;;  %v9532_v19 = vmul.f32 %v16657_v35, %v19150_v39  ;;  %v19154_v22 = vld [vmem:[#allocation138_spill] sm:$0xff] }
 0x532   : > { %9268 = vrot.lane.b32.xlu0 %v16871_v59, %s11826_s6  ;;  %v9838_v0 = vcombine.low %v9656_v2, %v9658_v32  ;;  %v8692_v56 = vrot.slane %v2169_v1, %v12926_v60  ;;  %v9407_v15 = vmul.f32 %v15742_v6, %v19151_v27  ;;  %v16919_v29 = vcombine.high %v16889_v51, %v18519_v14  ;;  %v19153_v2 = vld [vmem:[#allocation135_spill] sm:$0xff] }
 0x533   : > { %v9853_v54 = vrot.slane %v9846_v5, %v12926_v60  ;;  %v9535_v28 = vmul.f32 %v16722_v50, %v19152_v42  ;;  %v9406_v44 = vmul.f32 %v15720_v12, %v19153_v2  ;;  %v9661_v32 = vadd.f32 %v9533_v10, %v9405_v36  ;;  %v16941_v36 = vpop.permute.xlu0 %9192 }
 0x534   : > { %9270 = vrot.lane.b32.xlu1 %v16896_v62, %s11826_s6  ;;  %v9845_v35 = vrot.slane %v9838_v0, %v12926_v60  ;;  %v8700_v6 = vcombine.low %v8677_v63, %v8692_v56  ;;  %v8701_v18 = vcombine.high %v8677_v63, %v8692_v56  ;;  %v9534_v39 = vmul.f32 %v16708_v30, %v19154_v22  ;;  %v2006_v22 = vld [vmem:[#allocation2 + $0x2a0] sm:$0xff] }
 0x535   : > { %v9663_v46 = vadd.f32 %v9535_v28, %v9407_v15  ;;  %v8670_v5 = vcombine.high %v2168_v52, %v18519_v14  ;;  %v8685_v27 = vcombine.high %v2169_v1, %v18519_v14  ;;  %v9660_v42 = vadd.f32 %v9532_v19, %v9404_v9  ;;  %v19155_v9 = vld [vmem:[#allocation147_spill] sm:$0xff]  ;;  %v19156_v15 = vld [vmem:[#allocation148_spill] sm:$0xff]  ;;  %v16956_v28 = vpop.permute.xlu1 %9194 }
 0x536   : > { %9272 = vrot.lane.b32.xlu0 %v16889_v51, %s11826_s6  ;;  %v9862_v12 = vcombine.low %v9845_v35, %v9853_v54  ;;  %v16936_v50 = vrot.slane %v8700_v6, %v12929_v61  ;;  %v16939_v0 = vrot.slane %v8701_v18, %v12929_v61  ;;  %v9662_v10 = vadd.f32 %v9534_v39, %v9406_v44  ;;  %v19157_v6 = vld [vmem:[#allocation144_spill] sm:$0xff] }
 0x537   : > { %v9880_v63 = vcombine.low %v9661_v32, %v9663_v46  ;;  %v8684_v30 = vrot.slane %v8670_v5, %v12926_v60  ;;  %v8699_v52 = vrot.slane %v8685_v27, %v12926_v60  ;;  %v9409_v19 = vmul.f32 %v15821_v23, %v19155_v9  ;;  %v19158_v23 = vld [vmem:[#allocation146_spill] sm:$0xff] }
 0x538   : > { %9274 = vrot.lane.b32.xlu1 %v16919_v29, %s11826_s6  ;;  %v9869_v1 = vrot.slane %v9862_v12, %v12929_v61  ;;  %v16950_v56 = vcombine.high %v16936_v50, %v18519_v14  ;;  %v9537_v54 = vmul.f32 %v16760_v7, %v19156_v15  ;;  %v9872_v44 = vcombine.low %v9660_v42, %v9662_v10  ;;  %v19159_v12 = vld [vmem:[#allocation150_spill] sm:$0xff]  ;;  %v2007_v42 = vld [vmem:[#allocation2 + $0x2a8] sm:$0xff]  ;;  %v19161_v10 = vld [vmem:[#allocation149_spill] sm:$0xff] }
 0x539   : > { %v9887_v2 = vrot.slane %v9880_v63, %v12926_v60  ;;  %v8716_v35 = vcombine.low %v8684_v30, %v8699_v52  ;;  %v9408_v32 = vmul.f32 %v15806_v41, %v19157_v6  ;;  %v9536_v7 = vmul.f32 %v16748_v25, %v19158_v23  ;;  %v19160_v25 = vld [vmem:[#allocation152_spill] sm:$0xff]  ;;  %v19165_v23 = vld [vmem:[#allocation162_spill] sm:$0xff] }
 0x53a   : > { %v9870_v18 = vcombine.low %v16886_v21, %v9869_v1  ;;  %v9871_v46 = vcombine.high %v16886_v21, %v9869_v1  ;;  %9276 = vrot.lane.b32.xlu0 %v16936_v50, %s11826_s6  ;;  %v9879_v39 = vrot.slane %v9872_v44, %v12926_v60  ;;  %v8717_v27 = vcombine.high %v8684_v30, %v8699_v52  ;;  %v19162_v30 = vld [vmem:[#allocation151_spill] sm:$0xff] }
 0x53b   : > { %v16969_v5 = vrot.slane %v8716_v35, %v12929_v61  ;;  %v9411_v41 = vmul.f32 %v15840_v43, %v19159_v12  ;;  %v16979_v21 = vcombine.high %v16939_v0, %v18519_v14  ;;  %v9539_v63 = vmul.f32 %v16790_v20, %v19160_v25  ;;  %v16987_v43 = vpop.permute.xlu0 %9196 }
 0x53c   : > { %10574 = vst [vmem:[%s12285_s16 + $0x10] sm:$0xff] %v9870_v18  ;;  %10575 = vst [vmem:[%s12285_s16 + $0x18] sm:$0xff] %v9871_v46  ;;  %9278 = vrot.lane.b32.xlu1 %v16950_v56, %s11826_s6  ;;  %v9410_v1 = vmul.f32 %v15814_v49, %v19161_v10  ;;  %v9538_v52 = vmul.f32 %v16780_v48, %v19162_v30  ;;  %v9904_v9 = vcombine.low %v9879_v39, %v9887_v2  ;;  %v16997_v46 = vpop.permute.xlu1 %9198  ;;  %v19164_v2 = vld [vmem:[#allocation275_spill] sm:$0xff]  ;;  %v19170_v30 = vld [vmem:[#allocation280_spill] sm:$0xff] }
 0x53d   : > { %v9665_v15 = vadd.f32 %v9537_v54, %v9409_v19  ;;  %v9664_v44 = vadd.f32 %v9536_v7, %v9408_v32  ;;  %v2176_v35 = vadd.f32 %v15195_v24, %v2006_v22  ;;  %v16994_v6 = vcombine.high %v16969_v5, %v18519_v14  ;;  %v19163_v54 = vld [vmem:[#allocation155_spill] sm:$0xff] }
 0x53e   : > { %9280 = vrot.lane.b32.xlu0 %v16939_v0, %s11826_s6  ;;  %v9667_v20 = vadd.f32 %v9539_v63, %v9411_v41  ;;  %v9666_v18 = vadd.f32 %v9538_v52, %v9410_v1  ;;  %v2177_v49 = vadd.f32 %v15206_v13, %v2007_v42  ;;  %v17000_v48 = vrot.slane %v8717_v27, %v12929_v61  ;;  %v19166_v42 = vld [vmem:[#allocation154_spill] sm:$0xff]  ;;  %v19168_v63 = vld [vmem:[#allocation159_spill] sm:$0xff]  ;;  %v19169_v1 = vld [vmem:[#allocation161_spill] sm:$0xff] }
 0x53f   : > { %v8743_v19 = vrot.slane %v2176_v35, %v12926_v60  ;;  %v9413_v32 = vmul.f32 %v19164_v2, %v19163_v54  ;;  %v9541_v7 = vmul.f32 %v16832_v11, %v19165_v23  ;;  %v9911_v22 = vrot.slane %v9904_v9, %v12929_v61  ;;  %v19167_v27 = vld [vmem:[#allocation274_spill] sm:$0xff]  ;;  %v19171_v54 = vld [vmem:[#allocation165_spill] sm:$0xff] }
 0x540   : > { %9282 = vrot.lane.b32.xlu1 %v16979_v21, %s11826_s6  ;;  %v9896_v39 = vcombine.low %v9665_v15, %v9667_v20  ;;  %v9888_v12 = vcombine.low %v9664_v44, %v9666_v18  ;;  %v8758_v41 = vrot.slane %v2177_v49, %v12926_v60  ;;  %v9412_v25 = vmul.f32 %v19167_v27, %v19166_v42  ;;  %v17023_v18 = vpop.permute.xlu0 %9200  ;;  %v19173_v42 = vld [vmem:[#allocation277_spill] sm:$0xff] }
 0x541   : > { %v9540_v10 = vmul.f32 %v16820_v33, %v19168_v63  ;;  %v9415_v52 = vmul.f32 %v19170_v30, %v19169_v1  ;;  %v9543_v11 = vmul.f32 %v16868_v31, %v19171_v54  ;;  %v9669_v2 = vadd.f32 %v9541_v7, %v9413_v32  ;;  %v19172_v33 = vld [vmem:[#allocation164_spill] sm:$0xff]  ;;  %v19174_v63 = vld [vmem:[#allocation166_spill] sm:$0xff]  ;;  %v17039_v7 = vpop.permute.xlu1 %9202 }
 0x542   : > { %9284 = vrot.lane.b32.xlu0 %v16969_v5, %s11826_s6  ;;  %v9903_v9 = vrot.slane %v9896_v39, %v12926_v60  ;;  %v9895_v15 = vrot.slane %v9888_v12, %v12926_v60  ;;  %v8766_v44 = vcombine.low %v8743_v19, %v8758_v41  ;;  %v8767_v20 = vcombine.high %v8743_v19, %v8758_v41 }
 0x543   : > { %v9671_v23 = vadd.f32 %v9543_v11, %v9415_v52  ;;  %v9414_v27 = vmul.f32 %v19173_v42, %v19172_v33  ;;  %v9542_v1 = vmul.f32 %v16856_v38, %v19174_v63  ;;  %v17033_v31 = vcombine.high %v17000_v48, %v18519_v14  ;;  %v19182_v33 = vld [vmem:[#allocation172_spill] sm:$0xff]  ;;  %v19183_v42 = vld [vmem:[#allocation286_spill] sm:$0xff]  ;;  %v19184_v63 = vld [vmem:[#allocation173_spill] sm:$0xff] }
 0x544   : > { %9286 = vrot.lane.b32.xlu1 %v16994_v6, %s11826_s6  ;;  %v9912_v39 = vcombine.low %v9895_v15, %v9903_v9  ;;  %v17036_v19 = vrot.slane %v8766_v44, %v12929_v61  ;;  %v8736_v32 = vcombine.high %v2176_v35, %v18519_v14  ;;  %v9668_v12 = vadd.f32 %v9540_v10, %v9412_v25  ;;  %v19178_v9 = vld [vmem:[#allocation174_spill] sm:$0xff]  ;;  %v19179_v15 = vld [vmem:[#allocation289_spill] sm:$0xff]  ;;  %v19181_v44 = vld [vmem:[#allocation175_spill] sm:$0xff] }
 0x545   : > { %19175 = vst [vmem:[#allocation129_spill] sm:$0xff] %v17033_v31  ;;  %v9930_v41 = vcombine.low %v9669_v2, %v9671_v23  ;;  %v9670_v30 = vadd.f32 %v9542_v1, %v9414_v27  ;;  %v8751_v38 = vcombine.high %v2177_v49, %v18519_v14  ;;  %v17046_v54 = vrot.slane %v8767_v20, %v12929_v61 }
 0x546   : > { %19176 = vst [vmem:[#allocation220_spill] sm:$0xff] %v17036_v19  ;;  %9288 = vrot.lane.b32.xlu0 %v17000_v48, %s11826_s6  ;;  %v9919_v52 = vrot.slane %v9912_v39, %v12929_v61  ;;  %v8750_v11 = vrot.slane %v8736_v32, %v12926_v60  ;;  %v9417_v35 = vmul.f32 %v19179_v15, %v19178_v9  ;;  %v17064_v39 = vpop.permute.xlu0 %9204  ;;  %v2015_v9 = vld [vmem:[#allocation2 + $0x2e8] sm:$0xff] }
 0x547   : > { %19177 = vst [vmem:[#allocation217_spill] sm:$0xff] %v17046_v54  ;;  %v17053_v25 = vcombine.high %v17036_v19, %v18519_v14  ;;  %v9922_v10 = vcombine.low %v9668_v12, %v9670_v30  ;;  %v8765_v49 = vrot.slane %v8751_v38, %v12926_v60  ;;  %v9545_v2 = vmul.f32 %v16915_v3, %v19181_v44  ;;  %v2014_v3 = vld [vmem:[#allocation2 + $0x2e0] sm:$0xff]  ;;  %v19187_v44 = vld [vmem:[#allocation179_spill] sm:$0xff] }
 0x548   : > { %9290 = vrot.lane.b32.xlu1 %v17033_v31, %s11826_s6  ;;  %v9920_v20 = vcombine.low %v9911_v22, %v9919_v52  ;;  %v9921_v23 = vcombine.high %v9911_v22, %v9919_v52  ;;  %v9416_v27 = vmul.f32 %v19183_v42, %v19182_v33  ;;  %v9544_v1 = vmul.f32 %v16901_v40, %v19184_v63  ;;  %v19185_v22 = vld [vmem:[#allocation178_spill] sm:$0xff]  ;;  %v19186_v52 = vld [vmem:[#allocation171_spill] sm:$0xff]  ;;  %v19188_v33 = vld [vmem:[#allocation176_spill] sm:$0xff]  ;;  %v9207_v63 = vpop.permute.xlu1 %9206 }
 0x549   : > { %19180 = vst [vmem:[#allocation107_spill] sm:$0xff] %v17053_v25  ;;  %v9937_v32 = vrot.slane %v9930_v41, %v12926_v60  ;;  %v9929_v12 = vrot.slane %v9922_v10, %v12926_v60  ;;  %v8782_v30 = vcombine.low %v8750_v11, %v8765_v49  ;;  %v8783_v38 = vcombine.high %v8750_v11, %v8765_v49  ;;  %v19189_v42 = vld [vmem:[#allocation288_spill] sm:$0xff]  ;;  %v19194_v31 = vld [vmem:[#allocation297_spill] sm:$0xff] }
 0x54a   : > { %10576 = vst [vmem:[%s12285_s16 + $0x20] sm:$0xff] %v9920_v20  ;;  %10577 = vst [vmem:[%s12285_s16 + $0x28] sm:$0xff] %v9921_v23  ;;  %9292 = vrot.lane.b32.xlu0 %v17036_v19, %s11826_s6  ;;  %v9419_v15 = vmul.f32 %v19186_v52, %v19185_v22  ;;  %v9547_v40 = vmul.f32 %v16956_v28, %v19187_v44  ;;  %v9418_v41 = vmul.f32 %v19189_v42, %v19188_v33  ;;  %v19191_v20 = vld [vmem:[#allocation177_spill] sm:$0xff] }
 0x54b   : > { %v17080_v11 = vcombine.high %v17046_v54, %v18519_v14  ;;  %v17083_v10 = vrot.slane %v8782_v30, %v12929_v61  ;;  %v9673_v49 = vadd.f32 %v9545_v2, %v9417_v35  ;;  %v9546_v23 = vmul.f32 %v16941_v36, %v19191_v20  ;;  %v19193_v30 = vld [vmem:[#allocation83_spill] sm:$0xff]  ;;  %v19200_v20 = vld [vmem:[#allocation58_spill] sm:$0xff] }
 0x54c   : > { %9294 = vrot.lane.b32.xlu1 %v17053_v25, %s11826_s6  ;;  %v9672_v22 = vadd.f32 %v9544_v1, %v9416_v27  ;;  %v9675_v28 = vadd.f32 %v9547_v40, %v9419_v15  ;;  %v2184_v52 = vadd.f32 %v15195_v24, %v2014_v3  ;;  %v2185_v44 = vadd.f32 %v15206_v13, %v2015_v9  ;;  %v19195_v1 = vld [vmem:[#allocation182_spill] sm:$0xff]  ;;  %v9209_v9 = vpop.permute.xlu0 %9208  ;;  %v19198_v15 = vld [vmem:[#allocation57_spill] sm:$0xff] }
 0x54d   : > { %19190 = vst [vmem:[#allocation66_spill] sm:$0xff] %v17080_v11  ;;  %v9954_v33 = vcombine.low %v9929_v12, %v9937_v32  ;;  %v17092_v42 = vrot.slane %v8783_v38, %v12929_v61  ;;  %v9674_v19 = vadd.f32 %v9546_v23, %v9418_v41  ;;  %v9421_v35 = vmul.f32 %v19194_v31, %v19193_v30  ;;  %v19197_v38 = vld [vmem:[#allocation93_spill] sm:$0xff]  ;;  %v9211_v30 = vpop.permute.xlu1 %9210 }
 0x54e   : > { %9296 = vrot.lane.b32.xlu0 %v17046_v54, %s11826_s6  ;;  %v9946_v36 = vcombine.low %v9673_v49, %v9675_v28  ;;  %v8809_v2 = vrot.slane %v2184_v52, %v12926_v60  ;;  %v8824_v27 = vrot.slane %v2185_v44, %v12926_v60  ;;  %v9549_v3 = vmul.f32 %v16997_v46, %v19195_v1  ;;  %v19199_v49 = vld [vmem:[#allocation81_spill] sm:$0xff]  ;;  %v19201_v28 = vld [vmem:[#allocation184_spill] sm:$0xff] }
 0x54f   : > { %19192 = vst [vmem:[#allocation118_spill] sm:$0xff] %v17092_v42  ;;  %v17104_v32 = vcombine.high %v17083_v10, %v18519_v14  ;;  %v9938_v12 = vcombine.low %v9672_v22, %v9674_v19  ;;  %v9423_v31 = vmul.f32 %v19198_v15, %v19197_v38  ;;  %v9420_v23 = vmul.f32 %v19200_v20, %v19199_v49  ;;  %v19202_v22 = vld [vmem:[#allocation91_spill] sm:$0xff]  ;;  %v19203_v15 = vld [vmem:[#allocation185_spill] sm:$0xff]  ;;  %v19204_v54 = vld [vmem:[#allocation296_spill] sm:$0xff] }
 0x550   : > { %9298 = vrot.lane.b32.xlu1 %v17080_v11, %s11826_s6  ;;  %v9953_v40 = vrot.slane %v9946_v36, %v12926_v60  ;;  %v8832_v41 = vcombine.low %v8809_v2, %v8824_v27  ;;  %v9548_v46 = vmul.f32 %v16987_v43, %v19201_v28  ;;  %v9961_v1 = vrot.slane %v9954_v33, %v12929_v61  ;;  %v19206_v43 = vld [vmem:[#allocation96_spill] sm:$0xff] }
 0x551   : > { %19196 = vst [vmem:[#allocation73_spill] sm:$0xff] %v17104_v32  ;;  %v9945_v19 = vrot.slane %v9938_v12, %v12926_v60  ;;  %v9551_v38 = vmul.f32 %v17039_v7, %v19202_v22  ;;  %v9422_v11 = vmul.f32 %v19204_v54, %v19203_v15  ;;  %v17125_v36 = vcombine.high %v17092_v42, %v18519_v14 }
 0x552   : > { %9300 = vrot.lane.b32.xlu0 %v17083_v10, %s11826_s6  ;;  %v9677_v49 = vadd.f32 %v9549_v3, %v9421_v35  ;;  %v9550_v20 = vmul.f32 %v17023_v18, %v19206_v43  ;;  %v8802_v33 = vcombine.high %v2184_v52, %v18519_v14  ;;  %v8833_v28 = vcombine.high %v8809_v2, %v8824_v27  ;;  %v9213_v3 = vpop.permute.xlu0 %9212  ;;  %v19208_v2 = vld [vmem:[#allocation100_spill] sm:$0xff]  ;;  %v19209_v27 = vld [vmem:[#allocation305_spill] sm:$0xff] }
 0x553   : > { %19205 = vst [vmem:[#allocation79_spill] sm:$0xff] %v17125_v36  ;;  %v9962_v12 = vcombine.low %v9945_v19, %v9953_v40  ;;  %v9679_v25 = vadd.f32 %v9551_v38, %v9423_v31  ;;  %v8817_v7 = vcombine.high %v2185_v44, %v18519_v14  ;;  %v17134_v54 = vrot.slane %v8832_v41, %v12929_v61  ;;  %v19210_v40 = vld [vmem:[#allocation112_spill] sm:$0xff]  ;;  %v19213_v19 = vld [vmem:[#allocation45_spill] sm:$0xff] }
 0x554   : > { %9302 = vrot.lane.b32.xlu1 %v17104_v32, %s11826_s6  ;;  %v9676_v22 = vadd.f32 %v9548_v46, %v9420_v23  ;;  %v9678_v15 = vadd.f32 %v9550_v20, %v9422_v11  ;;  %v8816_v35 = vrot.slane %v8802_v33, %v12926_v60  ;;  %v9425_v31 = vmul.f32 %v19209_v27, %v19208_v2  ;;  %v19211_v11 = vld [vmem:[#allocation51_spill] sm:$0xff]  ;;  %v19212_v23 = vld [vmem:[#allocation40_spill] sm:$0xff]  ;;  %v2022_v27 = vld [vmem:[#allocation2 + $0x320] sm:$0xff] }
 0x555   : > { %19207 = vst [vmem:[#allocation230_spill] sm:$0xff] %v17134_v54  ;;  %v9969_v18 = vrot.slane %v9962_v12, %v12929_v61  ;;  %v9980_v43 = vcombine.low %v9677_v49, %v9679_v25  ;;  %v8831_v52 = vrot.slane %v8817_v7, %v12926_v60  ;;  %v9553_v41 = vmul.f32 %v9207_v63, %v19210_v40  ;;  %v9215_v25 = vpop.permute.xlu1 %9214  ;;  %v19214_v12 = vld [vmem:[#allocation49_spill] sm:$0xff]  ;;  %v19215_v7 = vld [vmem:[#allocation62_spill] sm:$0xff]  ;;  %v2023_v32 = vld [vmem:[#allocation2 + $0x328] sm:$0xff] }
 0x556   : > { %9304 = vrot.lane.b32.xlu0 %v17092_v42, %s11826_s6  ;;  %v9972_v44 = vcombine.low %v9676_v22, %v9678_v15  ;;  %v9424_v46 = vmul.f32 %v19212_v23, %v19211_v11  ;;  %v9552_v38 = vmul.f32 %v17064_v39, %v19213_v19  ;;  %v9427_v2 = vmul.f32 %v19215_v7, %v19214_v12  ;;  %v19218_v15 = vld [vmem:[#allocation46_spill] sm:$0xff]  ;;  %v19219_v40 = vld [vmem:[#allocation44_spill] sm:$0xff]  ;;  %v19235_v42 = vld [vmem:[#allocation53_spill] sm:$0xff] }
 0x557   : > { %v9970_v49 = vcombine.low %v9961_v1, %v9969_v18  ;;  %v9971_v20 = vcombine.high %v9961_v1, %v9969_v18  ;;  %v8848_v33 = vcombine.low %v8816_v35, %v8831_v52  ;;  %v17154_v63 = vcombine.high %v17134_v54, %v18519_v14  ;;  %v19220_v11 = vld [vmem:[#allocation306_spill] sm:$0xff]  ;;  %v19221_v19 = vld [vmem:[#allocation48_spill] sm:$0xff] }
 0x558   : > { %9306 = vrot.lane.b32.xlu1 %v17125_v36, %s11826_s6  ;;  %v17157_v22 = vrot.slane %v8833_v28, %v12929_v61  ;;  %v9987_v39 = vrot.slane %v9980_v43, %v12926_v60  ;;  %v9979_v1 = vrot.slane %v9972_v44, %v12926_v60  ;;  %v9555_v18 = vmul.f32 %v9211_v30, %v19218_v15 }
 0x559   : > { %19216 = vst [vmem:[#allocation82_spill] sm:$0xff] %v17154_v63  ;;  %10578 = vst [vmem:[%s12285_s16 + $0x30] sm:$0xff] %v9970_v49  ;;  %v9426_v23 = vmul.f32 %v19220_v11, %v19219_v40  ;;  %v9554_v12 = vmul.f32 %v9209_v9, %v19221_v19  ;;  %v17170_v7 = vrot.slane %v8848_v33, %v12929_v61  ;;  %v19227_v11 = vld [vmem:[#allocation316_spill] sm:$0xff] }
 0x55a   : > { %19217 = vst [vmem:[#allocation65_spill] sm:$0xff] %v17157_v22  ;;  %10579 = vst [vmem:[%s12285_s16 + $0x38] sm:$0xff] %v9971_v20  ;;  %9308 = vrot.lane.b32.xlu0 %v17134_v54, %s11826_s6  ;;  %v8849_v28 = vcombine.high %v8816_v35, %v8831_v52  ;;  %v2192_v43 = vadd.f32 %v15195_v24, %v2022_v27  ;;  %v2193_v49 = vadd.f32 %v15206_v13, %v2023_v32  ;;  %v9217_v20 = vpop.permute.xlu0 %9216  ;;  %v9219_v52 = vpop.permute.xlu1 %9218  ;;  %v19234_v54 = vld [vmem:[#allocation314_spill] sm:$0xff] }
 0x55b   : > { %v9681_v44 = vadd.f32 %v9553_v41, %v9425_v31  ;;  %v9680_v36 = vadd.f32 %v9552_v38, %v9424_v46  ;;  %v9683_v30 = vadd.f32 %v9555_v18, %v9427_v2  ;;  %v9682_v15 = vadd.f32 %v9554_v12, %v9426_v23  ;;  %v19224_v46 = vld [vmem:[#allocation47_spill] sm:$0xff] }
 0x55c   : > { %9310 = vrot.lane.b32.xlu1 %v17154_v63, %s11826_s6  ;;  %v17178_v9 = vcombine.high %v17157_v22, %v18519_v14  ;;  %v8875_v33 = vrot.slane %v2192_v43, %v12926_v60  ;;  %v8890_v35 = vrot.slane %v2193_v49, %v12926_v60  ;;  %v10004_v27 = vcombine.low %v9979_v1, %v9987_v39  ;;  %v19225_v38 = vld [vmem:[#allocation315_spill] sm:$0xff]  ;;  %v19228_v1 = vld [vmem:[#allocation140_spill] sm:$0xff] }
 0x55d   : > { %v9996_v40 = vcombine.low %v9681_v44, %v9683_v30  ;;  %v9988_v32 = vcombine.low %v9680_v36, %v9682_v15  ;;  %v17186_v31 = vcombine.high %v17170_v7, %v18519_v14  ;;  %v17189_v41 = vrot.slane %v8849_v28, %v12929_v61  ;;  %v19226_v18 = vld [vmem:[#allocation163_spill] sm:$0xff] }
 0x55e   : > { %9312 = vrot.lane.b32.xlu0 %v17157_v22, %s11826_s6  ;;  %v9429_v2 = vmul.f32 %v19225_v38, %v19224_v46  ;;  %v9431_v23 = vmul.f32 %v19227_v11, %v19226_v18  ;;  %v9557_v19 = vmul.f32 %v9215_v25, %v19228_v1  ;;  %v19229_v12 = vld [vmem:[#allocation167_spill] sm:$0xff]  ;;  %v8898_v30 = vcombine.low %v8875_v33, %v8890_v35  ;;  %v19232_v22 = vld [vmem:[#allocation158_spill] sm:$0xff]  ;;  %v19233_v38 = vld [vmem:[#allocation56_spill] sm:$0xff]  ;;  %v9221_v11 = vpop.permute.xlu0 %9220 }
 0x55f   : > { %19222 = vst [vmem:[#allocation227_spill] sm:$0xff] %v17186_v31  ;;  %19223 = vst [vmem:[#allocation76_spill] sm:$0xff] %v17189_v41  ;;  %v10003_v39 = vrot.slane %v9996_v40, %v12926_v60  ;;  %v9995_v36 = vrot.slane %v9988_v32, %v12926_v60  ;;  %v9559_v44 = vmul.f32 %v9219_v52, %v19229_v12  ;;  %v19230_v28 = vld [vmem:[#allocation139_spill] sm:$0xff] }
 0x560   : > { %9314 = vrot.lane.b32.xlu1 %v17178_v9, %s11826_s6  ;;  %v19231_v15 = vld [vmem:[#allocation311_spill] sm:$0xff]  ;;  %v9556_v46 = vmul.f32 %v9213_v3, %v19232_v22  ;;  %v9430_v18 = vmul.f32 %v19234_v54, %v19233_v38  ;;  %v9558_v32 = vmul.f32 %v9217_v20, %v19235_v42  ;;  %v8868_v25 = vcombine.high %v2192_v43, %v18519_v14  ;;  %v9223_v22 = vpop.permute.xlu1 %9222  ;;  %v2030_v38 = vld [vmem:[#allocation2 + $0x360] sm:$0xff] }
 0x561   : > { %v9428_v63 = vmul.f32 %v19231_v15, %v19230_v28  ;;  %v10012_v40 = vcombine.low %v9995_v36, %v10003_v39  ;;  %v10011_v52 = vrot.slane %v10004_v27, %v12929_v61  ;;  %v17213_v1 = vcombine.high %v17189_v41, %v18519_v14  ;;  %v19236_v28 = vld [vmem:[#allocation181_spill] sm:$0xff] }
 0x562   : > { %9316 = vrot.lane.b32.xlu0 %v17170_v7, %s11826_s6  ;;  %v9687_v12 = vadd.f32 %v9559_v44, %v9431_v23  ;;  %v8883_v3 = vcombine.high %v2193_v49, %v18519_v14  ;;  %v9685_v39 = vadd.f32 %v9557_v19, %v9429_v2  ;;  %v8899_v36 = vcombine.high %v8875_v33, %v8890_v35  ;;  %v19237_v15 = vld [vmem:[#allocation197_spill] sm:$0xff]  ;;  %v19238_v33 = vld [vmem:[#allocation72_spill] sm:$0xff]  ;;  %v9225_v19 = vpop.permute.xlu0 %9224 }
 0x563   : > { %v10019_v54 = vrot.slane %v10012_v40, %v12929_v61  ;;  %v9686_v42 = vadd.f32 %v9558_v32, %v9430_v18  ;;  %v17220_v43 = vrot.slane %v8898_v30, %v12929_v61  ;;  %v9684_v20 = vadd.f32 %v9556_v46, %v9428_v63  ;;  %v19239_v46 = vld [vmem:[#allocation180_spill] sm:$0xff]  ;;  %v19240_v18 = vld [vmem:[#allocation198_spill] sm:$0xff] }
 0x564   : > { %9318 = vrot.lane.b32.xlu1 %v17186_v31, %s11826_s6  ;;  %v8882_v27 = vrot.slane %v8868_v25, %v12926_v60  ;;  %v8897_v23 = vrot.slane %v8883_v3, %v12926_v60  ;;  %v9433_v2 = vmul.f32 %v19237_v15, %v19236_v28  ;;  %v9561_v35 = vmul.f32 %v9223_v22, %v19238_v33  ;;  %v19241_v32 = vld [vmem:[#allocation74_spill] sm:$0xff]  ;;  %v9227_v3 = vpop.permute.xlu1 %9226  ;;  %v2031_v31 = vld [vmem:[#allocation2 + $0x368] sm:$0xff] }
 0x565   : > { %v10020_v49 = vcombine.low %v10011_v52, %v10019_v54  ;;  %v10021_v44 = vcombine.high %v10011_v52, %v10019_v54  ;;  %v10030_v30 = vcombine.low %v9685_v39, %v9687_v12  ;;  %v10022_v63 = vcombine.low %v9684_v20, %v9686_v42  ;;  %v19242_v22 = vld [vmem:[#allocation54_spill] sm:$0xff]  ;;  %v19243_v54 = vld [vmem:[#allocation324_spill] sm:$0xff]  ;;  %v19244_v15 = vld [vmem:[#allocation111_spill] sm:$0xff] }
 0x566   : > { %9320 = vrot.lane.b32.xlu0 %v17189_v41, %s11826_s6  ;;  %v9432_v40 = vmul.f32 %v19240_v18, %v19239_v46  ;;  %v9560_v25 = vmul.f32 %v9221_v11, %v19241_v32  ;;  %v17235_v52 = vrot.slane %v8899_v36, %v12929_v61  ;;  %v9435_v28 = vmul.f32 %v19243_v54, %v19242_v22  ;;  %v19245_v41 = vld [vmem:[#allocation43_spill] sm:$0xff]  ;;  %v19246_v12 = vld [vmem:[#allocation321_spill] sm:$0xff]  ;;  %v19248_v20 = vld [vmem:[#allocation52_spill] sm:$0xff] }
 0x567   : > { %10580 = vst [vmem:[%s12285_s16 + $0x40] sm:$0xff] %v10020_v49  ;;  %10581 = vst [vmem:[%s12285_s16 + $0x48] sm:$0xff] %v10021_v44  ;;  %v9563_v33 = vmul.f32 %v9227_v3, %v19244_v15  ;;  %v9434_v39 = vmul.f32 %v19246_v12, %v19245_v41  ;;  %v17246_v11 = vcombine.high %v17220_v43, %v18519_v14 }
 0x568   : > { %9322 = vrot.lane.b32.xlu1 %v17213_v1, %s11826_s6  ;;  %v8914_v42 = vcombine.low %v8882_v27, %v8897_v23  ;;  %v9562_v49 = vmul.f32 %v9225_v19, %v19248_v20  ;;  %v2200_v36 = vadd.f32 %v15195_v24, %v2030_v38  ;;  %v9689_v44 = vadd.f32 %v9561_v35, %v9433_v2 }
 0x569   : > { %19247 = vst [vmem:[#allocation87_spill] sm:$0xff] %v17246_v11  ;;  %v9691_v46 = vadd.f32 %v9563_v33, %v9435_v28  ;;  %v2201_v18 = vadd.f32 %v15206_v13, %v2031_v31  ;;  %v10037_v41 = vrot.slane %v10030_v30, %v12926_v60  ;;  %v10029_v32 = vrot.slane %v10022_v63, %v12926_v60 }
 0x56a   : > { %9324 = vrot.lane.b32.xlu0 %v17220_v43, %s11826_s6  ;;  %v9688_v3 = vadd.f32 %v9560_v25, %v9432_v40  ;;  %v9690_v22 = vadd.f32 %v9562_v49, %v9434_v39  ;;  %v17257_v54 = vcombine.high %v17235_v52, %v18519_v14  ;;  %v8915_v19 = vcombine.high %v8882_v27, %v8897_v23  ;;  %v9229_v23 = vpop.permute.xlu0 %9228 }
 0x56b   : > { %v10046_v15 = vcombine.low %v9689_v44, %v9691_v46  ;;  %v17262_v31 = vrot.slane %v8914_v42, %v12929_v61  ;;  %v8941_v35 = vrot.slane %v2200_v36, %v12926_v60  ;;  %v8956_v38 = vrot.slane %v2201_v18, %v12926_v60 }
 0x56c   : > { %19249 = vst [vmem:[#allocation235_spill] sm:$0xff] %v17257_v54  ;;  %9326 = vrot.lane.b32.xlu1 %v17246_v11, %s11826_s6  ;;  %v10038_v2 = vcombine.low %v9688_v3, %v9690_v22  ;;  %v10054_v63 = vcombine.low %v10029_v32, %v10037_v41  ;;  %v17271_v40 = vrot.slane %v8915_v19, %v12929_v61  ;;  %v9231_v25 = vpop.permute.xlu1 %9230 }
 0x56d   : > { %19250 = vst [vmem:[#allocation88_spill] sm:$0xff] %v17262_v31  ;;  %v10053_v30 = vrot.slane %v10046_v15, %v12926_v60  ;;  %v8934_v28 = vcombine.high %v2200_v36, %v18519_v14  ;;  %v17278_v33 = vcombine.high %v17262_v31, %v18519_v14  ;;  %v8964_v39 = vcombine.low %v8941_v35, %v8956_v38  ;;  %v2038_v15 = vld [vmem:[#allocation2 + $0x3a0] sm:$0xff] }
 0x56e   : > { %9328 = vrot.lane.b32.xlu0 %v17235_v52, %s11826_s6  ;;  %v10045_v27 = vrot.slane %v10038_v2, %v12926_v60  ;;  %19251 = vst [vmem:[#allocation80_spill] sm:$0xff] %v17271_v40  ;;  %v8949_v42 = vcombine.high %v2201_v18, %v18519_v14  ;;  %v10061_v20 = vrot.slane %v10054_v63, %v12929_v61  ;;  %v9233_v22 = vpop.permute.xlu0 %9232  ;;  %v2039_v2 = vld [vmem:[#allocation2 + $0x3a8] sm:$0xff] }
 0x56f   : > { %19252 = vst [vmem:[#allocation131_spill] sm:$0xff] %v17278_v33  ;;  %v17287_v36 = vcombine.high %v17271_v40, %v18519_v14  ;;  %v8965_v44 = vcombine.high %v8941_v35, %v8956_v38  ;;  %v8948_v46 = vrot.slane %v8934_v28, %v12926_v60  ;;  %v17293_v32 = vrot.slane %v8964_v39, %v12929_v61  ;;  %v19255_v35 = vld [vmem:[#allocation61_spill] sm:$0xff] }
 0x570   : > { %9330 = vrot.lane.b32.xlu1 %v17257_v54, %s11826_s6  ;;  %v10062_v12 = vcombine.low %v10045_v27, %v10053_v30  ;;  %v9235_v3 = vpop.permute.xlu1 %9234  ;;  %v8963_v19 = vrot.slane %v8949_v42, %v12926_v60  ;;  %v9439_v38 = vmul.f32 %v16544_v34, %v19255_v35  ;;  %v19256_v30 = vld [vmem:[#allocation68_spill] sm:$0xff]  ;;  %v19257_v27 = vld [vmem:[#allocation67_spill] sm:$0xff]  ;;  %v2209_v42 = vadd.f32 %v15206_v13, %v2039_v2  ;;  %v19261_v34 = vld [vmem:[#allocation330_spill] sm:$0xff] }
 0x571   : > { %19253 = vst [vmem:[#allocation84_spill] sm:$0xff] %v17287_v36  ;;  %19254 = vst [vmem:[#allocation94_spill] sm:$0xff] %v17293_v32  ;;  %v9438_v63 = vmul.f32 %v16520_v4, %v19256_v30  ;;  %v9567_v28 = vmul.f32 %v9235_v3, %v19257_v27  ;;  %v17317_v4 = vrot.slane %v8965_v44, %v12929_v61  ;;  %v19262_v35 = vld [vmem:[#allocation60_spill] sm:$0xff]  ;;  %v19263_v30 = vld [vmem:[#allocation50_spill] sm:$0xff] }
 0x572   : > { %9332 = vrot.lane.b32.xlu0 %v17262_v31, %s11826_s6  ;;  %v10069_v49 = vrot.slane %v10062_v12, %v12929_v61  ;;  %v19258_v12 = vld [vmem:[#allocation186_spill] sm:$0xff]  ;;  %v8980_v3 = vcombine.low %v8948_v46, %v8963_v19  ;;  %v19265_v2 = vld [vmem:[#allocation59_spill] sm:$0xff]  ;;  %v9022_v44 = vrot.slane %v2209_v42, %v12926_v60 }
 0x573   : > { %v9566_v39 = vmul.f32 %v9233_v22, %v19258_v12  ;;  %v9565_v22 = vmul.f32 %v9231_v25, %v19262_v35  ;;  %v9564_v12 = vmul.f32 %v9229_v23, %v19265_v2  ;;  %v17331_v25 = vcombine.high %v17317_v4, %v18519_v14  ;;  %v19270_v35 = vld [vmem:[#allocation187_spill] sm:$0xff]  ;;  %v19272_v2 = vld [vmem:[#allocation188_spill] sm:$0xff] }
 0x574   : > { %9334 = vrot.lane.b32.xlu1 %v17278_v33, %s11826_s6  ;;  %v10070_v18 = vcombine.low %v10061_v20, %v10069_v49  ;;  %v10071_v41 = vcombine.high %v10061_v20, %v10069_v49  ;;  %v2208_v20 = vadd.f32 %v15195_v24, %v2038_v15  ;;  %v17312_v49 = vcombine.high %v17293_v32, %v18519_v14  ;;  %v19264_v15 = vld [vmem:[#allocation206_spill] sm:$0xff] }
 0x575   : > { %v9436_v27 = vmul.f32 %v19264_v15, %v19263_v30  ;;  %v8981_v33 = vcombine.high %v8948_v46, %v8963_v19  ;;  %19266 = vst [vmem:[#allocation97_spill] sm:$0xff] %v17331_v25  ;;  %v17334_v23 = vrot.slane %v8980_v3, %v12929_v61  ;;  %v19271_v30 = vld [vmem:[#allocation213_spill] sm:$0xff] }
 0x576   : > { %9336 = vrot.lane.b32.xlu0 %v17271_v40, %s11826_s6  ;;  %10582 = vst [vmem:[%s12285_s16 + $0x50] sm:$0xff] %v10070_v18  ;;  %10583 = vst [vmem:[%s12285_s16 + $0x58] sm:$0xff] %v10071_v41  ;;  %v19260_v18 = vld [vmem:[#allocation55_spill] sm:$0xff]  ;;  %v9694_v40 = vadd.f32 %v9566_v39, %v9438_v63  ;;  %v9440_v15 = vmul.f32 %v19271_v30, %v19270_v35  ;;  %v19274_v3 = vld [vmem:[#allocation337_spill] sm:$0xff] }
 0x577   : > { %19259 = vst [vmem:[#allocation237_spill] sm:$0xff] %v17312_v49  ;;  %v9437_v41 = vmul.f32 %v19261_v34, %v19260_v18  ;;  %v9007_v18 = vrot.slane %v2208_v20, %v12926_v60  ;;  %19267 = vst [vmem:[#allocation86_spill] sm:$0xff] %v17334_v23  ;;  %v9692_v19 = vadd.f32 %v9564_v12, %v9436_v27  ;;  %v19268_v34 = vld [vmem:[#allocation191_spill] sm:$0xff] }
 0x578   : > { %9338 = vrot.lane.b32.xlu1 %v17287_v36, %s11826_s6  ;;  %v9695_v36 = vadd.f32 %v9567_v28, %v9439_v38  ;;  %v19269_v38 = vld [vmem:[#allocation335_spill] sm:$0xff]  ;;  %v17339_v39 = vrot.slane %v8981_v33, %v12929_v61  ;;  %v9000_v33 = vcombine.high %v2208_v20, %v18519_v14  ;;  %v17355_v35 = vcombine.high %v17334_v23, %v18519_v14 }
 0x579   : > { %v9237_v31 = vpop.permute.xlu0 %9236  ;;  %v9693_v46 = vadd.f32 %v9565_v22, %v9437_v41  ;;  %v9441_v63 = vmul.f32 %v19269_v38, %v19268_v34  ;;  %v19275_v41 = vld [vmem:[#allocation194_spill] sm:$0xff]  ;;  %v10072_v34 = vcombine.low %v9692_v19, %v9694_v40  ;;  %v9030_v11 = vcombine.low %v9007_v18, %v9022_v44 }
 0x57a   : > { %9340 = vrot.lane.b32.xlu0 %v17293_v32, %s11826_s6  ;;  %v19273_v32 = vld [vmem:[#allocation69_spill] sm:$0xff]  ;;  %v19276_v22 = vld [vmem:[#allocation334_spill] sm:$0xff]  ;;  %v17362_v40 = vcombine.high %v17339_v39, %v18519_v14 }
 0x57b   : > { %v9239_v28 = vpop.permute.xlu1 %9238  ;;  %v9443_v54 = vmul.f32 %v19274_v3, %v19273_v32  ;;  %v9442_v27 = vmul.f32 %v19276_v22, %v19275_v41  ;;  %v10080_v12 = vcombine.low %v9693_v46, %v9695_v36  ;;  %v9015_v3 = vcombine.high %v2209_v42, %v18519_v14  ;;  %v19279_v46 = vld [vmem:[#allocation193_spill] sm:$0xff] }
 0x57c   : > { %9342 = vrot.lane.b32.xlu1 %v17312_v49, %s11826_s6  ;;  %v9568_v49 = vmul.f32 %v9237_v31, %v19272_v2  ;;  %v19277_v31 = vld [vmem:[#allocation192_spill] sm:$0xff]  ;;  %v19278_v2 = vld [vmem:[#allocation195_spill] sm:$0xff]  ;;  %v9031_v22 = vcombine.high %v9007_v18, %v9022_v44  ;;  %v9014_v42 = vrot.slane %v9000_v33, %v12926_v60 }
 0x57d   : > { %v9241_v38 = vpop.permute.xlu0 %9240  ;;  %v9569_v30 = vmul.f32 %v9239_v28, %v19277_v31  ;;  %v10079_v28 = vrot.slane %v10072_v34, %v12926_v60 }
 0x57e   : > { %9344 = vrot.lane.b32.xlu0 %v17317_v4, %s11826_s6  ;;  %v9570_v32 = vmul.f32 %v9241_v38, %v19278_v2  ;;  %v9696_v20 = vadd.f32 %v9568_v49, %v9440_v15  ;;  %v17370_v38 = vrot.slane %v9030_v11, %v12929_v61  ;;  %v9029_v49 = vrot.slane %v9015_v3, %v12926_v60  ;;  %v2046_v15 = vld [vmem:[#allocation2 + $0x3e0] sm:$0xff] }
 0x57f   : > { %v9243_v36 = vpop.permute.xlu1 %9242  ;;  %v9697_v31 = vadd.f32 %v9569_v30, %v9441_v63  ;;  %v17380_v34 = vrot.slane %v9031_v22, %v12929_v61  ;;  %v2216_v33 = vadd.f32 %v15195_v24, %v2046_v15 }
 0x580   : > { %9346 = vrot.lane.b32.xlu1 %v17331_v25, %s11826_s6  ;;  %v9571_v19 = vmul.f32 %v9243_v36, %v19279_v46  ;;  %v9698_v41 = vadd.f32 %v9570_v32, %v9442_v27  ;;  %v10087_v25 = vrot.slane %v10080_v12, %v12926_v60  ;;  %19280 = vst [vmem:[#allocation233_spill] sm:$0xff] %v17370_v38  ;;  %v2047_v27 = vld [vmem:[#allocation2 + $0x3e8] sm:$0xff] }
 0x581   : > { %v17389_v32 = vcombine.high %v17370_v38, %v18519_v14  ;;  %v9046_v3 = vcombine.low %v9014_v42, %v9029_v49  ;;  %v9047_v24 = vcombine.high %v9014_v42, %v9029_v49  ;;  %v19284_v49 = vld [vmem:[#allocation78_spill] sm:$0xff] }
 0x582   : > { %9348 = vrot.lane.b32.xlu0 %v17334_v23, %s11826_s6  ;;  %v9699_v2 = vadd.f32 %v9571_v19, %v9443_v54  ;;  %v10088_v23 = vcombine.low %v9696_v20, %v9698_v41  ;;  %v2217_v54 = vadd.f32 %v15206_v13, %v2047_v27  ;;  %v10104_v63 = vcombine.low %v10079_v28, %v10087_v25  ;;  %v19282_v28 = vld [vmem:[#allocation70_spill] sm:$0xff] }
 0x583   : > { %19281 = vst [vmem:[#allocation89_spill] sm:$0xff] %v17389_v32  ;;  %v9073_v13 = vrot.slane %v2216_v33, %v12926_v60  ;;  %v17401_v41 = vcombine.high %v17380_v34, %v18519_v14  ;;  %v17404_v22 = vrot.slane %v9046_v3, %v12929_v61  ;;  %v9445_v42 = vmul.f32 %v16712_v45, %v19282_v28  ;;  %v19287_v3 = vld [vmem:[#allocation64_spill] sm:$0xff] }
 0x584   : > { %9350 = vrot.lane.b32.xlu1 %v17355_v35, %s11826_s6  ;;  %v9245_v18 = vpop.permute.xlu0 %9244  ;;  %v10096_v44 = vcombine.low %v9697_v31, %v9699_v2  ;;  %v10095_v11 = vrot.slane %v10088_v23, %v12926_v60  ;;  %v9088_v25 = vrot.slane %v2217_v54, %v12926_v60  ;;  %v10111_v46 = vrot.slane %v10104_v63, %v12929_v61  ;;  %v19283_v31 = vld [vmem:[#allocation201_spill] sm:$0xff] }
 0x585   : > { %v9446_v2 = vmul.f32 %v16727_v53, %v19283_v31  ;;  %v17420_v28 = vrot.slane %v9047_v24, %v12929_v61  ;;  %v19291_v31 = vld [vmem:[#allocation95_spill] sm:$0xff] }
 0x586   : > { %9352 = vrot.lane.b32.xlu0 %v17339_v39, %s11826_s6  ;;  %v9247_v12 = vpop.permute.xlu1 %9246  ;;  %v10103_v30 = vrot.slane %v10096_v44, %v12926_v60  ;;  %v9096_v53 = vcombine.low %v9073_v13, %v9088_v25 }
 0x588   : > { %9354 = vrot.lane.b32.xlu1 %v17362_v40, %s11826_s6  ;;  %v10112_v23 = vcombine.low %v10095_v11, %v10103_v30  ;;  %v9249_v36 = vpop.permute.xlu0 %9248  ;;  %v19285_v11 = vld [vmem:[#allocation199_spill] sm:$0xff]  ;;  %v19286_v30 = vld [vmem:[#allocation200_spill] sm:$0xff] }
 0x589   : > { %v9574_v15 = vmul.f32 %v9249_v36, %v19284_v49  ;;  %v9447_v63 = vmul.f32 %v16738_v17, %v19285_v11  ;;  %v19289_v36 = vld [vmem:[#allocation196_spill] sm:$0xff]  ;;  %v17429_v17 = vcombine.high %v17404_v22, %v18519_v14  ;;  %v9450_v49 = vmul.f32 %v16772_v57, %v19291_v31 }
 0x58a   : > { %9356 = vrot.lane.b32.xlu0 %v17370_v38, %s11826_s6  ;;  %v9251_v20 = vpop.permute.xlu1 %9250  ;;  %v10119_v19 = vrot.slane %v10112_v23, %v12929_v61  ;;  %v19288_v38 = vld [vmem:[#allocation75_spill] sm:$0xff]  ;;  %v17441_v11 = vcombine.high %v17420_v28, %v18519_v14 }
 0x58b   : > { %v9575_v23 = vmul.f32 %v9251_v20, %v19286_v30  ;;  %v9572_v45 = vmul.f32 %v9245_v18, %v19288_v38  ;;  %v9066_v20 = vcombine.high %v2216_v33, %v18519_v14  ;;  %v9702_v38 = vadd.f32 %v9574_v15, %v9446_v2  ;;  %v19292_v15 = vld [vmem:[#allocation85_spill] sm:$0xff] }
 0x58c   : > { %9358 = vrot.lane.b32.xlu1 %v17389_v32, %s11826_s6  ;;  %v10120_v27 = vcombine.low %v10111_v46, %v10119_v19  ;;  %v10121_v44 = vcombine.high %v10111_v46, %v10119_v19  ;;  %v9444_v32 = vmul.f32 %v16700_v8, %v19287_v3  ;;  %v9573_v46 = vmul.f32 %v9247_v12, %v19289_v36  ;;  %v19290_v19 = vld [vmem:[#allocation202_spill] sm:$0xff]  ;;  %v19293_v30 = vld [vmem:[#allocation205_spill] sm:$0xff] }
 0x58d   : > { %v9081_v8 = vcombine.high %v2217_v54, %v18519_v14  ;;  %v9703_v24 = vadd.f32 %v9575_v23, %v9447_v63  ;;  %v9448_v12 = vmul.f32 %v16769_v26, %v19290_v19  ;;  %v17444_v33 = vrot.slane %v9096_v53, %v12929_v61  ;;  %v19294_v36 = vld [vmem:[#allocation90_spill] sm:$0xff] }
 0x58e   : > { %9360 = vrot.lane.b32.xlu0 %v17380_v34, %s11826_s6  ;;  %10584 = vst [vmem:[%s12285_s16 + $0x60] sm:$0xff] %v10120_v27  ;;  %10585 = vst [vmem:[%s12285_s16 + $0x68] sm:$0xff] %v10121_v44  ;;  %v9700_v27 = vadd.f32 %v9572_v45, %v9444_v32  ;;  %v9097_v54 = vcombine.high %v9073_v13, %v9088_v25  ;;  %v9701_v2 = vadd.f32 %v9573_v46, %v9445_v42  ;;  %v19295_v13 = vld [vmem:[#allocation207_spill] sm:$0xff]  ;;  %v19296_v25 = vld [vmem:[#allocation105_spill] sm:$0xff] }
 0x58f   : > { %v9080_v26 = vrot.slane %v9066_v20, %v12926_v60  ;;  %v9095_v57 = vrot.slane %v9081_v8, %v12926_v60  ;;  %v9449_v23 = vmul.f32 %v16784_v16, %v19293_v30  ;;  %v9451_v42 = vmul.f32 %v19296_v25, %v19295_v13  ;;  %v19297_v46 = vld [vmem:[#allocation209_spill] sm:$0xff]  ;;  %v19299_v25 = vld [vmem:[#allocation114_spill] sm:$0xff] }
 0x590   : > { %9362 = vrot.lane.b32.xlu1 %v17401_v41, %s11826_s6  ;;  %v9253_v18 = vpop.permute.xlu0 %9252  ;;  %v10122_v32 = vcombine.low %v9700_v27, %v9702_v38  ;;  %v10130_v45 = vcombine.low %v9701_v2, %v9703_v24  ;;  %v17461_v20 = vcombine.high %v17444_v33, %v18519_v14  ;;  %v17464_v8 = vrot.slane %v9097_v54, %v12929_v61  ;;  %v19298_v38 = vld [vmem:[#allocation208_spill] sm:$0xff] }
 0x591   : > { %v9576_v63 = vmul.f32 %v9253_v18, %v19292_v15  ;;  %v9112_v27 = vcombine.low %v9080_v26, %v9095_v57 }
 0x592   : > { %9364 = vrot.lane.b32.xlu0 %v17404_v22, %s11826_s6  ;;  %v9255_v44 = vpop.permute.xlu1 %9254  ;;  %v10137_v2 = vrot.slane %v10130_v45, %v12926_v60 }
 0x593   : > { %v9577_v53 = vmul.f32 %v9255_v44, %v19294_v36  ;;  %v9704_v16 = vadd.f32 %v9576_v63, %v9448_v12  ;;  %v10129_v44 = vrot.slane %v10122_v32, %v12926_v60  ;;  %v17475_v12 = vcombine.high %v17464_v8, %v18519_v14 }
 0x594   : > { %9366 = vrot.lane.b32.xlu1 %v17429_v17, %s11826_s6  ;;  %v9257_v3 = vpop.permute.xlu0 %9256  ;;  %v17481_v32 = vrot.slane %v9112_v27, %v12929_v61  ;;  %v19302_v27 = vld [vmem:[#allocation92_spill] sm:$0xff] }
 0x595   : > { %v9578_v18 = vmul.f32 %v9257_v3, %v19297_v46  ;;  %v9705_v15 = vadd.f32 %v9577_v53, %v9449_v23  ;;  %v9113_v23 = vcombine.high %v9080_v26, %v9095_v57  ;;  %v10154_v45 = vcombine.low %v10129_v44, %v10137_v2  ;;  %v19300_v57 = vld [vmem:[#allocation215_spill] sm:$0xff]  ;;  %v19303_v44 = vld [vmem:[#allocation210_spill] sm:$0xff] }
 0x596   : > { %9368 = vrot.lane.b32.xlu0 %v17420_v28, %s11826_s6  ;;  %v9259_v19 = vpop.permute.xlu1 %9258 }
 0x597   : > { %v9579_v24 = vmul.f32 %v9259_v19, %v19298_v38  ;;  %v9706_v31 = vadd.f32 %v9578_v18, %v9450_v49  ;;  %v17492_v18 = vcombine.high %v17481_v32, %v18519_v14  ;;  %v17495_v26 = vrot.slane %v9113_v23, %v12929_v61 }
 0x598   : > { %9370 = vrot.lane.b32.xlu1 %v17441_v11, %s11826_s6  ;;  %v9455_v19 = vmul.f32 %v16860_v55, %v19300_v57  ;;  %v19307_v57 = vld [vmem:[#allocation218_spill] sm:$0xff] }
 0x599   : > { %v9707_v30 = vadd.f32 %v9579_v24, %v9451_v42  ;;  %v10138_v3 = vcombine.low %v9704_v16, %v9706_v31  ;;  %v9454_v42 = vmul.f32 %v16839_v47, %v19299_v25  ;;  %v19301_v16 = vld [vmem:[#allocation109_spill] sm:$0xff]  ;;  %v10161_v24 = vrot.slane %v10154_v45, %v12929_v61 }
 0x59a   : > { %9372 = vrot.lane.b32.xlu0 %v17444_v33, %s11826_s6  ;;  %v9452_v47 = vmul.f32 %v16836_v37, %v19302_v27 }
 0x59b   : > { %v10146_v54 = vcombine.low %v9705_v15, %v9707_v30  ;;  %v10145_v63 = vrot.slane %v10138_v3, %v12926_v60  ;;  %v19304_v30 = vld [vmem:[#allocation212_spill] sm:$0xff] }
 0x59c   : > { %9374 = vrot.lane.b32.xlu1 %v17461_v20, %s11826_s6  ;;  %v9261_v49 = vpop.permute.xlu0 %9260  ;;  %v9453_v55 = vmul.f32 %v16848_v58, %v19304_v30  ;;  %v19305_v3 = vld [vmem:[#allocation108_spill] sm:$0xff]  ;;  %v19312_v30 = vld [vmem:[#allocation222_spill] sm:$0xff] }
 0x59d   : > { %v10153_v36 = vrot.slane %v10146_v54, %v12926_v60  ;;  %v9580_v2 = vmul.f32 %v9261_v49, %v19303_v44  ;;  %v17515_v49 = vcombine.high %v17495_v26, %v18519_v14  ;;  %v19310_v14 = vld [vmem:[#allocation221_spill] sm:$0xff] }
 0x59e   : > { %v9263_v53 = vpop.permute.xlu1 %9262  ;;  %9376 = vrot.lane.b32.xlu0 %v17464_v8, %s11826_s6 }
 0x59f   : > { %v10162_v13 = vcombine.low %v10145_v63, %v10153_v36  ;;  %v9581_v54 = vmul.f32 %v9263_v53, %v19305_v3  ;;  %v19306_v63 = vld [vmem:[#allocation216_spill] sm:$0xff] }
 0x5a0   : > { %9378 = vrot.lane.b32.xlu1 %v17475_v12, %s11826_s6  ;;  %v9265_v46 = vpop.permute.xlu0 %9264 }
 0x5a1   : > { %v9582_v38 = vmul.f32 %v9265_v46, %v19301_v16  ;;  %v10169_v31 = vrot.slane %v10162_v13, %v12929_v61  ;;  %v9708_v46 = vadd.f32 %v9580_v2, %v9452_v47  ;;  %v9709_v53 = vadd.f32 %v9581_v54, %v9453_v55  ;;  %v19308_v16 = vld [vmem:[#allocation116_spill] sm:$0xff]  ;;  %v19311_v2 = vld [vmem:[#allocation121_spill] sm:$0xff] }
 0x5a2   : > { %v9267_v15 = vpop.permute.xlu1 %9266  ;;  %9380 = vrot.lane.b32.xlu0 %v17481_v32, %s11826_s6  ;;  %v9459_v55 = vmul.f32 %v16919_v29, %v19312_v30  ;;  %v19315_v29 = vld [vmem:[#allocation232_spill] sm:$0xff] }
 0x5a3   : > { %v9583_v23 = vmul.f32 %v9267_v15, %v19306_v63  ;;  %v10170_v45 = vcombine.low %v10161_v24, %v10169_v31  ;;  %v10171_v36 = vcombine.high %v10161_v24, %v10169_v31  ;;  %v9710_v13 = vadd.f32 %v9582_v38, %v9454_v42  ;;  %v19309_v24 = vld [vmem:[#allocation223_spill] sm:$0xff] }
 0x5a4   : > { %9382 = vrot.lane.b32.xlu1 %v17492_v18, %s11826_s6  ;;  %v9269_v37 = vpop.permute.xlu0 %9268  ;;  %v9456_v42 = vmul.f32 %v16871_v59, %v19307_v57  ;;  %v9458_v31 = vmul.f32 %v16889_v51, %v19309_v24  ;;  %v19313_v59 = vld [vmem:[#allocation225_spill] sm:$0xff] }
 0x5a5   : > { %v9711_v25 = vadd.f32 %v9583_v23, %v9455_v19  ;;  %10586 = vst [vmem:[%s12285_s16 + $0x70] sm:$0xff] %v10170_v45  ;;  %10587 = vst [vmem:[%s12285_s16 + $0x78] sm:$0xff] %v10171_v36  ;;  %v9584_v38 = vmul.f32 %v9269_v37, %v19308_v16  ;;  %v10172_v27 = vcombine.low %v9708_v46, %v9710_v13  ;;  %v19314_v23 = vld [vmem:[#allocation224_spill] sm:$0xff] }
 0x5a6   : > { %v9271_v58 = vpop.permute.xlu1 %9270  ;;  %9384 = vrot.lane.b32.xlu0 %v17495_v26, %s11826_s6  ;;  %v9457_v19 = vmul.f32 %v16896_v62, %v19310_v14  ;;  %v9462_v16 = vmul.f32 %v16939_v0, %v19315_v29  ;;  %v19317_v14 = vld [vmem:[#allocation134_spill] sm:$0xff]  ;;  %v19321_v0 = vld [vmem:[#allocation229_spill] sm:$0xff]  ;;  %v19325_v29 = vld [vmem:[#allocation236_spill] sm:$0xff] }
 0x5a7   : > { %v10180_v44 = vcombine.low %v9709_v53, %v9711_v25  ;;  %v9585_v15 = vmul.f32 %v9271_v58, %v19311_v2  ;;  %v9712_v63 = vadd.f32 %v9584_v38, %v9456_v42  ;;  %v10179_v36 = vrot.slane %v10172_v27, %v12926_v60  ;;  %v19319_v2 = vld [vmem:[#allocation226_spill] sm:$0xff] }
 0x5a8   : > { %9386 = vrot.lane.b32.xlu1 %v17515_v49, %s11826_s6  ;;  %v9273_v47 = vpop.permute.xlu0 %9272 }
 0x5a9   : > { %v9586_v3 = vmul.f32 %v9273_v47, %v19313_v59  ;;  %v10187_v13 = vrot.slane %v10180_v44, %v12926_v60  ;;  %v9713_v37 = vadd.f32 %v9585_v15, %v9457_v19  ;;  %v19318_v44 = vld [vmem:[#allocation122_spill] sm:$0xff]  ;;  %v19320_v59 = vld [vmem:[#allocation228_spill] sm:$0xff] }
 0x5aa   : > { %v9275_v54 = vpop.permute.xlu1 %9274  ;;  %v9460_v19 = vmul.f32 %v16936_v50, %v19318_v44  ;;  %v19328_v44 = vld [vmem:[#allocation143_spill] sm:$0xff] }
 0x5ab   : > { %v9587_v51 = vmul.f32 %v9275_v54, %v19314_v23  ;;  %v9714_v45 = vadd.f32 %v9586_v3, %v9458_v31  ;;  %v10204_v42 = vcombine.low %v10179_v36, %v10187_v13  ;;  %v19316_v31 = vld [vmem:[#allocation133_spill] sm:$0xff]  ;;  %v9461_v3 = vmul.f32 %v16950_v56, %v19320_v59 }
 0x5ac   : > { %v9277_v62 = vpop.permute.xlu0 %9276  ;;  %v9463_v27 = vmul.f32 %v16979_v21, %v19316_v31 }
 0x5ad   : > { %v9715_v46 = vadd.f32 %v9587_v51, %v9459_v55  ;;  %v10188_v25 = vcombine.low %v9712_v63, %v9714_v45  ;;  %v9588_v15 = vmul.f32 %v9277_v62, %v19319_v2  ;;  %v19322_v63 = vld [vmem:[#allocation231_spill] sm:$0xff]  ;;  %v10211_v21 = vrot.slane %v10204_v42, %v12929_v61  ;;  %v19330_v2 = vld [vmem:[#allocation241_spill] sm:$0xff] }
 0x5ae   : > { %v9279_v53 = vpop.permute.xlu1 %9278 }
 0x5af   : > { %v10196_v58 = vcombine.low %v9713_v37, %v9715_v46  ;;  %v10195_v57 = vrot.slane %v10188_v25, %v12926_v60  ;;  %v9589_v54 = vmul.f32 %v9279_v53, %v19321_v0  ;;  %v9716_v13 = vadd.f32 %v9588_v15, %v9460_v19  ;;  %v19323_v37 = vld [vmem:[#allocation234_spill] sm:$0xff]  ;;  %v19324_v25 = vld [vmem:[#allocation240_spill] sm:$0xff] }
 0x5b0   : > { %v9281_v24 = vpop.permute.xlu0 %9280  ;;  %v9464_v46 = vmul.f32 %v16969_v5, %v19323_v37  ;;  %v9466_v56 = vmul.f32 %v17000_v48, %v19324_v25  ;;  %v19329_v5 = vld [vmem:[#allocation129_spill] sm:$0xff]  ;;  %v19334_v37 = vld [vmem:[#allocation246_spill] sm:$0xff] }
 0x5b1   : > { %v10203_v38 = vrot.slane %v10196_v58, %v12926_v60  ;;  %v9590_v47 = vmul.f32 %v9281_v24, %v19317_v14  ;;  %v19327_v14 = vld [vmem:[#allocation141_spill] sm:$0xff]  ;;  %v9467_v19 = vmul.f32 %v19329_v5, %v19328_v44  ;;  %v19342_v44 = vld [vmem:[#allocation243_spill] sm:$0xff] }
 0x5b2   : > { %v9283_v30 = vpop.permute.xlu1 %9282 }
 0x5b3   : > { %v10212_v55 = vcombine.low %v10195_v57, %v10203_v38  ;;  %v9591_v23 = vmul.f32 %v9283_v30, %v19322_v63  ;;  %v9718_v51 = vadd.f32 %v9590_v47, %v9462_v16  ;;  %v9717_v57 = vadd.f32 %v9589_v54, %v9461_v3  ;;  %v19326_v38 = vld [vmem:[#allocation238_spill] sm:$0xff] }
 0x5b4   : > { %v9285_v45 = vpop.permute.xlu0 %9284  ;;  %v9465_v42 = vmul.f32 %v16994_v6, %v19326_v38 }
 0x5b5   : > { %v10219_v36 = vrot.slane %v10212_v55, %v12929_v61  ;;  %v9719_v50 = vadd.f32 %v9591_v23, %v9463_v27  ;;  %v9592_v16 = vmul.f32 %v9285_v45, %v19325_v29  ;;  %v10222_v24 = vcombine.low %v9716_v13, %v9718_v51  ;;  %v19331_v55 = vld [vmem:[#allocation239_spill] sm:$0xff] }
 0x5b6   : > { %v9287_v62 = vpop.permute.xlu1 %9286  ;;  %v19333_v13 = vld [vmem:[#allocation107_spill] sm:$0xff] }
 0x5b7   : > { %v10220_v53 = vcombine.low %v10211_v21, %v10219_v36  ;;  %v10221_v58 = vcombine.high %v10211_v21, %v10219_v36  ;;  %v10230_v27 = vcombine.low %v9717_v57, %v9719_v50  ;;  %v9593_v47 = vmul.f32 %v9287_v62, %v19327_v14  ;;  %v19332_v50 = vld [vmem:[#allocation142_spill] sm:$0xff]  ;;  %v19341_v14 = vld [vmem:[#allocation220_spill] sm:$0xff] }
 0x5b8   : > { %v9289_v31 = vpop.permute.xlu0 %9288  ;;  %v9720_v30 = vadd.f32 %v9592_v16, %v9464_v46  ;;  %v10229_v0 = vrot.slane %v10222_v24, %v12926_v60  ;;  %v9469_v62 = vmul.f32 %v19333_v13, %v19332_v50  ;;  %v19335_v46 = vld [vmem:[#allocation66_spill] sm:$0xff]  ;;  %v19338_v24 = vld [vmem:[#allocation245_spill] sm:$0xff] }
 0x5b9   : > { %10588 = vst [vmem:[%s12285_s16 + $0x80] sm:$0xff] %v10220_v53  ;;  %10589 = vst [vmem:[%s12285_s16 + $0x88] sm:$0xff] %v10221_v58  ;;  %v9594_v48 = vmul.f32 %v9289_v31, %v19330_v2  ;;  %v10237_v6 = vrot.slane %v10230_v27, %v12926_v60  ;;  %v9721_v63 = vadd.f32 %v9593_v47, %v9465_v42  ;;  %v19336_v53 = vld [vmem:[#allocation248_spill] sm:$0xff]  ;;  %v19339_v42 = vld [vmem:[#allocation249_spill] sm:$0xff] }
 0x5ba   : > { %v9291_v15 = vpop.permute.xlu1 %9290  ;;  %v9471_v25 = vmul.f32 %v19335_v46, %v19334_v37  ;;  %v19340_v27 = vld [vmem:[#allocation242_spill] sm:$0xff]  ;;  %v19347_v46 = vld [vmem:[#allocation252_spill] sm:$0xff] }
 0x5bb   : > { %v9595_v59 = vmul.f32 %v9291_v15, %v19331_v55  ;;  %v9722_v3 = vadd.f32 %v9594_v48, %v9466_v56  ;;  %v19337_v56 = vld [vmem:[#allocation217_spill] sm:$0xff]  ;;  %v10254_v29 = vcombine.low %v10229_v0, %v10237_v6  ;;  %v9468_v47 = vmul.f32 %v19341_v14, %v19340_v27  ;;  %v19343_v48 = vld [vmem:[#allocation247_spill] sm:$0xff] }
 0x5bc   : > { %v9293_v54 = vpop.permute.xlu0 %9292  ;;  %v9470_v58 = vmul.f32 %v19337_v56, %v19336_v53 }
 0x5bd   : > { %v9723_v23 = vadd.f32 %v9595_v59, %v9467_v19  ;;  %v10238_v51 = vcombine.low %v9720_v30, %v9722_v3  ;;  %v9596_v5 = vmul.f32 %v9293_v54, %v19342_v44  ;;  %v10261_v59 = vrot.slane %v10254_v29, %v12929_v61  ;;  %v19345_v54 = vld [vmem:[#allocation168_spill] sm:$0xff]  ;;  %v19350_v29 = vld [vmem:[#allocation255_spill] sm:$0xff] }
 0x5be   : > { %v9295_v45 = vpop.permute.xlu1 %9294 }
 0x5bf   : > { %v10246_v21 = vcombine.low %v9721_v63, %v9723_v23  ;;  %v10245_v36 = vrot.slane %v10238_v51, %v12926_v60  ;;  %v9597_v38 = vmul.f32 %v9295_v45, %v19338_v24  ;;  %v9724_v63 = vadd.f32 %v9596_v5, %v9468_v47  ;;  %v19344_v51 = vld [vmem:[#allocation251_spill] sm:$0xff]  ;;  %v19351_v24 = vld [vmem:[#allocation170_spill] sm:$0xff]  ;;  %v19354_v47 = vld [vmem:[#allocation256_spill] sm:$0xff] }
 0x5c0   : > { %v9297_v57 = vpop.permute.xlu0 %9296  ;;  %v9472_v45 = vmul.f32 %v17083_v10, %v19344_v51  ;;  %v19357_v51 = vld [vmem:[#allocation259_spill] sm:$0xff] }
 0x5c1   : > { %v10253_v16 = vrot.slane %v10246_v21, %v12926_v60  ;;  %v9598_v31 = vmul.f32 %v9297_v57, %v19339_v42  ;;  %v9725_v0 = vadd.f32 %v9597_v38, %v9469_v62  ;;  %v19346_v21 = vld [vmem:[#allocation118_spill] sm:$0xff]  ;;  %v19349_v62 = vld [vmem:[#allocation73_spill] sm:$0xff]  ;;  %v19352_v38 = vld [vmem:[#allocation79_spill] sm:$0xff] }
 0x5c2   : > { %v9299_v19 = vpop.permute.xlu1 %9298  ;;  %v19348_v57 = vld [vmem:[#allocation254_spill] sm:$0xff]  ;;  %v9475_v10 = vmul.f32 %v19352_v38, %v19351_v24  ;;  %v19353_v42 = vld [vmem:[#allocation257_spill] sm:$0xff] }
 0x5c3   : > { %v10262_v2 = vcombine.low %v10245_v36, %v10253_v16  ;;  %v9599_v15 = vmul.f32 %v9299_v19, %v19343_v48  ;;  %v9726_v30 = vadd.f32 %v9598_v31, %v9470_v58  ;;  %v9474_v36 = vmul.f32 %v19346_v21, %v19345_v54  ;;  %v19358_v54 = vld [vmem:[#allocation264_spill] sm:$0xff]  ;;  %v19359_v21 = vld [vmem:[#allocation65_spill] sm:$0xff] }
 0x5c4   : > { %v9301_v55 = vpop.permute.xlu0 %9300 }
 0x5c5   : > { %v10269_v3 = vrot.slane %v10262_v2, %v12929_v61  ;;  %v9727_v6 = vadd.f32 %v9599_v15, %v9471_v25  ;;  %v9600_v53 = vmul.f32 %v9301_v55, %v19347_v46  ;;  %v10272_v56 = vcombine.low %v9724_v63, %v9726_v30 }
 0x5c6   : > { %v9303_v23 = vpop.permute.xlu1 %9302  ;;  %v9473_v25 = vmul.f32 %v19349_v62, %v19348_v57  ;;  %v19363_v62 = vld [vmem:[#allocation262_spill] sm:$0xff] }
 0x5c7   : > { %v10270_v50 = vcombine.low %v10261_v59, %v10269_v3  ;;  %v10271_v13 = vcombine.high %v10261_v59, %v10269_v3  ;;  %v10280_v37 = vcombine.low %v9725_v0, %v9727_v6  ;;  %v9601_v16 = vmul.f32 %v9303_v23, %v19350_v29  ;;  %v19355_v3 = vld [vmem:[#allocation258_spill] sm:$0xff]  ;;  %v19364_v29 = vld [vmem:[#allocation265_spill] sm:$0xff] }
 0x5c8   : > { %v9305_v58 = vpop.permute.xlu0 %9304  ;;  %v9728_v14 = vadd.f32 %v9600_v53, %v9472_v45  ;;  %v10279_v2 = vrot.slane %v10272_v56, %v12926_v60  ;;  %v19356_v0 = vld [vmem:[#allocation230_spill] sm:$0xff] }
 0x5c9   : > { %10590 = vst [vmem:[%s12285_s16 + $0x90] sm:$0xff] %v10270_v50  ;;  %10591 = vst [vmem:[%s12285_s16 + $0x98] sm:$0xff] %v10271_v13  ;;  %v9602_v31 = vmul.f32 %v9305_v58, %v19353_v42  ;;  %v10287_v19 = vrot.slane %v10280_v37, %v12926_v60  ;;  %v9729_v15 = vadd.f32 %v9601_v16, %v9473_v25  ;;  %v19360_v13 = vld [vmem:[#allocation260_spill] sm:$0xff]  ;;  %v19361_v37 = vld [vmem:[#allocation82_spill] sm:$0xff] }
 0x5ca   : > { %v9307_v27 = vpop.permute.xlu1 %9306  ;;  %v9476_v6 = vmul.f32 %v19356_v0, %v19355_v3  ;;  %v9477_v46 = vmul.f32 %v19361_v37, %v19360_v13  ;;  %v19362_v58 = vld [vmem:[#allocation261_spill] sm:$0xff]  ;;  %v9479_v25 = vmul.f32 %v17178_v9, %v19363_v62  ;;  %v19365_v42 = vld [vmem:[#allocation263_spill] sm:$0xff]  ;;  %v19366_v9 = vld [vmem:[#allocation266_spill] sm:$0xff] }
 0x5cb   : > { %v9603_v44 = vmul.f32 %v9307_v27, %v19354_v47  ;;  %v9730_v5 = vadd.f32 %v9602_v31, %v9474_v36  ;;  %v9478_v36 = vmul.f32 %v19359_v21, %v19358_v54  ;;  %v10304_v50 = vcombine.low %v10279_v2, %v10287_v19  ;;  %v19369_v3 = vld [vmem:[#allocation76_spill] sm:$0xff]  ;;  %v19371_v54 = vld [vmem:[#allocation227_spill] sm:$0xff]  ;;  %v19372_v13 = vld [vmem:[#allocation269_spill] sm:$0xff] }
 0x5cc   : > { %v9309_v48 = vpop.permute.xlu0 %9308  ;;  %v19373_v37 = vld [vmem:[#allocation270_spill] sm:$0xff] }
 0x5cd   : > { %v9731_v30 = vadd.f32 %v9603_v44, %v9475_v10  ;;  %v10288_v55 = vcombine.low %v9728_v14, %v9730_v5  ;;  %v9604_v45 = vmul.f32 %v9309_v48, %v19357_v51  ;;  %v10311_v14 = vrot.slane %v10304_v50, %v12929_v61 }
 0x5ce   : > { %v9311_v59 = vpop.permute.xlu1 %9310 }
 0x5cf   : > { %v10296_v63 = vcombine.low %v9729_v15, %v9731_v30  ;;  %v10295_v23 = vrot.slane %v10288_v55, %v12926_v60  ;;  %v9605_v57 = vmul.f32 %v9311_v59, %v19362_v58  ;;  %v9732_v10 = vadd.f32 %v9604_v45, %v9476_v6  ;;  %v19367_v30 = vld [vmem:[#allocation268_spill] sm:$0xff]  ;;  %v19368_v59 = vld [vmem:[#allocation271_spill] sm:$0xff] }
 0x5d0   : > { %v9313_v53 = vpop.permute.xlu0 %9312  ;;  %v9480_v15 = vmul.f32 %v17170_v7, %v19366_v9  ;;  %v9482_v0 = vmul.f32 %v19369_v3, %v19368_v59  ;;  %v19370_v45 = vld [vmem:[#allocation267_spill] sm:$0xff]  ;;  %v19381_v59 = vld [vmem:[#allocation281_spill] sm:$0xff] }
 0x5d1   : > { %v10303_v56 = vrot.slane %v10296_v63, %v12926_v60  ;;  %v9606_v16 = vmul.f32 %v9313_v53, %v19364_v29  ;;  %v9733_v5 = vadd.f32 %v9605_v57, %v9477_v46  ;;  %v9481_v21 = vmul.f32 %v19371_v54, %v19370_v45  ;;  %v19374_v53 = vld [vmem:[#allocation272_spill] sm:$0xff]  ;;  %v19380_v9 = vld [vmem:[#allocation87_spill] sm:$0xff] }
 0x5d2   : > { %v9315_v24 = vpop.permute.xlu1 %9314  ;;  %v9483_v46 = vmul.f32 %v17213_v1, %v19373_v37  ;;  %v19377_v1 = vld [vmem:[#allocation279_spill] sm:$0xff] }
 0x5d3   : > { %v10312_v38 = vcombine.low %v10295_v23, %v10303_v56  ;;  %v9607_v31 = vmul.f32 %v9315_v24, %v19365_v42  ;;  %v9734_v27 = vadd.f32 %v9606_v16, %v9478_v36 }
 0x5d4   : > { %v9317_v47 = vpop.permute.xlu0 %9316 }
 0x5d5   : > { %v10319_v44 = vrot.slane %v10312_v38, %v12929_v61  ;;  %v9735_v19 = vadd.f32 %v9607_v31, %v9479_v25  ;;  %v10322_v2 = vcombine.low %v9732_v10, %v9734_v27  ;;  %v9608_v55 = vmul.f32 %v9317_v47, %v19367_v30  ;;  %v19375_v25 = vld [vmem:[#allocation273_spill] sm:$0xff]  ;;  %v19376_v27 = vld [vmem:[#allocation276_spill] sm:$0xff] }
 0x5d6   : > { %v9319_v48 = vpop.permute.xlu1 %9318 }
 0x5d7   : > { %v10320_v6 = vcombine.low %v10311_v14, %v10319_v44  ;;  %v10321_v63 = vcombine.high %v10311_v14, %v10319_v44  ;;  %v10330_v23 = vcombine.low %v9733_v5, %v9735_v19  ;;  %v10329_v51 = vrot.slane %v10322_v2, %v12926_v60  ;;  %v19378_v19 = vld [vmem:[#allocation283_spill] sm:$0xff] }
 0x5d8   : > { %v9321_v36 = vpop.permute.xlu0 %9320  ;;  %v9609_v7 = vmul.f32 %v9319_v48, %v19372_v13  ;;  %v9736_v62 = vadd.f32 %v9608_v55, %v9480_v15  ;;  %v9484_v14 = vmul.f32 %v17220_v43, %v19376_v27  ;;  %v9486_v2 = vmul.f32 %v17235_v52, %v19378_v19  ;;  %v19379_v48 = vld [vmem:[#allocation278_spill] sm:$0xff]  ;;  %v19384_v43 = vld [vmem:[#allocation285_spill] sm:$0xff] }
 0x5d9   : > { %10592 = vst [vmem:[%s12285_s16 + $0xa0] sm:$0xff] %v10320_v6  ;;  %10593 = vst [vmem:[%s12285_s16 + $0xa8] sm:$0xff] %v10321_v63  ;;  %v10337_v50 = vrot.slane %v10330_v23, %v12926_v60  ;;  %v9610_v56 = vmul.f32 %v9321_v36, %v19374_v53  ;;  %v9485_v15 = vmul.f32 %v19380_v9, %v19379_v48  ;;  %v19383_v6 = vld [vmem:[#allocation235_spill] sm:$0xff]  ;;  %v19393_v19 = vld [vmem:[#allocation293_spill] sm:$0xff] }
 0x5da   : > { %v9323_v58 = vpop.permute.xlu1 %9322  ;;  %v9737_v38 = vadd.f32 %v9609_v7, %v9481_v21  ;;  %v19385_v21 = vld [vmem:[#allocation284_spill] sm:$0xff]  ;;  %v19394_v48 = vld [vmem:[#allocation291_spill] sm:$0xff] }
 0x5db   : > { %v10354_v57 = vcombine.low %v10329_v51, %v10337_v50  ;;  %v9611_v29 = vmul.f32 %v9323_v58, %v19375_v25  ;;  %v9738_v16 = vadd.f32 %v9610_v56, %v9482_v0  ;;  %v19382_v0 = vld [vmem:[#allocation282_spill] sm:$0xff]  ;;  %v19386_v58 = vld [vmem:[#allocation287_spill] sm:$0xff]  ;;  %v19395_v9 = vld [vmem:[#allocation84_spill] sm:$0xff] }
 0x5dc   : > { %v9325_v24 = vpop.permute.xlu0 %9324  ;;  %v9487_v63 = vmul.f32 %v19383_v6, %v19382_v0  ;;  %v19397_v6 = vld [vmem:[#allocation183_spill] sm:$0xff] }
 0x5dd   : > { %v9739_v10 = vadd.f32 %v9611_v29, %v9483_v46  ;;  %v10338_v42 = vcombine.low %v9736_v62, %v9738_v16  ;;  %v9612_v5 = vmul.f32 %v9325_v24, %v19377_v1  ;;  %v10361_v52 = vrot.slane %v10354_v57, %v12929_v61  ;;  %v19387_v62 = vld [vmem:[#allocation88_spill] sm:$0xff]  ;;  %v19388_v29 = vld [vmem:[#allocation169_spill] sm:$0xff] }
 0x5de   : > { %v9327_v31 = vpop.permute.xlu1 %9326  ;;  %v9488_v25 = vmul.f32 %v19387_v62, %v19386_v58  ;;  %v19389_v24 = vld [vmem:[#allocation292_spill] sm:$0xff]  ;;  %v19402_v58 = vld [vmem:[#allocation298_spill] sm:$0xff]  ;;  %v19403_v62 = vld [vmem:[#allocation237_spill] sm:$0xff] }
 0x5df   : > { %v10346_v47 = vcombine.low %v9737_v38, %v9739_v10  ;;  %v10345_v44 = vrot.slane %v10338_v42, %v12926_v60  ;;  %v9613_v3 = vmul.f32 %v9327_v31, %v19381_v59  ;;  %v9740_v54 = vadd.f32 %v9612_v5, %v9484_v14  ;;  %v19390_v38 = vld [vmem:[#allocation80_spill] sm:$0xff]  ;;  %v19391_v14 = vld [vmem:[#allocation290_spill] sm:$0xff] }
 0x5e0   : > { %v9329_v30 = vpop.permute.xlu0 %9328  ;;  %v9490_v10 = vmul.f32 %v19390_v38, %v19389_v24  ;;  %v19404_v24 = vld [vmem:[#allocation41_spill] sm:$0xff] }
 0x5e1   : > { %v10353_v55 = vrot.slane %v10346_v47, %v12926_v60  ;;  %v9614_v23 = vmul.f32 %v9329_v30, %v19384_v43  ;;  %v9741_v37 = vadd.f32 %v9613_v3, %v9485_v15  ;;  %v19392_v47 = vld [vmem:[#allocation131_spill] sm:$0xff]  ;;  %v9491_v15 = vmul.f32 %v19395_v9, %v19394_v48  ;;  %v19396_v30 = vld [vmem:[#allocation294_spill] sm:$0xff] }
 0x5e2   : > { %v9331_v51 = vpop.permute.xlu1 %9330 }
 0x5e3   : > { %v10362_v45 = vcombine.low %v10345_v44, %v10353_v55  ;;  %v9615_v36 = vmul.f32 %v9331_v51, %v19385_v21  ;;  %v9742_v50 = vadd.f32 %v9614_v23, %v9486_v2  ;;  %v9489_v44 = vmul.f32 %v19392_v47, %v19391_v14 }
 0x5e4   : > { %v9333_v13 = vpop.permute.xlu0 %9332 }
 0x5e5   : > { %v10369_v7 = vrot.slane %v10362_v45, %v12929_v61  ;;  %v9743_v46 = vadd.f32 %v9615_v36, %v9487_v63  ;;  %v10372_v53 = vcombine.low %v9740_v54, %v9742_v50  ;;  %v9616_v16 = vmul.f32 %v9333_v13, %v19388_v29  ;;  %v19398_v36 = vld [vmem:[#allocation295_spill] sm:$0xff]  ;;  %v19399_v50 = vld [vmem:[#allocation94_spill] sm:$0xff] }
 0x5e6   : > { %v9335_v56 = vpop.permute.xlu1 %9334 }
 0x5e7   : > { %v10370_v42 = vcombine.low %v10361_v52, %v10369_v7  ;;  %v10371_v31 = vcombine.high %v10361_v52, %v10369_v7  ;;  %v10380_v57 = vcombine.low %v9741_v37, %v9743_v46  ;;  %v10379_v27 = vrot.slane %v10372_v53, %v12926_v60  ;;  %v19400_v37 = vld [vmem:[#allocation299_spill] sm:$0xff]  ;;  %v19401_v53 = vld [vmem:[#allocation302_spill] sm:$0xff] }
 0x5e8   : > { %v9337_v1 = vpop.permute.xlu0 %9336  ;;  %v9617_v2 = vmul.f32 %v9335_v56, %v19393_v19  ;;  %v9744_v0 = vadd.f32 %v9616_v16, %v9488_v25  ;;  %v9492_v52 = vmul.f32 %v19399_v50, %v19398_v36  ;;  %v9494_v56 = vmul.f32 %v17317_v4, %v19401_v53  ;;  %v19413_v36 = vld [vmem:[#allocation307_spill] sm:$0xff] }
 0x5e9   : > { %10594 = vst [vmem:[%s12285_s16 + $0xb0] sm:$0xff] %v10370_v42  ;;  %10595 = vst [vmem:[%s12285_s16 + $0xb8] sm:$0xff] %v10371_v31  ;;  %v10387_v5 = vrot.slane %v10380_v57, %v12926_v60  ;;  %v9618_v55 = vmul.f32 %v9337_v1, %v19396_v30  ;;  %v9493_v25 = vmul.f32 %v19403_v62, %v19402_v58  ;;  %v19406_v42 = vld [vmem:[#allocation97_spill] sm:$0xff]  ;;  %v19407_v57 = vld [vmem:[#allocation42_spill] sm:$0xff] }
 0x5ea   : > { %v9339_v59 = vpop.permute.xlu1 %9338  ;;  %v9745_v51 = vadd.f32 %v9617_v2, %v9489_v44  ;;  %v19408_v1 = vld [vmem:[#allocation301_spill] sm:$0xff]  ;;  %v9497_v50 = vmul.f32 %v17355_v35, %v19413_v36 }
 0x5eb   : > { %v10404_v3 = vcombine.low %v10379_v27, %v10387_v5  ;;  %v9619_v63 = vmul.f32 %v9339_v59, %v19397_v6  ;;  %v9746_v43 = vadd.f32 %v9618_v55, %v9490_v10  ;;  %v19405_v10 = vld [vmem:[#allocation300_spill] sm:$0xff]  ;;  %v19409_v59 = vld [vmem:[#allocation303_spill] sm:$0xff] }
 0x5ec   : > { %v9341_v23 = vpop.permute.xlu0 %9340  ;;  %v9495_v31 = vmul.f32 %v19406_v42, %v19405_v10 }
 0x5ed   : > { %v9747_v45 = vadd.f32 %v9619_v63, %v9491_v15  ;;  %v10388_v54 = vcombine.low %v9744_v0, %v9746_v43  ;;  %v9620_v46 = vmul.f32 %v9341_v23, %v19400_v37  ;;  %v10411_v4 = vrot.slane %v10404_v3, %v12929_v61  ;;  %v19410_v0 = vld [vmem:[#allocation86_spill] sm:$0xff]  ;;  %v19411_v63 = vld [vmem:[#allocation304_spill] sm:$0xff]  ;;  %v19412_v23 = vld [vmem:[#allocation63_spill] sm:$0xff] }
 0x5ee   : > { %v9343_v21 = vpop.permute.xlu1 %9342  ;;  %v9496_v6 = vmul.f32 %v19410_v0, %v19409_v59  ;;  %v19425_v59 = vld [vmem:[#allocation317_spill] sm:$0xff] }
 0x5ef   : > { %v10396_v13 = vcombine.low %v9745_v51, %v9747_v45  ;;  %v10395_v7 = vrot.slane %v10388_v54, %v12926_v60  ;;  %v9621_v38 = vmul.f32 %v9343_v21, %v19404_v24  ;;  %v9748_v44 = vadd.f32 %v9620_v46, %v9492_v52  ;;  %v19415_v46 = vld [vmem:[#allocation190_spill] sm:$0xff] }
 0x5f0   : > { %v9345_v29 = vpop.permute.xlu0 %9344  ;;  %v9498_v51 = vmul.f32 %v17339_v39, %v19412_v23  ;;  %v9499_v53 = vmul.f32 %v17362_v40, %v19415_v46  ;;  %v19420_v40 = vld [vmem:[#allocation313_spill] sm:$0xff]  ;;  %v9503_v0 = vmul.f32 %v17401_v41, %v19425_v59  ;;  %v19428_v41 = vld [vmem:[#allocation322_spill] sm:$0xff]  ;;  %v19429_v46 = vld [vmem:[#allocation323_spill] sm:$0xff] }
 0x5f1   : > { %v10403_v16 = vrot.slane %v10396_v13, %v12926_v60  ;;  %v9622_v27 = vmul.f32 %v9345_v29, %v19407_v57  ;;  %v9749_v9 = vadd.f32 %v9621_v38, %v9493_v25  ;;  %v19417_v29 = vld [vmem:[#allocation309_spill] sm:$0xff] }
 0x5f2   : > { %v9347_v14 = vpop.permute.xlu1 %9346  ;;  %v19418_v57 = vld [vmem:[#allocation189_spill] sm:$0xff] }
 0x5f3   : > { %v10412_v47 = vcombine.low %v10395_v7, %v10403_v16  ;;  %v9623_v5 = vmul.f32 %v9347_v14, %v19408_v1  ;;  %v9750_v19 = vadd.f32 %v9622_v27, %v9494_v56  ;;  %v19414_v7 = vld [vmem:[#allocation308_spill] sm:$0xff]  ;;  %v19416_v56 = vld [vmem:[#allocation310_spill] sm:$0xff]  ;;  %v19419_v27 = vld [vmem:[#allocation233_spill] sm:$0xff] }
 0x5f4   : > { %v9349_v2 = vpop.permute.xlu0 %9348  ;;  %v9500_v14 = vmul.f32 %v19419_v27, %v19418_v57  ;;  %v19434_v57 = vld [vmem:[#allocation204_spill] sm:$0xff]  ;;  %v19438_v59 = vld [vmem:[#allocation333_spill] sm:$0xff] }
 0x5f5   : > { %v10419_v48 = vrot.slane %v10412_v47, %v12929_v61  ;;  %v9751_v15 = vadd.f32 %v9623_v5, %v9495_v31  ;;  %v10422_v30 = vcombine.low %v9748_v44, %v9750_v19  ;;  %v9624_v43 = vmul.f32 %v9349_v2, %v19411_v63  ;;  %v19421_v5 = vld [vmem:[#allocation319_spill] sm:$0xff]  ;;  %v19423_v2 = vld [vmem:[#allocation89_spill] sm:$0xff] }
 0x5f6   : > { %v9351_v55 = vpop.permute.xlu1 %9350  ;;  %v9502_v19 = vmul.f32 %v17380_v34, %v19421_v5 }
 0x5f7   : > { %v10420_v45 = vcombine.low %v10411_v4, %v10419_v48  ;;  %v10421_v54 = vcombine.high %v10411_v4, %v10419_v48  ;;  %v10430_v3 = vcombine.low %v9749_v9, %v9751_v15  ;;  %v10429_v21 = vrot.slane %v10422_v30, %v12926_v60  ;;  %v19422_v4 = vld [vmem:[#allocation312_spill] sm:$0xff]  ;;  %v19424_v30 = vld [vmem:[#allocation71_spill] sm:$0xff] }
 0x5f8   : > { %v9353_v52 = vpop.permute.xlu0 %9352  ;;  %v9625_v37 = vmul.f32 %v9351_v55, %v19414_v7  ;;  %v9752_v25 = vadd.f32 %v9624_v43, %v9496_v6  ;;  %v9501_v48 = vmul.f32 %v19423_v2, %v19422_v4  ;;  %v19426_v6 = vld [vmem:[#allocation320_spill] sm:$0xff] }
 0x5f9   : > { %10596 = vst [vmem:[%s12285_s16 + $0xc0] sm:$0xff] %v10420_v45  ;;  %10597 = vst [vmem:[%s12285_s16 + $0xc8] sm:$0xff] %v10421_v54  ;;  %v10437_v13 = vrot.slane %v10430_v3, %v12926_v60  ;;  %v9626_v39 = vmul.f32 %v9353_v52, %v19416_v56  ;;  %v19427_v45 = vld [vmem:[#allocation318_spill] sm:$0xff]  ;;  %v19430_v56 = vld [vmem:[#allocation77_spill] sm:$0xff] }
 0x5fa   : > { %v9355_v58 = vpop.permute.xlu1 %9354  ;;  %v9753_v35 = vadd.f32 %v9625_v37, %v9497_v50  ;;  %v9504_v37 = vmul.f32 %v17404_v22, %v19428_v41 }
 0x5fb   : > { %v10454_v62 = vcombine.low %v10429_v21, %v10437_v13  ;;  %v9627_v16 = vmul.f32 %v9355_v58, %v19417_v29  ;;  %v9754_v24 = vadd.f32 %v9626_v39, %v9498_v51  ;;  %v9506_v39 = vmul.f32 %v17420_v28, %v19430_v56 }
 0x5fc   : > { %v9357_v38 = vpop.permute.xlu0 %9356 }
 0x5fd   : > { %v9755_v10 = vadd.f32 %v9627_v16, %v9499_v53  ;;  %v10438_v42 = vcombine.low %v9752_v25, %v9754_v24  ;;  %v9628_v1 = vmul.f32 %v9357_v38, %v19420_v40  ;;  %v10461_v34 = vrot.slane %v10454_v62, %v12929_v61  ;;  %v19431_v16 = vld [vmem:[#allocation325_spill] sm:$0xff] }
 0x5fe   : > { %v9359_v31 = vpop.permute.xlu1 %9358  ;;  %v9505_v24 = vmul.f32 %v17429_v17, %v19431_v16 }
 0x5ff   : > { %v10446_v47 = vcombine.low %v9753_v35, %v9755_v10  ;;  %v10445_v44 = vrot.slane %v10438_v42, %v12926_v60  ;;  %v9629_v55 = vmul.f32 %v9359_v31, %v19424_v30  ;;  %v9756_v51 = vadd.f32 %v9628_v1, %v9500_v14  ;;  %v19432_v10 = vld [vmem:[#allocation326_spill] sm:$0xff]  ;;  %v19433_v42 = vld [vmem:[#allocation203_spill] sm:$0xff] }
 0x600   : > { %v9361_v9 = vpop.permute.xlu0 %9360  ;;  %v9507_v31 = vmul.f32 %v17441_v11, %v19433_v42  ;;  %v19437_v11 = vld [vmem:[#allocation329_spill] sm:$0xff] }
 0x601   : > { %v10453_v15 = vrot.slane %v10446_v47, %v12926_v60  ;;  %v9630_v63 = vmul.f32 %v9361_v9, %v19426_v6  ;;  %v9757_v50 = vadd.f32 %v9629_v55, %v9501_v48  ;;  %v19436_v48 = vld [vmem:[#allocation328_spill] sm:$0xff]  ;;  %v19439_v6 = vld [vmem:[#allocation331_spill] sm:$0xff] }
 0x602   : > { %v9363_v43 = vpop.permute.xlu1 %9362  ;;  %v9508_v9 = vmul.f32 %v17444_v33, %v19436_v48  ;;  %v19442_v33 = vld [vmem:[#allocation113_spill] sm:$0xff] }
 0x603   : > { %v10462_v23 = vcombine.low %v10445_v44, %v10453_v15  ;;  %v9631_v54 = vmul.f32 %v9363_v43, %v19427_v45  ;;  %v9758_v3 = vadd.f32 %v9630_v63, %v9502_v19  ;;  %v19435_v44 = vld [vmem:[#allocation327_spill] sm:$0xff]  ;;  %v9509_v63 = vmul.f32 %v17461_v20, %v19439_v6 }
 0x604   : > { %v9365_v21 = vpop.permute.xlu0 %9364 }
 0x605   : > { %v10469_v36 = vrot.slane %v10462_v23, %v12929_v61  ;;  %v9759_v52 = vadd.f32 %v9631_v54, %v9503_v0  ;;  %v10472_v13 = vcombine.low %v9756_v51, %v9758_v3  ;;  %v9632_v53 = vmul.f32 %v9365_v21, %v19429_v46  ;;  %v19440_v51 = vld [vmem:[#allocation332_spill] sm:$0xff]  ;;  %v19441_v54 = vld [vmem:[#allocation211_spill] sm:$0xff] }
 0x606   : > { %v9367_v7 = vpop.permute.xlu1 %9366  ;;  %v9510_v0 = vmul.f32 %v17464_v8, %v19438_v59  ;;  %v9511_v3 = vmul.f32 %v17475_v12, %v19441_v54  ;;  %v19444_v12 = vld [vmem:[#allocation336_spill] sm:$0xff] }
 0x607   : > { %v10470_v58 = vcombine.low %v10461_v34, %v10469_v36  ;;  %v10471_v25 = vcombine.high %v10461_v34, %v10469_v36  ;;  %v10480_v62 = vcombine.low %v9757_v50, %v9759_v52  ;;  %v10479_v29 = vrot.slane %v10472_v13, %v12926_v60  ;;  %v19443_v52 = vld [vmem:[#allocation214_spill] sm:$0xff] }
 0x608   : > { %v9369_v38 = vpop.permute.xlu0 %9368  ;;  %v9633_v22 = vmul.f32 %v9367_v7, %v19432_v10  ;;  %v9760_v47 = vadd.f32 %v9632_v53, %v9504_v37  ;;  %v19447_v10 = vld [vmem:[#allocation338_spill] sm:$0xff] }
 0x609   : > { %10598 = vst [vmem:[%s12285_s16 + $0xd0] sm:$0xff] %v10470_v58  ;;  %10599 = vst [vmem:[%s12285_s16 + $0xd8] sm:$0xff] %v10471_v25  ;;  %v10487_v35 = vrot.slane %v10480_v62, %v12926_v60  ;;  %v9634_v28 = vmul.f32 %v9369_v38, %v19434_v57  ;;  %v19445_v58 = vld [vmem:[#allocation39_spill] sm:$0xff]  ;;  %v19446_v62 = vld [vmem:[#allocation340_spill] sm:$0xff] }
 0x60a   : > { %v9371_v27 = vpop.permute.xlu1 %9370  ;;  %v9761_v17 = vadd.f32 %v9633_v22, %v9505_v24  ;;  %v9513_v22 = vmul.f32 %v17492_v18, %v19447_v10  ;;  %v19448_v57 = vld [vmem:[#allocation219_spill] sm:$0xff] }
 0x60b   : > { %v10504_v14 = vcombine.low %v10479_v29, %v10487_v35  ;;  %v9635_v40 = vmul.f32 %v9371_v27, %v19435_v44  ;;  %v9762_v1 = vadd.f32 %v9634_v28, %v9506_v39  ;;  %v9512_v39 = vmul.f32 %v17481_v32, %v19444_v12  ;;  %v19449_v28 = vld [vmem:[#allocation339_spill] sm:$0xff] }
 0x60c   : > { %v9373_v5 = vpop.permute.xlu0 %9372  ;;  %v9514_v29 = vmul.f32 %v17495_v26, %v19446_v62  ;;  %v9515_v27 = vmul.f32 %v17515_v49, %v19449_v28 }
 0x60d   : > { %v9763_v19 = vadd.f32 %v9635_v40, %v9507_v31  ;;  %v10488_v4 = vcombine.low %v9760_v47, %v9762_v1  ;;  %v9636_v55 = vmul.f32 %v9373_v5, %v19437_v11  ;;  %v10511_v8 = vrot.slane %v10504_v14, %v12929_v61  ;;  %v19450_v14 = vld [vmem:[#allocation341_spill] sm:$0xff]  ;;  %v19451_v1 = vld [vmem:[#allocation342_spill] sm:$0xff] }
 0x60e   : > { %v9375_v2 = vpop.permute.xlu1 %9374 }
 0x60f   : > { %v10496_v15 = vcombine.low %v9761_v17, %v9763_v19  ;;  %v10495_v30 = vrot.slane %v10488_v4, %v12926_v60  ;;  %v9637_v45 = vmul.f32 %v9375_v2, %v19440_v51  ;;  %v9764_v50 = vadd.f32 %v9636_v55, %v9508_v9 }
 0x610   : > { %v9377_v43 = vpop.permute.xlu0 %9376 }
 0x611   : > { %v10503_v23 = vrot.slane %v10496_v15, %v12926_v60  ;;  %v9638_v34 = vmul.f32 %v9377_v43, %v19442_v33  ;;  %v9765_v37 = vadd.f32 %v9637_v45, %v9509_v63 }
 0x612   : > { %v9379_v21 = vpop.permute.xlu1 %9378 }
 0x613   : > { %v10512_v36 = vcombine.low %v10495_v30, %v10503_v23  ;;  %v9639_v13 = vmul.f32 %v9379_v21, %v19443_v52  ;;  %v9766_v7 = vadd.f32 %v9638_v34, %v9510_v0 }
 0x614   : > { %v9381_v20 = vpop.permute.xlu0 %9380 }
 0x615   : > { %v10519_v41 = vrot.slane %v10512_v36, %v12929_v61  ;;  %v9767_v46 = vadd.f32 %v9639_v13, %v9511_v3  ;;  %v10522_v53 = vcombine.low %v9764_v50, %v9766_v7  ;;  %v9640_v25 = vmul.f32 %v9381_v20, %v19445_v58 }
 0x616   : > { %v9383_v56 = vpop.permute.xlu1 %9382 }
 0x617   : > { %v10520_v16 = vcombine.low %v10511_v8, %v10519_v41  ;;  %v10521_v24 = vcombine.high %v10511_v8, %v10519_v41  ;;  %v10530_v38 = vcombine.low %v9765_v37, %v9767_v46  ;;  %v10529_v35 = vrot.slane %v10522_v53, %v12926_v60 }
 0x618   : > { %v9385_v42 = vpop.permute.xlu0 %9384  ;;  %v9641_v32 = vmul.f32 %v9383_v56, %v19448_v57  ;;  %v9768_v40 = vadd.f32 %v9640_v25, %v9512_v39 }
 0x619   : > { %10600 = vst [vmem:[%s12285_s16 + $0xe0] sm:$0xff] %v10520_v16  ;;  %10601 = vst [vmem:[%s12285_s16 + $0xe8] sm:$0xff] %v10521_v24  ;;  %v10537_v31 = vrot.slane %v10530_v38, %v12926_v60  ;;  %v9642_v26 = vmul.f32 %v9385_v42, %v19450_v14 }
 0x61a   : > { %v9387_v47 = vpop.permute.xlu1 %9386  ;;  %v9769_v17 = vadd.f32 %v9641_v32, %v9513_v22 }
 0x61b   : > { %v10554_v44 = vcombine.low %v10529_v35, %v10537_v31  ;;  %v9643_v5 = vmul.f32 %v9387_v47, %v19451_v1  ;;  %v9770_v18 = vadd.f32 %v9642_v26, %v9514_v29 }
 0x61d   : > { %v9771_v19 = vadd.f32 %v9643_v5, %v9515_v27  ;;  %v10538_v4 = vcombine.low %v9768_v40, %v9770_v18  ;;  %v10561_v49 = vrot.slane %v10554_v44, %v12929_v61 }
 0x61f   : > { %v10546_v2 = vcombine.low %v9769_v17, %v9771_v19  ;;  %v10545_v48 = vrot.slane %v10538_v4, %v12926_v60 }
 0x621   : > { %v10553_v9 = vrot.slane %v10546_v2, %v12926_v60 }
 0x623   : > { %v10562_v15 = vcombine.low %v10545_v48, %v10553_v9 }
 0x625   : > { %v10569_v30 = vrot.slane %v10562_v15, %v12929_v61 }
 0x627   : > { %v10570_v11 = vcombine.low %v10561_v49, %v10569_v30  ;;  %v10571_v55 = vcombine.high %v10561_v49, %v10569_v30 }
 0x629   : > { %10602 = vst [vmem:[%s12285_s16 + $0xf0] sm:$0xff] %v10570_v11  ;;  %10603 = vst [vmem:[%s12285_s16 + $0xf8] sm:$0xff] %v10571_v55 }
 0x62a PF: > { %s19452_s24 = sld [smem:[#allocation26_spill]]  ;;  %s19453_s19 = sld [smem:[#allocation35_spill]] }
 0x62b   : > { %s19454_s20 = sld [smem:[#allocation349_spill]]  ;;  %s10678_s8 = sshll.u32 %s12285_s16, 4  ;;  %s17774_s8 = int_to_ptr.vmem [resolvable:$true] %s10678_s8 }
 0x62c   : > { %s19455_s3 = sld [smem:[#allocation350_spill]]  ;;  %s11590_s0 = scalar_lea.vmem %s17774_s8, 4096 }
 0x62d   : > { %p11591_p0 = scmp.ne.s32.totalorder %s17774_s8, %s11590_s0  ;;  %s11828_s30 = smov [#allocation13]  }
 0x62e   : > { %s11594_s18 = sshll.u32 %s11828_s30, 4  ;;  %s11595_s18 = int_to_ptr.vmem [resolvable:$false] %s11594_s18 }
 0x62f   : > { %s11596_s16 = scalar_lea.vmem %s11595_s18, 8192  ;;  %p11597_p7 = scmp.lt.s32.totalorder %s17774_s8, %s11595_s18 }
 0x630   : > { %s10971_s22 = sshll.u32 %s19452_s24, 12  ;;  %p19456_p9 = scmp.ne.s32.totalorder %s19453_s19, 0 }
 0x631   : > { %s17771_s2 = scalar_lea.hbm %s19454_s20, %s10971_s22  ;;  %p11598_p4 = scmp.lt.s32.totalorder %s11596_s16, %s11590_s0 }
 0x632   : > { %s17779_s23 = scalar_lea.hbm %s19455_s3, %s10971_s22  ;;  %p11592_p8 = pnand %p11591_p0, %p19456_p9 }
 0x633   : > { %p11599_p2 = por %p11598_p4, %p11597_p7 }
 0x634   : > { %p11593_p11 = pneg %p11592_p8 }
 0x636   : > { %p11600_p10 = pnand %p11599_p2, %p11593_p11 }
 0x638   : > { %11603 = shalt.err (!%p11600_p10)
}
 0x639   : > { %s11604_s22 = scalar_lea.hbm %s17771_s2, 4096  ;;  %s11608_s30 = scalar_lea.hbm %s19454_s20, 16384 }
 0x63a   : > { %p11605_p12 = scmp.ne.s32.totalorder %s17771_s2, %s11604_s22  ;;  %p11609_p5 = scmp.lt.u32.totalorder %s17771_s2, %s19454_s20 }
 0x63b   : > { %p11610_p1 = scmp.lt.u32.totalorder %s11608_s30, %s11604_s22  ;;  %p11612_p0 = scmp.lt.u32.totalorder %s11604_s22, %s17771_s2 }
 0x63c   : > { %p11606_p3 = pnand %p11605_p12, %p19456_p9 }
 0x63d   : > { %p11611_p6 = por %p11610_p1, %p11609_p5 }
 0x63e   : > { %p11607_p13 = pneg %p11606_p3 }
 0x63f   : > { %p11613_p8 = por %p11612_p0, %p11611_p6 }
 0x641   : > { %p11614_p11 = pnand %p11613_p8, %p11607_p13 }
 0x643   : > { %11617 = shalt.err (!%p11614_p11)
}
 0x644   : > { %s11829_s0 = smov 256   ;;  %s11830_s16 = smov 16  }
 0x645   : > { %s19457_s6 = scalar_lea.sflag [#allocation14], %s12254_s7  ;;  %s10969_s22 = sshll.u32 %s19452_s24, 13 }
 0x646   : > { %11243 = dma.vmem_to_hbm [thread:$0]  (%p19456_p9), %s17774_s8, 4096, %s17771_s2, %s19457_s6, %s11829_s0, %s11829_s0, %s11830_s16  }
 0x647   : > { %s19458_s30 = sld [smem:[#allocation348_spill]]  ;;  %s10661_s4 = sshll.u32 %s12283_s5, 4  ;;  %s17815_s4 = int_to_ptr.vmem [resolvable:$true] %s10661_s4 }
 0x648   : > { %s10695_s20 = sshll.u32 %s12287_s25, 4  ;;  %s10637_s13 = scalar_lea.sflag [#allocation5], %s12269_s10  ;;  %s17844_s20 = int_to_ptr.vmem [resolvable:$true] %s10695_s20 }
 0x649   : > { %s11618_s12 = scalar_lea.vmem %s17815_s4, 8192  ;;  %s11831_s2 = smov [#allocation12]  }
 0x64a   : > { %p11619_p7 = scmp.ne.s32.totalorder %s17815_s4, %s11618_s12  ;;  %s11622_s24 = sshll.u32 %s11831_s2, 4  ;;  %s11623_s24 = int_to_ptr.vmem [resolvable:$false] %s11622_s24 }
 0x64b   : > { %s11624_s8 = scalar_lea.vmem %s11623_s24, 16384  ;;  %p11625_p10 = scmp.lt.s32.totalorder %s17815_s4, %s11623_s24 }
 0x64c   : > { %p11620_p4 = pnand %p11619_p7, %p19456_p9  ;;  %p11626_p12 = scmp.lt.s32.totalorder %s11624_s8, %s11618_s12 }
 0x64d   : > { %s19459_s18 = smov %s19458_s30  ;;  %s17812_s1 = scalar_lea.hbm %s19458_s30, %s10969_s22 }
 0x64e   : > { %p11621_p2 = pneg %p11620_p4  ;;  %p11627_p3 = por %p11626_p12, %p11625_p10 }
 0x650   : > { %p11628_p13 = pnand %p11627_p3, %p11621_p2 }
 0x652   : > { %11631 = shalt.err (!%p11628_p13)
}
 0x653   : > { %s11632_s5 = scalar_lea.hbm %s17812_s1, 8192  ;;  %s11636_s21 = scalar_lea.hbm %s19459_s18, 32768 }
 0x654   : > { %p11633_p5 = scmp.ne.s32.totalorder %s17812_s1, %s11632_s5  ;;  %p11637_p0 = scmp.lt.u32.totalorder %s17812_s1, %s19459_s18 }
 0x655   : > { %p11638_p8 = scmp.lt.u32.totalorder %s11636_s21, %s11632_s5  ;;  %p11640_p7 = scmp.lt.u32.totalorder %s11632_s5, %s17812_s1 }
 0x656   : > { %p11634_p1 = pnand %p11633_p5, %p19456_p9 }
 0x657   : > { %p11639_p11 = por %p11638_p8, %p11637_p0 }
 0x658   : > { %p11635_p6 = pneg %p11634_p1 }
 0x659   : > { %p11641_p4 = por %p11640_p7, %p11639_p11 }
 0x65b   : > { %p11642_p2 = pnand %p11641_p4, %p11635_p6 }
 0x65d   : > { %11645 = shalt.err (!%p11642_p2)
}
 0x65e   : > { %s11832_s12 = smov 512   ;;  %s11833_s2 = smov 32  }
 0x65f   : > { %11242 = dma.vmem_to_hbm [thread:$0]  (%p19456_p9), %s17815_s4, 8192, %s17812_s1, %s10637_s13, %s11832_s12, %s11832_s12, %s11833_s2  }
 0x660   : > { %s11646_s24 = scalar_lea.vmem %s17844_s20, 4096  ;;  %s11834_s8 = smov [#allocation15]  }
 0x661   : > { %p11647_p10 = scmp.ne.s32.totalorder %s17844_s20, %s11646_s24  ;;  %s11650_s5 = sshll.u32 %s11834_s8, 4  ;;  %s11651_s5 = int_to_ptr.vmem [resolvable:$false] %s11650_s5 }
 0x662   : > { %s11652_s6 = scalar_lea.vmem %s11651_s5, 8192  ;;  %p11653_p13 = scmp.lt.s32.totalorder %s17844_s20, %s11651_s5 }
 0x663   : > { %p11648_p12 = pnand %p11647_p10, %p19456_p9  ;;  %p11654_p5 = scmp.lt.s32.totalorder %s11652_s6, %s11646_s24 }
 0x665   : > { %p11649_p3 = pneg %p11648_p12  ;;  %p11655_p1 = por %p11654_p5, %p11653_p13 }
 0x667   : > { %p11656_p6 = pnand %p11655_p1, %p11649_p3 }
 0x669   : > { %11659 = shalt.err (!%p11656_p6)
}
 0x66a   : > { %s11660_s1 = scalar_lea.hbm %s17779_s23, 4096  ;;  %s11664_s10 = scalar_lea.hbm %s19455_s3, 16384 }
 0x66b   : > { %p11661_p0 = scmp.ne.s32.totalorder %s17779_s23, %s11660_s1  ;;  %p11665_p7 = scmp.lt.u32.totalorder %s17779_s23, %s19455_s3 }
 0x66c   : > { %p11666_p4 = scmp.lt.u32.totalorder %s11664_s10, %s11660_s1  ;;  %p11668_p10 = scmp.lt.u32.totalorder %s11660_s1, %s17779_s23 }
 0x66d   : > { %p11662_p8 = pnand %p11661_p0, %p19456_p9 }
 0x66e   : > { %p11667_p2 = por %p11666_p4, %p11665_p7 }
 0x66f   : > { %p11663_p11 = pneg %p11662_p8 }
 0x670   : > { %p11669_p12 = por %p11668_p10, %p11667_p2 }
 0x672   : > { %p11670_p3 = pnand %p11669_p12, %p11663_p11 }
 0x674   : > { %11673 = shalt.err (!%p11670_p3)
}
 0x675   : > { %s19460_s21 = scalar_lea.sflag [#allocation14], %s12254_s7 }
 0x676   : > { %11244 = dma.vmem_to_hbm [thread:$0]  (%p19456_p9), %s17844_s20, 4096, %s17779_s23, %s19460_s21, %s11829_s0, %s11829_s0, %s11830_s16  }
 0x677 PF: > { %s19461_s11 = sld [smem:[#allocation22_spill]]  ;;  %s19462_s30 = sld [smem:[#allocation33_spill]] }
 0x678   : > { %p11278_p13 = scmp.ge.s32.totalorder %s11808_s14, 2 }
 0x67d   : > { %s10710_s12 = sand.u32 1, %s19461_s11   ;;  %p19463_p5 = scmp.ne.s32.totalorder %s19462_s30, 0 }
 0x67e   : > { %s10711_s2 = scalar_lea.sflag [#allocation5], %s10710_s12 }
 0x67f   : > { %p11266_p1 = pnand %p11278_p13, %p19463_p5 }
 0x681   : > { %11747 = dma.done.wait (!%p11266_p1), %s10711_s2, 8192  }
 0x682   : > { %11749 = vsyncadd (!%p11266_p1), %s10711_s2, 4294959104  ;;  %s19464_s19 = sadd.s32 4294967294, %s11808_s14  }
 0x683   : > { %s10719_s24 = sand.u32 1, %s19464_s19  }
 0x684   : > { %s10720_s8 = scalar_lea.sflag [#allocation14], %s10719_s24 }
 0x685   : > { %11751 = dma.done.wait (!%p11266_p1), %s10720_s8, 8192  }
 0x686   : > { %11753 = vsyncadd (!%p11266_p1), %s10720_s8, 4294959104  ;;  %s33_s14 = sadd.s32 1, %s11808_s14   ;;  %s19466_s24 = sld [smem:[#allocation23_spill]] }
 0x687   : > { %p17879_p9 = scmp.ge.s32.totalorder %s33_s14, 10   ;;  %s19467_s20 = smov %s12174_s27 }
 0x688   : > { %s19468_s30 = sld [smem:[#allocation24_spill]]  ;;  %s19469_s10 = sld [smem:[#allocation27_spill]] }
 0x689   : > { %s19470_s11 = sld [smem:[#allocation28_spill]]  ;;  %s19471_s12 = sld [smem:[#allocation37_spill]] }
 0x68a   : > { %s19472_s13 = sld [smem:[#allocation38_spill]]  ;;  %s19473_s25 = smov %s11764_s26 }
 0x68b   : > { %s19474_s26 = smov %s12114_s15  ;;  %s19475_s27 = smov %s11772_s28 }
 0x68c   : > { %s19476_s28 = smov %s11776_s29  ;;  %s19477_s29 = smov %s19467_s20 }
 0x68d   : > { %s19478_s8 = smov %s11788_s9  ;;  %s19479_s9 = smov %s12117_s17 }
 0x68e   :  { %32 = sbr.rel (!%p17879_p9) target bundleno = 25 (0x19), region = 166 }
 0x695   :  { %10734 = vsyncpa [#allocation4], 1 }
 0x696   :  { %10736 = vsyncpa [#allocation4 + $0x1], 1 }
 0x697   :  { %10737 = vsyncpa [#allocation7], 1 }
 0x698   :  { %10739 = vsyncpa [#allocation7 + $0x1], 1 }
 0x699   :  { %10740 = vsyncpa [#allocation10], 1 }
 0x69a   :  { %10742 = vsyncpa [#allocation10 + $0x1], 1 }
 0x69b   :  { %10743 = vsyncpa [#allocation5], 1 }
 0x69c   :  { %10745 = vsyncpa [#allocation5 + $0x1], 1 }
 0x69d   :  { %10746 = vsyncpa [#allocation14], 1 }
 0x69e   :  { %10748 = vsyncpa [#allocation14 + $0x1], 1 }

</bundles_post_ra>
